<compile_context>
chip_gen: v7x
topology: tpu7x:2x2x1
jax: 0.10.0
libtpu: 0.0.40
codegen_flags: <defaults>
</compile_context>

<pallas_src>
import functools

import jax
import jax.numpy as jnp
from jax import lax
from jax.experimental import pallas as pl
from jax.experimental.pallas import tpu as pltpu


_NEG_PAD = -1e9  # padding similarity -> quad_linear(diff) == 0 for real rows


def _ap_loss_kernel(sim_ref, lab_ref, out_ref, *, sigma, inv_sigma, rho,
                    batch_size):
    s = sim_ref[...]                        # (TQ, BP) f32
    l = lab_ref[...]                        # (TQ, BP) f32, {0, 1}
    tq = s.shape[0]

    # Transposed views built once per grid step (XLU work, non-binding slot).
    s_k = s[:, None, :]                     # (TQ, 1, BP)
    s_j = s[:, :, None]                     # (TQ, BP, 1)
    l_k = l[:, None, :]
    l_j = l[:, :, None]

    # diff[q, j, k] = sim[q, k] - sim[q, j]
    diff = s_k - s_j                        # (TQ, BP, BP)
    gt0 = diff > 0.0

    # quad_linear with a single scale, no divides:
    #   x > 0            -> 2*t + 1
    #   -sigma <= x <= 0 -> (t + 1)^2
    #   else             -> 0                       (t = x / sigma)
    t = diff * inv_sigma
    lin = 2.0 * t + 1.0
    tp1 = t + 1.0
    quad = tp1 * tp1
    ql = jnp.where(gt0, lin, jnp.where(diff >= -sigma, quad, 0.0))

    is_pos = (l_k * l_j) == 1.0             # pos_label_mask == 1
    pos_branch = jnp.where(gt0, rho, 0.0)   # rho * heaviside(diff)

    sim_sl_sg = jnp.where(is_pos, pos_branch, ql)      # un-masked (TQ, BP, BP)
    sim_pos_sg = jnp.where(is_pos, pos_branch, 0.0)

    # Analytic eye-mask removal: diag(sim_sl_sg) == 1 - l, diag(sim_pos_sg) == 0
    # for {0,1} labels, hence masked_sum + 1 == unmasked_sum + l.
    sim_all_rk = jnp.sum(sim_sl_sg, axis=-1) + l        # (TQ, BP)
    sim_pos_rk = jnp.sum(sim_pos_sg, axis=-1) + 1.0     # (TQ, BP)

    pos_divide = jnp.sum(sim_pos_rk / sim_all_rk * l, axis=-1, keepdims=True)
    pos_cnt = jnp.sum(l, axis=-1, keepdims=True)        # (TQ, 1)

    # Zero out padded query rows (pos_cnt == 0 there would give NaN).  Real
    # rows keep reference semantics (NaN if a row truly has no positives).
    row = pl.program_id(0) * tq + lax.broadcasted_iota(jnp.int32, (tq, 1), 0)
    per_q = jnp.where(row < batch_size, pos_divide / pos_cnt, 0.0)  # (TQ, 1)

    out_ref[...] = jnp.broadcast_to(per_q, out_ref.shape)  # lane-dense store


def _choose_tq(bp):
    # Size TQ so the ~6 simultaneously-live (TQ, BP, BP) f32 intermediates stay
    # around 8 MiB (comfortable under the 32 MiB scoped VMEM limit on all gens).
    budget = 8 * 1024 * 1024
    tq = budget // (6 * bp * bp * 4)
    tq = int(min(max(tq, 8), 128))
    return max((tq // 8) * 8, 8)


def quad_linear_ap_loss(sim_matrix, label_matrix, *, sigma, rho, batch_size):
    B = batch_size
    assert sim_matrix.shape == (B, B) and label_matrix.shape == (B, B)

    bp = ((B + 127) // 128) * 128           # lane-dense gallery axis
    tq = _choose_tq(bp)                     # query rows per grid step
    qp = ((B + tq - 1) // tq) * tq          # padded query axis

    sim = jnp.full((qp, bp), _NEG_PAD, dtype=jnp.float32)
    sim = sim.at[:B, :B].set(sim_matrix.astype(jnp.float32))
    lab = jnp.zeros((qp, bp), dtype=jnp.float32)
    lab = lab.at[:B, :B].set(label_matrix.astype(jnp.float32))

    kernel = functools.partial(
        _ap_loss_kernel,
        sigma=float(sigma),
        inv_sigma=1.0 / float(sigma),
        rho=float(rho),
        batch_size=B,
    )

    per_q = pl.pallas_call(
        kernel,
        out_shape=jax.ShapeDtypeStruct((qp, 128), jnp.float32),
        grid_spec=pltpu.PrefetchScalarGridSpec(
            num_scalar_prefetch=0,
            grid=(qp // tq,),
            in_specs=[
                pl.BlockSpec((tq, bp), lambda i: (i, 0)),
                pl.BlockSpec((tq, bp), lambda i: (i, 0)),
            ],
            out_specs=pl.BlockSpec((tq, 128), lambda i: (i, 0)),
        ),
        compiler_params=pltpu.CompilerParams(
            dimension_semantics=("parallel",),
            vmem_limit_bytes=32 * 1024 * 1024,
        ),
    )(sim, lab)

    ap = jnp.sum(per_q[:B, 0]) / B
    return 1.0 - ap


# ----------------------------------------------------------------------------
# Pure-JAX reference (faithful to the PyTorch module) for verification.
# ----------------------------------------------------------------------------
def _heaviside(x):
    return jnp.where(x > 0, jnp.ones_like(x), jnp.zeros_like(x))


def _quad_linear_ref(x, sigma):
    lin = 2.0 * x / sigma + 1.0
    quad = (x / sigma) ** 2 + 2.0 * x / sigma + 1.0
    mid = jnp.where((x >= -sigma) & (x <= 0), quad, jnp.zeros_like(x))
    return jnp.where(x > 0, lin, mid)


def _reference_loss(sim_matrix, label_matrix, sigma, rho, batch_size):
    B = batch_size
    mask = 1.0 - jnp.eye(B)
    mask = jnp.broadcast_to(mask[None, :, :], (B, B, B))
    rep = jnp.broadcast_to(sim_matrix[:, None, :], (B, B, B))
    diff = rep - jnp.transpose(rep, (0, 2, 1))
    sim_sl = _quad_linear_ref(diff, sigma) * mask
    lab_rep = jnp.broadcast_to(label_matrix[:, None, :], (B, B, B))
    plm = lab_rep * jnp.transpose(lab_rep, (0, 2, 1))
    sim_sl_sg = jnp.where(plm == 1.0, rho * _heaviside(diff), sim_sl) * mask
    sim_all_rk = jnp.sum(sim_sl_sg, axis=-1) + 1.0
    sim_pos_sg = jnp.where(plm == 1.0, sim_sl_sg, jnp.zeros_like(sim_sl_sg))
    sim_pos_rk = jnp.sum(sim_pos_sg, axis=-1) + 1.0
    pos_divide_vec = jnp.sum(sim_pos_rk / sim_all_rk * label_matrix, axis=-1)
    pos_cnt_vec = jnp.sum(label_matrix, axis=-1)
    return 1.0 - jnp.mean(pos_divide_vec / pos_cnt_vec)


if __name__ == "__main__":
    B = 8
    sigma = 0.1
    rho = 1.0

    key = jax.random.PRNGKey(0)
    k_sim, k_cls = jax.random.split(key)

    # Deterministic synthetic inputs: cosine-like similarities in [-1, 1] and a
    # binary same-class label matrix (diagonal is 1 by construction).
    sim_matrix = jax.random.uniform(
        k_sim, (B, B), minval=-1.0, maxval=1.0, dtype=jnp.float32
    )
    classes = jax.random.randint(k_cls, (B,), 0, 2)
    label_matrix = (classes[:, None] == classes[None, :]).astype(jnp.float32)

    loss = quad_linear_ap_loss(
        sim_matrix, label_matrix, sigma=sigma, rho=rho, batch_size=B
    )
    loss = jax.block_until_ready(loss)

    ref = _reference_loss(sim_matrix, label_matrix, sigma, rho, B)
    assert jnp.allclose(loss, ref, atol=1e-5, rtol=1e-5), (loss, ref)

    print("KERNEL_OK")
</pallas_src>

<mosaic_0001>
module attributes {stable_mosaic.version = 11 : i64} {
  func.func @_ap_loss_kernel(%arg0: i32, %arg1: memref<16x128xf32, #tpu.memory_space<vmem>>, %arg2: memref<16x128xf32, #tpu.memory_space<vmem>>, %arg3: memref<16x128xf32, #tpu.memory_space<vmem>>) attributes {dimension_semantics = [#tpu.dimension_semantics<parallel>], iteration_bounds = array<i64: 1>, scalar_prefetch = 0 : i64, scratch_operands = 0 : i64, tpu.core_type = #tpu.core_type<tc>, window_params = [{transform_indices = @transform_0, window_bounds = array<i64: 16, 128>}, {transform_indices = @transform_1, window_bounds = array<i64: 16, 128>}, {transform_indices = @transform_2, window_bounds = array<i64: 16, 128>}]} {
    %c0 = arith.constant 0 : index
    %c0_0 = arith.constant 0 : index
    %0 = vector.load %arg1[%c0, %c0_0] : memref<16x128xf32, #tpu.memory_space<vmem>>, vector<16x128xf32>
    %c0_1 = arith.constant 0 : index
    %c0_2 = arith.constant 0 : index
    %1 = vector.load %arg2[%c0_1, %c0_2] : memref<16x128xf32, #tpu.memory_space<vmem>>, vector<16x128xf32>
    %2 = vector.shape_cast %0 : vector<16x128xf32> to vector<16x1x128xf32>
    %3 = vector.shape_cast %0 : vector<16x128xf32> to vector<16x128x1xf32>
    %4 = vector.shape_cast %1 : vector<16x128xf32> to vector<16x1x128xf32>
    %5 = vector.shape_cast %1 : vector<16x128xf32> to vector<16x128x1xf32>
    %6 = vector.broadcast %2 : vector<16x1x128xf32> to vector<16x128x128xf32>
    %7 = vector.broadcast %3 : vector<16x128x1xf32> to vector<16x128x128xf32>
    %8 = arith.subf %6, %7 : vector<16x128x128xf32>
    %cst = arith.constant 0.000000e+00 : f32
    %9 = vector.broadcast %cst : f32 to vector<16x128x128xf32>
    %10 = arith.cmpf ogt, %8, %9 : vector<16x128x128xf32>
    %cst_3 = arith.constant 1.000000e+01 : f32
    %11 = vector.broadcast %cst_3 : f32 to vector<16x128x128xf32>
    %12 = arith.mulf %8, %11 : vector<16x128x128xf32>
    %cst_4 = arith.constant 2.000000e+00 : f32
    %13 = vector.broadcast %cst_4 : f32 to vector<16x128x128xf32>
    %14 = arith.mulf %13, %12 : vector<16x128x128xf32>
    %cst_5 = arith.constant 1.000000e+00 : f32
    %15 = vector.broadcast %cst_5 : f32 to vector<16x128x128xf32>
    %16 = arith.addf %14, %15 : vector<16x128x128xf32>
    %cst_6 = arith.constant 1.000000e+00 : f32
    %17 = vector.broadcast %cst_6 : f32 to vector<16x128x128xf32>
    %18 = arith.addf %12, %17 : vector<16x128x128xf32>
    %19 = arith.mulf %18, %18 : vector<16x128x128xf32>
    %cst_7 = arith.constant -1.000000e-01 : f32
    %20 = vector.broadcast %cst_7 : f32 to vector<16x128x128xf32>
    %21 = arith.cmpf oge, %8, %20 : vector<16x128x128xf32>
    %cst_8 = arith.constant 0.000000e+00 : f32
    %22 = vector.broadcast %cst_8 : f32 to vector<16x128x128xf32>
    %23 = arith.select %21, %19, %22 : vector<16x128x128xi1>, vector<16x128x128xf32>
    %24 = arith.select %10, %16, %23 : vector<16x128x128xi1>, vector<16x128x128xf32>
    %25 = vector.broadcast %4 : vector<16x1x128xf32> to vector<16x128x128xf32>
    %26 = vector.broadcast %5 : vector<16x128x1xf32> to vector<16x128x128xf32>
    %27 = arith.mulf %25, %26 : vector<16x128x128xf32>
    %cst_9 = arith.constant 1.000000e+00 : f32
    %28 = vector.broadcast %cst_9 : f32 to vector<16x128x128xf32>
    %29 = arith.cmpf oeq, %27, %28 : vector<16x128x128xf32>
    %cst_10 = arith.constant 1.000000e+00 : f32
    %cst_11 = arith.constant 0.000000e+00 : f32
    %30 = vector.broadcast %cst_10 : f32 to vector<16x128x128xf32>
    %31 = vector.broadcast %cst_11 : f32 to vector<16x128x128xf32>
    %32 = arith.select %10, %30, %31 : vector<16x128x128xi1>, vector<16x128x128xf32>
    %33 = arith.select %29, %32, %24 : vector<16x128x128xi1>, vector<16x128x128xf32>
    %cst_12 = arith.constant 0.000000e+00 : f32
    %34 = vector.broadcast %cst_12 : f32 to vector<16x128x128xf32>
    %35 = arith.select %29, %32, %34 : vector<16x128x128xi1>, vector<16x128x128xf32>
    %cst_13 = arith.constant dense<0.000000e+00> : vector<16x128xf32>
    %36 = vector.multi_reduction <add>, %33, %cst_13 [2] : vector<16x128x128xf32> to vector<16x128xf32>
    %37 = arith.addf %36, %1 : vector<16x128xf32>
    %cst_14 = arith.constant dense<0.000000e+00> : vector<16x128xf32>
    %38 = vector.multi_reduction <add>, %35, %cst_14 [2] : vector<16x128x128xf32> to vector<16x128xf32>
    %cst_15 = arith.constant 1.000000e+00 : f32
    %39 = vector.broadcast %cst_15 : f32 to vector<16x128xf32>
    %40 = arith.addf %38, %39 : vector<16x128xf32>
    %41 = arith.divf %40, %37 : vector<16x128xf32>
    %42 = arith.mulf %41, %1 : vector<16x128xf32>
    %cst_16 = arith.constant dense<0.000000e+00> : vector<16xf32>
    %43 = vector.multi_reduction <add>, %42, %cst_16 [1] : vector<16x128xf32> to vector<16xf32>
    %44 = vector.shape_cast %43 : vector<16xf32> to vector<16x1xf32>
    %cst_17 = arith.constant dense<0.000000e+00> : vector<16xf32>
    %45 = vector.multi_reduction <add>, %1, %cst_17 [1] : vector<16x128xf32> to vector<16xf32>
    %46 = vector.shape_cast %45 : vector<16xf32> to vector<16x1xf32>
    %c16_i32 = arith.constant 16 : i32
    %47 = arith.muli %arg0, %c16_i32 : i32
    %48 = tpu.iota {dimensions = array<i32: 0>} : vector<16x1xi32>
    %49 = vector.broadcast %47 : i32 to vector<16x1xi32>
    %50 = arith.addi %49, %48 : vector<16x1xi32>
    %c8_i32 = arith.constant 8 : i32
    %51 = vector.broadcast %c8_i32 : i32 to vector<16x1xi32>
    %52 = arith.cmpi slt, %50, %51 : vector<16x1xi32>
    %53 = arith.divf %44, %46 : vector<16x1xf32>
    %cst_18 = arith.constant 0.000000e+00 : f32
    %54 = vector.broadcast %cst_18 : f32 to vector<16x1xf32>
    %55 = arith.select %52, %53, %54 : vector<16x1xi1>, vector<16x1xf32>
    %56 = vector.shape_cast %55 : vector<16x1xf32> to vector<16x1xf32>
    %57 = vector.broadcast %56 : vector<16x1xf32> to vector<16x128xf32>
    %c0_19 = arith.constant 0 : index
    %c0_20 = arith.constant 0 : index
    %58 = vector.load %arg3[%c0_19, %c0_20] : memref<16x128xf32, #tpu.memory_space<vmem>>, vector<16x128xf32>
    tpu.vector_store %arg3[%c0_19, %c0_20], %57 {strides = array<i32>} : memref<16x128xf32, #tpu.memory_space<vmem>>, vector<16x128xf32>,
    return
  }
  func.func @transform_0(%arg0: i32) -> (i32, i32) {
    %c0_i32 = arith.constant 0 : i32
    %c0_i32_0 = arith.constant 0 : i32
    return %arg0, %c0_i32 : i32, i32
  }
  func.func @transform_1(%arg0: i32) -> (i32, i32) {
    %c0_i32 = arith.constant 0 : i32
    %c0_i32_0 = arith.constant 0 : i32
    return %arg0, %c0_i32 : i32, i32
  }
  func.func @transform_2(%arg0: i32) -> (i32, i32) {
    %c0_i32 = arith.constant 0 : i32
    %c0_i32_0 = arith.constant 0 : i32
    return %arg0, %c0_i32 : i32, i32
  }
}

</mosaic_0001>

<bundles_post_ra>
// kernel: tpu_custom_call.1
= control target key start
LH: loop header
LB: loop body
LE: loop exit
PB: predicated region body
PF: predicated region fallthrough
CT: control target
= control target key end

     0   :  { %7 = vsyncpa [#allocation3], 0  ;;  %s20475_s0 = inlined_call_operand.hbm [shape: f32[16,128], index: 0, kind: input, shape index: {}]   ;;  %s20476_s1 = inlined_call_operand.hbm [shape: f32[16,128], index: 1, kind: input, shape index: {}]   ;;  %s20477_s2 = inlined_call_operand.hbm [shape: f32[16,128], index: 2, kind: output, shape index: {}]  }
   0x1   :  { %8 = vsyncpa [#allocation6], 0 }
   0x2   :  { %9 = vsyncpa [#allocation4], 0  ;;  %s12753_s9 = smov [#allocation2]   ;;  %s12681_s13 = scalar_lea.hbm %s20475_s0, 256 }
   0x3   :  { %s15_s10 = sshll.u32 %s12753_s9, 4  ;;  %p12682_p0 = scmp.ne.s32.totalorder %s20475_s0, %s12681_s13  ;;  %s16_s10 = int_to_ptr.vmem [resolvable:$true] %s15_s10 }
   0x4   :  { %p12685_p1 = scmp.lt.u32.totalorder %s12681_s13, %s20475_s0 }
   0x6   :  { %p12687_p2 = pnand %p12685_p1, %p12682_p0 }
   0x8   :  { %12690 = shalt.err (!%p12687_p2)
}
   0x9   :  { %s12691_s18 = scalar_lea.vmem %s16_s10, 256  ;;  %p12696_p4 = scmp.lt.s32.totalorder %s16_s10, %s16_s10 }
   0xa   :  { %p12692_p3 = scmp.ne.s32.totalorder %s16_s10, %s12691_s18  ;;  %p12697_p5 = scmp.lt.s32.totalorder %s12691_s18, %s12691_s18 }
   0xc   :  { %p12698_p6 = por %p12697_p5, %p12696_p4 }
   0xe   :  { %p12699_p7 = pnand %p12698_p6, %p12692_p3 }
  0x10   :  { %12702 = shalt.err (!%p12699_p7)
}
  0x11   :  { %s12754_s19 = smov 128   ;;  %s12755_s20 = smov 8  }
  0x12   :  { %21 = dma.hbm_to_vmem [thread:$0]  %s20475_s0, 256, %s16_s10, [#allocation3], %s12754_s19, %s12754_s19, %s12755_s20  }
  0x13   :  { %s12756_s23 = smov [#allocation5]   ;;  %s12703_s27 = scalar_lea.hbm %s20476_s1, 256 }
  0x14   :  { %s27_s24 = sshll.u32 %s12756_s23, 4  ;;  %p12704_p8 = scmp.ne.s32.totalorder %s20476_s1, %s12703_s27  ;;  %s28_s24 = int_to_ptr.vmem [resolvable:$true] %s27_s24 }
  0x15   :  { %p12707_p9 = scmp.lt.u32.totalorder %s12703_s27, %s20476_s1 }
  0x17   :  { %p12709_p10 = pnand %p12707_p9, %p12704_p8 }
  0x19   :  { %12712 = shalt.err (!%p12709_p10)
}
  0x1a   :  { %s12713_s4 = scalar_lea.vmem %s28_s24, 256  ;;  %p12718_p12 = scmp.lt.s32.totalorder %s28_s24, %s28_s24 }
  0x1b   :  { %p12714_p11 = scmp.ne.s32.totalorder %s28_s24, %s12713_s4  ;;  %p12719_p13 = scmp.lt.s32.totalorder %s12713_s4, %s12713_s4 }
  0x1d   :  { %p12720_p0 = por %p12719_p13, %p12718_p12 }
  0x1f   :  { %p12721_p1 = pnand %p12720_p0, %p12714_p11 }
  0x21   :  { %12724 = shalt.err (!%p12721_p1)
}
  0x22   :  { %33 = dma.hbm_to_vmem [thread:$0]  %s20476_s1, 256, %s28_s24, [#allocation6], %s12754_s19, %s12754_s19, %s12755_s20  }
  0x23   :  { %12747 = dma.done.wait [#allocation3], 256  }
  0x24   :  { %12748 = vsyncadd [#allocation3], 4294967040 }
  0x25   :  { %12749 = dma.done.wait [#allocation6], 256  }
  0x26   :  { %12750 = vsyncadd [#allocation6], 4294967040  ;;  %v20478_v0 = vlaneseq  ;;  %v12757_v1 = vmov 1966171168   ;;  %v20479_v3 = vmov 0.0   ;;  %v12816_v8 = vld [vmem:[#allocation2] sm:$0xff] }
  0x27   :  { %v48_v2 = vunpack.c.l.s4 %v12757_v1  ;;  %12387 = vst [vmem:[#allocation7 + $0x8] sm:$0xff] %v20479_v3  ;;  %v46_v9 = vcombine.high %v12816_v8, %v12816_v8  ;;  %v12824_v12 = vld [vmem:[#allocation5] sm:$0xff]  ;;  %s12760_s1 = smov [#allocation7]  }
  0x28   :  { %v12808_v4 = vshrl.u32 %v20478_v0, 7  ;;  %v1218_v15 = vcombine.high %v12824_v12, %v12824_v12  ;;  %s12393_s6 = sshll.u32 %s12760_s1, 4  ;;  %s12394_s6 = int_to_ptr.vmem [resolvable:$true] %s12393_s6 }
  0x29   :  { %v49_v5 = vunpack.c.0.s8 %v48_v2  ;;  %s12725_s7 = scalar_lea.vmem %s12394_s6, 256  ;;  %p12730_p3 = scmp.lt.s32.totalorder %s12394_s6, %s12394_s6 }
  0x2a   :  { %21044 = vst [vmem:[#allocation11_spill] sm:$0xff] %v12808_v4  ;;  %v12811_v6 = vsub.s32 0, %v12808_v4  ;;  %v20485_v43 = vsub.s32 1, %v12808_v4  ;;  %v20484_v45 = vsub.s32 2, %v12808_v4  ;;  %v20483_v47 = vsub.s32 3, %v12808_v4  ;;  %p12726_p2 = scmp.ne.s32.totalorder %s12394_s6, %s12725_s7  ;;  %p12731_p4 = scmp.lt.s32.totalorder %s12725_s7, %s12725_s7 }
  0x2b   :  { %v12814_v7 = vsub.s32 %v49_v5, %v12808_v4  ;;  %v20482_v53 = vsub.s32 4, %v12808_v4 }
  0x2c   :  { %v147_v11 = vrot.slane %v12816_v8, %v12811_v6  ;;  %v214_v44 = vrot.slane %v12816_v8, %v20485_v43  ;;  %v281_v46 = vrot.slane %v12816_v8, %v20484_v45  ;;  %v348_v48 = vrot.slane %v12816_v8, %v20483_v47  ;;  %p12732_p5 = por %p12731_p4, %p12730_p3 }
  0x2d   :  { %v53_v10 = vrot.slane %v12816_v8, %v12814_v7  ;;  %v60_v13 = vrot.slane %v46_v9, %v12814_v7  ;;  %v1232_v20 = vrot.slane %v1218_v15, %v12814_v7  ;;  %v415_v56 = vrot.slane %v12816_v8, %v20482_v53 }
  0x2e   :  { %157 = vbcast.lane.b32.xlu1 %v147_v11, 272  ;;  %149 = vbcast.lane.b32.xlu0 %v147_v11, 256  ;;  %p12733_p6 = pnand %p12732_p5, %p12726_p2 }
  0x2f   :  { %v61_v14 = vcombine.high %v53_v10, %v53_v10  ;;  %v62_v16 = vcombine.high %v60_v13, %v60_v13  ;;  %v69_v17 = vrot.slane %v53_v10, %v12814_v7  ;;  %v76_v18 = vrot.slane %v60_v13, %v12814_v7 }
  0x30   :  { %v1234_v24 = vcombine.high %v1232_v20, %v1232_v20  ;;  %v1248_v27 = vrot.slane %v1232_v20, %v12814_v7 }
  0x31   :  { %v83_v19 = vrot.slane %v61_v14, %v12814_v7  ;;  %v90_v21 = vrot.slane %v62_v16, %v12814_v7  ;;  %v91_v22 = vcombine.high %v69_v17, %v69_v17  ;;  %v92_v25 = vcombine.high %v76_v18, %v76_v18 }
  0x32   :  { %161 = vbcast.lane.b32.xlu1 %v147_v11, 280  ;;  %153 = vbcast.lane.b32.xlu0 %v147_v11, 264  ;;  %v1262_v28 = vrot.slane %v1234_v24, %v12814_v7  ;;  %v1264_v29 = vcombine.high %v1248_v27, %v1248_v27  ;;  %v12837_v30 = vrot.slane %v69_v17, %v12811_v6  ;;  %v20481_v14 = vsub.s32 5, %v12808_v4 }
  0x33   :  { %v93_v23 = vcombine.high %v83_v19, %v83_v19  ;;  %v94_v26 = vcombine.high %v90_v21, %v90_v21  ;;  %v12840_v31 = vrot.slane %v83_v19, %v12811_v6  ;;  %v12843_v32 = vrot.slane %v91_v22, %v12811_v6 }
  0x34   :  { %v1266_v33 = vcombine.high %v1262_v28, %v1262_v28  ;;  %v12849_v35 = vrot.slane %v76_v18, %v12811_v6  ;;  %v12852_v36 = vrot.slane %v90_v21, %v12811_v6  ;;  %v12855_v37 = vrot.slane %v92_v25, %v12811_v6 }
  0x35   :  { %v12846_v34 = vrot.slane %v93_v23, %v12811_v6  ;;  %v12858_v38 = vrot.slane %v94_v26, %v12811_v6  ;;  %v12861_v39 = vrot.slane %v1248_v27, %v12811_v6  ;;  %v12864_v40 = vrot.slane %v1262_v28, %v12811_v6 }
  0x36   :  { %169 = vbcast.lane.b32.xlu1 %v147_v11, 296  ;;  %21046 = vst [vmem:[#allocation13_spill] sm:$0xff] %v12849_v35  ;;  %21047 = vst [vmem:[#allocation14_spill] sm:$0xff] %v12852_v36  ;;  %165 = vbcast.lane.b32.xlu0 %v147_v11, 288  ;;  %v12867_v41 = vrot.slane %v1264_v29, %v12811_v6  ;;  %v12870_v42 = vrot.slane %v1266_v33, %v12811_v6 }
  0x37   :  { %21045 = vst [vmem:[#allocation12_spill] sm:$0xff] %v12846_v34  ;;  %21048 = vst [vmem:[#allocation15_spill] sm:$0xff] %v12855_v37  ;;  %v482_v17 = vrot.slane %v12816_v8, %v20481_v14  ;;  %v615_v37 = vsub.s32 7, %v12808_v4  ;;  %v1225_v36 = vrot.slane %v12824_v12, %v12814_v7 }
  0x38   :  { %21049 = vst [vmem:[#allocation16_spill] sm:$0xff] %v12858_v38  ;;  %21050 = vst [vmem:[#allocation17_spill] sm:$0xff] %v12861_v39 }
  0x39   :  { %21051 = vst [vmem:[#allocation18_spill] sm:$0xff] %v12864_v40  ;;  %21052 = vst [vmem:[#allocation19_spill] sm:$0xff] %v12867_v41 }
  0x3a   :  { %21053 = vst [vmem:[#allocation20_spill] sm:$0xff] %v12870_v42  ;;  %177 = vbcast.lane.b32.xlu1 %v147_v11, 312  ;;  %173 = vbcast.lane.b32.xlu0 %v147_v11, 304 }
  0x3e   :  { %185 = vbcast.lane.b32.xlu1 %v147_v11, 328  ;;  %181 = vbcast.lane.b32.xlu0 %v147_v11, 320 }
  0x42   :  { %193 = vbcast.lane.b32.xlu1 %v147_v11, 344  ;;  %189 = vbcast.lane.b32.xlu0 %v147_v11, 336 }
  0x46   :  { %201 = vbcast.lane.b32.xlu1 %v147_v11, 360  ;;  %197 = vbcast.lane.b32.xlu0 %v147_v11, 352 }
  0x4a   :  { %209 = vbcast.lane.b32.xlu1 %v147_v11, 376  ;;  %205 = vbcast.lane.b32.xlu0 %v147_v11, 368 }
  0x4e   :  { %220 = vbcast.lane.b32.xlu1 %v214_v44, 264  ;;  %216 = vbcast.lane.b32.xlu0 %v214_v44, 256 }
  0x52   :  { %228 = vbcast.lane.b32.xlu1 %v214_v44, 280  ;;  %224 = vbcast.lane.b32.xlu0 %v214_v44, 272 }
  0x56   :  { %236 = vbcast.lane.b32.xlu1 %v214_v44, 296  ;;  %232 = vbcast.lane.b32.xlu0 %v214_v44, 288 }
  0x5a   :  { %244 = vbcast.lane.b32.xlu1 %v214_v44, 312  ;;  %240 = vbcast.lane.b32.xlu0 %v214_v44, 304 }
  0x5e   :  { %252 = vbcast.lane.b32.xlu1 %v214_v44, 328  ;;  %248 = vbcast.lane.b32.xlu0 %v214_v44, 320 }
  0x62   :  { %260 = vbcast.lane.b32.xlu1 %v214_v44, 344  ;;  %256 = vbcast.lane.b32.xlu0 %v214_v44, 336 }
  0x66   :  { %268 = vbcast.lane.b32.xlu1 %v214_v44, 360  ;;  %264 = vbcast.lane.b32.xlu0 %v214_v44, 352 }
  0x6a   :  { %276 = vbcast.lane.b32.xlu1 %v214_v44, 376  ;;  %272 = vbcast.lane.b32.xlu0 %v214_v44, 368 }
  0x6e   :  { %287 = vbcast.lane.b32.xlu1 %v281_v46, 264  ;;  %283 = vbcast.lane.b32.xlu0 %v281_v46, 256 }
  0x72   :  { %295 = vbcast.lane.b32.xlu1 %v281_v46, 280  ;;  %291 = vbcast.lane.b32.xlu0 %v281_v46, 272 }
  0x76   :  { %303 = vbcast.lane.b32.xlu1 %v281_v46, 296  ;;  %299 = vbcast.lane.b32.xlu0 %v281_v46, 288 }
  0x7a   :  { %311 = vbcast.lane.b32.xlu1 %v281_v46, 312  ;;  %307 = vbcast.lane.b32.xlu0 %v281_v46, 304 }
  0x7e   :  { %319 = vbcast.lane.b32.xlu1 %v281_v46, 328  ;;  %315 = vbcast.lane.b32.xlu0 %v281_v46, 320 }
  0x82   :  { %327 = vbcast.lane.b32.xlu1 %v281_v46, 344  ;;  %323 = vbcast.lane.b32.xlu0 %v281_v46, 336 }
  0x86   :  { %335 = vbcast.lane.b32.xlu1 %v281_v46, 360  ;;  %331 = vbcast.lane.b32.xlu0 %v281_v46, 352 }
  0x8a   :  { %343 = vbcast.lane.b32.xlu1 %v281_v46, 376  ;;  %339 = vbcast.lane.b32.xlu0 %v281_v46, 368  ;;  %v548_v46 = vsub.s32 6, %v12808_v4 }
  0x8c   :  { %v12970_v0 = vrot.slane %v12816_v8, %v548_v46 }
  0x8e   :  { %354 = vbcast.lane.b32.xlu1 %v348_v48, 264  ;;  %350 = vbcast.lane.b32.xlu0 %v348_v48, 256 }
  0x92   :  { %362 = vbcast.lane.b32.xlu1 %v348_v48, 280  ;;  %358 = vbcast.lane.b32.xlu0 %v348_v48, 272 }
  0x96   :  { %370 = vbcast.lane.b32.xlu1 %v348_v48, 296  ;;  %366 = vbcast.lane.b32.xlu0 %v348_v48, 288 }
  0x9a   :  { %378 = vbcast.lane.b32.xlu1 %v348_v48, 312  ;;  %374 = vbcast.lane.b32.xlu0 %v348_v48, 304 }
  0x9e   :  { %386 = vbcast.lane.b32.xlu1 %v348_v48, 328  ;;  %382 = vbcast.lane.b32.xlu0 %v348_v48, 320 }
  0xa0   :  { %v12884_v49 = vpop.permute.xlu1 %157  ;;  %v12886_v50 = vpop.permute.xlu0 %149 }
  0xa1   :  { %v13002_v39 = vsub.f32 %v12837_v30, %v12884_v49  ;;  %v13006_v38 = vsub.f32 %v12837_v30, %v12886_v50 }
  0xa2   :  { %394 = vbcast.lane.b32.xlu1 %v348_v48, 344  ;;  %390 = vbcast.lane.b32.xlu0 %v348_v48, 336 }
  0xa3   :  { %v2982_v49 = vmul.f32 10.0, %v13002_v39  ;;  %vm2726_vm0 = vcmp.gt.f32.partialorder %v13002_v39, 0.0  ;;  %vm4260_vm1 = vcmp.ge.f32.partialorder %v13006_v38, -0.1  ;;  %vm4262_vm2 = vcmp.ge.f32.partialorder %v13002_v39, -0.1 }
  0xa4   :  { %v12888_v51 = vpop.permute.xlu1 %161  ;;  %v12890_v52 = vpop.permute.xlu0 %153  ;;  %vm2724_vm3 = vcmp.gt.f32.partialorder %v13006_v38, 0.0 }
  0xa5   :  { %v13022_v50 = vsub.f32 %v12837_v30, %v12890_v52  ;;  %v13042_v52 = vsub.f32 %v12837_v30, %v12888_v51  ;;  %v21079_v51 = vsub.s32 4, %v12808_v4 }
  0xa6   :  { %402 = vbcast.lane.b32.xlu1 %v348_v48, 360  ;;  %398 = vbcast.lane.b32.xlu0 %v348_v48, 352 }
  0xa7   :  { %vm4263_vm4 = vcmp.ge.f32.partialorder %v13042_v52, -0.1  ;;  %vm4261_vm5 = vcmp.ge.f32.partialorder %v13022_v50, -0.1  ;;  %vm2725_vm7 = vcmp.gt.f32.partialorder %v13022_v50, 0.0  ;;  %vm2727_vm10 = vcmp.gt.f32.partialorder %v13042_v52, 0.0 }
  0xa8   :  { %v12893_v54 = vpop.permute.xlu1 %169  ;;  %v12895_v55 = vpop.permute.xlu0 %165 }
  0xaa   :  { %410 = vbcast.lane.b32.xlu1 %v348_v48, 376  ;;  %406 = vbcast.lane.b32.xlu0 %v348_v48, 368 }
  0xac   :  { %v12900_v57 = vpop.permute.xlu1 %177  ;;  %v12902_v58 = vpop.permute.xlu0 %173 }
  0xae   :  { %421 = vbcast.lane.b32.xlu1 %v415_v56, 264  ;;  %417 = vbcast.lane.b32.xlu0 %v415_v56, 256 }
  0xb0   :  { %v12904_v59 = vpop.permute.xlu1 %185  ;;  %v12906_v60 = vpop.permute.xlu0 %181 }
  0xb2   :  { %429 = vbcast.lane.b32.xlu1 %v415_v56, 280  ;;  %425 = vbcast.lane.b32.xlu0 %v415_v56, 272 }
  0xb4   :  { %v12908_v61 = vpop.permute.xlu1 %193  ;;  %v12910_v62 = vpop.permute.xlu0 %189 }
  0xb6   :  { %437 = vbcast.lane.b32.xlu1 %v415_v56, 296  ;;  %433 = vbcast.lane.b32.xlu0 %v415_v56, 288 }
  0xb8   :  { %v12912_v63 = vpop.permute.xlu1 %201  ;;  %v12914_v1 = vpop.permute.xlu0 %197 }
  0xba   :  { %445 = vbcast.lane.b32.xlu1 %v415_v56, 312  ;;  %441 = vbcast.lane.b32.xlu0 %v415_v56, 304 }
  0xbc   :  { %v12916_v2 = vpop.permute.xlu1 %209  ;;  %v12918_v5 = vpop.permute.xlu0 %205 }
  0xbe   :  { %453 = vbcast.lane.b32.xlu1 %v415_v56, 328  ;;  %449 = vbcast.lane.b32.xlu0 %v415_v56, 320 }
  0xc0   :  { %v12920_v9 = vpop.permute.xlu1 %220  ;;  %v12922_v10 = vpop.permute.xlu0 %216 }
  0xc2   :  { %461 = vbcast.lane.b32.xlu1 %v415_v56, 344  ;;  %457 = vbcast.lane.b32.xlu0 %v415_v56, 336 }
  0xc4   :  { %v12924_v11 = vpop.permute.xlu1 %228  ;;  %v12926_v13 = vpop.permute.xlu0 %224 }
  0xc6   :  { %469 = vbcast.lane.b32.xlu1 %v415_v56, 360  ;;  %465 = vbcast.lane.b32.xlu0 %v415_v56, 352 }
  0xc8   :  { %v12929_v15 = vpop.permute.xlu1 %236  ;;  %v12931_v16 = vpop.permute.xlu0 %232 }
  0xca   :  { %477 = vbcast.lane.b32.xlu1 %v415_v56, 376  ;;  %473 = vbcast.lane.b32.xlu0 %v415_v56, 368 }
  0xcc   :  { %v12936_v18 = vpop.permute.xlu1 %244  ;;  %v12938_v19 = vpop.permute.xlu0 %240 }
  0xce   :  { %488 = vbcast.lane.b32.xlu1 %v482_v17, 264  ;;  %484 = vbcast.lane.b32.xlu0 %v482_v17, 256 }
  0xd0   :  { %v12940_v20 = vpop.permute.xlu1 %252  ;;  %v12942_v21 = vpop.permute.xlu0 %248 }
  0xd2   :  { %496 = vbcast.lane.b32.xlu1 %v482_v17, 280  ;;  %492 = vbcast.lane.b32.xlu0 %v482_v17, 272 }
  0xd4   :  { %v12944_v22 = vpop.permute.xlu1 %260  ;;  %v12946_v23 = vpop.permute.xlu0 %256 }
  0xd6   :  { %504 = vbcast.lane.b32.xlu1 %v482_v17, 296  ;;  %500 = vbcast.lane.b32.xlu0 %v482_v17, 288 }
  0xd8   :  { %v12948_v24 = vpop.permute.xlu1 %268  ;;  %v12950_v25 = vpop.permute.xlu0 %264 }
  0xda   :  { %512 = vbcast.lane.b32.xlu1 %v482_v17, 312  ;;  %508 = vbcast.lane.b32.xlu0 %v482_v17, 304 }
  0xdc   :  { %v12952_v26 = vpop.permute.xlu1 %276  ;;  %v12954_v27 = vpop.permute.xlu0 %272 }
  0xde   :  { %520 = vbcast.lane.b32.xlu1 %v482_v17, 328  ;;  %516 = vbcast.lane.b32.xlu0 %v482_v17, 320 }
  0xe0   :  { %v12956_v28 = vpop.permute.xlu1 %287  ;;  %v12958_v29 = vpop.permute.xlu0 %283 }
  0xe2   :  { %528 = vbcast.lane.b32.xlu1 %v482_v17, 344  ;;  %524 = vbcast.lane.b32.xlu0 %v482_v17, 336 }
  0xe4   :  { %v12960_v33 = vpop.permute.xlu1 %295  ;;  %v12962_v44 = vpop.permute.xlu0 %291 }
  0xe5   :  { %21054 = vst [vmem:[#allocation21_spill] sm:$0xff] %v12960_v33  ;;  %21055 = vst [vmem:[#allocation22_spill] sm:$0xff] %v12962_v44  ;;  %v2983_v44 = vmul.f32 10.0, %v13042_v52 }
  0xe6   :  { %536 = vbcast.lane.b32.xlu1 %v482_v17, 360  ;;  %532 = vbcast.lane.b32.xlu0 %v482_v17, 352 }
  0xe8   :  { %v12965_v48 = vpop.permute.xlu1 %303  ;;  %v12967_v56 = vpop.permute.xlu0 %299 }
  0xe9   :  { %21056 = vst [vmem:[#allocation23_spill] sm:$0xff] %v12965_v48  ;;  %21057 = vst [vmem:[#allocation24_spill] sm:$0xff] %v12967_v56  ;;  %v13071_v56 = vrot.slane %v12824_v12, %v548_v46 }
  0xea   :  { %544 = vbcast.lane.b32.xlu1 %v482_v17, 376  ;;  %540 = vbcast.lane.b32.xlu0 %v482_v17, 368 }
  0xeb   :  { %21083 = vst [vmem:[#allocation45_spill] sm:$0xff] %v13071_v56 }
  0xec   :  { %v12972_v3 = vpop.permute.xlu1 %311  ;;  %v12974_v14 = vpop.permute.xlu0 %307 }
  0xed   :  { %21058 = vst [vmem:[#allocation25_spill] sm:$0xff] %v12972_v3  ;;  %21059 = vst [vmem:[#allocation26_spill] sm:$0xff] %v12974_v14 }
  0xee   :  { %555 = vbcast.lane.b32.xlu1 %v12970_v0, 264  ;;  %551 = vbcast.lane.b32.xlu0 %v12970_v0, 256 }
  0xf0   :  { %v12978_v53 = vpop.permute.xlu1 %319  ;;  %v12980_v47 = vpop.permute.xlu0 %315 }
  0xf1   :  { %21060 = vst [vmem:[#allocation27_spill] sm:$0xff] %v12978_v53  ;;  %21061 = vst [vmem:[#allocation28_spill] sm:$0xff] %v12980_v47  ;;  %v3750_v53 = vadd.f32 1.0, %v2982_v49 }
  0xf2   :  { %563 = vbcast.lane.b32.xlu1 %v12970_v0, 280  ;;  %559 = vbcast.lane.b32.xlu0 %v12970_v0, 272 }
  0xf4   :  { %v12984_v45 = vpop.permute.xlu1 %327  ;;  %v12986_v43 = vpop.permute.xlu0 %323 }
  0xf5   :  { %21062 = vst [vmem:[#allocation29_spill] sm:$0xff] %v12984_v45  ;;  %21063 = vst [vmem:[#allocation30_spill] sm:$0xff] %v12986_v43  ;;  %v21072_v43 = vsub.s32 1, %v12808_v4 }
  0xf6   :  { %571 = vbcast.lane.b32.xlu1 %v12970_v0, 296  ;;  %567 = vbcast.lane.b32.xlu0 %v12970_v0, 288 }
  0xf7   :  { %v13038_v45 = vrot.slane %v12824_v12, %v21072_v43  ;;  %v21077_v43 = vsub.s32 3, %v12808_v4 }
  0xf8   :  { %v12990_v17 = vpop.permute.xlu1 %335  ;;  %v12992_v42 = vpop.permute.xlu0 %331 }
  0xf9   :  { %21064 = vst [vmem:[#allocation31_spill] sm:$0xff] %v12990_v17  ;;  %21065 = vst [vmem:[#allocation32_spill] sm:$0xff] %v12992_v42  ;;  %v13026_v42 = vrot.slane %v12816_v8, %v615_v37 }
  0xfa   :  { %579 = vbcast.lane.b32.xlu1 %v12970_v0, 312  ;;  %575 = vbcast.lane.b32.xlu0 %v12970_v0, 304  ;;  %21073 = vst [vmem:[#allocation39_spill] sm:$0xff] %v13038_v45  ;;  %v13056_v45 = vrot.slane %v12824_v12, %v21077_v43  ;;  %v13074_v43 = vrot.slane %v12824_v12, %v615_v37 }
  0xfc   :  { %v12996_v41 = vpop.permute.xlu1 %343  ;;  %v12998_v40 = vpop.permute.xlu0 %339  ;;  %21078 = vst [vmem:[#allocation42_spill] sm:$0xff] %v13056_v45  ;;  %21084 = vst [vmem:[#allocation46_spill] sm:$0xff] %v13074_v43  ;;  %v21092_v43 = vmov 0.0  }
  0xfd   :  { %21066 = vst [vmem:[#allocation33_spill] sm:$0xff] %v12996_v41  ;;  %21067 = vst [vmem:[#allocation34_spill] sm:$0xff] %v12998_v40  ;;  %v1233_v40 = vcombine.high %v1225_v36, %v1225_v36  ;;  %v2980_v41 = vmul.f32 10.0, %v13006_v38 }
  0xfe   :  { %587 = vbcast.lane.b32.xlu1 %v12970_v0, 328  ;;  %583 = vbcast.lane.b32.xlu0 %v12970_v0, 320 }
  0xff   :  { %v1255_v8 = vrot.slane %v1233_v40, %v12814_v7  ;;  %v3748_v14 = vadd.f32 1.0, %v2980_v41  ;;  %v3236_v48 = vmul.f32 2.0, %v2980_v41  ;;  %v13096_v41 = vsub.f32 %v12837_v30, %v12893_v54 }
 0x100   :  { %v13013_v35 = vpop.permute.xlu1 %354  ;;  %v13015_v34 = vpop.permute.xlu0 %350 }
 0x101   :  { %21068 = vst [vmem:[#allocation35_spill] sm:$0xff] %v13013_v35  ;;  %21069 = vst [vmem:[#allocation36_spill] sm:$0xff] %v13015_v34  ;;  %v1241_v34 = vrot.slane %v1225_v36, %v12814_v7  ;;  %v13033_v35 = vrot.slane %v12824_v12, %v12811_v6  ;;  %v2981_v7 = vmul.f32 10.0, %v13022_v50  ;;  %v1265_v40 = vcombine.high %v1255_v8, %v1255_v8 }
 0x102   :  { %595 = vbcast.lane.b32.xlu1 %v12970_v0, 344  ;;  %591 = vbcast.lane.b32.xlu0 %v12970_v0, 336  ;;  %v4004_v46 = vmul.f32 %v3748_v14, %v3748_v14  ;;  %v13091_v37 = vrot.slane %v1255_v8, %v12811_v6  ;;  %v2985_v56 = vmul.f32 10.0, %v13096_v41  ;;  %vm4265_vm8 = vcmp.ge.f32.partialorder %v13096_v41, -0.1 }
 0x103   :  { %21071 = vst [vmem:[#allocation38_spill] sm:$0xff] %v13033_v35  ;;  %v1263_v3 = vcombine.high %v1241_v34, %v1241_v34  ;;  %v13103_v14 = vrot.slane %v1265_v40, %v12811_v6  ;;  %vm2729_vm14 = vcmp.gt.f32.partialorder %v13096_v41, 0.0 }
 0x104   :  { %v13028_v17 = vpop.permute.xlu1 %362  ;;  %v13044_v47 = vpop.permute.xlu0 %358  ;;  %21087 = vst [vmem:[#allocation49_spill] sm:$0xff] %v13091_v37  ;;  %v4516_v40 = vsel %vm4260_vm1, %v4004_v46, 0.0  ;;  %v13135_v46 = vsub.f32 %v12837_v30, %v12902_v58  ;;  %v13153_v58 = vsub.f32 %v12837_v30, %v12904_v59  ;;  %v3241_v37 = vmul.f32 2.0, %v2985_v56 }
 0x105   :  { %21070 = vst [vmem:[#allocation37_spill] sm:$0xff] %v13028_v17  ;;  %21074 = vst [vmem:[#allocation40_spill] sm:$0xff] %v13044_v47  ;;  %v21075_v17 = vsub.s32 2, %v12808_v4  ;;  %v13061_v47 = vrot.slane %v12824_v12, %v21079_v51  ;;  %v13079_v51 = vrot.slane %v1241_v34, %v12811_v6  ;;  %v3749_v34 = vadd.f32 1.0, %v2981_v7 }
 0x106   :  { %603 = vbcast.lane.b32.xlu1 %v12970_v0, 360  ;;  %599 = vbcast.lane.b32.xlu0 %v12970_v0, 352  ;;  %21089 = vst [vmem:[#allocation51_spill] sm:$0xff] %v13103_v14  ;;  %v2986_v59 = vmul.f32 10.0, %v13135_v46  ;;  %vm4266_vm9 = vcmp.ge.f32.partialorder %v13135_v46, -0.1 }
 0x107   :  { %v13050_v36 = vrot.slane %v12824_v12, %v21075_v17  ;;  %21080 = vst [vmem:[#allocation43_spill] sm:$0xff] %v13061_v47  ;;  %v21081_v17 = vsub.s32 5, %v12808_v4  ;;  %21085 = vst [vmem:[#allocation47_spill] sm:$0xff] %v13079_v51  ;;  %v3238_v47 = vmul.f32 2.0, %v2982_v49  ;;  %v3751_v49 = vadd.f32 1.0, %v2983_v44 }
 0x108   :  { %v13076_v45 = vpop.permute.xlu1 %370  ;;  %v13082_v33 = vpop.permute.xlu0 %366  ;;  %v3492_v4 = vadd.f32 1.0, %v3236_v48  ;;  %v13123_v48 = vsub.f32 %v12837_v30, %v12900_v57  ;;  %vm2730_vm15 = vcmp.gt.f32.partialorder %v13135_v46, 0.0 }
 0x109   :  { %21076 = vst [vmem:[#allocation41_spill] sm:$0xff] %v13050_v36  ;;  %v13068_v36 = vrot.slane %v12824_v12, %v21081_v17  ;;  %21086 = vst [vmem:[#allocation48_spill] sm:$0xff] %v13082_v33  ;;  %v13086_v17 = vsub.f32 %v12837_v30, %v12895_v55  ;;  %v4006_v12 = vmul.f32 %v3750_v53, %v3750_v53  ;;  %v3494_v54 = vadd.f32 1.0, %v3238_v47 }
 0x10a   :  { %611 = vbcast.lane.b32.xlu1 %v12970_v0, 376  ;;  %607 = vbcast.lane.b32.xlu0 %v12970_v0, 368  ;;  %v13100_v55 = vrot.slane %v1263_v3, %v12811_v6  ;;  %v13114_v0 = vsel %vm2726_vm0, 1.0, %v21092_v43  ;;  %v3237_v3 = vmul.f32 2.0, %v2981_v7  ;;  %v13129_v47 = vsel %vm2724_vm3, 1.0, %v21092_v43 }
 0x10b   :  { %21082 = vst [vmem:[#allocation44_spill] sm:$0xff] %v13068_v36  ;;  %21093 = vst [vmem:[#allocation54_spill] sm:$0xff] %v13114_v0  ;;  %v2984_v6 = vmul.f32 10.0, %v13086_v17  ;;  %v4518_v14 = vsel %vm4262_vm2, %v4006_v12, 0.0  ;;  %v4005_v7 = vmul.f32 %v3749_v34, %v3749_v34  ;;  %v3239_v0 = vmul.f32 2.0, %v2983_v44 }
 0x10c   :  { %21088 = vst [vmem:[#allocation50_spill] sm:$0xff] %v13100_v55  ;;  %v13106_v53 = vpop.permute.xlu1 %378  ;;  %v13109_v8 = vpop.permute.xlu0 %374  ;;  %21094 = vst [vmem:[#allocation55_spill] sm:$0xff] %v13129_v47  ;;  %vm4264_vm6 = vcmp.ge.f32.partialorder %v13086_v17, -0.1  ;;  %v13144_v51 = vsel %vm2724_vm3, %v3492_v4, %v4516_v40  ;;  %v13148_v44 = vsel %vm2726_vm0, %v3494_v54, %v4518_v14  ;;  %v3493_v47 = vadd.f32 1.0, %v3237_v3 }
 0x10d   :  { %21090 = vst [vmem:[#allocation52_spill] sm:$0xff] %v13106_v53  ;;  %21091 = vst [vmem:[#allocation53_spill] sm:$0xff] %v13109_v8  ;;  %v3752_v34 = vadd.f32 1.0, %v2984_v6  ;;  %v4007_v55 = vmul.f32 %v3751_v49, %v3751_v49  ;;  %v2987_v38 = vmul.f32 10.0, %v13123_v48  ;;  %v13159_v4 = vsub.f32 %v12837_v30, %v12906_v60 }
 0x10e   :  { %622 = vbcast.lane.b32.xlu1 %v13026_v42, 264  ;;  %618 = vbcast.lane.b32.xlu0 %v13026_v42, 256  ;;  %21097 = vst [vmem:[#allocation58_spill] sm:$0xff] %v13144_v51  ;;  %21098 = vst [vmem:[#allocation59_spill] sm:$0xff] %v13148_v44  ;;  %v4517_v39 = vsel %vm4261_vm5, %v4005_v7, 0.0  ;;  %v3753_v14 = vadd.f32 1.0, %v2985_v56  ;;  %v13176_v60 = vsub.f32 %v12837_v30, %v12908_v61 }
 0x10f   :  { %v3240_v54 = vmul.f32 2.0, %v2984_v6  ;;  %v13170_v49 = vsel %vm2725_vm7, 1.0, %v21092_v43  ;;  %v3495_v56 = vadd.f32 1.0, %v3239_v0  ;;  %v2989_v6 = vmul.f32 10.0, %v13153_v58 }
 0x110   :  { %v13137_v12 = vpop.permute.xlu1 %386  ;;  %v13140_v57 = vpop.permute.xlu0 %382  ;;  %21100 = vst [vmem:[#allocation61_spill] sm:$0xff] %v13170_v49  ;;  %v13185_v7 = vsel %vm2725_vm7, %v3493_v47, %v4517_v39  ;;  %v4519_v44 = vsel %vm4263_vm4, %v4007_v55, 0.0  ;;  %v4008_v51 = vmul.f32 %v3752_v34, %v3752_v34  ;;  %v13189_v49 = vmul.f32 2.0, %v2987_v38 }
 0x111   :  { %21095 = vst [vmem:[#allocation56_spill] sm:$0xff] %v13137_v12  ;;  %21096 = vst [vmem:[#allocation57_spill] sm:$0xff] %v13140_v57  ;;  %v3755_v61 = vadd.f32 1.0, %v2987_v38  ;;  %v2988_v36 = vmul.f32 10.0, %v13159_v4  ;;  %v13194_v0 = vsub.f32 %v12837_v30, %v12910_v62  ;;  %v13202_v55 = vsel %vm2727_vm10, 1.0, %v21092_v43 }
 0x112   :  { %630 = vbcast.lane.b32.xlu1 %v13026_v42, 280  ;;  %626 = vbcast.lane.b32.xlu0 %v13026_v42, 272  ;;  %21102 = vst [vmem:[#allocation63_spill] sm:$0xff] %v13185_v7  ;;  %21104 = vst [vmem:[#allocation65_spill] sm:$0xff] %v13202_v55  ;;  %vm2728_vm11 = vcmp.gt.f32.partialorder %v13086_v17, 0.0  ;;  %v2991_v47 = vmul.f32 10.0, %v13176_v60  ;;  %v13208_v34 = vsub.f32 %v12837_v30, %v12912_v63 }
 0x113   :  { %v13214_v38 = vsel %vm2727_vm10, %v3495_v56, %v4519_v44  ;;  %v3496_v39 = vadd.f32 1.0, %v3240_v54  ;;  %v13220_v55 = vsub.f32 %v12837_v30, %v12914_v1  ;;  %v4520_v7 = vsel %vm4264_vm6, %v4008_v51, 0.0 }
 0x114   :  { %v13165_v40 = vpop.permute.xlu1 %394  ;;  %v13178_v3 = vpop.permute.xlu0 %390  ;;  %21106 = vst [vmem:[#allocation67_spill] sm:$0xff] %v13214_v38  ;;  %v4009_v63 = vmul.f32 %v3753_v14, %v3753_v14  ;;  %v3756_v57 = vadd.f32 1.0, %v2988_v36  ;;  %v2990_v52 = vmul.f32 10.0, %v13194_v0  ;;  %vm4267_vm12 = vcmp.ge.f32.partialorder %v13123_v48, -0.1 }
 0x115   :  { %21099 = vst [vmem:[#allocation60_spill] sm:$0xff] %v13165_v40  ;;  %21101 = vst [vmem:[#allocation62_spill] sm:$0xff] %v13178_v3  ;;  %v3242_v3 = vmul.f32 2.0, %v2986_v59  ;;  %v3754_v40 = vadd.f32 1.0, %v2986_v59  ;;  %v13216_v59 = vmul.f32 2.0, %v2989_v6  ;;  %v13233_v1 = vsub.f32 %v12837_v30, %v12916_v2 }
 0x116   :  { %638 = vbcast.lane.b32.xlu1 %v13026_v42, 296  ;;  %634 = vbcast.lane.b32.xlu0 %v13026_v42, 288  ;;  %vm4268_vm13 = vcmp.ge.f32.partialorder %v13159_v4, -0.1  ;;  %v13240_v51 = vsel %vm2728_vm11, 1.0, %v21092_v43  ;;  %v13243_v14 = vmul.f32 2.0, %v2991_v47  ;;  %v13250_v2 = vsel %vm2728_vm11, %v3496_v39, %v4520_v7 }
 0x117   :  { %21108 = vst [vmem:[#allocation69_spill] sm:$0xff] %v13240_v51  ;;  %v2993_v54 = vmul.f32 10.0, %v13208_v34  ;;  %21110 = vst [vmem:[#allocation71_spill] sm:$0xff] %v13250_v2  ;;  %v13252_v38 = vadd.f32 1.0, %v2991_v47  ;;  %v13257_v51 = vsub.f32 %v12837_v30, %v12918_v5  ;;  %v13262_v12 = vmul.f32 2.0, %v2990_v52 }
 0x118   :  { %v13197_v50 = vpop.permute.xlu1 %402  ;;  %v13210_v62 = vpop.permute.xlu0 %398  ;;  %v13270_v17 = vsel %vm2729_vm14, 1.0, %v21092_v43  ;;  %v2995_v30 = vmul.f32 10.0, %v13233_v1  ;;  %v13275_v5 = vsub.f32 %v12840_v31, %v12920_v9  ;;  %v4011_v9 = vmul.f32 %v3755_v61, %v3755_v61 }
 0x119   :  { %21103 = vst [vmem:[#allocation64_spill] sm:$0xff] %v13197_v50  ;;  %21105 = vst [vmem:[#allocation66_spill] sm:$0xff] %v13210_v62  ;;  %v13225_v50 = vadd.f32 1.0, %v2989_v6  ;;  %v3244_v62 = vmul.f32 2.0, %v2988_v36  ;;  %v4010_v36 = vmul.f32 %v3754_v40, %v3754_v40  ;;  %v3497_v6 = vadd.f32 1.0, %v3241_v37 }
 0x11a   :  { %646 = vbcast.lane.b32.xlu1 %v13026_v42, 312  ;;  %642 = vbcast.lane.b32.xlu0 %v13026_v42, 304  ;;  %v4521_v40 = vsel %vm4265_vm8, %v4009_v63, 0.0  ;;  %21111 = vst [vmem:[#allocation72_spill] sm:$0xff] %v13270_v17  ;;  %v3498_v37 = vadd.f32 1.0, %v3242_v3  ;;  %v13282_v39 = vmul.f32 2.0, %v2993_v54  ;;  %v13286_v63 = vsub.f32 %v12840_v31, %v12922_v10 }
 0x11b   :  { %v4522_v47 = vsel %vm4266_vm9, %v4010_v36, 0.0  ;;  %vm4269_vm0 = vcmp.ge.f32.partialorder %v13153_v58, -0.1  ;;  %v13295_v2 = vadd.f32 1.0, %v2993_v54  ;;  %v2994_v36 = vmul.f32 10.0, %v13257_v51 }
 0x11c   :  { %v13235_v44 = vpop.permute.xlu1 %410  ;;  %v13246_v56 = vpop.permute.xlu0 %406  ;;  %v13304_v10 = vsel %vm2730_vm15, %v3498_v37, %v4522_v47  ;;  %v13307_v41 = vsel %vm2730_vm15, 1.0, %v21092_v43  ;;  %vm2731_vm1 = vcmp.gt.f32.partialorder %v13123_v48, 0.0  ;;  %v4012_v61 = vmul.f32 %v3756_v57, %v3756_v57 }
 0x11d   :  { %21107 = vst [vmem:[#allocation68_spill] sm:$0xff] %v13235_v44  ;;  %21109 = vst [vmem:[#allocation70_spill] sm:$0xff] %v13246_v56  ;;  %v2992_v44 = vmul.f32 10.0, %v13220_v55  ;;  %v13264_v56 = vadd.f32 1.0, %v2990_v52  ;;  %v13292_v52 = vsel %vm2729_vm14, %v3497_v6, %v4521_v40  ;;  %vm4270_vm2 = vcmp.ge.f32.partialorder %v13194_v0, -0.1 }
 0x11e   :  { %654 = vbcast.lane.b32.xlu1 %v13026_v42, 328  ;;  %650 = vbcast.lane.b32.xlu0 %v13026_v42, 320  ;;  %21114 = vst [vmem:[#allocation75_spill] sm:$0xff] %v13292_v52  ;;  %21115 = vst [vmem:[#allocation76_spill] sm:$0xff] %v13304_v10  ;;  %v13311_v54 = vmul.f32 2.0, %v2995_v30  ;;  %v13316_v6 = vsub.f32 %v12840_v31, %v12924_v11  ;;  %v3499_v37 = vadd.f32 1.0, %v13189_v49 }
 0x11f   :  { %v13297_v17 = vmul.f32 2.0, %v2992_v44  ;;  %v13299_v46 = vadd.f32 1.0, %v2992_v44  ;;  %21116 = vst [vmem:[#allocation77_spill] sm:$0xff] %v13307_v41  ;;  %v2997_v44 = vmul.f32 10.0, %v13275_v5  ;;  %v13321_v47 = vadd.f32 1.0, %v2995_v30 }
 0x120   :  { %v13277_v7 = vpop.permute.xlu1 %421  ;;  %v13288_v3 = vpop.permute.xlu0 %417  ;;  %v2996_v41 = vmul.f32 10.0, %v13286_v63  ;;  %v13326_v57 = vsub.f32 %v12840_v31, %v12926_v13  ;;  %v4523_v52 = vsel %vm4267_vm12, %v4011_v9, 0.0  ;;  %v13334_v11 = vadd.f32 1.0, %v2994_v36 }
 0x121   :  { %21112 = vst [vmem:[#allocation73_spill] sm:$0xff] %v13277_v7  ;;  %21113 = vst [vmem:[#allocation74_spill] sm:$0xff] %v13288_v3  ;;  %v13332_v3 = vmul.f32 2.0, %v2994_v36  ;;  %v13340_v49 = vsel %vm2731_vm1, 1.0, %v21092_v43  ;;  %v3500_v30 = vadd.f32 1.0, %v3244_v62  ;;  %v13344_v13 = vsub.f32 %v12840_v31, %v12929_v15 }
 0x122   :  { %662 = vbcast.lane.b32.xlu1 %v13026_v42, 344  ;;  %658 = vbcast.lane.b32.xlu0 %v13026_v42, 336  ;;  %21119 = vst [vmem:[#allocation80_spill] sm:$0xff] %v13340_v49  ;;  %vm2732_vm3 = vcmp.gt.f32.partialorder %v13159_v4, 0.0  ;;  %v4524_v9 = vsel %vm4268_vm13, %v4012_v61, 0.0  ;;  %v4013_v36 = vmul.f32 %v13225_v50, %v13225_v50  ;;  %v13357_v62 = vsub.f32 %v12840_v31, %v12931_v16 }
 0x123   :  { %v13363_v49 = vsel %vm2731_vm1, %v3499_v37, %v4523_v52  ;;  %vm4271_vm4 = vcmp.ge.f32.partialorder %v13176_v60, -0.1  ;;  %v13366_v61 = vadd.f32 1.0, %v2997_v44  ;;  %v13368_v7 = vmul.f32 2.0, %v2996_v41 }
 0x124   :  { %v13318_v40 = vpop.permute.xlu1 %429  ;;  %v13328_v10 = vpop.permute.xlu0 %425  ;;  %21121 = vst [vmem:[#allocation82_spill] sm:$0xff] %v13363_v49  ;;  %v13370_v50 = vadd.f32 1.0, %v2996_v41  ;;  %v2998_v8 = vmul.f32 10.0, %v13326_v57  ;;  %v13378_v16 = vsel %vm2732_vm3, %v3500_v30, %v4524_v9  ;;  %v13383_v48 = vsel %vm2732_vm3, 1.0, %v21092_v43 }
 0x125   :  { %21117 = vst [vmem:[#allocation78_spill] sm:$0xff] %v13318_v40  ;;  %21118 = vst [vmem:[#allocation79_spill] sm:$0xff] %v13328_v10  ;;  %v13352_v10 = vmul.f32 2.0, %v2997_v44  ;;  %v2999_v40 = vmul.f32 10.0, %v13316_v6  ;;  %vm2733_vm5 = vcmp.gt.f32.partialorder %v13153_v58, 0.0  ;;  %v3501_v52 = vadd.f32 1.0, %v13216_v59 }
 0x126   :  { %670 = vbcast.lane.b32.xlu1 %v13026_v42, 360  ;;  %666 = vbcast.lane.b32.xlu0 %v13026_v42, 352  ;;  %21123 = vst [vmem:[#allocation84_spill] sm:$0xff] %v13378_v16  ;;  %21124 = vst [vmem:[#allocation85_spill] sm:$0xff] %v13383_v48  ;;  %vm4272_vm6 = vcmp.ge.f32.partialorder %v13220_v55, -0.1  ;;  %v13391_v44 = vsub.f32 %v12840_v31, %v12936_v18  ;;  %v4014_v4 = vmul.f32 %v13264_v56, %v13264_v56 }
 0x127   :  { %v3001_v41 = vmul.f32 10.0, %v13344_v13  ;;  %v4525_v37 = vsel %vm4269_vm0, %v4013_v36, 0.0  ;;  %v13398_v30 = vmul.f32 2.0, %v2999_v40  ;;  %v13400_v9 = vadd.f32 1.0, %v2999_v40 }
 0x128   :  { %v13359_v15 = vpop.permute.xlu1 %437  ;;  %v13373_v53 = vpop.permute.xlu0 %433  ;;  %v3000_v59 = vmul.f32 10.0, %v13357_v62  ;;  %v13405_v48 = vsub.f32 %v12840_v31, %v12938_v19  ;;  %v13409_v16 = vmul.f32 2.0, %v2998_v8  ;;  %v13418_v56 = vsel %vm2733_vm5, 1.0, %v21092_v43 }
 0x129   :  { %21120 = vst [vmem:[#allocation81_spill] sm:$0xff] %v13359_v15  ;;  %21122 = vst [vmem:[#allocation83_spill] sm:$0xff] %v13373_v53  ;;  %vm2734_vm7 = vcmp.gt.f32.partialorder %v13194_v0, 0.0  ;;  %v13423_v40 = vsub.f32 %v12840_v31, %v12940_v20  ;;  %v13428_v19 = vsel %vm2733_vm5, %v3501_v52, %v4525_v37  ;;  %v4015_v49 = vmul.f32 %v13252_v38, %v13252_v38 }
 0x12a   :  { %678 = vbcast.lane.b32.xlu1 %v13026_v42, 376  ;;  %674 = vbcast.lane.b32.xlu0 %v13026_v42, 368  ;;  %v13411_v42 = vadd.f32 1.0, %v2998_v8  ;;  %21127 = vst [vmem:[#allocation88_spill] sm:$0xff] %v13418_v56  ;;  %21128 = vst [vmem:[#allocation89_spill] sm:$0xff] %v13428_v19  ;;  %v3502_v8 = vadd.f32 1.0, %v13262_v12  ;;  %v13484_v15 = vsub.f32 %v12840_v31, %v12946_v23 }
 0x12b   :  { %v3003_v56 = vmul.f32 10.0, %v13391_v44  ;;  %v4526_v20 = vsel %vm4270_vm2, %v4014_v4, 0.0  ;;  %v13443_v58 = vadd.f32 1.0, %v3001_v41  ;;  %v13445_v52 = vmul.f32 2.0, %v3000_v59 }
 0x12c   :  { %v13407_v18 = vpop.permute.xlu1 %445  ;;  %v13413_v36 = vpop.permute.xlu0 %441  ;;  %v13447_v12 = vadd.f32 1.0, %v3000_v59  ;;  %v3002_v38 = vmul.f32 10.0, %v13405_v48  ;;  %vm4273_vm8 = vcmp.ge.f32.partialorder %v13208_v34, -0.1  ;;  %vm4274_vm9 = vcmp.ge.f32.partialorder %v13257_v51, -0.1 }
 0x12d   :  { %21125 = vst [vmem:[#allocation86_spill] sm:$0xff] %v13407_v18  ;;  %21126 = vst [vmem:[#allocation87_spill] sm:$0xff] %v13413_v36  ;;  %v13433_v36 = vmul.f32 2.0, %v3001_v41  ;;  %v13438_v18 = vsub.f32 %v12840_v31, %v12942_v21  ;;  %v13456_v21 = vsub.f32 %v12840_v31, %v12944_v22  ;;  %v13463_v41 = vsel %vm2734_vm7, 1.0, %v21092_v43 }
 0x12e   :  { %1325 = vbcast.lane.b32.xlu1 %v13033_v35, 264  ;;  %1321 = vbcast.lane.b32.xlu0 %v13033_v35, 256  ;;  %21132 = vst [vmem:[#allocation93_spill] sm:$0xff] %v13463_v41  ;;  %vm2735_vm10 = vcmp.gt.f32.partialorder %v13176_v60, 0.0  ;;  %v3503_v4 = vadd.f32 1.0, %v13243_v14  ;;  %v3005_v59 = vmul.f32 10.0, %v13423_v40  ;;  %v13502_v23 = vsub.f32 %v12840_v31, %v12948_v24 }
 0x12f   :  { %21130 = vst [vmem:[#allocation91_spill] sm:$0xff] %v13456_v21  ;;  %v4527_v22 = vsel %vm4271_vm4, %v4015_v49, 0.0  ;;  %v13477_v53 = vmul.f32 2.0, %v3003_v56  ;;  %v13479_v41 = vadd.f32 1.0, %v3003_v56  ;;  %v3004_v14 = vmul.f32 10.0, %v13438_v18 }
 0x130   :  { %v13450_v37 = vpop.permute.xlu1 %453  ;;  %v13458_v19 = vpop.permute.xlu0 %449  ;;  %v13487_v0 = vmul.f32 2.0, %v3002_v38  ;;  %vm2736_vm11 = vcmp.gt.f32.partialorder %v13220_v55, 0.0  ;;  %v3007_v56 = vmul.f32 10.0, %v13456_v21  ;;  %v13522_v21 = vadd.f32 1.0, %v3005_v59 }
 0x131   :  { %21129 = vst [vmem:[#allocation90_spill] sm:$0xff] %v13450_v37  ;;  %21131 = vst [vmem:[#allocation92_spill] sm:$0xff] %v13458_v19  ;;  %v13471_v37 = vsel %vm2734_vm7, %v3502_v8, %v4526_v20  ;;  %v4016_v19 = vmul.f32 %v13299_v46, %v13299_v46  ;;  %v13489_v8 = vadd.f32 1.0, %v3002_v38  ;;  %v13496_v46 = vsel %vm2735_vm10, 1.0, %v21092_v43 }
 0x132   :  { %1333 = vbcast.lane.b32.xlu1 %v13033_v35, 280  ;;  %21133 = vst [vmem:[#allocation94_spill] sm:$0xff] %v13471_v37  ;;  %1329 = vbcast.lane.b32.xlu0 %v13033_v35, 272  ;;  %21135 = vst [vmem:[#allocation96_spill] sm:$0xff] %v13496_v46  ;;  %v13508_v38 = vsel %vm2735_vm10, %v3503_v4, %v4527_v22  ;;  %v3504_v37 = vadd.f32 1.0, %v13297_v17  ;;  %v13515_v46 = vsub.f32 %v12840_v31, %v12950_v25 }
 0x133   :  { %21137 = vst [vmem:[#allocation98_spill] sm:$0xff] %v13508_v38  ;;  %v4528_v24 = vsel %vm4272_vm6, %v4016_v19, 0.0  ;;  %v13524_v60 = vmul.f32 2.0, %v3004_v14  ;;  %v13526_v4 = vadd.f32 1.0, %v3004_v14  ;;  %v3006_v17 = vmul.f32 10.0, %v13484_v15 }
 0x134   :  { %v13491_v49 = vpop.permute.xlu1 %461  ;;  %v13504_v20 = vpop.permute.xlu0 %457  ;;  %vm4275_vm12 = vcmp.ge.f32.partialorder %v13233_v1, -0.1  ;;  %vm4276_vm13 = vcmp.ge.f32.partialorder %v13286_v63, -0.1  ;;  %v13534_v25 = vsub.f32 %v12840_v31, %v12952_v26  ;;  %vm2737_vm14 = vcmp.gt.f32.partialorder %v13208_v34, 0.0 }
 0x135   :  { %21134 = vst [vmem:[#allocation95_spill] sm:$0xff] %v13491_v49  ;;  %21136 = vst [vmem:[#allocation97_spill] sm:$0xff] %v13504_v20  ;;  %v13511_v49 = vmul.f32 2.0, %v3005_v59  ;;  %v4017_v20 = vmul.f32 %v13295_v2, %v13295_v2  ;;  %v13541_v2 = vsel %vm2736_vm11, 1.0, %v21092_v43  ;;  %v4018_v59 = vmul.f32 %v13334_v11, %v13334_v11 }
 0x136   :  { %1341 = vbcast.lane.b32.xlu1 %v13033_v35, 296  ;;  %1337 = vbcast.lane.b32.xlu0 %v13033_v35, 288  ;;  %21140 = vst [vmem:[#allocation101_spill] sm:$0xff] %v13541_v2  ;;  %v13546_v22 = vmul.f32 2.0, %v3007_v56  ;;  %v3009_v14 = vmul.f32 10.0, %v13502_v23  ;;  %v13553_v26 = vsel %vm2736_vm11, %v3504_v37, %v4528_v24  ;;  %v3008_v2 = vmul.f32 10.0, %v13515_v46 }
 0x137   :  { %21138 = vst [vmem:[#allocation99_spill] sm:$0xff] %v13511_v49  ;;  %21142 = vst [vmem:[#allocation103_spill] sm:$0xff] %v13553_v26  ;;  %v13556_v49 = vadd.f32 1.0, %v3007_v56  ;;  %v13561_v33 = vsub.f32 %v12840_v31, %v12954_v27  ;;  %v4529_v11 = vsel %vm4273_vm8, %v4017_v20, 0.0  ;;  %v13568_v55 = vadd.f32 1.0, %v3006_v17 }
 0x138   :  { %v13536_v19 = vpop.permute.xlu1 %469  ;;  %v13549_v38 = vpop.permute.xlu0 %465  ;;  %v3506_v37 = vadd.f32 1.0, %v13332_v3  ;;  %v3011_v31 = vmul.f32 10.0, %v13534_v25  ;;  %v13580_v27 = vsub.f32 %v12843_v32, %v12956_v28  ;;  %vm2738_vm15 = vcmp.gt.f32.partialorder %v13257_v51, 0.0 }
 0x139   :  { %21139 = vst [vmem:[#allocation100_spill] sm:$0xff] %v13536_v19  ;;  %21141 = vst [vmem:[#allocation102_spill] sm:$0xff] %v13549_v38  ;;  %v3505_v19 = vadd.f32 1.0, %v13282_v39  ;;  %v13566_v38 = vmul.f32 2.0, %v3006_v17  ;;  %v13574_v39 = vsel %vm2737_vm14, 1.0, %v21092_v43  ;;  %v4530_v20 = vsel %vm4274_vm9, %v4018_v59, 0.0 }
 0x13a   :  { %1349 = vbcast.lane.b32.xlu1 %v13033_v35, 312  ;;  %1345 = vbcast.lane.b32.xlu0 %v13033_v35, 304  ;;  %21143 = vst [vmem:[#allocation104_spill] sm:$0xff] %v13574_v39  ;;  %21144 = vst [vmem:[#allocation105_spill] sm:$0xff] %v13580_v27  ;;  %v13587_v24 = vmul.f32 2.0, %v3009_v14  ;;  %v13591_v43 = vsub.f32 %v12843_v32, %v12958_v29  ;;  %v4019_v28 = vmul.f32 %v13321_v47, %v13321_v47 }
 0x13b   :  { %v13597_v17 = vsel %vm2737_vm14, %v3505_v19, %v4529_v11  ;;  %vm4277_vm0 = vcmp.ge.f32.partialorder %v13275_v5, -0.1  ;;  %v13602_v26 = vadd.f32 1.0, %v3009_v14  ;;  %v13604_v59 = vmul.f32 2.0, %v3008_v2  ;;  %v13615_v19 = vld [vmem:[#allocation7 + $0x8] sm:$0xff] }
 0x13c   :  { %v13582_v56 = vpop.permute.xlu1 %477  ;;  %21146 = vst [vmem:[#allocation107_spill] sm:$0xff] %v13587_v24  ;;  %v13593_v3 = vpop.permute.xlu0 %473  ;;  %21148 = vst [vmem:[#allocation109_spill] sm:$0xff] %v13597_v17  ;;  %v13606_v39 = vadd.f32 1.0, %v3008_v2  ;;  %v3010_v29 = vmul.f32 10.0, %v13561_v33  ;;  %v13613_v34 = vsel %vm2738_vm15, %v3506_v37, %v4530_v20  ;;  %v13620_v47 = vsel %vm2738_vm15, 1.0, %v13615_v19  ;;  %v21152_v37 = vld [vmem:[#allocation21_spill] sm:$0xff] }
 0x13d   :  { %21145 = vst [vmem:[#allocation106_spill] sm:$0xff] %v13582_v56  ;;  %21147 = vst [vmem:[#allocation108_spill] sm:$0xff] %v13593_v3  ;;  %vm2739_vm1 = vcmp.gt.f32.partialorder %v13233_v1, 0.0  ;;  %v4020_v2 = vmul.f32 %v13370_v50, %v13370_v50  ;;  %vm4278_vm2 = vcmp.ge.f32.partialorder %v13326_v57, -0.1  ;;  %v13626_v14 = vmul.f32 2.0, %v3011_v31 }
 0x13e   :  { %1357 = vbcast.lane.b32.xlu1 %v13033_v35, 328  ;;  %1353 = vbcast.lane.b32.xlu0 %v13033_v35, 320  ;;  %21149 = vst [vmem:[#allocation110_spill] sm:$0xff] %v13613_v34  ;;  %21150 = vst [vmem:[#allocation111_spill] sm:$0xff] %v13620_v47  ;;  %v3013_v11 = vmul.f32 10.0, %v13580_v27  ;;  %v13631_v20 = vsub.f32 %v12843_v32, %v21152_v37  ;;  %v3507_v51 = vadd.f32 1.0, %v13311_v54 }
 0x13f   :  { %21151 = vst [vmem:[#allocation112_spill] sm:$0xff] %v13626_v14  ;;  %v13636_v47 = vadd.f32 1.0, %v3011_v31  ;;  %v3012_v17 = vmul.f32 10.0, %v13591_v43  ;;  %v21156_v3 = vld [vmem:[#allocation22_spill] sm:$0xff]  ;;  %v4531_v14 = vsel %vm4275_vm12, %v4019_v28, 0.0  ;;  %v13647_v27 = vmul.f32 2.0, %v3010_v29 }
 0x140   :  { %21153 = vst [vmem:[#allocation21_spill] sm:$0xff] %v13631_v20  ;;  %v13633_v34 = vpop.permute.xlu1 %488  ;;  %v13641_v50 = vsub.f32 %v12843_v32, %v21156_v3  ;;  %v13643_v56 = vpop.permute.xlu0 %484  ;;  %v13649_v37 = vadd.f32 1.0, %v3010_v29  ;;  %v13655_v54 = vsel %vm2739_vm1, 1.0, %v13615_v19  ;;  %v3508_v31 = vadd.f32 1.0, %v13368_v7  ;;  %v21160_v3 = vld [vmem:[#allocation23_spill] sm:$0xff] }
 0x141   :  { %21154 = vst [vmem:[#allocation113_spill] sm:$0xff] %v13633_v34  ;;  %21155 = vst [vmem:[#allocation114_spill] sm:$0xff] %v13636_v47  ;;  %v13660_v34 = vsub.f32 %v12843_v32, %v21160_v3  ;;  %vm2740_vm3 = vcmp.gt.f32.partialorder %v13286_v63, 0.0  ;;  %v4532_v28 = vsel %vm4276_vm13, %v4020_v2, 0.0  ;;  %v4021_v29 = vmul.f32 %v13366_v61, %v13366_v61  ;;  %v21163_v47 = vld [vmem:[#allocation24_spill] sm:$0xff] }
 0x142   :  { %21157 = vst [vmem:[#allocation22_spill] sm:$0xff] %v13643_v56  ;;  %21158 = vst [vmem:[#allocation115_spill] sm:$0xff] %v13647_v27  ;;  %1365 = vbcast.lane.b32.xlu1 %v13033_v35, 344  ;;  %1361 = vbcast.lane.b32.xlu0 %v13033_v35, 336  ;;  %v13668_v56 = vmul.f32 2.0, %v3013_v11  ;;  %v13673_v7 = vsub.f32 %v12843_v32, %v21163_v47  ;;  %v13679_v27 = vsel %vm2739_vm1, %v3507_v51, %v4531_v14 }
 0x143   :  { %21159 = vst [vmem:[#allocation116_spill] sm:$0xff] %v13655_v54  ;;  %21161 = vst [vmem:[#allocation23_spill] sm:$0xff] %v13660_v34  ;;  %v3015_v54 = vmul.f32 10.0, %v13631_v20  ;;  %vm4279_vm4 = vcmp.ge.f32.partialorder %v13316_v6, -0.1  ;;  %v13682_v2 = vadd.f32 1.0, %v3013_v11  ;;  %v13694_v47 = vsel %vm2740_vm3, %v3508_v31, %v4532_v28 }
 0x144   :  { %21162 = vst [vmem:[#allocation117_spill] sm:$0xff] %v13668_v56  ;;  %v13675_v3 = vpop.permute.xlu1 %496  ;;  %21165 = vst [vmem:[#allocation118_spill] sm:$0xff] %v13679_v27  ;;  %v13684_v24 = vmul.f32 2.0, %v3012_v17  ;;  %v13686_v61 = vadd.f32 1.0, %v3012_v17  ;;  %v3014_v56 = vmul.f32 10.0, %v13641_v50  ;;  %v13689_v20 = vpop.permute.xlu0 %492  ;;  %v13699_v1 = vsel %vm2740_vm3, 1.0, %v13615_v19 }
 0x145   :  { %21164 = vst [vmem:[#allocation24_spill] sm:$0xff] %v13675_v3  ;;  %21166 = vst [vmem:[#allocation119_spill] sm:$0xff] %v13689_v20  ;;  %vm2741_vm5 = vcmp.gt.f32.partialorder %v13275_v5, 0.0  ;;  %v3509_v17 = vadd.f32 1.0, %v13352_v10  ;;  %vm4280_vm6 = vcmp.ge.f32.partialorder %v13357_v62, -0.1  ;;  %v4022_v63 = vmul.f32 %v13411_v42, %v13411_v42 }
 0x146   :  { %1373 = vbcast.lane.b32.xlu1 %v13033_v35, 360  ;;  %21167 = vst [vmem:[#allocation120_spill] sm:$0xff] %v13694_v47  ;;  %21168 = vst [vmem:[#allocation121_spill] sm:$0xff] %v13699_v1  ;;  %v3017_v14 = vmul.f32 10.0, %v13660_v34  ;;  %v21169_v11 = vld [vmem:[#allocation25_spill] sm:$0xff]  ;;  %1369 = vbcast.lane.b32.xlu0 %v13033_v35, 352 }
 0x147   :  { %v13707_v51 = vsub.f32 %v12843_v32, %v21169_v11  ;;  %v4533_v31 = vsel %vm4277_vm0, %v4021_v29, 0.0  ;;  %v13714_v28 = vmul.f32 2.0, %v3015_v54  ;;  %v13716_v1 = vadd.f32 1.0, %v3015_v54  ;;  %v21173_v47 = vld [vmem:[#allocation26_spill] sm:$0xff]  ;;  %v21177_v54 = vld [vmem:[#allocation27_spill] sm:$0xff]  ;;  %v21181_v34 = vld [vmem:[#allocation28_spill] sm:$0xff] }
 0x148   :  { %v3016_v10 = vmul.f32 10.0, %v13673_v7  ;;  %v13721_v27 = vsub.f32 %v12843_v32, %v21173_v47  ;;  %v13723_v11 = vpop.permute.xlu1 %504  ;;  %v13725_v20 = vmul.f32 2.0, %v3014_v56  ;;  %v13727_v3 = vadd.f32 1.0, %v3014_v56  ;;  %v13729_v29 = vpop.permute.xlu0 %500 }
 0x149   :  { %21170 = vst [vmem:[#allocation25_spill] sm:$0xff] %v13707_v51  ;;  %21171 = vst [vmem:[#allocation122_spill] sm:$0xff] %v13714_v28  ;;  %v13734_v42 = vsel %vm2741_vm5, 1.0, %v13615_v19  ;;  %vm2742_vm7 = vcmp.gt.f32.partialorder %v13326_v57, 0.0  ;;  %v13739_v28 = vsub.f32 %v12843_v32, %v21177_v54  ;;  %v13744_v47 = vsel %vm2741_vm5, %v3509_v17, %v4533_v31 }
 0x14a   :  { %21172 = vst [vmem:[#allocation123_spill] sm:$0xff] %v13716_v1  ;;  %21174 = vst [vmem:[#allocation26_spill] sm:$0xff] %v13723_v11  ;;  %1381 = vbcast.lane.b32.xlu1 %v13033_v35, 376  ;;  %v3510_v56 = vadd.f32 1.0, %v13409_v16  ;;  %v13749_v11 = vmul.f32 2.0, %v3017_v14  ;;  %v13754_v1 = vsub.f32 %v12843_v32, %v21181_v34  ;;  %1377 = vbcast.lane.b32.xlu0 %v13033_v35, 368 }
 0x14b   :  { %21175 = vst [vmem:[#allocation124_spill] sm:$0xff] %v13729_v29  ;;  %21176 = vst [vmem:[#allocation125_spill] sm:$0xff] %v13734_v42  ;;  %v4023_v29 = vmul.f32 %v13400_v9, %v13400_v9  ;;  %v3019_v42 = vmul.f32 10.0, %v13707_v51  ;;  %v4534_v5 = vsel %vm4278_vm2, %v4022_v63, 0.0  ;;  %v13759_v17 = vadd.f32 1.0, %v3017_v14  ;;  %v21184_v34 = vld [vmem:[#allocation29_spill] sm:$0xff] }
 0x14c   :  { %21178 = vst [vmem:[#allocation27_spill] sm:$0xff] %v13739_v28  ;;  %21179 = vst [vmem:[#allocation126_spill] sm:$0xff] %v13744_v47  ;;  %v13761_v31 = vmul.f32 2.0, %v3016_v10  ;;  %v13763_v16 = vadd.f32 1.0, %v3016_v10  ;;  %v3018_v9 = vmul.f32 10.0, %v13721_v27  ;;  %v13766_v54 = vpop.permute.xlu1 %512  ;;  %v13772_v35 = vsub.f32 %v12843_v32, %v21184_v34  ;;  %v13774_v47 = vpop.permute.xlu0 %508 }
 0x14d   :  { %21180 = vst [vmem:[#allocation127_spill] sm:$0xff] %v13749_v11  ;;  %21182 = vst [vmem:[#allocation28_spill] sm:$0xff] %v13759_v17  ;;  %vm4281_vm8 = vcmp.ge.f32.partialorder %v13344_v13, -0.1  ;;  %vm4282_vm9 = vcmp.ge.f32.partialorder %v13405_v48, -0.1  ;;  %v13787_v11 = vsel %vm2742_vm7, %v3510_v56, %v4534_v5 }
 0x14e   :  { %21183 = vst [vmem:[#allocation128_spill] sm:$0xff] %v13766_v54  ;;  %21185 = vst [vmem:[#allocation29_spill] sm:$0xff] %v13772_v35  ;;  %v13779_v14 = vsel %vm2742_vm7, 1.0, %v13615_v19  ;;  %vm2743_vm10 = vcmp.gt.f32.partialorder %v13316_v6, 0.0  ;;  %v3511_v63 = vadd.f32 1.0, %v13398_v30  ;;  %v3021_v10 = vmul.f32 10.0, %v13739_v28 }
 0x14f   :  { %21186 = vst [vmem:[#allocation129_spill] sm:$0xff] %v13774_v47  ;;  %21187 = vst [vmem:[#allocation130_spill] sm:$0xff] %v13779_v14  ;;  %v21188_v54 = vld [vmem:[#allocation39_spill] sm:$0xff]  ;;  %v4535_v34 = vsel %vm4279_vm4, %v4023_v29, 0.0  ;;  %v4024_v47 = vmul.f32 %v13447_v12, %v13447_v12  ;;  %v13793_v51 = vmul.f32 2.0, %v3019_v42  ;;  %v13795_v14 = vadd.f32 1.0, %v3019_v42 }
 0x150   :  { %1392 = vbcast.lane.b32.xlu1 %v21188_v54, 264  ;;  %21189 = vst [vmem:[#allocation131_spill] sm:$0xff] %v13787_v11  ;;  %v3020_v30 = vmul.f32 10.0, %v13754_v1  ;;  %v21192_v17 = vld [vmem:[#allocation30_spill] sm:$0xff]  ;;  %1388 = vbcast.lane.b32.xlu0 %v21188_v54, 256  ;;  %v13803_v57 = vmul.f32 2.0, %v3018_v9  ;;  %v13807_v29 = vpop.permute.xlu1 %520  ;;  %v13820_v11 = vpop.permute.xlu0 %516 }
 0x151   :  { %21190 = vst [vmem:[#allocation132_spill] sm:$0xff] %v13793_v51  ;;  %21191 = vst [vmem:[#allocation133_spill] sm:$0xff] %v13795_v14  ;;  %v13800_v28 = vsub.f32 %v12843_v32, %v21192_v17  ;;  %v13805_v56 = vadd.f32 1.0, %v3018_v9  ;;  %v13812_v12 = vsel %vm2743_vm10, 1.0, %v13615_v19  ;;  %vm2744_vm11 = vcmp.gt.f32.partialorder %v13357_v62, 0.0  ;;  %v21196_v5 = vld [vmem:[#allocation31_spill] sm:$0xff] }
 0x152   :  { %21194 = vst [vmem:[#allocation134_spill] sm:$0xff] %v13807_v29  ;;  %21195 = vst [vmem:[#allocation135_spill] sm:$0xff] %v13812_v12  ;;  %v3023_v42 = vmul.f32 10.0, %v13772_v35  ;;  %v13818_v17 = vsub.f32 %v12843_v32, %v21196_v5  ;;  %v13824_v9 = vsel %vm2743_vm10, %v3511_v63, %v4535_v34  ;;  %v3512_v29 = vadd.f32 1.0, %v13445_v52  ;;  %v21200_v14 = vld [vmem:[#allocation32_spill] sm:$0xff] }
 0x153   :  { %21193 = vst [vmem:[#allocation30_spill] sm:$0xff] %v13800_v28  ;;  %21197 = vst [vmem:[#allocation31_spill] sm:$0xff] %v13820_v11  ;;  %v13827_v51 = vmul.f32 2.0, %v3021_v10  ;;  %v13831_v12 = vsub.f32 %v12843_v32, %v21200_v14  ;;  %v4536_v5 = vsel %vm4280_vm6, %v4024_v47, 0.0  ;;  %v4025_v11 = vmul.f32 %v13443_v58, %v13443_v58  ;;  %v21203_v14 = vld [vmem:[#allocation33_spill] sm:$0xff] }
 0x154   :  { %21198 = vst [vmem:[#allocation136_spill] sm:$0xff] %v13824_v9  ;;  %1400 = vbcast.lane.b32.xlu1 %v21188_v54, 280  ;;  %v13838_v35 = vadd.f32 1.0, %v3021_v10  ;;  %v13840_v6 = vmul.f32 2.0, %v3020_v30  ;;  %v13842_v63 = vadd.f32 1.0, %v3020_v30  ;;  %v3022_v52 = vmul.f32 10.0, %v13800_v28  ;;  %v13852_v34 = vpop.permute.xlu1 %528 }
 0x155   :  { %21199 = vst [vmem:[#allocation137_spill] sm:$0xff] %v13827_v51  ;;  %1396 = vbcast.lane.b32.xlu0 %v21188_v54, 272  ;;  %vm4283_vm12 = vcmp.ge.f32.partialorder %v13391_v44, -0.1  ;;  %vm4284_vm13 = vcmp.ge.f32.partialorder %v13438_v18, -0.1  ;;  %v13850_v47 = vsub.f32 %v12843_v32, %v21203_v14  ;;  %v4026_v10 = vmul.f32 %v13489_v8, %v13489_v8  ;;  %v13865_v51 = vpop.permute.xlu0 %524 }
 0x156   :  { %21201 = vst [vmem:[#allocation32_spill] sm:$0xff] %v13838_v35  ;;  %21202 = vst [vmem:[#allocation138_spill] sm:$0xff] %v13840_v6  ;;  %v13857_v58 = vsel %vm2744_vm11, 1.0, %v13615_v19  ;;  %vm2745_vm14 = vcmp.gt.f32.partialorder %v13344_v13, 0.0  ;;  %v13862_v30 = vmul.f32 2.0, %v3023_v42  ;;  %v3025_v9 = vmul.f32 10.0, %v13818_v17 }
 0x157   :  { %21204 = vst [vmem:[#allocation33_spill] sm:$0xff] %v13850_v47  ;;  %21205 = vst [vmem:[#allocation139_spill] sm:$0xff] %v13852_v34  ;;  %v13869_v14 = vsel %vm2744_vm11, %v3512_v29, %v4536_v5  ;;  %v3513_v34 = vadd.f32 1.0, %v13433_v36  ;;  %v13872_v35 = vadd.f32 1.0, %v3023_v42  ;;  %v21210_v6 = vld [vmem:[#allocation34_spill] sm:$0xff]  ;;  %v4537_v8 = vsel %vm4281_vm8, %v4025_v11, 0.0 }
 0x158   :  { %21206 = vst [vmem:[#allocation140_spill] sm:$0xff] %v13857_v58  ;;  %21207 = vst [vmem:[#allocation141_spill] sm:$0xff] %v13862_v30  ;;  %v3024_v58 = vmul.f32 10.0, %v13831_v12  ;;  %v13877_v28 = vsub.f32 %v12843_v32, %v21210_v6  ;;  %1408 = vbcast.lane.b32.xlu1 %v21188_v54, 296  ;;  %v13884_v62 = vadd.f32 1.0, %v3022_v52  ;;  %v13890_v36 = vsel %vm2745_vm14, 1.0, %v13615_v19  ;;  %v13898_v11 = vpop.permute.xlu1 %536 }
 0x159   :  { %21208 = vst [vmem:[#allocation142_spill] sm:$0xff] %v13865_v51  ;;  %21209 = vst [vmem:[#allocation143_spill] sm:$0xff] %v13869_v14  ;;  %v13882_v51 = vmul.f32 2.0, %v3022_v52  ;;  %1404 = vbcast.lane.b32.xlu0 %v21188_v54, 288  ;;  %v3514_v29 = vadd.f32 1.0, %v13487_v0  ;;  %v3027_v32 = vmul.f32 10.0, %v13850_v47  ;;  %v13909_v0 = vpop.permute.xlu0 %532  ;;  %v13913_v47 = vsel %vm2745_vm14, %v3513_v34, %v4537_v8 }
 0x15a   :  { %21211 = vst [vmem:[#allocation34_spill] sm:$0xff] %v13890_v36  ;;  %v21212_v42 = vld [vmem:[#allocation35_spill] sm:$0xff]  ;;  %v21213_v5 = vld [vmem:[#allocation12_spill] sm:$0xff]  ;;  %vm2746_vm15 = vcmp.gt.f32.partialorder %v13405_v48, 0.0  ;;  %v4538_v52 = vsel %vm4282_vm9, %v4026_v10, 0.0  ;;  %v13903_v14 = vmul.f32 2.0, %v3025_v9 }
 0x15b   :  { %v13896_v6 = vsub.f32 %v21213_v5, %v21212_v42  ;;  %21215 = vst [vmem:[#allocation12_spill] sm:$0xff] %v13898_v11  ;;  %v21217_v30 = vld [vmem:[#allocation36_spill] sm:$0xff]  ;;  %v4027_v42 = vmul.f32 %v13479_v41, %v13479_v41  ;;  %vm4285_vm0 = vcmp.ge.f32.partialorder %v13423_v40, -0.1  ;;  %v13918_v11 = vadd.f32 1.0, %v3025_v9  ;;  %v21223_v8 = vld [vmem:[#allocation37_spill] sm:$0xff] }
 0x15c   :  { %21216 = vst [vmem:[#allocation144_spill] sm:$0xff] %v13903_v14  ;;  %v13907_v36 = vsub.f32 %v21213_v5, %v21217_v30  ;;  %21218 = vst [vmem:[#allocation36_spill] sm:$0xff] %v13913_v47  ;;  %v13920_v48 = vmul.f32 2.0, %v3024_v58  ;;  %v13922_v10 = vadd.f32 1.0, %v3024_v58  ;;  %v3026_v30 = vmul.f32 10.0, %v13877_v28  ;;  %1416 = vbcast.lane.b32.xlu1 %v21188_v54, 312 }
 0x15d   :  { %21214 = vst [vmem:[#allocation35_spill] sm:$0xff] %v13896_v6  ;;  %21219 = vst [vmem:[#allocation145_spill] sm:$0xff] %v13918_v11  ;;  %1412 = vbcast.lane.b32.xlu0 %v21188_v54, 304  ;;  %v13927_v13 = vsel %vm2746_vm15, %v3514_v29, %v4538_v52  ;;  %v13930_v34 = vsel %vm2746_vm15, 1.0, %v13615_v19  ;;  %vm2747_vm1 = vcmp.gt.f32.partialorder %v13391_v44, 0.0  ;;  %v4028_v41 = vmul.f32 %v13526_v4, %v13526_v4  ;;  %v13943_v29 = vpop.permute.xlu1 %544  ;;  %v21227_v14 = vld [vmem:[#allocation40_spill] sm:$0xff]  ;;  %v13953_v11 = vpop.permute.xlu0 %540 }
 0x15e   :  { %21220 = vst [vmem:[#allocation146_spill] sm:$0xff] %v13927_v13  ;;  %21221 = vst [vmem:[#allocation147_spill] sm:$0xff] %v13930_v34  ;;  %vm4286_vm2 = vcmp.ge.f32.partialorder %v13484_v15, -0.1  ;;  %v13936_v9 = vmul.f32 2.0, %v3027_v32  ;;  %v3029_v58 = vmul.f32 10.0, %v13896_v6  ;;  %v13941_v47 = vsub.f32 %v21213_v5, %v21223_v8 }
 0x15f   :  { %21225 = vst [vmem:[#allocation149_spill] sm:$0xff] %v13943_v29  ;;  %v3515_v52 = vadd.f32 1.0, %v13477_v53  ;;  %v13946_v34 = vadd.f32 1.0, %v3027_v32  ;;  %v3028_v13 = vmul.f32 10.0, %v13907_v36  ;;  %v13951_v4 = vsub.f32 %v21213_v5, %v21227_v14  ;;  %21228 = vst [vmem:[#allocation40_spill] sm:$0xff] %v13953_v11 }
 0x160   :  { %21222 = vst [vmem:[#allocation148_spill] sm:$0xff] %v13936_v9  ;;  %21224 = vst [vmem:[#allocation37_spill] sm:$0xff] %v13941_v47  ;;  %v4539_v9 = vsel %vm4283_vm12, %v4027_v42, 0.0  ;;  %v13957_v6 = vmul.f32 2.0, %v3026_v30  ;;  %v13959_v8 = vadd.f32 1.0, %v3026_v30  ;;  %1424 = vbcast.lane.b32.xlu1 %v21188_v54, 328  ;;  %v13970_v14 = vsub.f32 %v21213_v5, %v13076_v45 }
 0x161   :  { %21226 = vst [vmem:[#allocation150_spill] sm:$0xff] %v13946_v34  ;;  %v13965_v53 = vsel %vm2747_vm1, 1.0, %v13615_v19  ;;  %v3516_v32 = vadd.f32 1.0, %v13524_v60  ;;  %1420 = vbcast.lane.b32.xlu0 %v21188_v54, 320  ;;  %vm2748_vm3 = vcmp.gt.f32.partialorder %v13438_v18, 0.0  ;;  %v4540_v42 = vsel %vm4284_vm13, %v4028_v41, 0.0  ;;  %v13985_v45 = vpop.permute.xlu1 %555 }
 0x162   :  { %21229 = vst [vmem:[#allocation151_spill] sm:$0xff] %v13957_v6  ;;  %21230 = vst [vmem:[#allocation152_spill] sm:$0xff] %v13959_v8  ;;  %v4029_v30 = vmul.f32 %v13522_v21, %v13522_v21  ;;  %v13978_v34 = vmul.f32 2.0, %v3029_v58  ;;  %v21234_v6 = vld [vmem:[#allocation48_spill] sm:$0xff]  ;;  %v13989_v11 = vsel %vm2747_vm1, %v3515_v52, %v4539_v9  ;;  %v21237_v8 = vld [vmem:[#allocation91_spill] sm:$0xff]  ;;  %v13992_v41 = vadd.f32 1.0, %v3029_v58 }
 0x163   :  { %21231 = vst [vmem:[#allocation153_spill] sm:$0xff] %v13965_v53  ;;  %21232 = vst [vmem:[#allocation154_spill] sm:$0xff] %v13970_v14  ;;  %v3031_v53 = vmul.f32 10.0, %v13941_v47  ;;  %v13983_v60 = vsub.f32 %v21213_v5, %v21234_v6  ;;  %vm4287_vm4 = vcmp.ge.f32.partialorder %v21237_v8, -0.1  ;;  %v13994_v29 = vmul.f32 2.0, %v3028_v13  ;;  %v13999_v47 = vpop.permute.xlu0 %551 }
 0x164   :  { %21233 = vst [vmem:[#allocation155_spill] sm:$0xff] %v13978_v34  ;;  %21236 = vst [vmem:[#allocation156_spill] sm:$0xff] %v13989_v11  ;;  %v13996_v21 = vadd.f32 1.0, %v3028_v13  ;;  %v3030_v34 = vmul.f32 10.0, %v13951_v4  ;;  %1432 = vbcast.lane.b32.xlu1 %v21188_v54, 344  ;;  %v14004_v6 = vsel %vm2748_vm3, %v3516_v32, %v4540_v42  ;;  %v14009_v44 = vsel %vm2748_vm3, 1.0, %v13615_v19 }
 0x165   :  { %21235 = vst [vmem:[#allocation48_spill] sm:$0xff] %v13983_v60  ;;  %21238 = vst [vmem:[#allocation91_spill] sm:$0xff] %v13992_v41  ;;  %vm2749_vm5 = vcmp.gt.f32.partialorder %v13423_v40, 0.0  ;;  %v21242_v9 = vld [vmem:[#allocation99_spill] sm:$0xff]  ;;  %vm4288_vm6 = vcmp.ge.f32.partialorder %v13515_v46, -0.1  ;;  %v4030_v18 = vmul.f32 %v13568_v55, %v13568_v55 }
 0x166   :  { %21239 = vst [vmem:[#allocation157_spill] sm:$0xff] %v13994_v29  ;;  %21240 = vst [vmem:[#allocation158_spill] sm:$0xff] %v14004_v6  ;;  %v3517_v13 = vadd.f32 1.0, %v21242_v9  ;;  %v3033_v58 = vmul.f32 10.0, %v13970_v14  ;;  %v21243_v52 = vld [vmem:[#allocation52_spill] sm:$0xff]  ;;  %1428 = vbcast.lane.b32.xlu0 %v21188_v54, 336 }
 0x167   :  { %21241 = vst [vmem:[#allocation159_spill] sm:$0xff] %v14009_v44  ;;  %v14017_v11 = vsub.f32 %v21213_v5, %v21243_v52  ;;  %v4541_v32 = vsel %vm4285_vm0, %v4029_v30, 0.0  ;;  %v14024_v42 = vmul.f32 2.0, %v3031_v53  ;;  %v14026_v44 = vadd.f32 1.0, %v3031_v53  ;;  %v21247_v6 = vld [vmem:[#allocation53_spill] sm:$0xff]  ;;  %v14033_v52 = vpop.permute.xlu1 %563  ;;  %v14039_v30 = vpop.permute.xlu0 %559  ;;  %v21251_v53 = vld [vmem:[#allocation56_spill] sm:$0xff] }
 0x168   :  { %v3032_v9 = vmul.f32 10.0, %v13983_v60  ;;  %v14031_v14 = vsub.f32 %v21213_v5, %v21247_v6  ;;  %v14035_v41 = vmul.f32 2.0, %v3030_v34  ;;  %v14037_v29 = vadd.f32 1.0, %v3030_v34  ;;  %1440 = vbcast.lane.b32.xlu1 %v21188_v54, 360 }
 0x169   :  { %21244 = vst [vmem:[#allocation99_spill] sm:$0xff] %v14017_v11  ;;  %21245 = vst [vmem:[#allocation52_spill] sm:$0xff] %v14024_v42  ;;  %v14044_v55 = vsel %vm2749_vm5, 1.0, %v13615_v19  ;;  %vm2750_vm7 = vcmp.gt.f32.partialorder %v13484_v15, 0.0  ;;  %v14049_v42 = vsub.f32 %v21213_v5, %v21251_v53  ;;  %v14054_v6 = vsel %vm2749_vm5, %v3517_v13, %v4541_v32 }
 0x16a   :  { %21246 = vst [vmem:[#allocation160_spill] sm:$0xff] %v14026_v44  ;;  %21248 = vst [vmem:[#allocation53_spill] sm:$0xff] %v14035_v41  ;;  %v3518_v34 = vadd.f32 1.0, %v13566_v38  ;;  %v4031_v44 = vmul.f32 %v13556_v49, %v13556_v49  ;;  %v14059_v41 = vmul.f32 2.0, %v3033_v58  ;;  %1436 = vbcast.lane.b32.xlu0 %v21188_v54, 352  ;;  %v4542_v40 = vsel %vm4286_vm2, %v4030_v18, 0.0 }
 0x16b   :  { %21249 = vst [vmem:[#allocation161_spill] sm:$0xff] %v14037_v29  ;;  %21250 = vst [vmem:[#allocation162_spill] sm:$0xff] %v14044_v55  ;;  %v3035_v55 = vmul.f32 10.0, %v14017_v11  ;;  %v21255_v29 = vld [vmem:[#allocation57_spill] sm:$0xff]  ;;  %v14069_v13 = vadd.f32 1.0, %v3033_v58  ;;  %v14071_v32 = vmul.f32 2.0, %v3032_v9  ;;  %v14076_v53 = vpop.permute.xlu1 %571  ;;  %v14084_v11 = vpop.permute.xlu0 %567 }
 0x16c   :  { %21252 = vst [vmem:[#allocation56_spill] sm:$0xff] %v14049_v42  ;;  %21253 = vst [vmem:[#allocation163_spill] sm:$0xff] %v14054_v6  ;;  %v14064_v60 = vsub.f32 %v21213_v5, %v21255_v29  ;;  %v14073_v38 = vadd.f32 1.0, %v3032_v9  ;;  %v3034_v49 = vmul.f32 10.0, %v14031_v14  ;;  %vm4289_vm8 = vcmp.ge.f32.partialorder %v13502_v23, -0.1 }
 0x16d   :  { %21254 = vst [vmem:[#allocation164_spill] sm:$0xff] %v14059_v41  ;;  %21257 = vst [vmem:[#allocation165_spill] sm:$0xff] %v14069_v13  ;;  %vm4290_vm9 = vcmp.ge.f32.partialorder %v13561_v33, -0.1  ;;  %v21260_v29 = vld [vmem:[#allocation60_spill] sm:$0xff]  ;;  %v14089_v58 = vsel %vm2750_vm7, 1.0, %v13615_v19  ;;  %v14097_v41 = vsel %vm2750_vm7, %v3518_v34, %v4542_v40  ;;  %v4032_v13 = vmul.f32 %v13606_v39, %v13606_v39 }
 0x16e   :  { %21256 = vst [vmem:[#allocation57_spill] sm:$0xff] %v14064_v60  ;;  %21258 = vst [vmem:[#allocation166_spill] sm:$0xff] %v14071_v32  ;;  %v14082_v6 = vsub.f32 %v21213_v5, %v21260_v29  ;;  %vm2751_vm10 = vcmp.gt.f32.partialorder %v21237_v8, 0.0  ;;  %v3519_v18 = vadd.f32 1.0, %v13546_v22  ;;  %v3037_v9 = vmul.f32 10.0, %v14049_v42  ;;  %1448 = vbcast.lane.b32.xlu1 %v21188_v54, 376 }
 0x16f   :  { %21259 = vst [vmem:[#allocation167_spill] sm:$0xff] %v14073_v38  ;;  %21262 = vst [vmem:[#allocation168_spill] sm:$0xff] %v14089_v58  ;;  %v4543_v29 = vsel %vm4287_vm4, %v4031_v44, 0.0  ;;  %v14103_v32 = vmul.f32 2.0, %v3035_v55  ;;  %v14105_v58 = vadd.f32 1.0, %v3035_v55  ;;  %v3036_v22 = vmul.f32 10.0, %v14064_v60  ;;  %v14117_v44 = vpop.permute.xlu1 %579 }
 0x170   :  { %21261 = vst [vmem:[#allocation60_spill] sm:$0xff] %v14082_v6  ;;  %21263 = vst [vmem:[#allocation169_spill] sm:$0xff] %v14097_v41  ;;  %v21266_v38 = vld [vmem:[#allocation62_spill] sm:$0xff]  ;;  %1444 = vbcast.lane.b32.xlu0 %v21188_v54, 368  ;;  %v14113_v15 = vmul.f32 2.0, %v3034_v49  ;;  %v14115_v34 = vadd.f32 1.0, %v3034_v49  ;;  %v14130_v54 = vpop.permute.xlu0 %575  ;;  %v14134_v49 = vsel %vm2751_vm10, %v3519_v18, %v4543_v29 }
 0x171   :  { %21264 = vst [vmem:[#allocation170_spill] sm:$0xff] %v14103_v32  ;;  %21265 = vst [vmem:[#allocation171_spill] sm:$0xff] %v14105_v58  ;;  %v14110_v42 = vsub.f32 %v21213_v5, %v21266_v38  ;;  %v14122_v39 = vsel %vm2751_vm10, 1.0, %v13615_v19  ;;  %vm2752_vm11 = vcmp.gt.f32.partialorder %v13515_v46, 0.0  ;;  %v3039_v55 = vmul.f32 10.0, %v14082_v6  ;;  %v21271_v40 = vld [vmem:[#allocation64_spill] sm:$0xff] }
 0x172   :  { %21268 = vst [vmem:[#allocation172_spill] sm:$0xff] %v14113_v15  ;;  %21269 = vst [vmem:[#allocation173_spill] sm:$0xff] %v14115_v34  ;;  %v14128_v38 = vsub.f32 %v21213_v5, %v21271_v40  ;;  %v3520_v41 = vadd.f32 1.0, %v13604_v59  ;;  %v14137_v32 = vmul.f32 2.0, %v3037_v9  ;;  %v21275_v58 = vld [vmem:[#allocation66_spill] sm:$0xff]  ;;  %v21277_v15 = vld [vmem:[#allocation41_spill] sm:$0xff]  ;;  %v4033_v6 = vmul.f32 %v13602_v26, %v13602_v26 }
 0x173   :  { %21267 = vst [vmem:[#allocation62_spill] sm:$0xff] %v14110_v42  ;;  %21270 = vst [vmem:[#allocation174_spill] sm:$0xff] %v14122_v39  ;;  %v14141_v39 = vsub.f32 %v21213_v5, %v21275_v58  ;;  %1459 = vbcast.lane.b32.xlu1 %v21277_v15, 264  ;;  %v4544_v40 = vsel %vm4288_vm6, %v4032_v13, 0.0  ;;  %v14148_v34 = vadd.f32 1.0, %v3037_v9  ;;  %v14150_v8 = vmul.f32 2.0, %v3036_v22  ;;  %v14162_v29 = vpop.permute.xlu1 %587 }
 0x174   :  { %21272 = vst [vmem:[#allocation64_spill] sm:$0xff] %v14128_v38  ;;  %21273 = vst [vmem:[#allocation175_spill] sm:$0xff] %v14134_v49  ;;  %v14152_v18 = vadd.f32 1.0, %v3036_v22  ;;  %v3038_v59 = vmul.f32 10.0, %v14110_v42  ;;  %1455 = vbcast.lane.b32.xlu0 %v21277_v15, 256  ;;  %v21281_v58 = vld [vmem:[#allocation68_spill] sm:$0xff]  ;;  %v4034_v9 = vmul.f32 %v13649_v37, %v13649_v37 }
 0x175   :  { %21274 = vst [vmem:[#allocation176_spill] sm:$0xff] %v14137_v32  ;;  %21276 = vst [vmem:[#allocation66_spill] sm:$0xff] %v14141_v39  ;;  %vm4291_vm12 = vcmp.ge.f32.partialorder %v13534_v25, -0.1  ;;  %vm4292_vm13 = vcmp.ge.f32.partialorder %v13591_v43, -0.1  ;;  %v14160_v13 = vsub.f32 %v21213_v5, %v21281_v58  ;;  %v14175_v32 = vpop.permute.xlu0 %583  ;;  %v14179_v58 = vsel %vm2752_vm11, %v3520_v41, %v4544_v40 }
 0x176   :  { %21278 = vst [vmem:[#allocation177_spill] sm:$0xff] %v14148_v34  ;;  %21279 = vst [vmem:[#allocation178_spill] sm:$0xff] %v14150_v8  ;;  %v14167_v26 = vsel %vm2752_vm11, 1.0, %v13615_v19  ;;  %vm2753_vm14 = vcmp.gt.f32.partialorder %v13502_v23, 0.0  ;;  %v14172_v22 = vmul.f32 2.0, %v3039_v55  ;;  %v3041_v49 = vmul.f32 10.0, %v14128_v38 }
 0x177   :  { %21280 = vst [vmem:[#allocation179_spill] sm:$0xff] %v14152_v18  ;;  %21282 = vst [vmem:[#allocation68_spill] sm:$0xff] %v14160_v13  ;;  %v21286_v34 = vld [vmem:[#allocation107_spill] sm:$0xff]  ;;  %v14182_v42 = vadd.f32 1.0, %v3039_v55  ;;  %v21288_v18 = vld [vmem:[#allocation70_spill] sm:$0xff]  ;;  %1467 = vbcast.lane.b32.xlu1 %v21277_v15, 280 }
 0x178   :  { %21283 = vst [vmem:[#allocation180_spill] sm:$0xff] %v14167_v26  ;;  %21284 = vst [vmem:[#allocation181_spill] sm:$0xff] %v14172_v22  ;;  %v3521_v8 = vadd.f32 1.0, %v21286_v34  ;;  %v3040_v26 = vmul.f32 10.0, %v14141_v39  ;;  %v14187_v60 = vsub.f32 %v21213_v5, %v21288_v18  ;;  %v4545_v37 = vsel %vm4289_vm8, %v4033_v6, 0.0  ;;  %1463 = vbcast.lane.b32.xlu0 %v21277_v15, 272  ;;  %v14208_v6 = vpop.permute.xlu1 %595 }
 0x179   :  { %21285 = vst [vmem:[#allocation182_spill] sm:$0xff] %v14179_v58  ;;  %21287 = vst [vmem:[#allocation107_spill] sm:$0xff] %v14182_v42  ;;  %v14192_v22 = vmul.f32 2.0, %v3038_v59  ;;  %v14194_v46 = vadd.f32 1.0, %v3038_v59  ;;  %v14200_v41 = vsel %vm2753_vm14, 1.0, %v13615_v19  ;;  %v21293_v34 = vld [vmem:[#allocation115_spill] sm:$0xff] }
 0x17a   :  { %21289 = vst [vmem:[#allocation70_spill] sm:$0xff] %v14187_v60  ;;  %21292 = vst [vmem:[#allocation185_spill] sm:$0xff] %v14200_v41  ;;  %v3522_v55 = vadd.f32 1.0, %v21293_v34  ;;  %v3043_v5 = vmul.f32 10.0, %v14160_v13  ;;  %v21294_v40 = vld [vmem:[#allocation73_spill] sm:$0xff]  ;;  %vm2754_vm15 = vcmp.gt.f32.partialorder %v13561_v33, 0.0  ;;  %v14219_v34 = vpop.permute.xlu0 %591  ;;  %v14223_v13 = vsel %vm2753_vm14, %v3521_v8, %v4545_v37 }
 0x17b   :  { %21290 = vst [vmem:[#allocation183_spill] sm:$0xff] %v14192_v22  ;;  %21291 = vst [vmem:[#allocation184_spill] sm:$0xff] %v14194_v46  ;;  %v21295_v18 = vld [vmem:[#allocation13_spill] sm:$0xff]  ;;  %v4546_v59 = vsel %vm4290_vm9, %v4034_v9, 0.0  ;;  %v14213_v38 = vmul.f32 2.0, %v3041_v49  ;;  %v21298_v42 = vld [vmem:[#allocation74_spill] sm:$0xff] }
 0x17c   :  { %v14206_v58 = vsub.f32 %v21295_v18, %v21294_v40  ;;  %v14217_v41 = vsub.f32 %v21295_v18, %v21298_v42  ;;  %21300 = vst [vmem:[#allocation74_spill] sm:$0xff] %v14223_v13  ;;  %v21301_v40 = vld [vmem:[#allocation114_spill] sm:$0xff]  ;;  %v21302_v46 = vld [vmem:[#allocation105_spill] sm:$0xff]  ;;  %v14228_v39 = vadd.f32 1.0, %v3041_v49  ;;  %v14230_v33 = vmul.f32 2.0, %v3040_v26  ;;  %1475 = vbcast.lane.b32.xlu1 %v21277_v15, 296 }
 0x17d   :  { %21297 = vst [vmem:[#allocation73_spill] sm:$0xff] %v14213_v38  ;;  %v4035_v22 = vmul.f32 %v21301_v40, %v21301_v40  ;;  %vm4293_vm0 = vcmp.ge.f32.partialorder %v21302_v46, -0.1  ;;  %v14232_v9 = vadd.f32 1.0, %v3040_v26  ;;  %v3042_v42 = vmul.f32 10.0, %v14187_v60  ;;  %1471 = vbcast.lane.b32.xlu0 %v21277_v15, 288 }
 0x17e   :  { %21296 = vst [vmem:[#allocation115_spill] sm:$0xff] %v14206_v58  ;;  %21299 = vst [vmem:[#allocation13_spill] sm:$0xff] %v14217_v41  ;;  %v14237_v23 = vsel %vm2754_vm15, %v3522_v55, %v4546_v59  ;;  %v14240_v8 = vsel %vm2754_vm15, 1.0, %v13615_v19  ;;  %vm2755_vm1 = vcmp.gt.f32.partialorder %v13534_v25, 0.0  ;;  %v4036_v49 = vmul.f32 %v13686_v61, %v13686_v61  ;;  %v21309_v40 = vld [vmem:[#allocation78_spill] sm:$0xff]  ;;  %v14253_v55 = vpop.permute.xlu1 %603  ;;  %v21311_v59 = vld [vmem:[#allocation112_spill] sm:$0xff] }
 0x17f   :  { %21303 = vst [vmem:[#allocation114_spill] sm:$0xff] %v14228_v39  ;;  %21304 = vst [vmem:[#allocation105_spill] sm:$0xff] %v14230_v33  ;;  %vm4294_vm2 = vcmp.ge.f32.partialorder %v13641_v50, -0.1  ;;  %v14246_v26 = vmul.f32 2.0, %v3043_v5  ;;  %v3045_v37 = vmul.f32 10.0, %v14206_v58  ;;  %v14251_v13 = vsub.f32 %v21295_v18, %v21309_v40  ;;  %v14263_v33 = vpop.permute.xlu0 %599 }
 0x180   :  { %21305 = vst [vmem:[#allocation186_spill] sm:$0xff] %v14232_v9  ;;  %21306 = vst [vmem:[#allocation187_spill] sm:$0xff] %v14237_v23  ;;  %v3523_v23 = vadd.f32 1.0, %v21311_v59  ;;  %v3044_v38 = vmul.f32 10.0, %v14217_v41  ;;  %v21313_v39 = vld [vmem:[#allocation79_spill] sm:$0xff]  ;;  %v14267_v58 = vmul.f32 2.0, %v3042_v42 }
 0x181   :  { %21307 = vst [vmem:[#allocation188_spill] sm:$0xff] %v14240_v8  ;;  %21308 = vst [vmem:[#allocation189_spill] sm:$0xff] %v14246_v26  ;;  %v14256_v8 = vadd.f32 1.0, %v3043_v5  ;;  %v14261_v61 = vsub.f32 %v21295_v18, %v21313_v39  ;;  %v4547_v26 = vsel %vm4291_vm12, %v4035_v22, 0.0  ;;  %v14269_v40 = vadd.f32 1.0, %v3042_v42  ;;  %1483 = vbcast.lane.b32.xlu1 %v21277_v15, 312 }
 0x182   :  { %21310 = vst [vmem:[#allocation78_spill] sm:$0xff] %v14251_v13  ;;  %21315 = vst [vmem:[#allocation190_spill] sm:$0xff] %v14267_v58  ;;  %v14275_v5 = vsel %vm2755_vm1, 1.0, %v13615_v19  ;;  %v3524_v59 = vadd.f32 1.0, %v13684_v24  ;;  %v21318_v39 = vld [vmem:[#allocation81_spill] sm:$0xff]  ;;  %1479 = vbcast.lane.b32.xlu0 %v21277_v15, 304  ;;  %v4037_v42 = vmul.f32 %v13682_v2, %v13682_v2 }
 0x183   :  { %21312 = vst [vmem:[#allocation112_spill] sm:$0xff] %v14256_v8  ;;  %21314 = vst [vmem:[#allocation79_spill] sm:$0xff] %v14261_v61  ;;  %v14280_v8 = vsub.f32 %v21295_v18, %v21318_v39  ;;  %vm2756_vm3 = vcmp.gt.f32.partialorder %v13591_v43, 0.0  ;;  %v4548_v22 = vsel %vm4292_vm13, %v4036_v49, 0.0  ;;  %v14288_v58 = vmul.f32 2.0, %v3045_v37  ;;  %v21321_v41 = vld [vmem:[#allocation83_spill] sm:$0xff]  ;;  %v14295_v39 = vpop.permute.xlu1 %611 }
 0x184   :  { %21316 = vst [vmem:[#allocation191_spill] sm:$0xff] %v14269_v40  ;;  %21317 = vst [vmem:[#allocation192_spill] sm:$0xff] %v14275_v5  ;;  %v3047_v5 = vmul.f32 10.0, %v14251_v13  ;;  %v14293_v24 = vsub.f32 %v21295_v18, %v21321_v41  ;;  %v14299_v40 = vsel %vm2755_vm1, %v3523_v23, %v4547_v26  ;;  %v21324_v9 = vld [vmem:[#allocation21_spill] sm:$0xff]  ;;  %v14302_v49 = vadd.f32 1.0, %v3045_v37  ;;  %v14309_v13 = vpop.permute.xlu0 %607  ;;  %v21331_v37 = vld [vmem:[#allocation86_spill] sm:$0xff] }
 0x185   :  { %21319 = vst [vmem:[#allocation81_spill] sm:$0xff] %v14280_v8  ;;  %21320 = vst [vmem:[#allocation193_spill] sm:$0xff] %v14288_v58  ;;  %vm4295_vm4 = vcmp.ge.f32.partialorder %v21324_v9, -0.1  ;;  %v14304_v60 = vmul.f32 2.0, %v3044_v38  ;;  %v14306_v2 = vadd.f32 1.0, %v3044_v38  ;;  %v14314_v41 = vsel %vm2756_vm3, %v3524_v59, %v4548_v22 }
 0x186   :  { %21322 = vst [vmem:[#allocation83_spill] sm:$0xff] %v14293_v24  ;;  %21323 = vst [vmem:[#allocation194_spill] sm:$0xff] %v14299_v40  ;;  %v3046_v58 = vmul.f32 10.0, %v14261_v61  ;;  %1491 = vbcast.lane.b32.xlu1 %v21277_v15, 328  ;;  %v14319_v25 = vsel %vm2756_vm3, 1.0, %v13615_v19  ;;  %vm2757_vm5 = vcmp.gt.f32.partialorder %v21302_v46, 0.0  ;;  %v14327_v40 = vsub.f32 %v21295_v18, %v21331_v37 }
 0x187   :  { %21325 = vst [vmem:[#allocation21_spill] sm:$0xff] %v14302_v49  ;;  %21326 = vst [vmem:[#allocation195_spill] sm:$0xff] %v14304_v60  ;;  %v21330_v23 = vld [vmem:[#allocation117_spill] sm:$0xff]  ;;  %vm4296_vm6 = vcmp.ge.f32.partialorder %v13673_v7, -0.1  ;;  %v3049_v26 = vmul.f32 10.0, %v14280_v8  ;;  %v4038_v43 = vmul.f32 %v13727_v3, %v13727_v3  ;;  %v14343_v37 = vpop.permute.xlu1 %622 }
 0x188   :  { %21327 = vst [vmem:[#allocation196_spill] sm:$0xff] %v14306_v2  ;;  %21328 = vst [vmem:[#allocation197_spill] sm:$0xff] %v14314_v41  ;;  %v3525_v38 = vadd.f32 1.0, %v21330_v23  ;;  %1487 = vbcast.lane.b32.xlu0 %v21277_v15, 320  ;;  %v4549_v59 = vsel %vm4293_vm0, %v4037_v42, 0.0  ;;  %v14334_v22 = vmul.f32 2.0, %v3047_v5  ;;  %v14349_v42 = vpop.permute.xlu0 %618 }
 0x189   :  { %21329 = vst [vmem:[#allocation198_spill] sm:$0xff] %v14319_v25  ;;  %21332 = vst [vmem:[#allocation117_spill] sm:$0xff] %v14327_v40  ;;  %v14336_v25 = vadd.f32 1.0, %v3047_v5  ;;  %v3048_v23 = vmul.f32 10.0, %v14293_v24  ;;  %v21335_v41 = vld [vmem:[#allocation87_spill] sm:$0xff]  ;;  %v14345_v49 = vmul.f32 2.0, %v3046_v58 }
 0x18a   :  { %21333 = vst [vmem:[#allocation86_spill] sm:$0xff] %v14334_v22  ;;  %v14341_v8 = vsub.f32 %v21295_v18, %v21335_v41  ;;  %v14347_v60 = vadd.f32 1.0, %v3046_v58  ;;  %v14354_v3 = vsel %vm2757_vm5, 1.0, %v13615_v19  ;;  %vm2758_vm7 = vcmp.gt.f32.partialorder %v13641_v50, 0.0  ;;  %v21340_v5 = vld [vmem:[#allocation90_spill] sm:$0xff]  ;;  %1499 = vbcast.lane.b32.xlu1 %v21277_v15, 344 }
 0x18b   :  { %21334 = vst [vmem:[#allocation199_spill] sm:$0xff] %v14336_v25  ;;  %21337 = vst [vmem:[#allocation200_spill] sm:$0xff] %v14345_v49  ;;  %v14359_v22 = vsub.f32 %v21295_v18, %v21340_v5  ;;  %v14364_v41 = vsel %vm2757_vm5, %v3525_v38, %v4549_v59  ;;  %v3526_v58 = vadd.f32 1.0, %v13725_v20  ;;  %v21343_v49 = vld [vmem:[#allocation123_spill] sm:$0xff]  ;;  %v21345_v24 = vld [vmem:[#allocation92_spill] sm:$0xff]  ;;  %v4550_v46 = vsel %vm4294_vm2, %v4038_v43, 0.0  ;;  %v14386_v5 = vpop.permute.xlu1 %630 }
 0x18c   :  { %21336 = vst [vmem:[#allocation87_spill] sm:$0xff] %v14341_v8  ;;  %21338 = vst [vmem:[#allocation201_spill] sm:$0xff] %v14347_v60  ;;  %v4039_v25 = vmul.f32 %v21343_v49, %v21343_v49  ;;  %v14369_v60 = vmul.f32 2.0, %v3049_v26  ;;  %v14374_v2 = vsub.f32 %v21295_v18, %v21345_v24  ;;  %1495 = vbcast.lane.b32.xlu0 %v21277_v15, 336  ;;  %v14379_v38 = vadd.f32 1.0, %v3049_v26  ;;  %v21351_v24 = vld [vmem:[#allocation95_spill] sm:$0xff] }
 0x18d   :  { %21339 = vst [vmem:[#allocation202_spill] sm:$0xff] %v14354_v3  ;;  %21341 = vst [vmem:[#allocation90_spill] sm:$0xff] %v14359_v22  ;;  %v3051_v3 = vmul.f32 10.0, %v14327_v40  ;;  %v14381_v59 = vmul.f32 2.0, %v3048_v23  ;;  %v14383_v20 = vadd.f32 1.0, %v3048_v23  ;;  %v3050_v49 = vmul.f32 10.0, %v14341_v8  ;;  %v14394_v40 = vpop.permute.xlu0 %626 }
 0x18e   :  { %21342 = vst [vmem:[#allocation203_spill] sm:$0xff] %v14364_v41  ;;  %21344 = vst [vmem:[#allocation123_spill] sm:$0xff] %v14369_v60  ;;  %v21350_v41 = vld [vmem:[#allocation23_spill] sm:$0xff]  ;;  %vm4298_vm9 = vcmp.ge.f32.partialorder %v13721_v27, -0.1  ;;  %v14392_v60 = vsub.f32 %v21295_v18, %v21351_v24  ;;  %v14399_v26 = vsel %vm2758_vm7, 1.0, %v13615_v19 }
 0x18f   :  { %21346 = vst [vmem:[#allocation92_spill] sm:$0xff] %v14374_v2  ;;  %21347 = vst [vmem:[#allocation204_spill] sm:$0xff] %v14379_v38  ;;  %vm4297_vm8 = vcmp.ge.f32.partialorder %v21350_v41, -0.1  ;;  %vm2759_vm10 = vcmp.gt.f32.partialorder %v21324_v9, 0.0  ;;  %v21354_v43 = vld [vmem:[#allocation122_spill] sm:$0xff]  ;;  %v14407_v38 = vsel %vm2758_vm7, %v3526_v58, %v4550_v46 }
 0x190   :  { %21348 = vst [vmem:[#allocation205_spill] sm:$0xff] %v14381_v59  ;;  %21349 = vst [vmem:[#allocation206_spill] sm:$0xff] %v14383_v20  ;;  %v3527_v23 = vadd.f32 1.0, %v21354_v43  ;;  %v3053_v59 = vmul.f32 10.0, %v14359_v22  ;;  %1507 = vbcast.lane.b32.xlu1 %v21277_v15, 360  ;;  %v4551_v24 = vsel %vm4295_vm4, %v4039_v25, 0.0  ;;  %v4040_v20 = vmul.f32 %v13763_v16, %v13763_v16  ;;  %v14427_v25 = vpop.permute.xlu1 %638 }
 0x191   :  { %21352 = vst [vmem:[#allocation23_spill] sm:$0xff] %v14392_v60  ;;  %21353 = vst [vmem:[#allocation95_spill] sm:$0xff] %v14399_v26  ;;  %v14413_v8 = vmul.f32 2.0, %v3051_v3  ;;  %v14415_v26 = vadd.f32 1.0, %v3051_v3  ;;  %v3052_v43 = vmul.f32 10.0, %v14374_v2  ;;  %v21358_v61 = vld [vmem:[#allocation97_spill] sm:$0xff] }
 0x192   :  { %21355 = vst [vmem:[#allocation122_spill] sm:$0xff] %v14407_v38  ;;  %v14420_v22 = vsub.f32 %v21295_v18, %v21358_v61  ;;  %1503 = vbcast.lane.b32.xlu0 %v21277_v15, 352  ;;  %v14423_v50 = vmul.f32 2.0, %v3050_v49  ;;  %v14425_v58 = vadd.f32 1.0, %v3050_v49  ;;  %v14432_v16 = vsel %vm2759_vm10, 1.0, %v13615_v19  ;;  %v21363_v46 = vld [vmem:[#allocation100_spill] sm:$0xff]  ;;  %v14440_v38 = vpop.permute.xlu0 %634 }
 0x193   :  { %21356 = vst [vmem:[#allocation207_spill] sm:$0xff] %v14413_v8  ;;  %21357 = vst [vmem:[#allocation208_spill] sm:$0xff] %v14415_v26  ;;  %vm2760_vm11 = vcmp.gt.f32.partialorder %v13673_v7, 0.0  ;;  %v3055_v3 = vmul.f32 10.0, %v14392_v60  ;;  %v14438_v61 = vsub.f32 %v21295_v18, %v21363_v46  ;;  %v14444_v49 = vsel %vm2759_vm10, %v3527_v23, %v4551_v24  ;;  %v21367_v26 = vld [vmem:[#allocation102_spill] sm:$0xff]  ;;  %v21369_v60 = vld [vmem:[#allocation28_spill] sm:$0xff] }
 0x194   :  { %21359 = vst [vmem:[#allocation97_spill] sm:$0xff] %v14420_v22  ;;  %21360 = vst [vmem:[#allocation209_spill] sm:$0xff] %v14423_v50  ;;  %v3528_v8 = vadd.f32 1.0, %v13761_v31  ;;  %v14447_v50 = vmul.f32 2.0, %v3053_v59  ;;  %1515 = vbcast.lane.b32.xlu1 %v21277_v15, 376  ;;  %v4552_v46 = vsel %vm4296_vm6, %v4040_v20, 0.0 }
 0x195   :  { %21361 = vst [vmem:[#allocation210_spill] sm:$0xff] %v14425_v58  ;;  %21362 = vst [vmem:[#allocation211_spill] sm:$0xff] %v14432_v16  ;;  %v14451_v16 = vsub.f32 %v21295_v18, %v21367_v26  ;;  %v4041_v58 = vmul.f32 %v21369_v60, %v21369_v60  ;;  %v14458_v2 = vadd.f32 1.0, %v3053_v59  ;;  %v14460_v9 = vmul.f32 2.0, %v3052_v43  ;;  %v21373_v26 = vld [vmem:[#allocation25_spill] sm:$0xff]  ;;  %v21374_v24 = vld [vmem:[#allocation106_spill] sm:$0xff] }
 0x196   :  { %21364 = vst [vmem:[#allocation100_spill] sm:$0xff] %v14438_v61  ;;  %21365 = vst [vmem:[#allocation212_spill] sm:$0xff] %v14444_v49  ;;  %v14462_v23 = vadd.f32 1.0, %v3052_v43  ;;  %v3054_v31 = vmul.f32 10.0, %v14420_v22  ;;  %1511 = vbcast.lane.b32.xlu0 %v21277_v15, 368  ;;  %v14470_v20 = vsub.f32 %v21295_v18, %v21374_v24  ;;  %v14472_v49 = vpop.permute.xlu1 %646  ;;  %v14477_v60 = vsel %vm2760_vm11, 1.0, %v13615_v19 }
 0x197   :  { %21366 = vst [vmem:[#allocation213_spill] sm:$0xff] %v14447_v50  ;;  %21368 = vst [vmem:[#allocation102_spill] sm:$0xff] %v14451_v16  ;;  %vm4299_vm12 = vcmp.ge.f32.partialorder %v21373_v26, -0.1  ;;  %vm4300_vm13 = vcmp.ge.f32.partialorder %v13754_v1, -0.1  ;;  %v4042_v59 = vmul.f32 %v13805_v56, %v13805_v56  ;;  %v14485_v50 = vpop.permute.xlu0 %642  ;;  %v14489_v24 = vsel %vm2760_vm11, %v3528_v8, %v4552_v46 }
 0x198   :  { %21370 = vst [vmem:[#allocation28_spill] sm:$0xff] %v14458_v2  ;;  %21371 = vst [vmem:[#allocation214_spill] sm:$0xff] %v14460_v9  ;;  %vm2761_vm14 = vcmp.gt.f32.partialorder %v21350_v41, 0.0  ;;  %v14482_v43 = vmul.f32 2.0, %v3055_v3  ;;  %v3057_v15 = vmul.f32 10.0, %v14438_v61  ;;  %v21380_v2 = vld [vmem:[#allocation127_spill] sm:$0xff] }
 0x199   :  { %21372 = vst [vmem:[#allocation215_spill] sm:$0xff] %v14462_v23  ;;  %21375 = vst [vmem:[#allocation25_spill] sm:$0xff] %v14470_v20  ;;  %v3529_v9 = vadd.f32 1.0, %v21380_v2  ;;  %v14492_v23 = vadd.f32 1.0, %v3055_v3  ;;  %v21382_v22 = vld [vmem:[#allocation108_spill] sm:$0xff]  ;;  %v21384_v56 = vld [vmem:[#allocation42_spill] sm:$0xff] }
 0x19a   :  { %21376 = vst [vmem:[#allocation106_spill] sm:$0xff] %v14472_v49  ;;  %21377 = vst [vmem:[#allocation216_spill] sm:$0xff] %v14477_v60  ;;  %v3056_v60 = vmul.f32 10.0, %v14451_v16  ;;  %v14497_v49 = vsub.f32 %v21295_v18, %v21382_v22  ;;  %1526 = vbcast.lane.b32.xlu1 %v21384_v56, 264  ;;  %v14502_v61 = vmul.f32 2.0, %v3054_v31  ;;  %v14504_v7 = vadd.f32 1.0, %v3054_v31 }
 0x19b   :  { %21378 = vst [vmem:[#allocation217_spill] sm:$0xff] %v14482_v43  ;;  %21379 = vst [vmem:[#allocation218_spill] sm:$0xff] %v14489_v24  ;;  %v4553_v43 = vsel %vm4297_vm8, %v4041_v58, 0.0  ;;  %1522 = vbcast.lane.b32.xlu0 %v21384_v56, 256  ;;  %v14510_v8 = vsel %vm2761_vm14, 1.0, %v13615_v19  ;;  %v3530_v2 = vadd.f32 1.0, %v13803_v57  ;;  %v14518_v58 = vpop.permute.xlu1 %654  ;;  %v14529_v57 = vpop.permute.xlu0 %650 }
 0x19c   :  { %21381 = vst [vmem:[#allocation127_spill] sm:$0xff] %v14492_v23  ;;  %21383 = vst [vmem:[#allocation108_spill] sm:$0xff] %v14497_v49  ;;  %v3059_v18 = vmul.f32 10.0, %v14470_v20  ;;  %v21388_v22 = vld [vmem:[#allocation113_spill] sm:$0xff]  ;;  %v21389_v3 = vld [vmem:[#allocation14_spill] sm:$0xff]  ;;  %vm2762_vm15 = vcmp.gt.f32.partialorder %v13721_v27, 0.0  ;;  %v14533_v20 = vsel %vm2761_vm14, %v3529_v9, %v4553_v43 }
 0x19d   :  { %21385 = vst [vmem:[#allocation219_spill] sm:$0xff] %v14502_v61  ;;  %21386 = vst [vmem:[#allocation220_spill] sm:$0xff] %v14504_v7  ;;  %v14516_v46 = vsub.f32 %v21389_v3, %v21388_v22  ;;  %v4554_v31 = vsel %vm4298_vm9, %v4042_v59, 0.0  ;;  %v14523_v24 = vmul.f32 2.0, %v3057_v15  ;;  %v21392_v23 = vld [vmem:[#allocation22_spill] sm:$0xff]  ;;  %v21396_v22 = vld [vmem:[#allocation133_spill] sm:$0xff] }
 0x19e   :  { %21387 = vst [vmem:[#allocation221_spill] sm:$0xff] %v14510_v8  ;;  %v14527_v8 = vsub.f32 %v21389_v3, %v21392_v23  ;;  %21394 = vst [vmem:[#allocation222_spill] sm:$0xff] %v14529_v57  ;;  %v4043_v61 = vmul.f32 %v21396_v22, %v21396_v22  ;;  %v21397_v7 = vld [vmem:[#allocation27_spill] sm:$0xff]  ;;  %v14538_v16 = vadd.f32 1.0, %v3057_v15  ;;  %v14540_v27 = vmul.f32 2.0, %v3056_v60  ;;  %1534 = vbcast.lane.b32.xlu1 %v21384_v56, 280 }
 0x19f   :  { %21390 = vst [vmem:[#allocation113_spill] sm:$0xff] %v14516_v46  ;;  %21391 = vst [vmem:[#allocation14_spill] sm:$0xff] %v14523_v24  ;;  %vm4301_vm0 = vcmp.ge.f32.partialorder %v21397_v7, -0.1  ;;  %v14542_v59 = vadd.f32 1.0, %v3056_v60  ;;  %v3058_v23 = vmul.f32 10.0, %v14497_v49  ;;  %v14547_v41 = vsel %vm2762_vm15, %v3530_v2, %v4554_v31  ;;  %v14563_v2 = vpop.permute.xlu1 %662  ;;  %v14573_v49 = vpop.permute.xlu0 %658 }
 0x1a0   :  { %21393 = vst [vmem:[#allocation22_spill] sm:$0xff] %v14527_v8  ;;  %21395 = vst [vmem:[#allocation223_spill] sm:$0xff] %v14533_v20  ;;  %1530 = vbcast.lane.b32.xlu0 %v21384_v56, 272  ;;  %v14550_v9 = vsel %vm2762_vm15, 1.0, %v13615_v19  ;;  %vm2763_vm1 = vcmp.gt.f32.partialorder %v21373_v26, 0.0  ;;  %v4044_v15 = vmul.f32 %v13842_v63, %v13842_v63  ;;  %v21403_v43 = vld [vmem:[#allocation30_spill] sm:$0xff] }
 0x1a1   :  { %21398 = vst [vmem:[#allocation133_spill] sm:$0xff] %v14538_v16  ;;  %21399 = vst [vmem:[#allocation27_spill] sm:$0xff] %v14540_v27  ;;  %vm4302_vm2 = vcmp.ge.f32.partialorder %v21403_v43, -0.1  ;;  %v14556_v60 = vmul.f32 2.0, %v3059_v18  ;;  %v3061_v22 = vmul.f32 10.0, %v14516_v46 }
 0x1a2   :  { %21400 = vst [vmem:[#allocation224_spill] sm:$0xff] %v14542_v59  ;;  %21401 = vst [vmem:[#allocation225_spill] sm:$0xff] %v14547_v41  ;;  %v21405_v20 = vld [vmem:[#allocation24_spill] sm:$0xff]  ;;  %v3060_v27 = vmul.f32 10.0, %v14527_v8  ;;  %v21410_v16 = vld [vmem:[#allocation119_spill] sm:$0xff]  ;;  %v14577_v46 = vmul.f32 2.0, %v3058_v23 }
 0x1a3   :  { %21402 = vst [vmem:[#allocation226_spill] sm:$0xff] %v14550_v9  ;;  %21404 = vst [vmem:[#allocation30_spill] sm:$0xff] %v14556_v60  ;;  %v14561_v24 = vsub.f32 %v21389_v3, %v21405_v20  ;;  %v21408_v31 = vld [vmem:[#allocation132_spill] sm:$0xff]  ;;  %v14566_v9 = vadd.f32 1.0, %v3059_v18  ;;  %v14571_v63 = vsub.f32 %v21389_v3, %v21410_v16  ;;  %v4555_v60 = vsel %vm4299_vm12, %v4043_v61, 0.0  ;;  %1542 = vbcast.lane.b32.xlu1 %v21384_v56, 296 }
 0x1a4   :  { %21407 = vst [vmem:[#allocation227_spill] sm:$0xff] %v14563_v2  ;;  %v3531_v41 = vadd.f32 1.0, %v21408_v31  ;;  %21412 = vst [vmem:[#allocation228_spill] sm:$0xff] %v14573_v49  ;;  %v14579_v20 = vadd.f32 1.0, %v3058_v23  ;;  %v14585_v18 = vsel %vm2763_vm1, 1.0, %v13615_v19  ;;  %v21416_v31 = vld [vmem:[#allocation138_spill] sm:$0xff] }
 0x1a5   :  { %21406 = vst [vmem:[#allocation24_spill] sm:$0xff] %v14561_v24  ;;  %21409 = vst [vmem:[#allocation132_spill] sm:$0xff] %v14566_v9  ;;  %v3532_v8 = vadd.f32 1.0, %v21416_v31  ;;  %v21417_v16 = vld [vmem:[#allocation26_spill] sm:$0xff]  ;;  %1538 = vbcast.lane.b32.xlu0 %v21384_v56, 288  ;;  %vm2764_vm3 = vcmp.gt.f32.partialorder %v13754_v1, 0.0  ;;  %v4046_v1 = vmul.f32 %v13884_v62, %v13884_v62 }
 0x1a6   :  { %21411 = vst [vmem:[#allocation119_spill] sm:$0xff] %v14571_v63  ;;  %21413 = vst [vmem:[#allocation229_spill] sm:$0xff] %v14577_v46  ;;  %v14590_v9 = vsub.f32 %v21389_v3, %v21417_v16  ;;  %v4556_v61 = vsel %vm4300_vm13, %v4044_v15, 0.0  ;;  %v21419_v23 = vld [vmem:[#allocation32_spill] sm:$0xff]  ;;  %v14605_v16 = vpop.permute.xlu1 %670  ;;  %v14609_v49 = vsel %vm2763_vm1, %v3531_v41, %v4555_v60  ;;  %v21424_v2 = vld [vmem:[#allocation29_spill] sm:$0xff]  ;;  %v14612_v15 = vadd.f32 1.0, %v3061_v22 }
 0x1a7   :  { %21414 = vst [vmem:[#allocation230_spill] sm:$0xff] %v14579_v20  ;;  %21415 = vst [vmem:[#allocation231_spill] sm:$0xff] %v14585_v18  ;;  %v4045_v46 = vmul.f32 %v21419_v23, %v21419_v23  ;;  %v14598_v20 = vmul.f32 2.0, %v3061_v22  ;;  %v3063_v18 = vmul.f32 10.0, %v14561_v24  ;;  %v21421_v59 = vld [vmem:[#allocation124_spill] sm:$0xff]  ;;  %v14614_v57 = vmul.f32 2.0, %v3060_v27 }
 0x1a8   :  { %21418 = vst [vmem:[#allocation138_spill] sm:$0xff] %v14590_v9  ;;  %v14603_v31 = vsub.f32 %v21389_v3, %v21421_v59  ;;  %21423 = vst [vmem:[#allocation124_spill] sm:$0xff] %v14609_v49  ;;  %vm4303_vm4 = vcmp.ge.f32.partialorder %v21424_v2, -0.1  ;;  %v14616_v23 = vadd.f32 1.0, %v3060_v27  ;;  %v3062_v24 = vmul.f32 10.0, %v14571_v63 }
 0x1a9   :  { %21420 = vst [vmem:[#allocation26_spill] sm:$0xff] %v14598_v20  ;;  %21425 = vst [vmem:[#allocation29_spill] sm:$0xff] %v14612_v15  ;;  %v14619_v20 = vpop.permute.xlu0 %666  ;;  %1550 = vbcast.lane.b32.xlu1 %v21384_v56, 312  ;;  %v14624_v59 = vsel %vm2764_vm3, %v3532_v8, %v4556_v61  ;;  %v14629_v26 = vsel %vm2764_vm3, 1.0, %v13615_v19  ;;  %vm2765_vm5 = vcmp.gt.f32.partialorder %v21397_v7, 0.0  ;;  %v21430_v41 = vld [vmem:[#allocation137_spill] sm:$0xff] }
 0x1aa   :  { %21422 = vst [vmem:[#allocation32_spill] sm:$0xff] %v14603_v31  ;;  %21426 = vst [vmem:[#allocation232_spill] sm:$0xff] %v14614_v57  ;;  %v3533_v27 = vadd.f32 1.0, %v21430_v41  ;;  %vm4304_vm6 = vcmp.ge.f32.partialorder %v13831_v12, -0.1  ;;  %v3065_v60 = vmul.f32 10.0, %v14590_v9 }
 0x1ab   :  { %21427 = vst [vmem:[#allocation233_spill] sm:$0xff] %v14616_v23  ;;  %21428 = vst [vmem:[#allocation234_spill] sm:$0xff] %v14624_v59  ;;  %v21431_v22 = vld [vmem:[#allocation128_spill] sm:$0xff]  ;;  %1546 = vbcast.lane.b32.xlu0 %v21384_v56, 304  ;;  %v4557_v8 = vsel %vm4301_vm0, %v4045_v46, 0.0  ;;  %v14644_v61 = vmul.f32 2.0, %v3063_v18 }
 0x1ac   :  { %21429 = vst [vmem:[#allocation235_spill] sm:$0xff] %v14629_v26  ;;  %v14637_v49 = vsub.f32 %v21389_v3, %v21431_v22  ;;  %v14646_v26 = vadd.f32 1.0, %v3063_v18  ;;  %v3064_v41 = vmul.f32 10.0, %v14603_v31  ;;  %v21435_v59 = vld [vmem:[#allocation129_spill] sm:$0xff]  ;;  %v14653_v22 = vpop.permute.xlu1 %678  ;;  %v14655_v57 = vmul.f32 2.0, %v3062_v24  ;;  %v21440_v18 = vld [vmem:[#allocation134_spill] sm:$0xff] }
 0x1ad   :  { %21433 = vst [vmem:[#allocation128_spill] sm:$0xff] %v14644_v61  ;;  %v14651_v9 = vsub.f32 %v21389_v3, %v21435_v59  ;;  %v14657_v15 = vadd.f32 1.0, %v3062_v24  ;;  %v14659_v46 = vpop.permute.xlu0 %674  ;;  %v14664_v62 = vsel %vm2765_vm5, 1.0, %v13615_v19  ;;  %vm2766_vm7 = vcmp.gt.f32.partialorder %v21403_v43, 0.0  ;;  %1558 = vbcast.lane.b32.xlu1 %v21384_v56, 328  ;;  %v21456_v31 = vld [vmem:[#allocation142_spill] sm:$0xff] }
 0x1ae   :  { %21432 = vst [vmem:[#allocation137_spill] sm:$0xff] %v14637_v49  ;;  %21434 = vst [vmem:[#allocation236_spill] sm:$0xff] %v14646_v26  ;;  %v14669_v61 = vsub.f32 %v21389_v3, %v21440_v18  ;;  %v14674_v59 = vsel %vm2765_vm5, %v3533_v27, %v4557_v8  ;;  %v3534_v24 = vadd.f32 1.0, %v13882_v51  ;;  %v4047_v26 = vmul.f32 %v13872_v35, %v13872_v35  ;;  %v21479_v23 = vld [vmem:[#allocation40_spill] sm:$0xff] }
 0x1af   :  { %21436 = vst [vmem:[#allocation129_spill] sm:$0xff] %v14651_v9  ;;  %21437 = vst [vmem:[#allocation237_spill] sm:$0xff] %v14655_v57  ;;  %v14679_v57 = vmul.f32 2.0, %v3065_v60  ;;  %v3067_v19 = vmul.f32 10.0, %v14637_v49  ;;  %1554 = vbcast.lane.b32.xlu0 %v21384_v56, 320  ;;  %v4558_v7 = vsel %vm4302_vm2, %v4046_v1, 0.0  ;;  %v14809_v63 = vsub.f32 %v21389_v3, %v21479_v23 }
 0x1b0   :  { %21438 = vst [vmem:[#allocation238_spill] sm:$0xff] %v14657_v15  ;;  %21439 = vst [vmem:[#allocation239_spill] sm:$0xff] %v14664_v62  ;;  %v21444_v62 = vld [vmem:[#allocation31_spill] sm:$0xff]  ;;  %v14689_v27 = vadd.f32 1.0, %v3065_v60  ;;  %v14691_v8 = vmul.f32 2.0, %v3064_v41  ;;  %v14693_v51 = vadd.f32 1.0, %v3064_v41  ;;  %v14696_v18 = vpop.permute.xlu1 %1325 }
 0x1b1   :  { %21441 = vst [vmem:[#allocation134_spill] sm:$0xff] %v14669_v61  ;;  %21442 = vst [vmem:[#allocation240_spill] sm:$0xff] %v14674_v59  ;;  %v14684_v15 = vsub.f32 %v21389_v3, %v21444_v62  ;;  %v3066_v35 = vmul.f32 10.0, %v14651_v9  ;;  %vm4305_vm8 = vcmp.ge.f32.partialorder %v13818_v17, -0.1  ;;  %v21449_v62 = vld [vmem:[#allocation139_spill] sm:$0xff] }
 0x1b2   :  { %21443 = vst [vmem:[#allocation241_spill] sm:$0xff] %v14679_v57  ;;  %21446 = vst [vmem:[#allocation242_spill] sm:$0xff] %v14689_v27  ;;  %vm4306_vm9 = vcmp.ge.f32.partialorder %v13877_v28, -0.1  ;;  %v14702_v59 = vsub.f32 %v21389_v3, %v21449_v62  ;;  %v14704_v57 = vpop.permute.xlu0 %1321  ;;  %v14706_v60 = vld [vmem:[#allocation7 + $0x8] sm:$0xff]  ;;  %vm2767_vm10 = vcmp.gt.f32.partialorder %v21424_v2, 0.0  ;;  %v14719_v62 = vsel %vm2766_vm7, %v3534_v24, %v4558_v7 }
 0x1b3   :  { %21445 = vst [vmem:[#allocation31_spill] sm:$0xff] %v14684_v15  ;;  %21447 = vst [vmem:[#allocation243_spill] sm:$0xff] %v14691_v8  ;;  %v14711_v1 = vsel %vm2766_vm7, 1.0, %v14706_v60  ;;  %v21452_v41 = vld [vmem:[#allocation141_spill] sm:$0xff]  ;;  %v3069_v49 = vmul.f32 10.0, %v14669_v61  ;;  %1566 = vbcast.lane.b32.xlu1 %v21384_v56, 344  ;;  %v14732_v61 = vsub.f32 %v21389_v3, %v21456_v31 }
 0x1b4   :  { %21448 = vst [vmem:[#allocation244_spill] sm:$0xff] %v14693_v51  ;;  %21450 = vst [vmem:[#allocation139_spill] sm:$0xff] %v14702_v59  ;;  %v3535_v27 = vadd.f32 1.0, %v21452_v41  ;;  %v4559_v8 = vsel %vm4303_vm4, %v4047_v26, 0.0  ;;  %v4048_v51 = vmul.f32 %v13922_v10, %v13922_v10  ;;  %v14725_v9 = vmul.f32 2.0, %v3067_v19  ;;  %1562 = vbcast.lane.b32.xlu0 %v21384_v56, 336  ;;  %v14739_v26 = vpop.permute.xlu1 %1333 }
 0x1b5   :  { %21451 = vst [vmem:[#allocation245_spill] sm:$0xff] %v14711_v1  ;;  %21453 = vst [vmem:[#allocation141_spill] sm:$0xff] %v14719_v62  ;;  %v14727_v1 = vadd.f32 1.0, %v3067_v19  ;;  %v3068_v41 = vmul.f32 10.0, %v14684_v15  ;;  %v14735_v43 = vmul.f32 2.0, %v3066_v35  ;;  %v14737_v24 = vadd.f32 1.0, %v3066_v35 }
 0x1b6   :  { %21454 = vst [vmem:[#allocation246_spill] sm:$0xff] %v14725_v9  ;;  %21457 = vst [vmem:[#allocation142_spill] sm:$0xff] %v14732_v61  ;;  %v14744_v10 = vsel %vm2767_vm10, 1.0, %v14706_v60  ;;  %vm2768_vm11 = vcmp.gt.f32.partialorder %v13831_v12, 0.0  ;;  %v3071_v19 = vmul.f32 10.0, %v14702_v59  ;;  %v21461_v7 = vld [vmem:[#allocation12_spill] sm:$0xff]  ;;  %v14752_v62 = vpop.permute.xlu0 %1329  ;;  %v14756_v35 = vsel %vm2767_vm10, %v3535_v27, %v4559_v8 }
 0x1b7   :  { %21455 = vst [vmem:[#allocation247_spill] sm:$0xff] %v14727_v1  ;;  %21458 = vst [vmem:[#allocation248_spill] sm:$0xff] %v14735_v43  ;;  %v14750_v31 = vsub.f32 %v21389_v3, %v21461_v7  ;;  %v3536_v9 = vadd.f32 1.0, %v13920_v48  ;;  %v14759_v1 = vmul.f32 2.0, %v3069_v49  ;;  %1574 = vbcast.lane.b32.xlu1 %v21384_v56, 360  ;;  %v4560_v7 = vsel %vm4304_vm6, %v4048_v51, 0.0 }
 0x1b8   :  { %21459 = vst [vmem:[#allocation249_spill] sm:$0xff] %v14737_v24  ;;  %21460 = vst [vmem:[#allocation250_spill] sm:$0xff] %v14744_v10  ;;  %v14763_v10 = vsub.f32 %v21389_v3, %v13909_v0  ;;  %v21466_v59 = vld [vmem:[#allocation145_spill] sm:$0xff]  ;;  %v14770_v15 = vadd.f32 1.0, %v3069_v49  ;;  %v14772_v2 = vmul.f32 2.0, %v3068_v41  ;;  %v14774_v27 = vadd.f32 1.0, %v3068_v41 }
 0x1b9   :  { %21462 = vst [vmem:[#allocation12_spill] sm:$0xff] %v14750_v31  ;;  %21463 = vst [vmem:[#allocation251_spill] sm:$0xff] %v14756_v35  ;;  %v4049_v43 = vmul.f32 %v21466_v59, %v21466_v59  ;;  %v3070_v48 = vmul.f32 10.0, %v14732_v61  ;;  %1570 = vbcast.lane.b32.xlu0 %v21384_v56, 352  ;;  %v21470_v0 = vld [vmem:[#allocation33_spill] sm:$0xff]  ;;  %v14784_v35 = vpop.permute.xlu1 %1341  ;;  %v14789_v49 = vsel %vm2768_vm11, 1.0, %v14706_v60 }
 0x1ba   :  { %21464 = vst [vmem:[#allocation252_spill] sm:$0xff] %v14759_v1  ;;  %21465 = vst [vmem:[#allocation253_spill] sm:$0xff] %v14763_v10  ;;  %vm4307_vm12 = vcmp.ge.f32.partialorder %v21470_v0, -0.1  ;;  %vm4308_vm13 = vcmp.ge.f32.partialorder %v13907_v36, -0.1 }
 0x1bb   :  { %21467 = vst [vmem:[#allocation145_spill] sm:$0xff] %v14770_v15  ;;  %21468 = vst [vmem:[#allocation254_spill] sm:$0xff] %v14772_v2  ;;  %v21471_v8 = vld [vmem:[#allocation149_spill] sm:$0xff]  ;;  %vm2769_vm14 = vcmp.gt.f32.partialorder %v13818_v17, 0.0  ;;  %v21474_v59 = vld [vmem:[#allocation152_spill] sm:$0xff]  ;;  %v14794_v1 = vmul.f32 2.0, %v3071_v19  ;;  %v14797_v15 = vpop.permute.xlu0 %1337 }
 0x1bc   :  { %21469 = vst [vmem:[#allocation255_spill] sm:$0xff] %v14774_v27  ;;  %v14782_v51 = vsub.f32 %v21389_v3, %v21471_v8  ;;  %21473 = vst [vmem:[#allocation149_spill] sm:$0xff] %v14789_v49  ;;  %v4050_v41 = vmul.f32 %v21474_v59, %v21474_v59  ;;  %v3073_v2 = vmul.f32 10.0, %v14750_v31  ;;  %v14801_v8 = vsel %vm2768_vm11, %v3536_v9, %v4560_v7  ;;  %v21477_v61 = vld [vmem:[#allocation144_spill] sm:$0xff]  ;;  %v21485_v23 = vld [vmem:[#allocation15_spill] sm:$0xff] }
 0x1bd   :  { %21475 = vst [vmem:[#allocation152_spill] sm:$0xff] %v14794_v1  ;;  %21476 = vst [vmem:[#allocation256_spill] sm:$0xff] %v14801_v8  ;;  %v3537_v27 = vadd.f32 1.0, %v21477_v61  ;;  %v14804_v24 = vadd.f32 1.0, %v3071_v19  ;;  %v3072_v49 = vmul.f32 10.0, %v14763_v10  ;;  %1582 = vbcast.lane.b32.xlu1 %v21384_v56, 376  ;;  %v14828_v7 = vsub.f32 %v21485_v23, %v13985_v45 }
 0x1be   :  { %21472 = vst [vmem:[#allocation33_spill] sm:$0xff] %v14782_v51  ;;  %21480 = vst [vmem:[#allocation40_spill] sm:$0xff] %v14809_v63  ;;  %v4561_v59 = vsel %vm4305_vm8, %v4049_v43, 0.0  ;;  %v14814_v31 = vmul.f32 2.0, %v3070_v48  ;;  %v14816_v12 = vadd.f32 1.0, %v3070_v48  ;;  %1578 = vbcast.lane.b32.xlu0 %v21384_v56, 368  ;;  %v14830_v43 = vpop.permute.xlu1 %1349  ;;  %v14839_v8 = vsub.f32 %v21485_v23, %v13999_v47 }
 0x1bf   :  { %21478 = vst [vmem:[#allocation144_spill] sm:$0xff] %v14804_v24  ;;  %v14822_v9 = vsel %vm2769_vm14, 1.0, %v14706_v60  ;;  %v21484_v61 = vld [vmem:[#allocation151_spill] sm:$0xff]  ;;  %v3075_v3 = vmul.f32 10.0, %v14782_v51  ;;  %vm2770_vm15 = vcmp.gt.f32.partialorder %v13877_v28, 0.0  ;;  %v4562_v48 = vsel %vm4306_vm9, %v4050_v41, 0.0 }
 0x1c0   :  { %21481 = vst [vmem:[#allocation257_spill] sm:$0xff] %v14814_v31  ;;  %21482 = vst [vmem:[#allocation258_spill] sm:$0xff] %v14816_v12  ;;  %v3538_v19 = vadd.f32 1.0, %v21484_v61  ;;  %v14835_v56 = vmul.f32 2.0, %v3073_v2  ;;  %v14841_v61 = vpop.permute.xlu0 %1345  ;;  %v21490_v45 = vld [vmem:[#allocation150_spill] sm:$0xff]  ;;  %v21491_v1 = vld [vmem:[#allocation35_spill] sm:$0xff] }
 0x1c1   :  { %21483 = vst [vmem:[#allocation259_spill] sm:$0xff] %v14822_v9  ;;  %21486 = vst [vmem:[#allocation151_spill] sm:$0xff] %v14828_v7  ;;  %v14845_v9 = vsel %vm2769_vm14, %v3537_v27, %v4561_v59  ;;  %v4051_v51 = vmul.f32 %v21490_v45, %v21490_v45  ;;  %vm4309_vm0 = vcmp.ge.f32.partialorder %v21491_v1, -0.1  ;;  %v14850_v31 = vadd.f32 1.0, %v3073_v2  ;;  %v21635_v10 = vld [vmem:[#allocation227_spill] sm:$0xff] }
 0x1c2   :  { %21487 = vst [vmem:[#allocation15_spill] sm:$0xff] %v14835_v56  ;;  %21488 = vst [vmem:[#allocation260_spill] sm:$0xff] %v14839_v8  ;;  %v14852_v28 = vmul.f32 2.0, %v3072_v49  ;;  %v14854_v41 = vadd.f32 1.0, %v3072_v49  ;;  %v3074_v47 = vmul.f32 10.0, %v14809_v63  ;;  %v21495_v56 = vld [vmem:[#allocation43_spill] sm:$0xff]  ;;  %v14859_v17 = vsel %vm2770_vm15, %v3538_v19, %v4562_v48  ;;  %v14875_v19 = vpop.permute.xlu1 %1357 }
 0x1c3   :  { %21489 = vst [vmem:[#allocation261_spill] sm:$0xff] %v14845_v9  ;;  %21492 = vst [vmem:[#allocation150_spill] sm:$0xff] %v14850_v31  ;;  %1593 = vbcast.lane.b32.xlu1 %v21495_v56, 264  ;;  %1589 = vbcast.lane.b32.xlu0 %v21495_v56, 256  ;;  %v14862_v27 = vsel %vm2770_vm15, 1.0, %v14706_v60  ;;  %vm2771_vm1 = vcmp.gt.f32.partialorder %v21470_v0, 0.0  ;;  %v4052_v2 = vmul.f32 %v13996_v21, %v13996_v21 }
 0x1c4   :  { %21493 = vst [vmem:[#allocation35_spill] sm:$0xff] %v14852_v28  ;;  %21494 = vst [vmem:[#allocation262_spill] sm:$0xff] %v14854_v41  ;;  %vm4310_vm2 = vcmp.ge.f32.partialorder %v13951_v4, -0.1  ;;  %v14868_v49 = vmul.f32 2.0, %v3075_v3  ;;  %v3077_v59 = vmul.f32 10.0, %v14828_v7  ;;  %v14873_v45 = vsub.f32 %v21485_v23, %v14033_v52  ;;  %v14885_v31 = vpop.permute.xlu0 %1353 }
 0x1c5   :  { %21496 = vst [vmem:[#allocation263_spill] sm:$0xff] %v14859_v17  ;;  %21497 = vst [vmem:[#allocation264_spill] sm:$0xff] %v14862_v27  ;;  %v21500_v48 = vld [vmem:[#allocation148_spill] sm:$0xff]  ;;  %v14878_v27 = vadd.f32 1.0, %v3075_v3  ;;  %v3076_v9 = vmul.f32 10.0, %v14839_v8  ;;  %v14883_v21 = vsub.f32 %v21485_v23, %v14039_v30  ;;  %v4563_v7 = vsel %vm4307_vm12, %v4051_v51, 0.0 }
 0x1c6   :  { %21498 = vst [vmem:[#allocation265_spill] sm:$0xff] %v14868_v49  ;;  %21499 = vst [vmem:[#allocation266_spill] sm:$0xff] %v14873_v45  ;;  %v3539_v17 = vadd.f32 1.0, %v21500_v48  ;;  %v14889_v49 = vmul.f32 2.0, %v3074_v47  ;;  %v14891_v52 = vadd.f32 1.0, %v3074_v47  ;;  %v14897_v3 = vsel %vm2771_vm1, 1.0, %v14706_v60 }
 0x1c7   :  { %21501 = vst [vmem:[#allocation148_spill] sm:$0xff] %v14878_v27  ;;  %21502 = vst [vmem:[#allocation267_spill] sm:$0xff] %v14883_v21  ;;  %1601 = vbcast.lane.b32.xlu1 %v21495_v56, 280  ;;  %v21506_v48 = vld [vmem:[#allocation157_spill] sm:$0xff]  ;;  %v14902_v30 = vsub.f32 %v21485_v23, %v14076_v53  ;;  %1597 = vbcast.lane.b32.xlu0 %v21495_v56, 272  ;;  %vm2772_vm3 = vcmp.gt.f32.partialorder %v13907_v36, 0.0  ;;  %v14917_v53 = vpop.permute.xlu1 %1365 }
 0x1c8   :  { %21503 = vst [vmem:[#allocation268_spill] sm:$0xff] %v14889_v49  ;;  %21504 = vst [vmem:[#allocation269_spill] sm:$0xff] %v14891_v52  ;;  %v3540_v27 = vadd.f32 1.0, %v21506_v48  ;;  %v4564_v51 = vsel %vm4308_vm13, %v4052_v2, 0.0  ;;  %v21508_v47 = vld [vmem:[#allocation91_spill] sm:$0xff]  ;;  %v14910_v52 = vmul.f32 2.0, %v3077_v59  ;;  %v14915_v48 = vsub.f32 %v21485_v23, %v14084_v11 }
 0x1c9   :  { %21505 = vst [vmem:[#allocation270_spill] sm:$0xff] %v14897_v3  ;;  %21507 = vst [vmem:[#allocation157_spill] sm:$0xff] %v14902_v30  ;;  %v4053_v49 = vmul.f32 %v21508_v47, %v21508_v47  ;;  %v3079_v3 = vmul.f32 10.0, %v14873_v45  ;;  %v14921_v8 = vsel %vm2771_vm1, %v3539_v17, %v4563_v7  ;;  %v21512_v28 = vld [vmem:[#allocation37_spill] sm:$0xff]  ;;  %v14924_v2 = vadd.f32 1.0, %v3077_v59  ;;  %v21516_v11 = vld [vmem:[#allocation48_spill] sm:$0xff] }
 0x1ca   :  { %21509 = vst [vmem:[#allocation91_spill] sm:$0xff] %v14910_v52  ;;  %21510 = vst [vmem:[#allocation271_spill] sm:$0xff] %v14915_v48  ;;  %vm4311_vm4 = vcmp.ge.f32.partialorder %v21512_v28, -0.1  ;;  %v14926_v41 = vmul.f32 2.0, %v3076_v9  ;;  %v14928_v47 = vadd.f32 1.0, %v3076_v9  ;;  %v14931_v52 = vpop.permute.xlu0 %1361  ;;  %v14937_v0 = vsel %vm2772_vm3, %v3540_v27, %v4564_v51 }
 0x1cb   :  { %21511 = vst [vmem:[#allocation272_spill] sm:$0xff] %v14921_v8  ;;  %21513 = vst [vmem:[#allocation37_spill] sm:$0xff] %v14924_v2  ;;  %v3078_v45 = vmul.f32 10.0, %v14883_v21  ;;  %vm4312_vm5 = vcmp.ge.f32.partialorder %v21516_v11, -0.1  ;;  %1609 = vbcast.lane.b32.xlu1 %v21495_v56, 296  ;;  %v14949_v8 = vsub.f32 %v21485_v23, %v14117_v44  ;;  %v14965_v44 = vpop.permute.xlu1 %1373 }
 0x1cc   :  { %21514 = vst [vmem:[#allocation273_spill] sm:$0xff] %v14926_v41  ;;  %21515 = vst [vmem:[#allocation274_spill] sm:$0xff] %v14928_v47  ;;  %v14942_v7 = vsel %vm2772_vm3, 1.0, %v14706_v60  ;;  %vm2773_vm6 = vcmp.gt.f32.partialorder %v21491_v1, 0.0  ;;  %v21519_v9 = vld [vmem:[#allocation155_spill] sm:$0xff]  ;;  %v3081_v59 = vmul.f32 10.0, %v14902_v30  ;;  %v14963_v30 = vsub.f32 %v21485_v23, %v14130_v54 }
 0x1cd   :  { %21517 = vst [vmem:[#allocation48_spill] sm:$0xff] %v14937_v0  ;;  %21518 = vst [vmem:[#allocation275_spill] sm:$0xff] %v14942_v7  ;;  %v3541_v17 = vadd.f32 1.0, %v21519_v9  ;;  %1605 = vbcast.lane.b32.xlu0 %v21495_v56, 288  ;;  %v4565_v27 = vsel %vm4309_vm0, %v4053_v49, 0.0  ;;  %v21521_v51 = vld [vmem:[#allocation161_spill] sm:$0xff] }
 0x1ce   :  { %21520 = vst [vmem:[#allocation155_spill] sm:$0xff] %v14949_v8  ;;  %v4054_v36 = vmul.f32 %v21521_v51, %v21521_v51  ;;  %v14956_v0 = vmul.f32 2.0, %v3079_v3  ;;  %v14958_v7 = vadd.f32 1.0, %v3079_v3  ;;  %v3080_v9 = vmul.f32 10.0, %v14915_v48  ;;  %21524 = vst [vmem:[#allocation277_spill] sm:$0xff] %v14963_v30  ;;  %v14971_v49 = vpop.permute.xlu0 %1369 }
 0x1cf   :  { %v14967_v21 = vmul.f32 2.0, %v3078_v45  ;;  %v14969_v2 = vadd.f32 1.0, %v3078_v45  ;;  %v14976_v51 = vsel %vm2773_vm6, 1.0, %v14706_v60  ;;  %vm2774_vm7 = vcmp.gt.f32.partialorder %v13951_v4, 0.0  ;;  %1617 = vbcast.lane.b32.xlu1 %v21495_v56, 312  ;;  %v21530_v45 = vld [vmem:[#allocation53_spill] sm:$0xff] }
 0x1d0   :  { %21522 = vst [vmem:[#allocation161_spill] sm:$0xff] %v14956_v0  ;;  %21523 = vst [vmem:[#allocation276_spill] sm:$0xff] %v14958_v7  ;;  %v14981_v3 = vsub.f32 %v21485_v23, %v14162_v29  ;;  %v14986_v54 = vsel %vm2773_vm6, %v3541_v17, %v4565_v27  ;;  %v3542_v0 = vadd.f32 1.0, %v21530_v45  ;;  %v14991_v7 = vmul.f32 2.0, %v3081_v59  ;;  %v15008_v45 = vpop.permute.xlu1 %1381 }
 0x1d1   :  { %21525 = vst [vmem:[#allocation278_spill] sm:$0xff] %v14967_v21  ;;  %21526 = vst [vmem:[#allocation279_spill] sm:$0xff] %v14969_v2  ;;  %v21531_v21 = vld [vmem:[#allocation160_spill] sm:$0xff]  ;;  %v14996_v2 = vsub.f32 %v21485_v23, %v14175_v32  ;;  %1613 = vbcast.lane.b32.xlu0 %v21495_v56, 304  ;;  %v4566_v29 = vsel %vm4310_vm2, %v4054_v36, 0.0  ;;  %v15001_v1 = vadd.f32 1.0, %v3081_v59 }
 0x1d2   :  { %21527 = vst [vmem:[#allocation280_spill] sm:$0xff] %v14976_v51  ;;  %21528 = vst [vmem:[#allocation281_spill] sm:$0xff] %v14981_v3  ;;  %v4055_v48 = vmul.f32 %v21531_v21, %v21531_v21  ;;  %v3083_v51 = vmul.f32 10.0, %v14949_v8  ;;  %v15003_v17 = vmul.f32 2.0, %v3080_v9  ;;  %v15005_v27 = vadd.f32 1.0, %v3080_v9  ;;  %v15012_v32 = vpop.permute.xlu0 %1377  ;;  %v21539_v59 = vld [vmem:[#allocation52_spill] sm:$0xff] }
 0x1d3   :  { %21529 = vst [vmem:[#allocation282_spill] sm:$0xff] %v14986_v54  ;;  %21532 = vst [vmem:[#allocation53_spill] sm:$0xff] %v14991_v7  ;;  %v3082_v21 = vmul.f32 10.0, %v14963_v30  ;;  %v21537_v54 = vld [vmem:[#allocation154_spill] sm:$0xff]  ;;  %vm4314_vm9 = vcmp.ge.f32.partialorder %v14031_v14, -0.1  ;;  %v15031_v30 = vsel %vm2774_vm7, %v3542_v0, %v4566_v29 }
 0x1d4   :  { %21533 = vst [vmem:[#allocation160_spill] sm:$0xff] %v14996_v2  ;;  %21534 = vst [vmem:[#allocation283_spill] sm:$0xff] %v15001_v1  ;;  %vm4313_vm8 = vcmp.ge.f32.partialorder %v21537_v54, -0.1  ;;  %v15017_v36 = vsel %vm2774_vm7, 1.0, %v14706_v60  ;;  %vm2775_vm10 = vcmp.gt.f32.partialorder %v21512_v28, 0.0  ;;  %v15049_v0 = vpop.permute.xlu1 %1392 }
 0x1d5   :  { %21535 = vst [vmem:[#allocation284_spill] sm:$0xff] %v15003_v17  ;;  %21536 = vst [vmem:[#allocation285_spill] sm:$0xff] %v15005_v27  ;;  %v3543_v9 = vadd.f32 1.0, %v21539_v59  ;;  %v21540_v8 = vld [vmem:[#allocation167_spill] sm:$0xff]  ;;  %v3085_v1 = vmul.f32 10.0, %v14981_v3  ;;  %v15026_v17 = vsub.f32 %v21485_v23, %v14208_v6  ;;  %1625 = vbcast.lane.b32.xlu1 %v21495_v56, 328  ;;  %v15042_v3 = vsub.f32 %v21485_v23, %v14219_v34 }
 0x1d6   :  { %21538 = vst [vmem:[#allocation154_spill] sm:$0xff] %v15017_v36  ;;  %v4056_v7 = vmul.f32 %v21540_v8, %v21540_v8  ;;  %21542 = vst [vmem:[#allocation167_spill] sm:$0xff] %v15031_v30  ;;  %v4567_v36 = vsel %vm4311_vm4, %v4055_v48, 0.0  ;;  %v15035_v27 = vmul.f32 2.0, %v3083_v51  ;;  %v15037_v59 = vadd.f32 1.0, %v3083_v51  ;;  %1621 = vbcast.lane.b32.xlu0 %v21495_v56, 320  ;;  %v15061_v34 = vpop.permute.xlu0 %1388 }
 0x1d7   :  { %21541 = vst [vmem:[#allocation52_spill] sm:$0xff] %v15026_v17  ;;  %v3084_v8 = vmul.f32 10.0, %v14996_v2  ;;  %21545 = vst [vmem:[#allocation288_spill] sm:$0xff] %v15042_v3  ;;  %v15045_v6 = vmul.f32 2.0, %v3082_v21  ;;  %v15047_v4 = vadd.f32 1.0, %v3082_v21  ;;  %v15054_v48 = vsel %vm2775_vm10, 1.0, %v14706_v60 }
 0x1d8   :  { %21543 = vst [vmem:[#allocation286_spill] sm:$0xff] %v15035_v27  ;;  %21544 = vst [vmem:[#allocation287_spill] sm:$0xff] %v15037_v59  ;;  %v21549_v51 = vld [vmem:[#allocation166_spill] sm:$0xff]  ;;  %v15059_v30 = vsub.f32 %v21485_v23, %v14253_v55  ;;  %v15065_v27 = vsel %vm2775_vm10, %v3543_v9, %v4567_v36  ;;  %vm2776_vm11 = vcmp.gt.f32.partialorder %v21516_v11, 0.0  ;;  %v4568_v21 = vsel %vm4312_vm5, %v4056_v7, 0.0  ;;  %v21554_v55 = vld [vmem:[#allocation165_spill] sm:$0xff] }
 0x1d9   :  { %21546 = vst [vmem:[#allocation289_spill] sm:$0xff] %v15045_v6  ;;  %21547 = vst [vmem:[#allocation290_spill] sm:$0xff] %v15047_v4  ;;  %v3544_v29 = vadd.f32 1.0, %v21549_v51  ;;  %v15070_v59 = vmul.f32 2.0, %v3085_v1  ;;  %v15075_v51 = vsub.f32 %v21485_v23, %v14263_v33  ;;  %1633 = vbcast.lane.b32.xlu1 %v21495_v56, 344  ;;  %v4057_v28 = vmul.f32 %v21554_v55, %v21554_v55  ;;  %v21555_v36 = vld [vmem:[#allocation57_spill] sm:$0xff] }
 0x1da   :  { %21548 = vst [vmem:[#allocation291_spill] sm:$0xff] %v15054_v48  ;;  %21550 = vst [vmem:[#allocation166_spill] sm:$0xff] %v15059_v30  ;;  %v3087_v48 = vmul.f32 10.0, %v15026_v17  ;;  %vm4316_vm12 = vcmp.ge.f32.partialorder %v21555_v36, -0.1  ;;  %v15081_v9 = vadd.f32 1.0, %v3085_v1 }
 0x1db   :  { %21551 = vst [vmem:[#allocation292_spill] sm:$0xff] %v15065_v27  ;;  %21552 = vst [vmem:[#allocation293_spill] sm:$0xff] %v15070_v59  ;;  %v15083_v27 = vmul.f32 2.0, %v3084_v8  ;;  %v15085_v11 = vadd.f32 1.0, %v3084_v8  ;;  %v3086_v7 = vmul.f32 10.0, %v15042_v3  ;;  %1629 = vbcast.lane.b32.xlu0 %v21495_v56, 336  ;;  %v15089_v59 = vpop.permute.xlu1 %1400  ;;  %v15091_v33 = vsel %vm2776_vm11, %v3544_v29, %v4568_v21  ;;  %v15108_v29 = vpop.permute.xlu0 %1396 }
 0x1dc   :  { %21553 = vst [vmem:[#allocation294_spill] sm:$0xff] %v15075_v51  ;;  %21556 = vst [vmem:[#allocation165_spill] sm:$0xff] %v15081_v9  ;;  %v15094_v17 = vsel %vm2776_vm11, 1.0, %v14706_v60  ;;  %vm2777_vm13 = vcmp.gt.f32.partialorder %v21537_v54, 0.0  ;;  %v21561_v55 = vld [vmem:[#allocation173_spill] sm:$0xff]  ;;  %v3089_v9 = vmul.f32 10.0, %v15059_v30  ;;  %v15102_v8 = vsub.f32 %v21485_v23, %v14295_v39 }
 0x1dd   :  { %21557 = vst [vmem:[#allocation57_spill] sm:$0xff] %v15083_v27  ;;  %21558 = vst [vmem:[#allocation295_spill] sm:$0xff] %v15085_v11  ;;  %v4058_v1 = vmul.f32 %v21561_v55, %v21561_v55  ;;  %v15106_v27 = vsub.f32 %v21485_v23, %v14309_v13  ;;  %v21564_v21 = vld [vmem:[#allocation164_spill] sm:$0xff]  ;;  %v15112_v3 = vmul.f32 2.0, %v3087_v48  ;;  %v15114_v11 = vadd.f32 1.0, %v3087_v48  ;;  %1641 = vbcast.lane.b32.xlu1 %v21495_v56, 360 }
 0x1de   :  { %21559 = vst [vmem:[#allocation296_spill] sm:$0xff] %v15091_v33  ;;  %21560 = vst [vmem:[#allocation297_spill] sm:$0xff] %v15094_v17  ;;  %v3545_v33 = vadd.f32 1.0, %v21564_v21  ;;  %v21565_v17 = vld [vmem:[#allocation99_spill] sm:$0xff]  ;;  %v3088_v55 = vmul.f32 10.0, %v15075_v51  ;;  %v4569_v39 = vsel %vm4313_vm8, %v4057_v28, 0.0 }
 0x1df   :  { %21562 = vst [vmem:[#allocation173_spill] sm:$0xff] %v15102_v8  ;;  %21563 = vst [vmem:[#allocation298_spill] sm:$0xff] %v15106_v27  ;;  %vm4315_vm14 = vcmp.ge.f32.partialorder %v21565_v17, -0.1  ;;  %v15120_v30 = vmul.f32 2.0, %v3086_v7  ;;  %v15122_v13 = vadd.f32 1.0, %v3086_v7  ;;  %v15139_v51 = vpop.permute.xlu1 %1408 }
 0x1e0   :  { %21566 = vst [vmem:[#allocation164_spill] sm:$0xff] %v15112_v3  ;;  %21567 = vst [vmem:[#allocation299_spill] sm:$0xff] %v15114_v11  ;;  %1637 = vbcast.lane.b32.xlu0 %v21495_v56, 352  ;;  %v15128_v23 = vsel %vm2777_vm13, 1.0, %v14706_v60  ;;  %v21571_v48 = vld [vmem:[#allocation172_spill] sm:$0xff]  ;;  %vm2778_vm15 = vcmp.gt.f32.partialorder %v14031_v14, 0.0 }
 0x1e1   :  { %21568 = vst [vmem:[#allocation300_spill] sm:$0xff] %v15120_v30  ;;  %21569 = vst [vmem:[#allocation301_spill] sm:$0xff] %v15122_v13  ;;  %v3546_v21 = vadd.f32 1.0, %v21571_v48  ;;  %v21572_v3 = vld [vmem:[#allocation16_spill] sm:$0xff]  ;;  %v4570_v7 = vsel %vm4314_vm9, %v4058_v1, 0.0  ;;  %v15144_v30 = vmul.f32 2.0, %v3089_v9  ;;  %v15148_v13 = vpop.permute.xlu0 %1404 }
 0x1e2   :  { %21570 = vst [vmem:[#allocation302_spill] sm:$0xff] %v15128_v23  ;;  %v15133_v11 = vsub.f32 %v21572_v3, %v14343_v37  ;;  %v15137_v28 = vsub.f32 %v21572_v3, %v14349_v42  ;;  %v3091_v23 = vmul.f32 10.0, %v15102_v8  ;;  %v3090_v48 = vmul.f32 10.0, %v15106_v27  ;;  %v21577_v42 = vld [vmem:[#allocation56_spill] sm:$0xff]  ;;  %1649 = vbcast.lane.b32.xlu1 %v21495_v56, 376  ;;  %v21581_v1 = vld [vmem:[#allocation179_spill] sm:$0xff] }
 0x1e3   :  { %21575 = vst [vmem:[#allocation303_spill] sm:$0xff] %v15144_v30  ;;  %v15152_v37 = vsel %vm2777_vm13, %v3545_v33, %v4569_v39  ;;  %vm4317_vm0 = vcmp.ge.f32.partialorder %v21577_v42, -0.1  ;;  %v15155_v6 = vadd.f32 1.0, %v3089_v9  ;;  %v15157_v4 = vmul.f32 2.0, %v3088_v55  ;;  %v21582_v8 = vld [vmem:[#allocation62_spill] sm:$0xff] }
 0x1e4   :  { %21573 = vst [vmem:[#allocation172_spill] sm:$0xff] %v15133_v11  ;;  %21574 = vst [vmem:[#allocation16_spill] sm:$0xff] %v15137_v28  ;;  %v15159_v2 = vadd.f32 1.0, %v3088_v55  ;;  %v4060_v30 = vmul.f32 %v21581_v1, %v21581_v1  ;;  %vm4318_vm1 = vcmp.ge.f32.partialorder %v21582_v8, -0.1  ;;  %v15167_v54 = vsub.f32 %v21572_v3, %v14386_v5  ;;  %1645 = vbcast.lane.b32.xlu0 %v21495_v56, 368  ;;  %v15187_v56 = vpop.permute.xlu1 %1416 }
 0x1e5   :  { %21576 = vst [vmem:[#allocation304_spill] sm:$0xff] %v15152_v37  ;;  %21578 = vst [vmem:[#allocation56_spill] sm:$0xff] %v15155_v6  ;;  %v15172_v9 = vsel %vm2778_vm15, %v3546_v21, %v4570_v7  ;;  %v15177_v33 = vsel %vm2778_vm15, 1.0, %v14706_v60  ;;  %v21585_v55 = vld [vmem:[#allocation171_spill] sm:$0xff]  ;;  %v3093_v1 = vmul.f32 10.0, %v15133_v11  ;;  %v3092_v6 = vmul.f32 10.0, %v15137_v28 }
 0x1e6   :  { %21579 = vst [vmem:[#allocation305_spill] sm:$0xff] %v15157_v4  ;;  %21580 = vst [vmem:[#allocation306_spill] sm:$0xff] %v15159_v2  ;;  %v4059_v39 = vmul.f32 %v21585_v55, %v21585_v55  ;;  %v15185_v5 = vsub.f32 %v21572_v3, %v14394_v40  ;;  %v21587_v21 = vld [vmem:[#allocation170_spill] sm:$0xff]  ;;  %v15192_v2 = vmul.f32 2.0, %v3091_v23  ;;  %v15194_v14 = vadd.f32 1.0, %v3091_v23  ;;  %v15198_v55 = vpop.permute.xlu0 %1412  ;;  %v21595_v27 = vld [vmem:[#allocation44_spill] sm:$0xff] }
 0x1e7   :  { %21583 = vst [vmem:[#allocation179_spill] sm:$0xff] %v15167_v54  ;;  %21584 = vst [vmem:[#allocation62_spill] sm:$0xff] %v15177_v33  ;;  %v15190_v7 = vadd.f32 1.0, %v21587_v21  ;;  %v15196_v4 = vmul.f32 2.0, %v3090_v48  ;;  %v21592_v11 = vld [vmem:[#allocation178_spill] sm:$0xff]  ;;  %v15201_v28 = vadd.f32 1.0, %v3090_v48  ;;  %v15205_v40 = vsub.f32 %v21572_v3, %v14427_v25 }
 0x1e8   :  { %21586 = vst [vmem:[#allocation171_spill] sm:$0xff] %v15185_v5  ;;  %21589 = vst [vmem:[#allocation307_spill] sm:$0xff] %v15192_v2  ;;  %v3548_v37 = vadd.f32 1.0, %v21592_v11  ;;  %1660 = vbcast.lane.b32.xlu1 %v21595_v27, 264  ;;  %vm2780_vm2 = vcmp.gt.f32.partialorder %v21555_v36, 0.0  ;;  %v4572_v23 = vsel %vm4316_vm12, %v4060_v30, 0.0 }
 0x1e9   :  { %21588 = vst [vmem:[#allocation170_spill] sm:$0xff] %v15190_v7  ;;  %21590 = vst [vmem:[#allocation308_spill] sm:$0xff] %v15194_v14  ;;  %v3095_v21 = vmul.f32 10.0, %v15167_v54  ;;  %v15214_v7 = vsub.f32 %v21572_v3, %v14440_v38  ;;  %1656 = vbcast.lane.b32.xlu0 %v21595_v27, 256  ;;  %v15219_v11 = vsel %vm4315_vm14, %v4059_v39, 0.0  ;;  %v21598_v25 = vld [vmem:[#allocation177_spill] sm:$0xff]  ;;  %v15231_v14 = vpop.permute.xlu1 %1424 }
 0x1ea   :  { %21591 = vst [vmem:[#allocation309_spill] sm:$0xff] %v15196_v4  ;;  %21593 = vst [vmem:[#allocation178_spill] sm:$0xff] %v15201_v28  ;;  %v4061_v48 = vmul.f32 %v21598_v25, %v21598_v25  ;;  %v21599_v2 = vld [vmem:[#allocation60_spill] sm:$0xff]  ;;  %v15224_v4 = vmul.f32 2.0, %v3093_v1  ;;  %v15226_v30 = vadd.f32 1.0, %v3093_v1  ;;  %v15228_v54 = vmul.f32 2.0, %v3092_v6  ;;  %v15235_v17 = vpop.permute.xlu0 %1420 }
 0x1eb   :  { %21594 = vst [vmem:[#allocation310_spill] sm:$0xff] %v15205_v40  ;;  %21596 = vst [vmem:[#allocation311_spill] sm:$0xff] %v15214_v7  ;;  %vm4319_vm3 = vcmp.ge.f32.partialorder %v21599_v2, -0.1  ;;  %v3094_v38 = vmul.f32 10.0, %v15185_v5  ;;  %v15233_v28 = vadd.f32 1.0, %v3092_v6  ;;  %v15239_v39 = vsel %vm2780_vm2, %v3548_v37, %v4572_v23 }
 0x1ec   :  { %21597 = vst [vmem:[#allocation312_spill] sm:$0xff] %v15219_v11  ;;  %21600 = vst [vmem:[#allocation177_spill] sm:$0xff] %v15224_v4  ;;  %v15244_v25 = vsel %vm2780_vm2, 1.0, %v14706_v60  ;;  %vm2781_vm4 = vcmp.gt.f32.partialorder %v21577_v42, 0.0  ;;  %v21606_v1 = vld [vmem:[#allocation66_spill] sm:$0xff]  ;;  %v3097_v11 = vmul.f32 10.0, %v15205_v40  ;;  %v15262_v5 = vsub.f32 %v21572_v3, %v14485_v50 }
 0x1ed   :  { %21601 = vst [vmem:[#allocation60_spill] sm:$0xff] %v15226_v30  ;;  %21602 = vst [vmem:[#allocation313_spill] sm:$0xff] %v15228_v54  ;;  %vm4320_vm5 = vcmp.ge.f32.partialorder %v21606_v1, -0.1  ;;  %v21607_v4 = vld [vmem:[#allocation106_spill] sm:$0xff]  ;;  %1668 = vbcast.lane.b32.xlu1 %v21595_v27, 280 }
 0x1ee   :  { %21603 = vst [vmem:[#allocation314_spill] sm:$0xff] %v15231_v14  ;;  %21604 = vst [vmem:[#allocation315_spill] sm:$0xff] %v15233_v28  ;;  %v15251_v6 = vsub.f32 %v21572_v3, %v21607_v4  ;;  %v21609_v54 = vld [vmem:[#allocation176_spill] sm:$0xff]  ;;  %v15257_v36 = vmul.f32 2.0, %v3095_v21  ;;  %v3096_v28 = vmul.f32 10.0, %v15214_v7  ;;  %1664 = vbcast.lane.b32.xlu0 %v21595_v27, 272  ;;  %v15279_v7 = vpop.permute.xlu0 %1428 }
 0x1ef   :  { %21605 = vst [vmem:[#allocation316_spill] sm:$0xff] %v15235_v17  ;;  %v3549_v37 = vadd.f32 1.0, %v21609_v54  ;;  %v21610_v23 = vld [vmem:[#allocation184_spill] sm:$0xff]  ;;  %21612 = vst [vmem:[#allocation176_spill] sm:$0xff] %v15262_v5  ;;  %v4573_v4 = vsel %vm4317_vm0, %v4061_v48, 0.0  ;;  %v15267_v40 = vadd.f32 1.0, %v3095_v21 }
 0x1f0   :  { %21608 = vst [vmem:[#allocation66_spill] sm:$0xff] %v15251_v6  ;;  %v4062_v30 = vmul.f32 %v21610_v23, %v21610_v23  ;;  %21611 = vst [vmem:[#allocation106_spill] sm:$0xff] %v15257_v36  ;;  %v15269_v41 = vmul.f32 2.0, %v3094_v38  ;;  %v15271_v54 = vadd.f32 1.0, %v3094_v38  ;;  %v15275_v23 = vsub.f32 %v21572_v3, %v14518_v58  ;;  %v15277_v36 = vpop.permute.xlu1 %1432  ;;  %v21619_v21 = vld [vmem:[#allocation183_spill] sm:$0xff] }
 0x1f1   :  { %21613 = vst [vmem:[#allocation184_spill] sm:$0xff] %v15267_v40  ;;  %21617 = vst [vmem:[#allocation320_spill] sm:$0xff] %v15277_v36  ;;  %v15284_v50 = vsel %vm2781_vm4, 1.0, %v14706_v60  ;;  %vm2782_vm6 = vcmp.gt.f32.partialorder %v21582_v8, 0.0  ;;  %v3550_v48 = vadd.f32 1.0, %v21619_v21  ;;  %v21620_v40 = vld [vmem:[#allocation107_spill] sm:$0xff]  ;;  %v15415_v36 = vsub.f32 %v21572_v3, %v14659_v46 }
 0x1f2   :  { %21614 = vst [vmem:[#allocation317_spill] sm:$0xff] %v15269_v41  ;;  %21615 = vst [vmem:[#allocation318_spill] sm:$0xff] %v15271_v54  ;;  %v4063_v38 = vmul.f32 %v21620_v40, %v21620_v40  ;;  %v15290_v41 = vmul.f32 2.0, %v3097_v11  ;;  %v3099_v58 = vmul.f32 10.0, %v15251_v6  ;;  %1676 = vbcast.lane.b32.xlu1 %v21595_v27, 296  ;;  %v15296_v54 = vsel %vm2781_vm4, %v3549_v37, %v4573_v4  ;;  %v21624_v40 = vld [vmem:[#allocation222_spill] sm:$0xff] }
 0x1f3   :  { %21616 = vst [vmem:[#allocation319_spill] sm:$0xff] %v15275_v23  ;;  %21618 = vst [vmem:[#allocation321_spill] sm:$0xff] %v15279_v7  ;;  %v4574_v47 = vsel %vm4318_vm1, %v4062_v30, 0.0  ;;  %v15300_v63 = vadd.f32 1.0, %v3097_v11  ;;  %v15302_v24 = vmul.f32 2.0, %v3096_v28  ;;  %v3098_v21 = vmul.f32 10.0, %v15262_v5 }
 0x1f4   :  { %21621 = vst [vmem:[#allocation183_spill] sm:$0xff] %v15290_v41  ;;  %v15307_v41 = vsub.f32 %v21572_v3, %v21624_v40  ;;  %1672 = vbcast.lane.b32.xlu0 %v21595_v27, 288  ;;  %v21626_v6 = vld [vmem:[#allocation64_spill] sm:$0xff]  ;;  %v15311_v42 = vadd.f32 1.0, %v3096_v28  ;;  %v3101_v37 = vmul.f32 10.0, %v15275_v23  ;;  %v15314_v4 = vpop.permute.xlu1 %1440  ;;  %vm2783_vm8 = vcmp.gt.f32.partialorder %v21599_v2, 0.0 }
 0x1f5   :  { %21622 = vst [vmem:[#allocation107_spill] sm:$0xff] %v15300_v63  ;;  %21623 = vst [vmem:[#allocation322_spill] sm:$0xff] %v15302_v24  ;;  %vm4321_vm7 = vcmp.ge.f32.partialorder %v21626_v6, -0.1  ;;  %v21629_v11 = vld [vmem:[#allocation181_spill] sm:$0xff]  ;;  %v21630_v63 = vld [vmem:[#allocation70_spill] sm:$0xff]  ;;  %v15319_v24 = vpop.permute.xlu0 %1436  ;;  %v15323_v40 = vsel %vm2782_vm6, %v3550_v48, %v4574_v47 }
 0x1f6   :  { %21625 = vst [vmem:[#allocation222_spill] sm:$0xff] %v15307_v41  ;;  %21627 = vst [vmem:[#allocation64_spill] sm:$0xff] %v15311_v42  ;;  %v3551_v30 = vadd.f32 1.0, %v21629_v11  ;;  %vm4322_vm9 = vcmp.ge.f32.partialorder %v21630_v63, -0.1  ;;  %v15328_v28 = vsel %vm2782_vm6, 1.0, %v14706_v60 }
 0x1f7   :  { %21628 = vst [vmem:[#allocation323_spill] sm:$0xff] %v15314_v4  ;;  %21631 = vst [vmem:[#allocation181_spill] sm:$0xff] %v15319_v24  ;;  %v4575_v23 = vsel %vm4319_vm3, %v4063_v38, 0.0  ;;  %v21632_v42 = vld [vmem:[#allocation186_spill] sm:$0xff]  ;;  %v15334_v11 = vmul.f32 2.0, %v3099_v58  ;;  %v15336_v12 = vadd.f32 1.0, %v3099_v58  ;;  %v15340_v24 = vsub.f32 %v21572_v3, %v21635_v10 }
 0x1f8   :  { %v4064_v5 = vmul.f32 %v21632_v42, %v21632_v42  ;;  %v21637_v47 = vld [vmem:[#allocation228_spill] sm:$0xff]  ;;  %1684 = vbcast.lane.b32.xlu1 %v21595_v27, 312  ;;  %v15347_v8 = vmul.f32 2.0, %v3098_v21  ;;  %v15349_v38 = vadd.f32 1.0, %v3098_v21  ;;  %v3100_v42 = vmul.f32 10.0, %v15307_v41  ;;  %1680 = vbcast.lane.b32.xlu0 %v21595_v27, 304 }
 0x1f9   :  { %21633 = vst [vmem:[#allocation70_spill] sm:$0xff] %v15334_v11  ;;  %21634 = vst [vmem:[#allocation186_spill] sm:$0xff] %v15336_v12  ;;  %v15344_v48 = vsub.f32 %v21572_v3, %v21637_v47  ;;  %v15356_v58 = vsel %vm2783_vm8, 1.0, %v14706_v60  ;;  %v15358_v10 = vmul.f32 2.0, %v3101_v37  ;;  %v1449_v11 = vpop.permute.xlu1 %1448  ;;  %v15362_v47 = vsel %vm2783_vm8, %v3551_v30, %v4575_v23  ;;  %v21643_v21 = vld [vmem:[#allocation105_spill] sm:$0xff]  ;;  %v15373_v4 = vpop.permute.xlu0 %1444  ;;  %v21648_v7 = vld [vmem:[#allocation114_spill] sm:$0xff] }
 0x1fa   :  { %21636 = vst [vmem:[#allocation227_spill] sm:$0xff] %v15340_v24  ;;  %21639 = vst [vmem:[#allocation324_spill] sm:$0xff] %v15347_v8  ;;  %vm2784_vm10 = vcmp.gt.f32.partialorder %v21606_v1, 0.0  ;;  %v3552_v8 = vadd.f32 1.0, %v21643_v21  ;;  %v15368_v12 = vsub.f32 %v21572_v3, %v14605_v16  ;;  %v4065_v2 = vmul.f32 %v21648_v7, %v21648_v7  ;;  %v21654_v7 = vld [vmem:[#allocation68_spill] sm:$0xff] }
 0x1fb   :  { %21638 = vst [vmem:[#allocation228_spill] sm:$0xff] %v15344_v48  ;;  %21640 = vst [vmem:[#allocation325_spill] sm:$0xff] %v15349_v38  ;;  %v21645_v38 = vld [vmem:[#allocation49_spill] sm:$0xff]  ;;  %v15379_v23 = vadd.f32 1.0, %v3101_v37  ;;  %v3103_v30 = vmul.f32 10.0, %v15340_v24  ;;  %v3102_v21 = vmul.f32 10.0, %v15344_v48  ;;  %v15385_v16 = vsub.f32 %v21572_v3, %v14619_v20 }
 0x1fc   :  { %21641 = vst [vmem:[#allocation326_spill] sm:$0xff] %v15356_v58  ;;  %21642 = vst [vmem:[#allocation327_spill] sm:$0xff] %v15358_v10  ;;  %v15371_v41 = vmul.f32 %v21645_v38, %v1449_v11  ;;  %v4576_v10 = vsel %vm4320_vm5, %v4064_v5, 0.0  ;;  %1692 = vbcast.lane.b32.xlu1 %v21595_v27, 328  ;;  %v15388_v11 = vmul.f32 2.0, %v3100_v42  ;;  %1688 = vbcast.lane.b32.xlu0 %v21595_v27, 320 }
 0x1fd   :  { %21644 = vst [vmem:[#allocation105_spill] sm:$0xff] %v15368_v12  ;;  %21647 = vst [vmem:[#allocation328_spill] sm:$0xff] %v15373_v4  ;;  %v15396_v5 = vsel %vm2784_vm10, 1.0, %v14706_v60  ;;  %vm2785_vm11 = vcmp.gt.f32.partialorder %v21626_v6, 0.0  ;;  %vm4323_vm12 = vcmp.ge.f32.partialorder %v21654_v7, -0.1  ;;  %v15402_v20 = vsub.f32 %v21572_v3, %v14653_v22  ;;  %v1460_v37 = vpop.permute.xlu1 %1459  ;;  %v15420_v14 = vpop.permute.xlu0 %1455 }
 0x1fe   :  { %21646 = vst [vmem:[#allocation49_spill] sm:$0xff] %v15371_v41  ;;  %21649 = vst [vmem:[#allocation114_spill] sm:$0xff] %v15379_v23  ;;  %v15390_v41 = vadd.f32 1.0, %v3100_v42  ;;  %v15406_v42 = vsel %vm2784_vm10, %v3552_v8, %v4576_v10  ;;  %v21656_v23 = vld [vmem:[#allocation73_spill] sm:$0xff]  ;;  %v21657_v24 = vld [vmem:[#allocation191_spill] sm:$0xff]  ;;  %v3105_v4 = vmul.f32 10.0, %v15368_v12 }
 0x1ff   :  { %21650 = vst [vmem:[#allocation329_spill] sm:$0xff] %v15385_v16  ;;  %21651 = vst [vmem:[#allocation330_spill] sm:$0xff] %v15388_v11  ;;  %v3553_v11 = vadd.f32 1.0, %v21656_v23  ;;  %v21658_v48 = vld [vmem:[#allocation13_spill] sm:$0xff]  ;;  %v21660_v22 = vld [vmem:[#allocation50_spill] sm:$0xff]  ;;  %v4577_v1 = vsel %vm4321_vm7, %v4065_v2, 0.0 }
 0x200   :  { %21652 = vst [vmem:[#allocation331_spill] sm:$0xff] %v15390_v41  ;;  %21653 = vst [vmem:[#allocation332_spill] sm:$0xff] %v15396_v5  ;;  %v4066_v41 = vmul.f32 %v21657_v24, %v21657_v24  ;;  %vm4324_vm13 = vcmp.ge.f32.partialorder %v21658_v48, -0.1  ;;  %v15418_v17 = vmul.f32 %v21660_v22, %v1460_v37  ;;  %v15424_v8 = vmul.f32 2.0, %v3103_v30  ;;  %1700 = vbcast.lane.b32.xlu1 %v21595_v27, 344 }
 0x201   :  { %21655 = vst [vmem:[#allocation68_spill] sm:$0xff] %v15402_v20  ;;  %21659 = vst [vmem:[#allocation73_spill] sm:$0xff] %v15415_v36  ;;  %v15426_v10 = vadd.f32 1.0, %v3103_v30  ;;  %v15428_v24 = vmul.f32 2.0, %v3102_v21  ;;  %v3104_v23 = vmul.f32 10.0, %v15385_v16  ;;  %v15432_v46 = vadd.f32 1.0, %v3102_v21 }
 0x202   :  { %21661 = vst [vmem:[#allocation191_spill] sm:$0xff] %v15418_v17  ;;  %21662 = vst [vmem:[#allocation13_spill] sm:$0xff] %v15420_v14  ;;  %1696 = vbcast.lane.b32.xlu0 %v21595_v27, 336  ;;  %v15438_v3 = vsel %vm2785_vm11, 1.0, %v14706_v60  ;;  %vm2786_vm14 = vcmp.gt.f32.partialorder %v21630_v63, 0.0  ;;  %v21668_v2 = vld [vmem:[#allocation190_spill] sm:$0xff]  ;;  %v15449_v21 = vsel %vm2785_vm11, %v3553_v11, %v4577_v1 }
 0x203   :  { %21663 = vst [vmem:[#allocation50_spill] sm:$0xff] %v15424_v8  ;;  %21664 = vst [vmem:[#allocation333_spill] sm:$0xff] %v15426_v10  ;;  %v3554_v30 = vadd.f32 1.0, %v21668_v2  ;;  %v3107_v37 = vmul.f32 10.0, %v15402_v20  ;;  %v21669_v8 = vld [vmem:[#allocation47_spill] sm:$0xff]  ;;  %v1468_v10 = vpop.permute.xlu1 %1467  ;;  %v4578_v12 = vsel %vm4322_vm9, %v4066_v41, 0.0  ;;  %v15459_v20 = vpop.permute.xlu0 %1463 }
 0x204   :  { %21665 = vst [vmem:[#allocation334_spill] sm:$0xff] %v15428_v24  ;;  %21666 = vst [vmem:[#allocation335_spill] sm:$0xff] %v15432_v46  ;;  %v15445_v24 = vmul.f32 %v21669_v8, %v14696_v18  ;;  %v15453_v46 = vmul.f32 2.0, %v3105_v4  ;;  %v3106_v16 = vmul.f32 10.0, %v15415_v36  ;;  %v15457_v2 = vmul.f32 %v21660_v22, %v1468_v10  ;;  %v21674_v17 = vld [vmem:[#allocation112_spill] sm:$0xff]  ;;  %v21675_v14 = vld [vmem:[#allocation115_spill] sm:$0xff] }
 0x205   :  { %21667 = vst [vmem:[#allocation336_spill] sm:$0xff] %v15438_v3  ;;  %21673 = vst [vmem:[#allocation338_spill] sm:$0xff] %v15459_v20  ;;  %v4067_v18 = vmul.f32 %v21674_v17, %v21674_v17  ;;  %vm4325_vm15 = vcmp.ge.f32.partialorder %v21675_v14, -0.1  ;;  %v15464_v6 = vadd.f32 1.0, %v3105_v4  ;;  %v15466_v11 = vmul.f32 2.0, %v3104_v23 }
 0x206   :  { %21670 = vst [vmem:[#allocation190_spill] sm:$0xff] %v15445_v24  ;;  %21671 = vst [vmem:[#allocation47_spill] sm:$0xff] %v15453_v46  ;;  %v15468_v1 = vadd.f32 1.0, %v3104_v23  ;;  %v15472_v41 = vmul.f32 %v21669_v8, %v14704_v57  ;;  %1708 = vbcast.lane.b32.xlu1 %v21595_v27, 360  ;;  %v21680_v10 = vld [vmem:[#allocation79_spill] sm:$0xff]  ;;  %1704 = vbcast.lane.b32.xlu0 %v21595_v27, 352  ;;  %v15479_v17 = vsel %vm2786_vm14, %v3554_v30, %v4578_v12 }
 0x207   :  { %21672 = vst [vmem:[#allocation337_spill] sm:$0xff] %v15457_v2  ;;  %21676 = vst [vmem:[#allocation112_spill] sm:$0xff] %v15464_v6  ;;  %vm4326_vm0 = vcmp.ge.f32.partialorder %v21680_v10, -0.1  ;;  %v15484_v4 = vsel %vm2786_vm14, 1.0, %v14706_v60  ;;  %vm2787_vm1 = vcmp.gt.f32.partialorder %v21654_v7, 0.0  ;;  %v1476_v6 = vpop.permute.xlu1 %1475  ;;  %v15499_v63 = vmul.f32 %v21669_v8, %v14739_v26 }
 0x208   :  { %21677 = vst [vmem:[#allocation115_spill] sm:$0xff] %v15466_v11  ;;  %21678 = vst [vmem:[#allocation339_spill] sm:$0xff] %v15468_v1  ;;  %v21682_v23 = vld [vmem:[#allocation189_spill] sm:$0xff]  ;;  %v15488_v46 = vmul.f32 2.0, %v3107_v37  ;;  %v15490_v11 = vadd.f32 1.0, %v3107_v37  ;;  %vm20807_vm2 = vcmp.eq.f32.partialorder %v15445_v24, 1.0  ;;  %v15502_v36 = vmul.f32 %v21660_v22, %v1476_v6 }
 0x209   :  { %21679 = vst [vmem:[#allocation340_spill] sm:$0xff] %v15472_v41  ;;  %21681 = vst [vmem:[#allocation79_spill] sm:$0xff] %v15484_v4  ;;  %v3555_v57 = vadd.f32 1.0, %v21682_v23  ;;  %v21685_v1 = vld [vmem:[#allocation196_spill] sm:$0xff]  ;;  %v15495_v30 = vmul.f32 2.0, %v3106_v16  ;;  %v15504_v23 = vpop.permute.xlu0 %1471  ;;  %v4579_v37 = vsel %vm4323_vm12, %v4067_v18, 0.0  ;;  %v15598_v20 = vmul.f32 %v21669_v8, %v14830_v43 }
 0x20a   :  { %21683 = vst [vmem:[#allocation189_spill] sm:$0xff] %v15488_v46  ;;  %21684 = vst [vmem:[#allocation341_spill] sm:$0xff] %v15490_v11  ;;  %v4068_v12 = vmul.f32 %v21685_v1, %v21685_v1  ;;  %v15508_v46 = vadd.f32 1.0, %v3106_v16  ;;  %vm20811_vm3 = vcmp.eq.f32.partialorder %v15472_v41, 1.0  ;;  %v15513_v1 = vmul.f32 %v21669_v8, %v14752_v62  ;;  %1716 = vbcast.lane.b32.xlu1 %v21595_v27, 376  ;;  %v21692_v26 = vld [vmem:[#allocation78_spill] sm:$0xff] }
 0x20b   :  { %21686 = vst [vmem:[#allocation196_spill] sm:$0xff] %v15495_v30  ;;  %21687 = vst [vmem:[#allocation342_spill] sm:$0xff] %v15499_v63  ;;  %vm2788_vm4 = vcmp.gt.f32.partialorder %v21658_v48, 0.0  ;;  %vm4327_vm5 = vcmp.ge.f32.partialorder %v21692_v26, -0.1  ;;  %1712 = vbcast.lane.b32.xlu0 %v21595_v27, 368  ;;  %v1484_v27 = vpop.permute.xlu1 %1483  ;;  %v15539_v24 = vsel %vm2787_vm1, %v3555_v57, %v4579_v37 }
 0x20c   :  { %21688 = vst [vmem:[#allocation343_spill] sm:$0xff] %v15502_v36  ;;  %21689 = vst [vmem:[#allocation344_spill] sm:$0xff] %v15504_v23  ;;  %v21693_v6 = vld [vmem:[#allocation63_spill] sm:$0xff]  ;;  %v21694_v30 = vld [vmem:[#allocation61_spill] sm:$0xff]  ;;  %v15528_v18 = vsel %vm2787_vm1, 1.0, %v14706_v60  ;;  %v15535_v23 = vmul.f32 %v21669_v8, %v14784_v35  ;;  %vm2789_vm6 = vcmp.gt.f32.partialorder %v21675_v14, 0.0 }
 0x20d   :  { %21690 = vst [vmem:[#allocation345_spill] sm:$0xff] %v15508_v46  ;;  %21691 = vst [vmem:[#allocation346_spill] sm:$0xff] %v15513_v1  ;;  %v15523_v16 = vsel %vm20807_vm2, %v21694_v30, %v21693_v6  ;;  %v21697_v62 = vld [vmem:[#allocation195_spill] sm:$0xff]  ;;  %v21698_v46 = vld [vmem:[#allocation21_spill] sm:$0xff]  ;;  %v4580_v6 = vsel %vm4324_vm13, %v4068_v12, 0.0  ;;  %vm20804_vm8 = vcmp.eq.f32.partialorder %v15499_v63, 1.0  ;;  %v15565_v12 = vmul.f32 %v21669_v8, %v14797_v15 }
 0x20e   :  { %21695 = vst [vmem:[#allocation78_spill] sm:$0xff] %v15523_v16  ;;  %21696 = vst [vmem:[#allocation63_spill] sm:$0xff] %v15528_v18  ;;  %v3556_v11 = vadd.f32 1.0, %v21697_v62  ;;  %v4069_v36 = vmul.f32 %v21698_v46, %v21698_v46  ;;  %v21700_v30 = vld [vmem:[#allocation83_spill] sm:$0xff]  ;;  %v15547_v46 = vmul.f32 %v21660_v22, %v1484_v27  ;;  %v15549_v62 = vpop.permute.xlu0 %1479  ;;  %v21703_v35 = vld [vmem:[#allocation58_spill] sm:$0xff]  ;;  %v15560_v57 = vsel %vm2788_vm4, 1.0, %v14706_v60 }
 0x20f   :  { %21699 = vst [vmem:[#allocation195_spill] sm:$0xff] %v15535_v23  ;;  %vm4328_vm7 = vcmp.ge.f32.partialorder %v21700_v30, -0.1  ;;  %21702 = vst [vmem:[#allocation83_spill] sm:$0xff] %v15549_v62  ;;  %v21704_v16 = vld [vmem:[#allocation55_spill] sm:$0xff]  ;;  %vm20808_vm9 = vcmp.eq.f32.partialorder %v15513_v1, 1.0 }
 0x210   :  { %21701 = vst [vmem:[#allocation21_spill] sm:$0xff] %v15547_v46  ;;  %v15555_v7 = vsel %vm20811_vm3, %v21704_v16, %v21703_v35  ;;  %21706 = vst [vmem:[#allocation347_spill] sm:$0xff] %v15560_v57  ;;  %v21708_v27 = vld [vmem:[#allocation45_spill] sm:$0xff]  ;;  %v15575_v16 = vsel %vm2788_vm4, %v3556_v11, %v4580_v6  ;;  %v15582_v15 = vsel %vm2789_vm6, 1.0, %v14706_v60  ;;  %vm2790_vm11 = vcmp.gt.f32.partialorder %v21680_v10, 0.0  ;;  %v21717_v11 = vld [vmem:[#allocation199_spill] sm:$0xff] }
 0x211   :  { %21705 = vst [vmem:[#allocation58_spill] sm:$0xff] %v15555_v7  ;;  %21707 = vst [vmem:[#allocation348_spill] sm:$0xff] %v15565_v12  ;;  %1727 = vbcast.lane.b32.xlu1 %v21708_v27, 264  ;;  %v21709_v37 = vld [vmem:[#allocation193_spill] sm:$0xff]  ;;  %1723 = vbcast.lane.b32.xlu0 %v21708_v27, 256  ;;  %v4581_v7 = vsel %vm4325_vm15, %v4069_v36, 0.0  ;;  %v4071_v36 = vmul.f32 %v21717_v11, %v21717_v11  ;;  %v15615_v11 = vmul.f32 %v21669_v8, %v14841_v61 }
 0x212   :  { %v3557_v46 = vadd.f32 1.0, %v21709_v37  ;;  %v21710_v62 = vld [vmem:[#allocation201_spill] sm:$0xff]  ;;  %21712 = vst [vmem:[#allocation193_spill] sm:$0xff] %v15575_v16  ;;  %vm20757_vm12 = vcmp.eq.f32.partialorder %v15535_v23, 1.0  ;;  %v21714_v37 = vld [vmem:[#allocation67_spill] sm:$0xff]  ;;  %vm2791_vm13 = vcmp.gt.f32.partialorder %v21692_v26, 0.0  ;;  %v15603_v57 = vpop.permute.xlu0 %1487 }
 0x213   :  { %v4070_v41 = vmul.f32 %v21710_v62, %v21710_v62  ;;  %v21711_v35 = vld [vmem:[#allocation81_spill] sm:$0xff]  ;;  %21713 = vst [vmem:[#allocation201_spill] sm:$0xff] %v15582_v15  ;;  %v1492_v62 = vpop.permute.xlu1 %1491  ;;  %v21718_v6 = vld [vmem:[#allocation87_spill] sm:$0xff]  ;;  %21719 = vst [vmem:[#allocation67_spill] sm:$0xff] %v15598_v20  ;;  %vm20801_vm15 = vcmp.eq.f32.partialorder %v15565_v12, 1.0  ;;  %v15634_v61 = vsel %vm2790_vm11, 1.0, %v14706_v60 }
 0x214   :  { %vm4329_vm10 = vcmp.ge.f32.partialorder %v21711_v35, -0.1  ;;  %v21715_v2 = vld [vmem:[#allocation65_spill] sm:$0xff]  ;;  %vm4330_vm14 = vcmp.ge.f32.partialorder %v21718_v6, -0.1  ;;  %v15601_v15 = vmul.f32 %v21660_v22, %v1492_v62  ;;  %21721 = vst [vmem:[#allocation87_spill] sm:$0xff] %v15603_v57  ;;  %v15620_v43 = vsel %vm2789_vm6, %v3557_v46, %v4581_v7 }
 0x215   :  { %v15590_v48 = vsel %vm20804_vm8, %v21715_v2, %v21714_v37  ;;  %v21722_v16 = vld [vmem:[#allocation59_spill] sm:$0xff]  ;;  %v21723_v63 = vld [vmem:[#allocation54_spill] sm:$0xff]  ;;  %v21725_v2 = vld [vmem:[#allocation200_spill] sm:$0xff]  ;;  %1735 = vbcast.lane.b32.xlu1 %v21708_v27, 280  ;;  %v4582_v62 = vsel %vm4326_vm0, %v4070_v41, 0.0  ;;  %1731 = vbcast.lane.b32.xlu0 %v21708_v27, 272 }
 0x216   :  { %21716 = vst [vmem:[#allocation81_spill] sm:$0xff] %v15590_v48  ;;  %21720 = vst [vmem:[#allocation199_spill] sm:$0xff] %v15601_v15  ;;  %v15609_v37 = vsel %vm20808_vm9, %v21723_v63, %v21722_v16  ;;  %v3558_v48 = vadd.f32 1.0, %v21725_v2  ;;  %v21727_v16 = vld [vmem:[#allocation75_spill] sm:$0xff]  ;;  %v21728_v1 = vld [vmem:[#allocation72_spill] sm:$0xff]  ;;  %v15640_v46 = vsel %vm2791_vm13, 1.0, %v14706_v60 }
 0x217   :  { %21724 = vst [vmem:[#allocation59_spill] sm:$0xff] %v15609_v37  ;;  %21726 = vst [vmem:[#allocation200_spill] sm:$0xff] %v15615_v11  ;;  %v15629_v2 = vsel %vm20757_vm12, %v21728_v1, %v21727_v16  ;;  %v21731_v63 = vld [vmem:[#allocation86_spill] sm:$0xff]  ;;  %v1500_v41 = vpop.permute.xlu1 %1499  ;;  %v4583_v7 = vsel %vm4327_vm5, %v4071_v36, 0.0  ;;  %vm2792_vm0 = vcmp.gt.f32.partialorder %v21700_v30, 0.0  ;;  %v21734_v1 = vld [vmem:[#allocation204_spill] sm:$0xff]  ;;  %v15655_v37 = vpop.permute.xlu0 %1495 }
 0x218   :  { %21729 = vst [vmem:[#allocation75_spill] sm:$0xff] %v15629_v2  ;;  %21730 = vst [vmem:[#allocation349_spill] sm:$0xff] %v15634_v61  ;;  %v3559_v14 = vadd.f32 1.0, %v21731_v63  ;;  %v21733_v16 = vld [vmem:[#allocation206_spill] sm:$0xff]  ;;  %v4073_v2 = vmul.f32 %v21734_v1, %v21734_v1  ;;  %v21735_v15 = vld [vmem:[#allocation117_spill] sm:$0xff]  ;;  %vm20762_vm6 = vcmp.eq.f32.partialorder %v15598_v20, 1.0  ;;  %v15653_v57 = vmul.f32 %v21660_v22, %v1500_v41 }
 0x219   :  { %21732 = vst [vmem:[#allocation86_spill] sm:$0xff] %v15640_v46  ;;  %v4072_v23 = vmul.f32 %v21733_v16, %v21733_v16  ;;  %vm4331_vm1 = vcmp.ge.f32.partialorder %v21735_v15, -0.1  ;;  %v21736_v63 = vld [vmem:[#allocation92_spill] sm:$0xff]  ;;  %21738 = vst [vmem:[#allocation204_spill] sm:$0xff] %v15655_v37  ;;  %v21739_v36 = vld [vmem:[#allocation71_spill] sm:$0xff]  ;;  %v15665_v1 = vsel %vm2790_vm11, %v3558_v48, %v4582_v62  ;;  %v15670_v16 = vmul.f32 %v21669_v8, %v14875_v19 }
 0x21a   :  { %vm4332_vm4 = vcmp.ge.f32.partialorder %v21736_v63, -0.1  ;;  %21737 = vst [vmem:[#allocation206_spill] sm:$0xff] %v15653_v57  ;;  %v21740_v46 = vld [vmem:[#allocation69_spill] sm:$0xff]  ;;  %vm20765_vm5 = vcmp.eq.f32.partialorder %v15615_v11, 1.0  ;;  %v15674_v41 = vmul.f32 %v21669_v8, %v14885_v31  ;;  %1743 = vbcast.lane.b32.xlu1 %v21708_v27, 296  ;;  %v15681_v10 = vsel %vm2791_vm13, %v3559_v14, %v4583_v7 }
 0x21b   :  { %v15661_v61 = vsel %vm20801_vm15, %v21740_v46, %v21739_v36  ;;  %21742 = vst [vmem:[#allocation92_spill] sm:$0xff] %v15670_v16  ;;  %vm2793_vm12 = vcmp.gt.f32.partialorder %v21711_v35, 0.0  ;;  %1739 = vbcast.lane.b32.xlu0 %v21708_v27, 288  ;;  %21744 = vst [vmem:[#allocation350_spill] sm:$0xff] %v15681_v10  ;;  %v21745_v48 = vld [vmem:[#allocation205_spill] sm:$0xff]  ;;  %v15687_v19 = vsel %vm2792_vm0, 1.0, %v14706_v60  ;;  %v1508_v12 = vpop.permute.xlu1 %1507 }
 0x21c   :  { %21741 = vst [vmem:[#allocation117_spill] sm:$0xff] %v15661_v61  ;;  %21743 = vst [vmem:[#allocation71_spill] sm:$0xff] %v15674_v41  ;;  %v3560_v62 = vadd.f32 1.0, %v21745_v48  ;;  %v21747_v36 = vld [vmem:[#allocation123_spill] sm:$0xff]  ;;  %v21748_v46 = vld [vmem:[#allocation82_spill] sm:$0xff]  ;;  %v4584_v26 = vsel %vm4328_vm7, %v4072_v23, 0.0 }
 0x21d   :  { %21746 = vst [vmem:[#allocation205_spill] sm:$0xff] %v15687_v19  ;;  %v3561_v31 = vadd.f32 1.0, %v21747_v36  ;;  %v21749_v57 = vld [vmem:[#allocation80_spill] sm:$0xff]  ;;  %v4585_v14 = vsel %vm4329_vm10, %v4073_v2, 0.0  ;;  %v21751_v7 = vld [vmem:[#allocation210_spill] sm:$0xff]  ;;  %v21752_v61 = vld [vmem:[#allocation97_spill] sm:$0xff]  ;;  %v15704_v36 = vmul.f32 %v21660_v22, %v1508_v12  ;;  %v15706_v19 = vpop.permute.xlu0 %1503  ;;  %v15724_v12 = vmul.f32 %v21669_v8, %v14917_v53 }
 0x21e   :  { %v15694_v37 = vsel %vm20762_vm6, %v21749_v57, %v21748_v46  ;;  %v4074_v48 = vmul.f32 %v21751_v7, %v21751_v7  ;;  %vm4334_vm11 = vcmp.ge.f32.partialorder %v21752_v61, -0.1  ;;  %21754 = vst [vmem:[#allocation210_spill] sm:$0xff] %v15706_v19  ;;  %v21755_v10 = vld [vmem:[#allocation76_spill] sm:$0xff]  ;;  %v21756_v20 = vld [vmem:[#allocation77_spill] sm:$0xff]  ;;  %v15717_v23 = vsel %vm2793_vm12, 1.0, %v14706_v60 }
 0x21f   :  { %21750 = vst [vmem:[#allocation123_spill] sm:$0xff] %v15694_v37  ;;  %21753 = vst [vmem:[#allocation82_spill] sm:$0xff] %v15704_v36  ;;  %v15712_v46 = vsel %vm20765_vm5, %v21756_v20, %v21755_v10  ;;  %vm2794_vm7 = vcmp.gt.f32.partialorder %v21718_v6, 0.0  ;;  %vm20768_vm10 = vcmp.eq.f32.partialorder %v15670_v16, 1.0  ;;  %vm20780_vm13 = vcmp.eq.f32.partialorder %v15674_v41, 1.0  ;;  %1751 = vbcast.lane.b32.xlu1 %v21708_v27, 312  ;;  %v1516_v19 = vpop.permute.xlu1 %1515 }
 0x220   :  { %21757 = vst [vmem:[#allocation97_spill] sm:$0xff] %v15712_v46  ;;  %21758 = vst [vmem:[#allocation76_spill] sm:$0xff] %v15717_v23  ;;  %v21760_v2 = vld [vmem:[#allocation208_spill] sm:$0xff]  ;;  %v21761_v7 = vld [vmem:[#allocation90_spill] sm:$0xff]  ;;  %v15732_v57 = vmul.f32 %v21669_v8, %v14931_v52  ;;  %1747 = vbcast.lane.b32.xlu0 %v21708_v27, 304  ;;  %v15737_v11 = vsel %vm2792_vm0, %v3560_v62, %v4584_v26  ;;  %v15741_v53 = vsel %vm2793_vm12, %v3561_v31, %v4585_v14 }
 0x221   :  { %21759 = vst [vmem:[#allocation351_spill] sm:$0xff] %v15724_v12  ;;  %v4075_v10 = vmul.f32 %v21760_v2, %v21760_v2  ;;  %vm4333_vm6 = vcmp.ge.f32.partialorder %v21761_v7, -0.1  ;;  %v21763_v20 = vld [vmem:[#allocation209_spill] sm:$0xff]  ;;  %v4586_v2 = vsel %vm4330_vm14, %v4074_v48, 0.0  ;;  %v15749_v52 = vsel %vm2794_vm7, 1.0, %v14706_v60  ;;  %v15757_v31 = vpop.permute.xlu0 %1511 }
 0x222   :  { %21762 = vst [vmem:[#allocation208_spill] sm:$0xff] %v15732_v57  ;;  %v3562_v36 = vadd.f32 1.0, %v21763_v20  ;;  %21764 = vst [vmem:[#allocation90_spill] sm:$0xff] %v15749_v52  ;;  %vm2795_vm5 = vcmp.gt.f32.partialorder %v21735_v15, 0.0  ;;  %v21765_v30 = vld [vmem:[#allocation215_spill] sm:$0xff]  ;;  %v15755_v35 = vmul.f32 %v21660_v22, %v1516_v19  ;;  %v21768_v20 = vld [vmem:[#allocation84_spill] sm:$0xff]  ;;  %v15775_v19 = vmul.f32 %v21669_v8, %v14965_v44 }
 0x223   :  { %v4076_v62 = vmul.f32 %v21765_v30, %v21765_v30  ;;  %21767 = vst [vmem:[#allocation215_spill] sm:$0xff] %v15757_v31  ;;  %v21769_v26 = vld [vmem:[#allocation85_spill] sm:$0xff]  ;;  %v21772_v37 = vld [vmem:[#allocation88_spill] sm:$0xff]  ;;  %v21774_v52 = vld [vmem:[#allocation207_spill] sm:$0xff]  ;;  %vm20773_vm12 = vcmp.eq.f32.partialorder %v15724_v12, 1.0  ;;  %1759 = vbcast.lane.b32.xlu1 %v21708_v27, 328 }
 0x224   :  { %21766 = vst [vmem:[#allocation209_spill] sm:$0xff] %v15755_v35  ;;  %v15763_v14 = vsel %vm20780_vm13, %v21769_v26, %v21768_v20  ;;  %v21771_v48 = vld [vmem:[#allocation89_spill] sm:$0xff]  ;;  %v3563_v23 = vadd.f32 1.0, %v21774_v52  ;;  %21775 = vst [vmem:[#allocation207_spill] sm:$0xff] %v15775_v19  ;;  %v4587_v30 = vsel %vm4331_vm1, %v4075_v10, 0.0  ;;  %vm2796_vm14 = vcmp.gt.f32.partialorder %v21736_v63, 0.0 }
 0x225   :  { %21770 = vst [vmem:[#allocation84_spill] sm:$0xff] %v15763_v14  ;;  %v15769_v46 = vsel %vm20768_vm10, %v21772_v37, %v21771_v48  ;;  %v21776_v20 = vld [vmem:[#allocation102_spill] sm:$0xff]  ;;  %vm20776_vm10 = vcmp.eq.f32.partialorder %v15732_v57, 1.0  ;;  %1755 = vbcast.lane.b32.xlu0 %v21708_v27, 320  ;;  %v15786_v52 = vsel %vm2794_vm7, %v3562_v36, %v4586_v2  ;;  %v15791_v44 = vsel %vm2795_vm5, 1.0, %v14706_v60  ;;  %v1527_v37 = vpop.permute.xlu1 %1526  ;;  %v21779_v26 = vld [vmem:[#allocation28_spill] sm:$0xff] }
 0x226   :  { %21773 = vst [vmem:[#allocation89_spill] sm:$0xff] %v15769_v46  ;;  %vm4336_vm0 = vcmp.ge.f32.partialorder %v21776_v20, -0.1  ;;  %v21777_v48 = vld [vmem:[#allocation214_spill] sm:$0xff]  ;;  %v15796_v10 = vmul.f32 %v21669_v8, %v14971_v49  ;;  %v4588_v41 = vsel %vm4332_vm4, %v4076_v62, 0.0  ;;  %v4077_v6 = vmul.f32 %v21779_v26, %v21779_v26  ;;  %v21780_v36 = vld [vmem:[#allocation220_spill] sm:$0xff] }
 0x227   :  { %v3564_v16 = vadd.f32 1.0, %v21777_v48  ;;  %v4078_v2 = vmul.f32 %v21780_v36, %v21780_v36  ;;  %v21781_v35 = vld [vmem:[#allocation23_spill] sm:$0xff]  ;;  %v15808_v48 = vpop.permute.xlu0 %1522  ;;  %v21785_v46 = vld [vmem:[#allocation98_spill] sm:$0xff]  ;;  %v21786_v49 = vld [vmem:[#allocation96_spill] sm:$0xff]  ;;  %v15818_v62 = vsel %vm2795_vm5, %v3563_v23, %v4587_v30  ;;  %vm20779_vm4 = vcmp.eq.f32.partialorder %v15775_v19, 1.0  ;;  %1767 = vbcast.lane.b32.xlu1 %v21708_v27, 344 }
 0x228   :  { %21778 = vst [vmem:[#allocation102_spill] sm:$0xff] %v15796_v10  ;;  %vm4335_vm1 = vcmp.ge.f32.partialorder %v21781_v35, -0.1  ;;  %v21782_v60 = vld [vmem:[#allocation51_spill] sm:$0xff]  ;;  %21784 = vst [vmem:[#allocation28_spill] sm:$0xff] %v15808_v48  ;;  %v15814_v14 = vsel %vm20773_vm12, %v21786_v49, %v21785_v46  ;;  %v15820_v26 = vld [vmem:[#allocation7 + $0x8] sm:$0xff]  ;;  %v15840_v23 = vmul.f32 %v21669_v8, %v15008_v45 }
 0x229   :  { %v15806_v31 = vmul.f32 %v21782_v60, %v1527_v37  ;;  %21787 = vst [vmem:[#allocation220_spill] sm:$0xff] %v15814_v14  ;;  %v15825_v36 = vsel %vm2796_vm14, 1.0, %v15820_v26  ;;  %v21789_v37 = vld [vmem:[#allocation94_spill] sm:$0xff]  ;;  %vm2797_vm5 = vcmp.gt.f32.partialorder %v21761_v7, 0.0  ;;  %vm2798_vm7 = vcmp.gt.f32.partialorder %v21752_v61, 0.0  ;;  %v21792_v15 = vld [vmem:[#allocation100_spill] sm:$0xff]  ;;  %v1535_v48 = vpop.permute.xlu1 %1534 }
 0x22a   :  { %21788 = vst [vmem:[#allocation23_spill] sm:$0xff] %v15825_v36  ;;  %vm4337_vm12 = vcmp.ge.f32.partialorder %v21792_v15, -0.1  ;;  %21793 = vst [vmem:[#allocation94_spill] sm:$0xff] %v15840_v23  ;;  %1763 = vbcast.lane.b32.xlu0 %v21708_v27, 336  ;;  %v15845_v30 = vsel %vm2796_vm14, %v3564_v16, %v4588_v41  ;;  %v21794_v12 = vld [vmem:[#allocation213_spill] sm:$0xff]  ;;  %v15859_v63 = vmul.f32 %v21782_v60, %v1535_v48 }
 0x22b   :  { %21783 = vst [vmem:[#allocation214_spill] sm:$0xff] %v15806_v31  ;;  %v21790_v31 = vld [vmem:[#allocation93_spill] sm:$0xff]  ;;  %v3565_v49 = vadd.f32 1.0, %v21794_v12  ;;  %v4589_v45 = vsel %vm4333_vm6, %v4077_v6, 0.0  ;;  %v4590_v14 = vsel %vm4334_vm11, %v4078_v2, 0.0  ;;  %v15861_v16 = vpop.permute.xlu0 %1530  ;;  %v21800_v12 = vld [vmem:[#allocation104_spill] sm:$0xff]  ;;  %v15881_v6 = vmul.f32 %v21645_v38, %v15049_v0 }
 0x22c   :  { %v15833_v46 = vsel %vm20776_vm10, %v21790_v31, %v21789_v37  ;;  %v21795_v37 = vld [vmem:[#allocation219_spill] sm:$0xff]  ;;  %vm20782_vm10 = vcmp.eq.f32.partialorder %v15796_v10, 1.0  ;;  %v15852_v31 = vmul.f32 %v21669_v8, %v15012_v32  ;;  %21797 = vst [vmem:[#allocation213_spill] sm:$0xff] %v15859_v63  ;;  %v21799_v41 = vld [vmem:[#allocation109_spill] sm:$0xff]  ;;  %v15872_v32 = vsel %vm2797_vm5, 1.0, %v15820_v26  ;;  %1775 = vbcast.lane.b32.xlu1 %v21708_v27, 360 }
 0x22d   :  { %21791 = vst [vmem:[#allocation98_spill] sm:$0xff] %v15833_v46  ;;  %v3566_v57 = vadd.f32 1.0, %v21795_v37  ;;  %21798 = vst [vmem:[#allocation219_spill] sm:$0xff] %v15861_v16  ;;  %v15867_v37 = vsel %vm20779_vm4, %v21800_v12, %v21799_v41  ;;  %v15877_v8 = vsel %vm2798_vm7, 1.0, %v15820_v26  ;;  %vm2799_vm6 = vcmp.gt.f32.partialorder %v21781_v35, 0.0  ;;  %v21804_v2 = vld [vmem:[#allocation127_spill] sm:$0xff]  ;;  %v1543_v46 = vpop.permute.xlu1 %1542 }
 0x22e   :  { %21796 = vst [vmem:[#allocation100_spill] sm:$0xff] %v15852_v31  ;;  %21801 = vst [vmem:[#allocation109_spill] sm:$0xff] %v15867_v37  ;;  %v4079_v48 = vmul.f32 %v21804_v2, %v21804_v2  ;;  %v21805_v41 = vld [vmem:[#allocation224_spill] sm:$0xff]  ;;  %vm20792_vm14 = vcmp.eq.f32.partialorder %v15840_v23, 1.0  ;;  %1771 = vbcast.lane.b32.xlu0 %v21708_v27, 352  ;;  %v21807_v63 = vld [vmem:[#allocation103_spill] sm:$0xff]  ;;  %v15900_v37 = vsel %vm2797_vm5, %v3565_v49, %v4589_v45 }
 0x22f   :  { %21802 = vst [vmem:[#allocation352_spill] sm:$0xff] %v15872_v32  ;;  %21803 = vst [vmem:[#allocation353_spill] sm:$0xff] %v15881_v6  ;;  %v4080_v19 = vmul.f32 %v21805_v41, %v21805_v41  ;;  %v21806_v12 = vld [vmem:[#allocation108_spill] sm:$0xff]  ;;  %v21808_v16 = vld [vmem:[#allocation101_spill] sm:$0xff]  ;;  %v15904_v2 = vsel %vm2798_vm7, %v3566_v57, %v4590_v14  ;;  %vm20800_vm4 = vcmp.eq.f32.partialorder %v15852_v31, 1.0  ;;  %v15909_v41 = vmul.f32 %v21645_v38, %v15061_v34  ;;  %v15918_v61 = vpop.permute.xlu0 %1538 }
 0x230   :  { %vm4338_vm11 = vcmp.ge.f32.partialorder %v21806_v12, -0.1  ;;  %v15896_v0 = vsel %vm20782_vm10, %v21808_v16, %v21807_v63  ;;  %vm2800_vm13 = vcmp.gt.f32.partialorder %v21776_v20, 0.0  ;;  %v21811_v10 = vld [vmem:[#allocation133_spill] sm:$0xff]  ;;  %v15916_v7 = vmul.f32 %v21782_v60, %v1543_v46  ;;  %21814 = vst [vmem:[#allocation103_spill] sm:$0xff] %v15918_v61  ;;  %v21817_v49 = vld [vmem:[#allocation27_spill] sm:$0xff] }
 0x231   :  { %21809 = vst [vmem:[#allocation127_spill] sm:$0xff] %v15896_v0  ;;  %21810 = vst [vmem:[#allocation224_spill] sm:$0xff] %v15909_v41  ;;  %v4081_v63 = vmul.f32 %v21811_v10, %v21811_v10  ;;  %v21812_v16 = vld [vmem:[#allocation25_spill] sm:$0xff]  ;;  %v15924_v34 = vsel %vm2799_vm6, 1.0, %v15820_v26  ;;  %v3568_v45 = vadd.f32 1.0, %v21817_v49  ;;  %vm20790_vm5 = vcmp.eq.f32.partialorder %v15881_v6, 1.0 }
 0x232   :  { %vm4339_vm10 = vcmp.ge.f32.partialorder %v21812_v16, -0.1  ;;  %21813 = vst [vmem:[#allocation108_spill] sm:$0xff] %v15916_v7  ;;  %v21815_v57 = vld [vmem:[#allocation217_spill] sm:$0xff]  ;;  %21816 = vst [vmem:[#allocation133_spill] sm:$0xff] %v15924_v34  ;;  %1783 = vbcast.lane.b32.xlu1 %v21708_v27, 376 }
 0x233   :  { %v3567_v14 = vadd.f32 1.0, %v21815_v57  ;;  %v21818_v10 = vld [vmem:[#allocation118_spill] sm:$0xff]  ;;  %v21819_v0 = vld [vmem:[#allocation116_spill] sm:$0xff]  ;;  %v4591_v57 = vsel %vm4335_vm1, %v4079_v48, 0.0  ;;  %v4592_v7 = vsel %vm4336_vm0, %v4080_v19, 0.0  ;;  %1779 = vbcast.lane.b32.xlu0 %v21708_v27, 368  ;;  %v15956_v19 = vmul.f32 %v21645_v38, %v15089_v59  ;;  %v1547_v27 = vpop.permute.xlu0 %1546 }
 0x234   :  { %v15933_v46 = vsel %vm20792_vm14, %v21819_v0, %v21818_v10  ;;  %v21821_v61 = vld [vmem:[#allocation110_spill] sm:$0xff]  ;;  %v21822_v49 = vld [vmem:[#allocation111_spill] sm:$0xff]  ;;  %v15949_v23 = vsel %vm2800_vm13, 1.0, %v15820_v26  ;;  %vm2801_vm7 = vcmp.gt.f32.partialorder %v21792_v15, 0.0  ;;  %vm20791_vm1 = vcmp.eq.f32.partialorder %v15909_v41, 1.0  ;;  %v21836_v20 = vld [vmem:[#allocation120_spill] sm:$0xff] }
 0x235   :  { %21820 = vst [vmem:[#allocation25_spill] sm:$0xff] %v15933_v46  ;;  %v15944_v34 = vsel %vm20800_vm4, %v21822_v49, %v21821_v61  ;;  %v21824_v10 = vld [vmem:[#allocation14_spill] sm:$0xff]  ;;  %21825 = vst [vmem:[#allocation27_spill] sm:$0xff] %v15956_v19  ;;  %v15960_v0 = vmul.f32 %v21645_v38, %v15108_v29  ;;  %v1551_v61 = vpop.permute.xlu1 %1550  ;;  %v4593_v31 = vsel %vm4337_vm12, %v4081_v63, 0.0  ;;  %v15975_v59 = vsel %vm2799_vm6, %v3567_v14, %v4591_v57  ;;  %v21839_v57 = vld [vmem:[#allocation229_spill] sm:$0xff] }
 0x236   :  { %21823 = vst [vmem:[#allocation217_spill] sm:$0xff] %v15944_v34  ;;  %v3569_v48 = vadd.f32 1.0, %v21824_v10  ;;  %v15965_v49 = vmul.f32 %v21782_v60, %v1551_v61  ;;  %v21828_v46 = vld [vmem:[#allocation126_spill] sm:$0xff]  ;;  %v21829_v10 = vld [vmem:[#allocation125_spill] sm:$0xff]  ;;  %v15979_v29 = vsel %vm2800_vm13, %v3568_v45, %v4592_v7  ;;  %v15982_v63 = vmul.f32 %v21782_v60, %v1547_v27 }
 0x237   :  { %21826 = vst [vmem:[#allocation118_spill] sm:$0xff] %v15960_v0  ;;  %v15971_v34 = vsel %vm20790_vm5, %v21829_v10, %v21828_v46  ;;  %v21832_v61 = vld [vmem:[#allocation46_spill] sm:$0xff]  ;;  %vm2802_vm12 = vcmp.gt.f32.partialorder %v21806_v12, 0.0  ;;  %v21834_v46 = vld [vmem:[#allocation132_spill] sm:$0xff]  ;;  %v21837_v7 = vld [vmem:[#allocation121_spill] sm:$0xff]  ;;  %v16005_v45 = vsel %vm2801_vm7, 1.0, %v15820_v26 }
 0x238   :  { %21827 = vst [vmem:[#allocation110_spill] sm:$0xff] %v15965_v49  ;;  %21830 = vst [vmem:[#allocation14_spill] sm:$0xff] %v15971_v34  ;;  %1794 = vbcast.lane.b32.xlu1 %v21832_v61, 264  ;;  %v21833_v49 = vld [vmem:[#allocation230_spill] sm:$0xff]  ;;  %v4083_v10 = vmul.f32 %v21834_v46, %v21834_v46  ;;  %1790 = vbcast.lane.b32.xlu0 %v21832_v61, 256  ;;  %v15996_v27 = vsel %vm20791_vm1, %v21837_v7, %v21836_v20  ;;  %vm20797_vm13 = vcmp.eq.f32.partialorder %v15956_v19, 1.0 }
 0x239   :  { %21831 = vst [vmem:[#allocation126_spill] sm:$0xff] %v15982_v63  ;;  %v4082_v6 = vmul.f32 %v21833_v49, %v21833_v49  ;;  %v21835_v35 = vld [vmem:[#allocation22_spill] sm:$0xff]  ;;  %21838 = vst [vmem:[#allocation230_spill] sm:$0xff] %v15996_v27  ;;  %v16000_v14 = vsel %vm2801_vm7, %v3569_v48, %v4593_v31  ;;  %v3570_v49 = vadd.f32 1.0, %v21839_v57  ;;  %vm20799_vm6 = vcmp.eq.f32.partialorder %v15960_v0, 1.0  ;;  %v1559_v46 = vpop.permute.xlu1 %1558  ;;  %v21840_v20 = vld [vmem:[#allocation113_spill] sm:$0xff]  ;;  %v1555_v48 = vpop.permute.xlu0 %1554 }
 0x23a   :  { %vm4340_vm0 = vcmp.ge.f32.partialorder %v21835_v35, -0.1  ;;  %vm5418_vm5 = vcmp.eq.f32.partialorder %v15982_v63, 1.0  ;;  %vm2803_vm1 = vcmp.gt.f32.partialorder %v21812_v16, 0.0  ;;  %vm4341_vm14 = vcmp.ge.f32.partialorder %v21840_v20, -0.1 }
 0x23b   :  { %v16014_v31 = vmul.f32 %v21782_v60, %v1559_v46  ;;  %v16020_v15 = vsel %vm5418_vm5, %v15177_v33, %v15172_v9  ;;  %v16025_v57 = vsel %vm2802_vm12, 1.0, %v15820_v26  ;;  %v21843_v41 = vld [vmem:[#allocation30_spill] sm:$0xff]  ;;  %v16030_v34 = vmul.f32 %v21645_v38, %v15139_v51  ;;  %v21849_v63 = vld [vmem:[#allocation135_spill] sm:$0xff]  ;;  %v21858_v16 = vld [vmem:[#allocation232_spill] sm:$0xff] }
 0x23c   :  { %21842 = vst [vmem:[#allocation22_spill] sm:$0xff] %v16020_v15  ;;  %v3571_v7 = vadd.f32 1.0, %v21843_v41  ;;  %v16033_v46 = vmul.f32 %v21782_v60, %v1555_v48  ;;  %1802 = vbcast.lane.b32.xlu1 %v21832_v61, 280  ;;  %v4594_v9 = vsel %vm4338_vm11, %v4082_v6, 0.0  ;;  %v4595_v15 = vsel %vm4339_vm10, %v4083_v10, 0.0  ;;  %1798 = vbcast.lane.b32.xlu0 %v21832_v61, 272 }
 0x23d   :  { %21841 = vst [vmem:[#allocation132_spill] sm:$0xff] %v16014_v31  ;;  %21844 = vst [vmem:[#allocation120_spill] sm:$0xff] %v16030_v34  ;;  %vm5421_vm7 = vcmp.eq.f32.partialorder %v16014_v31, 1.0  ;;  %v21845_v41 = vld [vmem:[#allocation131_spill] sm:$0xff]  ;;  %v21846_v27 = vld [vmem:[#allocation130_spill] sm:$0xff]  ;;  %v16057_v6 = vsel %vm2803_vm1, 1.0, %v15820_v26  ;;  %v16061_v10 = vmul.f32 %v21645_v38, %v15148_v13  ;;  %v1567_v0 = vpop.permute.xlu1 %1566 }
 0x23e   :  { %v16046_v51 = vsel %vm20799_vm6, %v21846_v27, %v21845_v41  ;;  %v21848_v48 = vld [vmem:[#allocation136_spill] sm:$0xff]  ;;  %vm5420_vm10 = vcmp.eq.f32.partialorder %v16033_v46, 1.0  ;;  %v16068_v41 = vsel %vm5421_vm7, %v15284_v50, %v15296_v54  ;;  %vm2804_vm11 = vcmp.gt.f32.partialorder %v21835_v35, 0.0  ;;  %v21866_v31 = vld [vmem:[#allocation26_spill] sm:$0xff] }
 0x23f   :  { %21847 = vst [vmem:[#allocation229_spill] sm:$0xff] %v16046_v51  ;;  %v16052_v33 = vsel %vm20797_vm13, %v21849_v63, %v21848_v48  ;;  %21851 = vst [vmem:[#allocation30_spill] sm:$0xff] %v16061_v10  ;;  %v21853_v48 = vld [vmem:[#allocation119_spill] sm:$0xff]  ;;  %v16073_v19 = vmul.f32 %v21782_v60, %v1567_v0  ;;  %v1563_v63 = vpop.permute.xlu0 %1562  ;;  %v16079_v13 = vsel %vm5420_vm10, %v15244_v25, %v15239_v39  ;;  %vm20806_vm6 = vcmp.eq.f32.partialorder %v16030_v34, 1.0  ;;  %v21857_v39 = vld [vmem:[#allocation29_spill] sm:$0xff] }
 0x240   :  { %21850 = vst [vmem:[#allocation113_spill] sm:$0xff] %v16052_v33  ;;  %21852 = vst [vmem:[#allocation131_spill] sm:$0xff] %v16068_v41  ;;  %vm4342_vm13 = vcmp.ge.f32.partialorder %v21853_v48, -0.1  ;;  %v16083_v27 = vsel %vm2802_vm12, %v3570_v49, %v4594_v9  ;;  %v16087_v54 = vsel %vm2803_vm1, %v3571_v7, %v4595_v15  ;;  %v16091_v0 = vmul.f32 %v21782_v60, %v1563_v63  ;;  %v21856_v41 = vld [vmem:[#allocation233_spill] sm:$0xff]  ;;  %v21870_v34 = vld [vmem:[#allocation24_spill] sm:$0xff] }
 0x241   :  { %21854 = vst [vmem:[#allocation136_spill] sm:$0xff] %v16073_v19  ;;  %21855 = vst [vmem:[#allocation119_spill] sm:$0xff] %v16079_v13  ;;  %1810 = vbcast.lane.b32.xlu1 %v21832_v61, 296  ;;  %v4084_v33 = vmul.f32 %v21856_v41, %v21856_v41  ;;  %v4085_v13 = vmul.f32 %v21857_v39, %v21857_v39  ;;  %vm20870_vm12 = vcmp.eq.f32.partialorder %v16073_v19, 1.0  ;;  %1806 = vbcast.lane.b32.xlu0 %v21832_v61, 288  ;;  %v1575_v49 = vpop.permute.xlu1 %1574  ;;  %v21862_v39 = vld [vmem:[#allocation36_spill] sm:$0xff] }
 0x242   :  { %v3572_v12 = vadd.f32 1.0, %v21858_v16  ;;  %v16104_v7 = vsel %vm2804_vm11, 1.0, %v15820_v26  ;;  %vm2805_vm1 = vcmp.gt.f32.partialorder %v21840_v20, 0.0  ;;  %vm20810_vm4 = vcmp.eq.f32.partialorder %v16061_v10, 1.0  ;;  %v21863_v16 = vld [vmem:[#allocation34_spill] sm:$0xff]  ;;  %v21882_v35 = vld [vmem:[#allocation156_spill] sm:$0xff] }
 0x243   :  { %v16110_v63 = vmul.f32 %v21645_v38, %v15187_v56  ;;  %vm5422_vm15 = vcmp.eq.f32.partialorder %v16091_v0, 1.0  ;;  %v16117_v15 = vsel %vm20870_vm12, %v15356_v58, %v15362_v47  ;;  %v16120_v9 = vmul.f32 %v21782_v60, %v1575_v49  ;;  %v1571_v41 = vpop.permute.xlu0 %1570  ;;  %v21867_v47 = vld [vmem:[#allocation32_spill] sm:$0xff] }
 0x244   :  { %21860 = vst [vmem:[#allocation29_spill] sm:$0xff] %v16117_v15  ;;  %v16126_v51 = vsel %vm20806_vm6, %v21863_v16, %v21862_v39  ;;  %v16132_v56 = vsel %vm5422_vm15, %v15328_v28, %v15323_v40  ;;  %v3573_v19 = vadd.f32 1.0, %v21866_v31  ;;  %vm4344_vm8 = vcmp.ge.f32.partialorder %v21867_v47, -0.1  ;;  %v21871_v31 = vld [vmem:[#allocation143_spill] sm:$0xff]  ;;  %v22082_v46 = vld [vmem:[#allocation332_spill] sm:$0xff] }
 0x245   :  { %21859 = vst [vmem:[#allocation233_spill] sm:$0xff] %v16110_v63  ;;  %21861 = vst [vmem:[#allocation232_spill] sm:$0xff] %v16120_v9  ;;  %v16138_v49 = vmul.f32 %v21645_v38, %v15198_v55  ;;  %v16141_v15 = vmul.f32 %v21782_v60, %v1571_v41  ;;  %1818 = vbcast.lane.b32.xlu1 %v21832_v61, 312  ;;  %v4596_v39 = vsel %vm4340_vm0, %v4084_v33, 0.0  ;;  %v4597_v40 = vsel %vm4341_vm14, %v4085_v13, 0.0  ;;  %v21872_v55 = vld [vmem:[#allocation140_spill] sm:$0xff]  ;;  %v1583_v33 = vpop.permute.xlu1 %1582 }
 0x246   :  { %21864 = vst [vmem:[#allocation36_spill] sm:$0xff] %v16126_v51  ;;  %21865 = vst [vmem:[#allocation354_spill] sm:$0xff] %v16132_v56  ;;  %vm4343_vm6 = vcmp.ge.f32.partialorder %v21870_v34, -0.1  ;;  %vm20819_vm2 = vcmp.eq.f32.partialorder %v16120_v9, 1.0  ;;  %1814 = vbcast.lane.b32.xlu0 %v21832_v61, 304  ;;  %v16155_v41 = vsel %vm20810_vm4, %v21872_v55, %v21871_v31  ;;  %v16174_v55 = vmul.f32 %v21782_v60, %v1583_v33 }
 0x247   :  { %21868 = vst [vmem:[#allocation26_spill] sm:$0xff] %v16138_v49  ;;  %21869 = vst [vmem:[#allocation32_spill] sm:$0xff] %v16141_v15  ;;  %v16160_v16 = vsel %vm2805_vm1, 1.0, %v15820_v26  ;;  %vm2806_vm0 = vcmp.gt.f32.partialorder %v21853_v48, 0.0  ;;  %vm20813_vm14 = vcmp.eq.f32.partialorder %v16110_v63, 1.0  ;;  %vm20824_vm9 = vcmp.eq.f32.partialorder %v16141_v15, 1.0  ;;  %v1579_v56 = vpop.permute.xlu0 %1578 }
 0x248   :  { %21873 = vst [vmem:[#allocation24_spill] sm:$0xff] %v16155_v41  ;;  %v16169_v13 = vsel %vm20819_vm2, %v15438_v3, %v15449_v21  ;;  %v21875_v31 = vld [vmem:[#allocation238_spill] sm:$0xff]  ;;  %v16180_v51 = vsel %vm20824_vm9, %v15396_v5, %v15406_v42  ;;  %v16184_v41 = vsel %vm2804_vm11, %v3572_v12, %v4596_v39  ;;  %v16188_v21 = vsel %vm2805_vm1, %v3573_v19, %v4597_v40  ;;  %v21881_v42 = vld [vmem:[#allocation237_spill] sm:$0xff]  ;;  %v21892_v3 = vld [vmem:[#allocation147_spill] sm:$0xff] }
 0x249   :  { %21874 = vst [vmem:[#allocation143_spill] sm:$0xff] %v16169_v13  ;;  %v4086_v10 = vmul.f32 %v21875_v31, %v21875_v31  ;;  %21876 = vst [vmem:[#allocation238_spill] sm:$0xff] %v16174_v55  ;;  %vm20821_vm4 = vcmp.eq.f32.partialorder %v16138_v49, 1.0  ;;  %v21878_v31 = vld [vmem:[#allocation314_spill] sm:$0xff]  ;;  %v16196_v13 = vmul.f32 %v21782_v60, %v1579_v56  ;;  %1826 = vbcast.lane.b32.xlu1 %v21832_v61, 328  ;;  %vm20822_vm11 = vcmp.eq.f32.partialorder %v16174_v55, 1.0  ;;  %v1594_v40 = vpop.permute.xlu1 %1593 }
 0x24a   :  { %21877 = vst [vmem:[#allocation355_spill] sm:$0xff] %v16180_v51  ;;  %v16193_v33 = vmul.f32 %v21645_v38, %v21878_v31  ;;  %v3574_v51 = vadd.f32 1.0, %v21881_v42  ;;  %1822 = vbcast.lane.b32.xlu0 %v21832_v61, 320  ;;  %v21883_v19 = vld [vmem:[#allocation153_spill] sm:$0xff]  ;;  %v16211_v12 = vsel %vm2806_vm0, 1.0, %v15820_v26  ;;  %vm2807_vm1 = vcmp.gt.f32.partialorder %v21870_v34, 0.0 }
 0x24b   :  { %21880 = vst [vmem:[#allocation356_spill] sm:$0xff] %v16196_v13  ;;  %v16206_v20 = vsel %vm20813_vm14, %v21883_v19, %v21882_v35  ;;  %v21885_v56 = vld [vmem:[#allocation316_spill] sm:$0xff]  ;;  %vm20823_vm3 = vcmp.eq.f32.partialorder %v16196_v13, 1.0  ;;  %v4598_v31 = vsel %vm4342_vm13, %v4086_v10, 0.0  ;;  %v21888_v63 = vld [vmem:[#allocation129_spill] sm:$0xff]  ;;  %v1590_v60 = vpop.permute.xlu0 %1589  ;;  %v21891_v9 = vld [vmem:[#allocation146_spill] sm:$0xff] }
 0x24c   :  { %21879 = vst [vmem:[#allocation314_spill] sm:$0xff] %v16193_v33  ;;  %21884 = vst [vmem:[#allocation237_spill] sm:$0xff] %v16206_v20  ;;  %v16216_v39 = vmul.f32 %v21645_v38, %v21885_v56  ;;  %v21887_v42 = vld [vmem:[#allocation236_spill] sm:$0xff]  ;;  %vm4346_vm14 = vcmp.ge.f32.partialorder %v21888_v63, -0.1  ;;  %v21889_v19 = vld [vmem:[#allocation17_spill] sm:$0xff]  ;;  %v16231_v56 = vsel %vm20821_vm4, %v21892_v3, %v21891_v9  ;;  %v16237_v10 = vsel %vm20823_vm3, %v15484_v4, %v15479_v17 }
 0x24d   :  { %v4087_v35 = vmul.f32 %v21887_v42, %v21887_v42  ;;  %v16225_v20 = vmul.f32 %v21889_v19, %v1594_v40  ;;  %21893 = vst [vmem:[#allocation236_spill] sm:$0xff] %v16231_v56  ;;  %21894 = vst [vmem:[#allocation129_spill] sm:$0xff] %v16237_v10  ;;  %v21895_v15 = vld [vmem:[#allocation244_spill] sm:$0xff]  ;;  %v21896_v5 = vld [vmem:[#allocation138_spill] sm:$0xff]  ;;  %vm20833_vm2 = vcmp.eq.f32.partialorder %v16193_v33, 1.0  ;;  %v16244_v40 = vmul.f32 %v21889_v19, %v1590_v60 }
 0x24e   :  { %21886 = vst [vmem:[#allocation156_spill] sm:$0xff] %v16216_v39  ;;  %v4088_v42 = vmul.f32 %v21895_v15, %v21895_v15  ;;  %vm4345_vm13 = vcmp.ge.f32.partialorder %v21896_v5, -0.1  ;;  %1834 = vbcast.lane.b32.xlu1 %v21832_v61, 344  ;;  %v16251_v9 = vsel %vm20822_vm11, %v15528_v18, %v15539_v24  ;;  %v21899_v17 = vld [vmem:[#allocation128_spill] sm:$0xff]  ;;  %1830 = vbcast.lane.b32.xlu0 %v21832_v61, 336  ;;  %v1602_v24 = vpop.permute.xlu1 %1601 }
 0x24f   :  { %21890 = vst [vmem:[#allocation316_spill] sm:$0xff] %v16225_v20  ;;  %21897 = vst [vmem:[#allocation17_spill] sm:$0xff] %v16244_v40  ;;  %v3575_v49 = vadd.f32 1.0, %v21899_v17  ;;  %v16257_v15 = vsel %vm2806_vm0, %v3574_v51, %v4598_v31  ;;  %v16262_v60 = vsel %vm2807_vm1, 1.0, %v15820_v26  ;;  %vm2808_vm4 = vcmp.gt.f32.partialorder %v21867_v47, 0.0  ;;  %v21900_v3 = vld [vmem:[#allocation243_spill] sm:$0xff] }
 0x250   :  { %21898 = vst [vmem:[#allocation146_spill] sm:$0xff] %v16251_v9  ;;  %v3576_v10 = vadd.f32 1.0, %v21900_v3  ;;  %vm20834_vm11 = vcmp.eq.f32.partialorder %v16216_v39, 1.0  ;;  %vm20835_vm3 = vcmp.eq.f32.partialorder %v16225_v20, 1.0  ;;  %vm20837_vm9 = vcmp.eq.f32.partialorder %v16244_v40, 1.0  ;;  %v21901_v48 = vld [vmem:[#allocation320_spill] sm:$0xff]  ;;  %v1598_v9 = vpop.permute.xlu0 %1597 }
 0x251   :  { %v4599_v51 = vsel %vm4343_vm6, %v4087_v35, 0.0  ;;  %v16273_v31 = vmul.f32 %v21645_v38, %v21901_v48  ;;  %v16276_v17 = vmul.f32 %v21889_v19, %v1602_v24  ;;  %v21904_v56 = vld [vmem:[#allocation163_spill] sm:$0xff]  ;;  %v21905_v3 = vld [vmem:[#allocation162_spill] sm:$0xff]  ;;  %v4600_v18 = vsel %vm4344_vm8, %v4088_v42, 0.0  ;;  %v21907_v13 = vld [vmem:[#allocation321_spill] sm:$0xff] }
 0x252   :  { %v16282_v55 = vsel %vm20833_vm2, %v21905_v3, %v21904_v56  ;;  %v16288_v35 = vmul.f32 %v21645_v38, %v21907_v13  ;;  %v16291_v48 = vmul.f32 %v21889_v19, %v1598_v9  ;;  %1842 = vbcast.lane.b32.xlu1 %v21832_v61, 360  ;;  %v21910_v24 = vld [vmem:[#allocation193_spill] sm:$0xff]  ;;  %v21911_v4 = vld [vmem:[#allocation347_spill] sm:$0xff]  ;;  %v16303_v56 = vsel %vm2808_vm4, 1.0, %v15820_v26  ;;  %1838 = vbcast.lane.b32.xlu0 %v21832_v61, 352  ;;  %v21915_v13 = vld [vmem:[#allocation158_spill] sm:$0xff]  ;;  %v1610_v39 = vpop.permute.xlu1 %1609 }
 0x253   :  { %21902 = vst [vmem:[#allocation244_spill] sm:$0xff] %v16273_v31  ;;  %21903 = vst [vmem:[#allocation138_spill] sm:$0xff] %v16276_v17  ;;  %v16298_v58 = vsel %vm20837_vm9, %v21911_v4, %v21910_v24  ;;  %v21914_v42 = vld [vmem:[#allocation137_spill] sm:$0xff]  ;;  %v21916_v9 = vld [vmem:[#allocation159_spill] sm:$0xff]  ;;  %vm20856_vm6 = vcmp.eq.f32.partialorder %v16276_v17, 1.0  ;;  %vm20844_vm2 = vcmp.eq.f32.partialorder %v16273_v31, 1.0  ;;  %v16335_v34 = vmul.f32 %v21889_v19, %v1610_v39 }
 0x254   :  { %21906 = vst [vmem:[#allocation128_spill] sm:$0xff] %v16282_v55  ;;  %21908 = vst [vmem:[#allocation243_spill] sm:$0xff] %v16288_v35  ;;  %vm4347_vm8 = vcmp.ge.f32.partialorder %v21914_v42, -0.1  ;;  %v16311_v33 = vsel %vm20834_vm11, %v21916_v9, %v21915_v13  ;;  %v21918_v3 = vld [vmem:[#allocation201_spill] sm:$0xff]  ;;  %v21920_v55 = vld [vmem:[#allocation242_spill] sm:$0xff]  ;;  %v16329_v13 = vsel %vm2808_vm4, %v3576_v10, %v4600_v18 }
 0x255   :  { %21909 = vst [vmem:[#allocation320_spill] sm:$0xff] %v16291_v48  ;;  %21912 = vst [vmem:[#allocation163_spill] sm:$0xff] %v16298_v58  ;;  %v16317_v24 = vsel %vm20835_vm3, %v21918_v3, %v15620_v43  ;;  %v16321_v58 = vsel %vm2807_vm1, %v3575_v49, %v4599_v51  ;;  %vm20840_vm0 = vcmp.eq.f32.partialorder %v16291_v48, 1.0  ;;  %v21922_v9 = vld [vmem:[#allocation249_spill] sm:$0xff]  ;;  %v1606_v49 = vpop.permute.xlu0 %1605  ;;  %vm2809_vm1 = vcmp.gt.f32.partialorder %v21896_v5, 0.0  ;;  %v21926_v47 = vld [vmem:[#allocation248_spill] sm:$0xff] }
 0x256   :  { %21913 = vst [vmem:[#allocation321_spill] sm:$0xff] %v16303_v56  ;;  %21917 = vst [vmem:[#allocation193_spill] sm:$0xff] %v16311_v33  ;;  %v4089_v56 = vmul.f32 %v21920_v55, %v21920_v55  ;;  %v4090_v43 = vmul.f32 %v21922_v9, %v21922_v9  ;;  %v21924_v55 = vld [vmem:[#allocation241_spill] sm:$0xff]  ;;  %vm20846_vm3 = vcmp.eq.f32.partialorder %v16288_v35, 1.0  ;;  %v16342_v18 = vmul.f32 %v21889_v19, %v1606_v49  ;;  %v21927_v39 = vld [vmem:[#allocation323_spill] sm:$0xff] }
 0x257   :  { %21919 = vst [vmem:[#allocation347_spill] sm:$0xff] %v16317_v24  ;;  %21921 = vst [vmem:[#allocation137_spill] sm:$0xff] %v16329_v13  ;;  %v3577_v51 = vadd.f32 1.0, %v21924_v55  ;;  %v21925_v24 = vld [vmem:[#allocation31_spill] sm:$0xff]  ;;  %1850 = vbcast.lane.b32.xlu1 %v21832_v61, 376  ;;  %vm2810_vm4 = vcmp.gt.f32.partialorder %v21888_v63, 0.0  ;;  %v16349_v9 = vmul.f32 %v21645_v38, %v21927_v39 }
 0x258   :  { %21923 = vst [vmem:[#allocation158_spill] sm:$0xff] %v16335_v34  ;;  %vm4348_vm11 = vcmp.ge.f32.partialorder %v21925_v24, -0.1  ;;  %v3578_v10 = vadd.f32 1.0, %v21926_v47  ;;  %1846 = vbcast.lane.b32.xlu0 %v21832_v61, 368  ;;  %v21929_v55 = vld [vmem:[#allocation349_spill] sm:$0xff]  ;;  %v1618_v61 = vpop.permute.xlu1 %1617 }
 0x259   :  { %21928 = vst [vmem:[#allocation242_spill] sm:$0xff] %v16349_v9  ;;  %v16356_v33 = vsel %vm20840_vm0, %v21929_v55, %v15665_v1  ;;  %v21931_v49 = vld [vmem:[#allocation350_spill] sm:$0xff]  ;;  %v4601_v47 = vsel %vm4345_vm13, %v4089_v56, 0.0  ;;  %v21934_v3 = vld [vmem:[#allocation181_spill] sm:$0xff]  ;;  %vm20849_vm9 = vcmp.eq.f32.partialorder %v16342_v18, 1.0  ;;  %v4602_v1 = vsel %vm4346_vm14, %v4090_v43, 0.0 }
 0x25a   :  { %21930 = vst [vmem:[#allocation249_spill] sm:$0xff] %v16356_v33  ;;  %v21932_v13 = vld [vmem:[#allocation86_spill] sm:$0xff]  ;;  %v16368_v39 = vmul.f32 %v21645_v38, %v21934_v3  ;;  %v21936_v33 = vld [vmem:[#allocation247_spill] sm:$0xff]  ;;  %vm20847_vm0 = vcmp.eq.f32.partialorder %v16335_v34, 1.0  ;;  %v21941_v55 = vld [vmem:[#allocation169_spill] sm:$0xff]  ;;  %v16407_v31 = vsel %vm2810_vm4, 1.0, %v15820_v26 }
 0x25b   :  { %v16362_v20 = vsel %vm20856_vm6, %v21932_v13, %v21931_v49  ;;  %v4091_v48 = vmul.f32 %v21936_v33, %v21936_v33  ;;  %v16377_v49 = vmul.f32 %v21889_v19, %v1618_v61  ;;  %v21937_v56 = vld [vmem:[#allocation175_spill] sm:$0xff]  ;;  %v21938_v17 = vld [vmem:[#allocation174_spill] sm:$0xff]  ;;  %v16388_v13 = vsel %vm2809_vm1, 1.0, %v15820_v26  ;;  %v21942_v61 = vld [vmem:[#allocation168_spill] sm:$0xff]  ;;  %21944 = vst [vmem:[#allocation350_spill] sm:$0xff] %v16407_v31 }
 0x25c   :  { %21933 = vst [vmem:[#allocation241_spill] sm:$0xff] %v16362_v20  ;;  %21935 = vst [vmem:[#allocation31_spill] sm:$0xff] %v16368_v39  ;;  %v1614_v20 = vpop.permute.xlu0 %1613  ;;  %v16383_v3 = vsel %vm20844_vm2, %v21938_v17, %v21937_v56  ;;  %v21940_v43 = vld [vmem:[#allocation134_spill] sm:$0xff]  ;;  %v16398_v40 = vsel %vm20846_vm3, %v21942_v61, %v21941_v55  ;;  %v16402_v56 = vsel %vm2809_vm1, %v3577_v51, %v4601_v47  ;;  %vm20851_vm13 = vcmp.eq.f32.partialorder %v16349_v9, 1.0  ;;  %v1626_v5 = vpop.permute.xlu1 %1625  ;;  %v21948_v51 = vld [vmem:[#allocation76_spill] sm:$0xff] }
 0x25d   :  { %21939 = vst [vmem:[#allocation248_spill] sm:$0xff] %v16383_v3  ;;  %vm4349_vm14 = vcmp.ge.f32.partialorder %v21940_v43, -0.1  ;;  %v16392_v33 = vmul.f32 %v21889_v19, %v1614_v20  ;;  %21943 = vst [vmem:[#allocation323_spill] sm:$0xff] %v16398_v40  ;;  %v21945_v20 = vld [vmem:[#allocation205_spill] sm:$0xff]  ;;  %v16418_v55 = vsel %vm2810_vm4, %v3578_v10, %v4602_v1  ;;  %vm2811_vm1 = vcmp.gt.f32.partialorder %v21914_v42, 0.0 }
 0x25e   :  { %v16414_v17 = vsel %vm20849_vm9, %v21945_v20, %v15737_v11  ;;  %21947 = vst [vmem:[#allocation247_spill] sm:$0xff] %v16418_v55  ;;  %vm20855_vm2 = vcmp.eq.f32.partialorder %v16368_v39, 1.0  ;;  %v16426_v47 = vsel %vm20847_vm0, %v21948_v51, %v15741_v53  ;;  %v21950_v35 = vld [vmem:[#allocation246_spill] sm:$0xff]  ;;  %v4603_v11 = vsel %vm4347_vm8, %v4091_v48, 0.0  ;;  %v21954_v3 = vld [vmem:[#allocation255_spill] sm:$0xff]  ;;  %v21963_v31 = vld [vmem:[#allocation180_spill] sm:$0xff] }
 0x25f   :  { %21946 = vst [vmem:[#allocation181_spill] sm:$0xff] %v16414_v17  ;;  %21949 = vst [vmem:[#allocation175_spill] sm:$0xff] %v16426_v47  ;;  %v3579_v61 = vadd.f32 1.0, %v21950_v35  ;;  %v21951_v17 = vld [vmem:[#allocation328_spill] sm:$0xff]  ;;  %vm20865_vm4 = vcmp.eq.f32.partialorder %v16392_v33, 1.0  ;;  %v16437_v10 = vmul.f32 %v21889_v19, %v1626_v5  ;;  %v4092_v40 = vmul.f32 %v21954_v3, %v21954_v3  ;;  %v21955_v53 = vld [vmem:[#allocation142_spill] sm:$0xff] }
 0x260   :  { %v16433_v63 = vmul.f32 %v21645_v38, %v21951_v17  ;;  %v1622_v1 = vpop.permute.xlu0 %1621  ;;  %vm4350_vm3 = vcmp.ge.f32.partialorder %v21955_v53, -0.1  ;;  %vm20864_vm0 = vcmp.eq.f32.partialorder %v16377_v49, 1.0  ;;  %v21957_v48 = vld [vmem:[#allocation74_spill] sm:$0xff]  ;;  %v21958_v47 = vld [vmem:[#allocation185_spill] sm:$0xff]  ;;  %v16455_v17 = vsel %vm2811_vm1, 1.0, %v15820_v26 }
 0x261   :  { %21953 = vst [vmem:[#allocation169_spill] sm:$0xff] %v16437_v10  ;;  %v16444_v35 = vmul.f32 %v21889_v19, %v1622_v1  ;;  %v16450_v38 = vsel %vm20851_vm13, %v21958_v47, %v21957_v48  ;;  %21960 = vst [vmem:[#allocation246_spill] sm:$0xff] %v16455_v17  ;;  %v21961_v5 = vld [vmem:[#allocation49_spill] sm:$0xff]  ;;  %v21962_v3 = vld [vmem:[#allocation182_spill] sm:$0xff]  ;;  %vm2812_vm9 = vcmp.gt.f32.partialorder %v21925_v24, 0.0  ;;  %v1634_v47 = vpop.permute.xlu1 %1633  ;;  %v16476_v34 = vsel %vm2811_vm1, %v3579_v61, %v4603_v11 }
 0x262   :  { %21952 = vst [vmem:[#allocation134_spill] sm:$0xff] %v16433_v63  ;;  %21959 = vst [vmem:[#allocation76_spill] sm:$0xff] %v16450_v38  ;;  %vm20858_vm8 = vcmp.eq.f32.partialorder %v21961_v5, 1.0  ;;  %v16462_v55 = vsel %vm20855_vm2, %v21963_v31, %v21962_v3  ;;  %v21965_v1 = vld [vmem:[#allocation145_spill] sm:$0xff]  ;;  %v21966_v48 = vld [vmem:[#allocation139_spill] sm:$0xff]  ;;  %vm2813_vm2 = vcmp.gt.f32.partialorder %v21940_v43, 0.0 }
 0x263   :  { %21956 = vst [vmem:[#allocation205_spill] sm:$0xff] %v16444_v35  ;;  %21964 = vst [vmem:[#allocation328_spill] sm:$0xff] %v16462_v55  ;;  %v4093_v9 = vmul.f32 %v21965_v1, %v21965_v1  ;;  %vm4351_vm13 = vcmp.ge.f32.partialorder %v21966_v48, -0.1  ;;  %v21967_v38 = vld [vmem:[#allocation90_spill] sm:$0xff]  ;;  %vm20861_vm6 = vcmp.eq.f32.partialorder %v16433_v63, 1.0  ;;  %v16482_v1 = vmul.f32 %v21889_v19, %v1634_v47 }
 0x264   :  { %v16472_v17 = vsel %vm20865_vm4, %v21967_v38, %v15786_v52  ;;  %21969 = vst [vmem:[#allocation142_spill] sm:$0xff] %v16476_v34  ;;  %v21970_v3 = vld [vmem:[#allocation254_spill] sm:$0xff]  ;;  %v1630_v31 = vpop.permute.xlu0 %1629  ;;  %v16488_v52 = vsel %vm20864_vm0, %v15791_v44, %v15818_v62  ;;  %v4604_v42 = vsel %vm4348_vm11, %v4092_v40, 0.0  ;;  %vm20863_vm1 = vcmp.eq.f32.partialorder %v16444_v35, 1.0  ;;  %v21974_v11 = vld [vmem:[#allocation192_spill] sm:$0xff]  ;;  %v21978_v62 = vld [vmem:[#allocation13_spill] sm:$0xff] }
 0x265   :  { %21968 = vst [vmem:[#allocation255_spill] sm:$0xff] %v16472_v17  ;;  %v3580_v39 = vadd.f32 1.0, %v21970_v3  ;;  %21971 = vst [vmem:[#allocation74_spill] sm:$0xff] %v16482_v1  ;;  %v21973_v61 = vld [vmem:[#allocation194_spill] sm:$0xff]  ;;  %v16502_v47 = vsel %vm2812_vm9, 1.0, %v15820_v26  ;;  %v21977_v17 = vld [vmem:[#allocation252_spill] sm:$0xff]  ;;  %v16511_v40 = vmul.f32 %v21889_v19, %v1630_v31 }
 0x266   :  { %21972 = vst [vmem:[#allocation182_spill] sm:$0xff] %v16488_v52  ;;  %v16497_v3 = vsel %vm20858_vm8, %v21974_v11, %v21973_v61  ;;  %21976 = vst [vmem:[#allocation139_spill] sm:$0xff] %v16502_v47  ;;  %v3581_v55 = vadd.f32 1.0, %v21977_v17  ;;  %v16507_v52 = vmul.f32 %v21660_v22, %v21978_v62  ;;  %vm20869_vm11 = vcmp.eq.f32.partialorder %v16437_v10, 1.0  ;;  %v21980_v5 = vld [vmem:[#allocation253_spill] sm:$0xff]  ;;  %v1642_v11 = vpop.permute.xlu1 %1641  ;;  %v21982_v34 = vld [vmem:[#allocation188_spill] sm:$0xff] }
 0x267   :  { %21975 = vst [vmem:[#allocation145_spill] sm:$0xff] %v16497_v3  ;;  %v4605_v61 = vsel %vm4349_vm14, %v4093_v9, 0.0  ;;  %vm4352_vm8 = vcmp.ge.f32.partialorder %v21980_v5, -0.1  ;;  %v21981_v3 = vld [vmem:[#allocation187_spill] sm:$0xff]  ;;  %v16524_v62 = vsel %vm2812_vm9, %v3580_v39, %v4604_v42  ;;  %v16529_v31 = vsel %vm2813_vm2, 1.0, %v15820_v26 }
 0x268   :  { %21979 = vst [vmem:[#allocation90_spill] sm:$0xff] %v16507_v52  ;;  %v16520_v17 = vsel %vm20861_vm6, %v21982_v34, %v21981_v3  ;;  %21984 = vst [vmem:[#allocation194_spill] sm:$0xff] %v16524_v62  ;;  %vm2814_vm14 = vcmp.gt.f32.partialorder %v21955_v53, 0.0  ;;  %v16533_v9 = vmul.f32 %v21889_v19, %v1642_v11  ;;  %v1638_v47 = vpop.permute.xlu0 %1637  ;;  %v16539_v3 = vsel %vm20863_vm1, %v15825_v36, %v15845_v30  ;;  %v21987_v24 = vld [vmem:[#allocation258_spill] sm:$0xff]  ;;  %v21988_v42 = vld [vmem:[#allocation144_spill] sm:$0xff] }
 0x269   :  { %21983 = vst [vmem:[#allocation254_spill] sm:$0xff] %v16520_v17  ;;  %21985 = vst [vmem:[#allocation252_spill] sm:$0xff] %v16529_v31  ;;  %v4094_v39 = vmul.f32 %v21987_v24, %v21987_v24  ;;  %v4095_v63 = vmul.f32 %v21988_v42, %v21988_v42  ;;  %v21989_v34 = vld [vmem:[#allocation191_spill] sm:$0xff]  ;;  %v16550_v11 = vsel %vm20869_vm11, %v15872_v32, %v15900_v37  ;;  %v21992_v30 = vld [vmem:[#allocation257_spill] sm:$0xff]  ;;  %vm20876_vm6 = vcmp.eq.f32.partialorder %v16507_v52, 1.0 }
 0x26a   :  { %21986 = vst [vmem:[#allocation13_spill] sm:$0xff] %v16539_v3  ;;  %vm20874_vm9 = vcmp.eq.f32.partialorder %v21989_v34, 1.0  ;;  %21990 = vst [vmem:[#allocation253_spill] sm:$0xff] %v16550_v11  ;;  %v16554_v17 = vsel %vm2813_vm2, %v3581_v55, %v4605_v61  ;;  %v3582_v3 = vadd.f32 1.0, %v21992_v30  ;;  %v21993_v24 = vld [vmem:[#allocation338_spill] sm:$0xff]  ;;  %vm20885_vm1 = vcmp.eq.f32.partialorder %v16511_v40, 1.0  ;;  %v1650_v43 = vpop.permute.xlu1 %1649 }
 0x26b   :  { %21991 = vst [vmem:[#allocation187_spill] sm:$0xff] %v16554_v17  ;;  %v16560_v31 = vmul.f32 %v21660_v22, %v21993_v24  ;;  %vm2815_vm0 = vcmp.gt.f32.partialorder %v21966_v48, 0.0  ;;  %vm20884_vm4 = vcmp.eq.f32.partialorder %v16482_v1, 1.0  ;;  %v16566_v37 = vmul.f32 %v21889_v19, %v1638_v47  ;;  %v21996_v61 = vld [vmem:[#allocation152_spill] sm:$0xff]  ;;  %v21998_v17 = vld [vmem:[#allocation203_spill] sm:$0xff]  ;;  %v21999_v62 = vld [vmem:[#allocation202_spill] sm:$0xff] }
 0x26c   :  { %v16571_v55 = vsel %vm2814_vm14, 1.0, %v15820_v26  ;;  %v3583_v42 = vadd.f32 1.0, %v21996_v61  ;;  %v21997_v30 = vld [vmem:[#allocation40_spill] sm:$0xff]  ;;  %v16576_v24 = vmul.f32 %v21889_v19, %v1650_v43  ;;  %v1646_v11 = vpop.permute.xlu0 %1645  ;;  %v16582_v47 = vsel %vm20874_vm9, %v21999_v62, %v21998_v17  ;;  %v22002_v61 = vld [vmem:[#allocation337_spill] sm:$0xff]  ;;  %v22004_v43 = vld [vmem:[#allocation198_spill] sm:$0xff] }
 0x26d   :  { %21994 = vst [vmem:[#allocation258_spill] sm:$0xff] %v16560_v31  ;;  %21995 = vst [vmem:[#allocation144_spill] sm:$0xff] %v16571_v55  ;;  %vm4354_vm2 = vcmp.ge.f32.partialorder %v21997_v30, -0.1  ;;  %v4606_v10 = vsel %vm4350_vm3, %v4094_v39, 0.0  ;;  %v4607_v55 = vsel %vm4351_vm13, %v4095_v63, 0.0  ;;  %v16600_v17 = vsel %vm20885_vm1, %v15877_v8, %v15904_v2 }
 0x26e   :  { %22000 = vst [vmem:[#allocation257_spill] sm:$0xff] %v16582_v47  ;;  %v22001_v32 = vld [vmem:[#allocation12_spill] sm:$0xff]  ;;  %vm20879_vm12 = vcmp.eq.f32.partialorder %v22002_v61, 1.0  ;;  %v22003_v35 = vld [vmem:[#allocation197_spill] sm:$0xff]  ;;  %22006 = vst [vmem:[#allocation152_spill] sm:$0xff] %v16600_v17  ;;  %v16605_v63 = vsel %vm2815_vm0, 1.0, %v15820_v26  ;;  %v1661_v2 = vpop.permute.xlu1 %1660  ;;  %v16620_v52 = vsel %vm2814_vm14, %v3582_v3, %v4606_v10 }
 0x26f   :  { %vm4353_vm11 = vcmp.ge.f32.partialorder %v22001_v32, -0.1  ;;  %v16594_v36 = vsel %vm20876_vm6, %v22004_v43, %v22003_v35  ;;  %22007 = vst [vmem:[#allocation40_spill] sm:$0xff] %v16605_v63  ;;  %vm20882_vm3 = vcmp.eq.f32.partialorder %v16560_v31, 1.0  ;;  %v22008_v39 = vld [vmem:[#allocation133_spill] sm:$0xff]  ;;  %vm2816_vm13 = vcmp.gt.f32.partialorder %v21980_v5, 0.0 }
 0x270   :  { %22005 = vst [vmem:[#allocation338_spill] sm:$0xff] %v16594_v36  ;;  %v16612_v34 = vsel %vm20884_vm4, %v22008_v39, %v15975_v59  ;;  %v22010_v35 = vld [vmem:[#allocation262_spill] sm:$0xff]  ;;  %vm20883_vm9 = vcmp.eq.f32.partialorder %v16566_v37, 1.0  ;;  %22011 = vst [vmem:[#allocation12_spill] sm:$0xff] %v16620_v52  ;;  %v16624_v43 = vsel %vm2815_vm0, %v3583_v42, %v4607_v55  ;;  %v22013_v17 = vld [vmem:[#allocation35_spill] sm:$0xff]  ;;  %vm5441_vm6 = vcmp.eq.f32.partialorder %v16533_v9, 1.0  ;;  %v1657_v36 = vpop.permute.xlu0 %1656 }
 0x271   :  { %22009 = vst [vmem:[#allocation203_spill] sm:$0xff] %v16612_v34  ;;  %v4096_v62 = vmul.f32 %v22010_v35, %v22010_v35  ;;  %22012 = vst [vmem:[#allocation197_spill] sm:$0xff] %v16624_v43  ;;  %v3584_v47 = vadd.f32 1.0, %v22013_v17  ;;  %v16629_v59 = vmul.f32 %v21889_v19, %v1646_v11  ;;  %v22014_v34 = vld [vmem:[#allocation18_spill] sm:$0xff]  ;;  %v22015_v63 = vld [vmem:[#allocation212_spill] sm:$0xff]  ;;  %v16654_v11 = vsel %vm2816_vm13, 1.0, %v15820_v26 }
 0x272   :  { %v16632_v35 = vmul.f32 %v22014_v34, %v1661_v2  ;;  %v22016_v1 = vld [vmem:[#allocation211_spill] sm:$0xff]  ;;  %v22018_v53 = vld [vmem:[#allocation260_spill] sm:$0xff]  ;;  %v22021_v55 = vld [vmem:[#allocation122_spill] sm:$0xff]  ;;  %22024 = vst [vmem:[#allocation18_spill] sm:$0xff] %v16654_v11  ;;  %vm2817_vm14 = vcmp.gt.f32.partialorder %v22001_v32, 0.0 }
 0x273   :  { %v16638_v10 = vsel %vm20879_vm12, %v22016_v1, %v22015_v63  ;;  %vm4356_vm0 = vcmp.ge.f32.partialorder %v22018_v53, -0.1  ;;  %v22019_v48 = vld [vmem:[#allocation344_spill] sm:$0xff]  ;;  %v22022_v42 = vld [vmem:[#allocation95_spill] sm:$0xff]  ;;  %v22025_v17 = vld [vmem:[#allocation33_spill] sm:$0xff]  ;;  %v16662_v63 = vsel %vm20883_vm9, %v15949_v23, %v15979_v29  ;;  %v4608_v2 = vsel %vm4352_vm8, %v4096_v62, 0.0 }
 0x274   :  { %22017 = vst [vmem:[#allocation133_spill] sm:$0xff] %v16638_v10  ;;  %v16643_v3 = vmul.f32 %v21660_v22, %v22019_v48  ;;  %v16649_v19 = vsel %vm20882_vm3, %v22022_v42, %v22021_v55  ;;  %vm4355_vm12 = vcmp.ge.f32.partialorder %v22025_v17, -0.1  ;;  %22026 = vst [vmem:[#allocation212_spill] sm:$0xff] %v16662_v63  ;;  %v22027_v48 = vld [vmem:[#allocation15_spill] sm:$0xff]  ;;  %v22028_v61 = vld [vmem:[#allocation150_spill] sm:$0xff]  ;;  %v1669_v42 = vpop.permute.xlu1 %1668  ;;  %v16674_v10 = vsel %vm5441_vm6, %v16005_v45, %v16000_v14 }
 0x275   :  { %22023 = vst [vmem:[#allocation35_spill] sm:$0xff] %v16649_v19  ;;  %v3585_v55 = vadd.f32 1.0, %v22027_v48  ;;  %v4097_v1 = vmul.f32 %v22028_v61, %v22028_v61  ;;  %v22029_v31 = vld [vmem:[#allocation343_spill] sm:$0xff]  ;;  %22030 = vst [vmem:[#allocation260_spill] sm:$0xff] %v16674_v10  ;;  %vm2818_vm9 = vcmp.gt.f32.partialorder %v21997_v30, 0.0  ;;  %v22031_v29 = vld [vmem:[#allocation269_spill] sm:$0xff]  ;;  %v16682_v62 = vmul.f32 %v22014_v34, %v1657_v36  ;;  %v1665_v48 = vpop.permute.xlu0 %1664 }
 0x276   :  { %22020 = vst [vmem:[#allocation262_spill] sm:$0xff] %v16643_v3  ;;  %vm20890_vm3 = vcmp.eq.f32.partialorder %v22029_v31, 1.0  ;;  %v4098_v63 = vmul.f32 %v22031_v29, %v22031_v29  ;;  %vm5443_vm8 = vcmp.eq.f32.partialorder %v16576_v24, 1.0  ;;  %vm5442_vm4 = vcmp.eq.f32.partialorder %v16629_v59, 1.0  ;;  %v22033_v10 = vld [vmem:[#allocation268_spill] sm:$0xff]  ;;  %v22034_v11 = vld [vmem:[#allocation83_spill] sm:$0xff] }
 0x277   :  { %v16685_v61 = vmul.f32 %v22014_v34, %v1669_v42  ;;  %vm20891_vm1 = vcmp.eq.f32.partialorder %v16643_v3, 1.0  ;;  %v16690_v14 = vsel %vm2816_vm13, %v3584_v47, %v4608_v2  ;;  %v16695_v29 = vsel %vm2817_vm14, 1.0, %v15820_v26  ;;  %v22036_v42 = vld [vmem:[#allocation223_spill] sm:$0xff]  ;;  %v22037_v43 = vld [vmem:[#allocation221_spill] sm:$0xff]  ;;  %v22091_v0 = vld [vmem:[#allocation356_spill] sm:$0xff] }
 0x278   :  { %22032 = vst [vmem:[#allocation344_spill] sm:$0xff] %v16695_v29  ;;  %v3586_v19 = vadd.f32 1.0, %v22033_v10  ;;  %v16700_v36 = vmul.f32 %v21660_v22, %v22034_v11  ;;  %v16706_v52 = vsel %vm20890_vm3, %v22037_v43, %v22036_v42  ;;  %v4609_v5 = vsel %vm4353_vm11, %v4097_v1, 0.0  ;;  %v1677_v2 = vpop.permute.xlu1 %1676  ;;  %v22042_v42 = vld [vmem:[#allocation148_spill] sm:$0xff]  ;;  %v22048_v29 = vld [vmem:[#allocation21_spill] sm:$0xff] }
 0x279   :  { %22038 = vst [vmem:[#allocation33_spill] sm:$0xff] %v16706_v52  ;;  %v16713_v47 = vsel %vm2818_vm9, 1.0, %v15820_v26  ;;  %v16719_v10 = vsel %vm5442_vm4, %v16025_v57, %v16083_v27  ;;  %v16725_v11 = vsel %vm5443_vm8, %v16057_v6, %v16087_v54  ;;  %v4610_v1 = vsel %vm4354_vm2, %v4098_v63, 0.0  ;;  %v1673_v52 = vpop.permute.xlu0 %1672  ;;  %v22043_v27 = vld [vmem:[#allocation218_spill] sm:$0xff]  ;;  %v22161_v59 = vld [vmem:[#allocation276_spill] sm:$0xff] }
 0x27a   :  { %22035 = vst [vmem:[#allocation122_spill] sm:$0xff] %v16700_v36  ;;  %22039 = vst [vmem:[#allocation15_spill] sm:$0xff] %v16713_v47  ;;  %v4099_v31 = vmul.f32 %v22042_v42, %v22042_v42  ;;  %vm5444_vm11 = vcmp.eq.f32.partialorder %v16682_v62, 1.0  ;;  %v16733_v43 = vmul.f32 %v22014_v34, %v1677_v2  ;;  %v22046_v54 = vld [vmem:[#allocation274_spill] sm:$0xff]  ;;  %vm5445_vm2 = vcmp.eq.f32.partialorder %v16632_v35, 1.0  ;;  %v22177_v62 = vld [vmem:[#allocation161_spill] sm:$0xff] }
 0x27b   :  { %22040 = vst [vmem:[#allocation150_spill] sm:$0xff] %v16719_v10  ;;  %22041 = vst [vmem:[#allocation269_spill] sm:$0xff] %v16725_v11  ;;  %v22044_v10 = vld [vmem:[#allocation216_spill] sm:$0xff]  ;;  %v4100_v11 = vmul.f32 %v22046_v54, %v22046_v54  ;;  %v16745_v63 = vmul.f32 %v22014_v34, %v1665_v48  ;;  %v22047_v42 = vld [vmem:[#allocation58_spill] sm:$0xff]  ;;  %v16750_v2 = vsel %vm2817_vm14, %v3585_v55, %v4609_v5  ;;  %vm2819_vm13 = vcmp.gt.f32.partialorder %v22025_v17, 0.0 }
 0x27c   :  { %v16739_v47 = vsel %vm20891_vm1, %v22044_v10, %v22043_v27  ;;  %6388 = vadd.xlane.f32.xlu0 %v22047_v42  ;;  %vm20895_vm3 = vcmp.eq.f32.partialorder %v22048_v29, 1.0  ;;  %vm20897_vm1 = vcmp.eq.f32.partialorder %v16700_v36, 1.0  ;;  %v16757_v27 = vsel %vm2818_vm9, %v3586_v19, %v4610_v1  ;;  %v22049_v54 = vld [vmem:[#allocation265_spill] sm:$0xff]  ;;  %v1685_v48 = vpop.permute.xlu1 %1684 }
 0x27d   :  { %22045 = vst [vmem:[#allocation268_spill] sm:$0xff] %v16739_v47  ;;  %v3587_v3 = vadd.f32 1.0, %v22049_v54  ;;  %v16764_v32 = vsel %vm5444_vm11, %v16104_v7, %v16184_v41  ;;  %v4611_v55 = vsel %vm4355_vm12, %v4099_v31, 0.0  ;;  %vm2820_vm14 = vcmp.gt.f32.partialorder %v22018_v53, 0.0  ;;  %v22051_v5 = vld [vmem:[#allocation273_spill] sm:$0xff]  ;;  %v1681_v19 = vpop.permute.xlu0 %1680  ;;  %v22059_v47 = vld [vmem:[#allocation231_spill] sm:$0xff] }
 0x27e   :  { %22050 = vst [vmem:[#allocation83_spill] sm:$0xff] %v16764_v32  ;;  %v3588_v42 = vadd.f32 1.0, %v22051_v5  ;;  %v16771_v30 = vmul.f32 %v22014_v34, %v1685_v48  ;;  %v16777_v1 = vsel %vm5445_vm2, %v16160_v16, %v16188_v21  ;;  %v16782_v41 = vsel %vm2819_vm13, 1.0, %v15820_v26  ;;  %v22054_v48 = vld [vmem:[#allocation59_spill] sm:$0xff]  ;;  %v22055_v5 = vld [vmem:[#allocation78_spill] sm:$0xff]  ;;  %v22056_v10 = vld [vmem:[#allocation225_spill] sm:$0xff] }
 0x27f   :  { %22052 = vst [vmem:[#allocation223_spill] sm:$0xff] %v16777_v1  ;;  %22053 = vst [vmem:[#allocation148_spill] sm:$0xff] %v16782_v41  ;;  %v4612_v31 = vsel %vm4356_vm0, %v4100_v11, 0.0  ;;  %vm20899_vm12 = vcmp.eq.f32.partialorder %v16745_v63, 1.0  ;;  %v16788_v54 = vmul.f32 %v22014_v34, %v1673_v52  ;;  %6390 = vadd.xlane.f32.xlu1 %v22055_v5  ;;  %v22057_v21 = vld [vmem:[#allocation226_spill] sm:$0xff]  ;;  %v22058_v32 = vld [vmem:[#allocation124_spill] sm:$0xff] }
 0x280   :  { %6392 = vadd.xlane.f32.xlu0 %v22054_v48  ;;  %v16796_v1 = vsel %vm20897_vm1, %v22057_v21, %v22056_v10  ;;  %v16802_v11 = vsel %vm20895_vm3, %v22059_v47, %v22058_v32  ;;  %v22061_v41 = vld [vmem:[#allocation87_spill] sm:$0xff]  ;;  %vm20898_vm9 = vcmp.eq.f32.partialorder %v16685_v61, 1.0  ;;  %v16811_v48 = vsel %vm2819_vm13, %v3587_v3, %v4611_v55  ;;  %v1693_v29 = vpop.permute.xlu1 %1692  ;;  %v22067_v21 = vld [vmem:[#allocation37_spill] sm:$0xff] }
 0x281   :  { %22060 = vst [vmem:[#allocation218_spill] sm:$0xff] %v16802_v11  ;;  %v16806_v52 = vmul.f32 %v21660_v22, %v22061_v41  ;;  %v16816_v10 = vsel %vm2820_vm14, 1.0, %v15820_v26  ;;  %v22063_v5 = vld [vmem:[#allocation199_spill] sm:$0xff]  ;;  %v16821_v32 = vsel %vm2820_vm14, %v3588_v42, %v4612_v31  ;;  %v16828_v3 = vmul.f32 %v22014_v34, %v1693_v29  ;;  %v1689_v17 = vpop.permute.xlu0 %1688  ;;  %v22068_v42 = vld [vmem:[#allocation62_spill] sm:$0xff]  ;;  %v22071_v29 = vld [vmem:[#allocation81_spill] sm:$0xff] }
 0x282   :  { %vm20908_vm0 = vcmp.eq.f32.partialorder %v22063_v5, 1.0  ;;  %v22064_v41 = vld [vmem:[#allocation151_spill] sm:$0xff]  ;;  %v16834_v55 = vsel %vm20899_vm12, %v16211_v12, %v16257_v15  ;;  %v4101_v53 = vmul.f32 %v22067_v21, %v22067_v21  ;;  %v16841_v11 = vsel %vm5418_vm5, %v22068_v42, 0.0  ;;  %v22178_v35 = vld [vmem:[#allocation157_spill] sm:$0xff] }
 0x283   :  { %22062 = vst [vmem:[#allocation274_spill] sm:$0xff] %v16806_v52  ;;  %vm2821_vm3 = vcmp.gt.f32.partialorder %v22064_v41, 0.0  ;;  %v22065_v47 = vld [vmem:[#allocation91_spill] sm:$0xff]  ;;  %22066 = vst [vmem:[#allocation58_spill] sm:$0xff] %v16834_v55  ;;  %vm4357_vm13 = vcmp.ge.f32.partialorder %v22064_v41, -0.1  ;;  %v16851_v15 = vsel %vm20898_vm9, %v16262_v60, %v16321_v58 }
 0x284   :  { %v16825_v36 = vadd.f32 1.0, %v22065_v47  ;;  %22070 = vst [vmem:[#allocation265_spill] sm:$0xff] %v16841_v11  ;;  %vm20900_vm14 = vcmp.eq.f32.partialorder %v16788_v54, 1.0  ;;  %6394 = vadd.xlane.f32.xlu0 %v22071_v29  ;;  %v22072_v47 = vld [vmem:[#allocation117_spill] sm:$0xff]  ;;  %22073 = vst [vmem:[#allocation273_spill] sm:$0xff] %v16851_v15  ;;  %v16856_v21 = vsel %vm5420_vm10, %v15244_v25, 0.0  ;;  %v16865_v29 = vmul.f32 %v22014_v34, %v1681_v19  ;;  %v1701_v42 = vpop.permute.xlu1 %1700 }
 0x285   :  { %6396 = vadd.xlane.f32.xlu1 %v22072_v47  ;;  %22074 = vst [vmem:[#allocation59_spill] sm:$0xff] %v16856_v21  ;;  %v16861_v31 = vsel %vm5421_vm7, %v15284_v50, 0.0  ;;  %vm20909_vm5 = vcmp.eq.f32.partialorder %v16806_v52, 1.0  ;;  %v16870_v58 = vsel %vm5422_vm15, %v15328_v28, 0.0  ;;  %v22078_v47 = vld [vmem:[#allocation326_spill] sm:$0xff]  ;;  %v22079_v11 = vld [vmem:[#allocation136_spill] sm:$0xff] }
 0x286   :  { %22076 = vst [vmem:[#allocation78_spill] sm:$0xff] %v16861_v31  ;;  %22077 = vst [vmem:[#allocation225_spill] sm:$0xff] %v16870_v58  ;;  %vm22080_vm1 = vcmp.eq.f32.partialorder %v22079_v11, 1.0  ;;  %v22083_v21 = vld [vmem:[#allocation32_spill] sm:$0xff]  ;;  %vm20901_vm7 = vcmp.eq.f32.partialorder %v16733_v43, 1.0  ;;  %v22090_v28 = vld [vmem:[#allocation79_spill] sm:$0xff] }
 0x287   :  { %v16875_v25 = vsel %vm22080_vm1, %v22078_v47, 0.0  ;;  %vm22084_vm10 = vcmp.eq.f32.partialorder %v22083_v21, 1.0  ;;  %v22086_v19 = vld [vmem:[#allocation336_spill] sm:$0xff]  ;;  %vm22092_vm15 = vcmp.eq.f32.partialorder %v22091_v0, 1.0  ;;  %v22094_v11 = vld [vmem:[#allocation63_spill] sm:$0xff]  ;;  %v22095_v47 = vld [vmem:[#allocation238_spill] sm:$0xff]  ;;  %v16899_v21 = vmul.f32 %v22014_v34, %v1701_v42 }
 0x288   :  { %22081 = vst [vmem:[#allocation124_spill] sm:$0xff] %v16875_v25  ;;  %v16880_v50 = vsel %vm22084_vm10, %v22082_v46, 0.0  ;;  %v22087_v31 = vld [vmem:[#allocation232_spill] sm:$0xff]  ;;  %v16891_v58 = vsel %vm22092_vm15, %v22090_v28, 0.0  ;;  %vm22096_vm1 = vcmp.eq.f32.partialorder %v22095_v47, 1.0  ;;  %v1697_v46 = vpop.permute.xlu0 %1696  ;;  %v22105_v28 = vld [vmem:[#allocation349_spill] sm:$0xff] }
 0x289   :  { %22085 = vst [vmem:[#allocation87_spill] sm:$0xff] %v16880_v50  ;;  %vm22088_vm9 = vcmp.eq.f32.partialorder %v22087_v31, 1.0  ;;  %22093 = vst [vmem:[#allocation91_spill] sm:$0xff] %v16891_v58  ;;  %v16896_v25 = vsel %vm22096_vm1, %v22094_v11, 0.0  ;;  %v22098_v50 = vld [vmem:[#allocation17_spill] sm:$0xff]  ;;  %v22106_v58 = vld [vmem:[#allocation320_spill] sm:$0xff] }
 0x28a   :  { %v16886_v15 = vsel %vm22088_vm9, %v22086_v19, 0.0  ;;  %22097 = vst [vmem:[#allocation37_spill] sm:$0xff] %v16896_v25  ;;  %vm22099_vm10 = vcmp.eq.f32.partialorder %v22098_v50, 1.0  ;;  %v22101_v19 = vld [vmem:[#allocation201_spill] sm:$0xff]  ;;  %vm22107_vm15 = vcmp.eq.f32.partialorder %v22106_v58, 1.0  ;;  %v22109_v11 = vld [vmem:[#allocation267_spill] sm:$0xff] }
 0x28b   :  { %22089 = vst [vmem:[#allocation151_spill] sm:$0xff] %v16886_v15  ;;  %v16904_v31 = vsel %vm22099_vm10, %v21911_v4, 0.0  ;;  %v22102_v15 = vld [vmem:[#allocation316_spill] sm:$0xff]  ;;  %v16914_v47 = vsel %vm22107_vm15, %v22105_v28, 0.0  ;;  %vm4358_vm1 = vcmp.ge.f32.partialorder %v22109_v11, -0.1 }
 0x28c   :  { %22100 = vst [vmem:[#allocation62_spill] sm:$0xff] %v16904_v31  ;;  %vm22103_vm9 = vcmp.eq.f32.partialorder %v22102_v15, 1.0  ;;  %22108 = vst [vmem:[#allocation81_spill] sm:$0xff] %v16914_v47  ;;  %vm5451_vm12 = vcmp.eq.f32.partialorder %v16771_v30, 1.0  ;;  %v22110_v42 = vld [vmem:[#allocation75_spill] sm:$0xff]  ;;  %v22111_v25 = vld [vmem:[#allocation97_spill] sm:$0xff] }
 0x28d   :  { %v16909_v0 = vsel %vm22103_vm9, %v22101_v19, 0.0  ;;  %6398 = vadd.xlane.f32.xlu0 %v22110_v42  ;;  %6400 = vadd.xlane.f32.xlu1 %v22111_v25  ;;  %v22112_v4 = vld [vmem:[#allocation137_spill] sm:$0xff]  ;;  %v22115_v19 = vld [vmem:[#allocation86_spill] sm:$0xff]  ;;  %vm22119_vm9 = vcmp.eq.f32.partialorder %v16342_v18, 1.0  ;;  %vm5450_vm15 = vcmp.eq.f32.partialorder %v16865_v29, 1.0  ;;  %v16941_v25 = vsel %vm20901_vm7, %v16388_v13, %v16402_v56  ;;  %v22174_v47 = vld [vmem:[#allocation187_spill] sm:$0xff] }
 0x28e   :  { %22104 = vst [vmem:[#allocation126_spill] sm:$0xff] %v16909_v0  ;;  %v22113_v50 = vld [vmem:[#allocation321_spill] sm:$0xff]  ;;  %v22116_v0 = vld [vmem:[#allocation138_spill] sm:$0xff]  ;;  %v16934_v28 = vsel %vm22119_vm9, %v21945_v20, 0.0  ;;  %22121 = vst [vmem:[#allocation136_spill] sm:$0xff] %v16941_v25  ;;  %v16955_v20 = vmul.f32 %v22014_v34, %v1689_v17  ;;  %vm22128_vm7 = vcmp.eq.f32.partialorder %v16377_v49, 1.0  ;;  %v1705_v17 = vpop.permute.xlu0 %1704 }
 0x28f   :  { %v16924_v15 = vsel %vm20900_vm14, %v22113_v50, %v22112_v4  ;;  %vm22117_vm10 = vcmp.eq.f32.partialorder %v22116_v0, 1.0  ;;  %22120 = vst [vmem:[#allocation326_spill] sm:$0xff] %v16934_v28  ;;  %v22122_v42 = vld [vmem:[#allocation158_spill] sm:$0xff]  ;;  %v16960_v56 = vsel %vm22128_vm7, %v15791_v44, 0.0  ;;  %v22130_v28 = vld [vmem:[#allocation23_spill] sm:$0xff]  ;;  %vm22138_vm9 = vcmp.eq.f32.partialorder %v16511_v40, 1.0 }
 0x290   :  { %22114 = vst [vmem:[#allocation117_spill] sm:$0xff] %v16924_v15  ;;  %v16929_v58 = vsel %vm22117_vm10, %v22115_v19, 0.0  ;;  %vm22123_vm14 = vcmp.eq.f32.partialorder %v22122_v42, 1.0  ;;  %vm22125_vm10 = vcmp.eq.f32.partialorder %v16392_v33, 1.0  ;;  %v22127_v18 = vld [vmem:[#allocation266_spill] sm:$0xff]  ;;  %v1709_v19 = vpop.permute.xlu1 %1708  ;;  %22129 = vst [vmem:[#allocation336_spill] sm:$0xff] %v16960_v56 }
 0x291   :  { %22118 = vst [vmem:[#allocation132_spill] sm:$0xff] %v16929_v58  ;;  %v16946_v4 = vsel %vm22123_vm14, %v21948_v51, 0.0  ;;  %v16951_v0 = vsel %vm22125_vm10, %v21967_v38, 0.0  ;;  %v22131_v42 = vld [vmem:[#allocation205_spill] sm:$0xff]  ;;  %v16978_v49 = vsel %vm22138_vm9, %v15877_v8, 0.0  ;;  %v22140_v44 = vld [vmem:[#allocation74_spill] sm:$0xff] }
 0x292   :  { %22124 = vst [vmem:[#allocation332_spill] sm:$0xff] %v16946_v4  ;;  %22126 = vst [vmem:[#allocation32_spill] sm:$0xff] %v16951_v0  ;;  %vm22132_vm14 = vcmp.eq.f32.partialorder %v22131_v42, 1.0  ;;  %v22134_v4 = vld [vmem:[#allocation352_spill] sm:$0xff]  ;;  %v22135_v33 = vld [vmem:[#allocation169_spill] sm:$0xff]  ;;  %v16973_v0 = vmul.f32 %v22014_v34, %v1709_v19  ;;  %vm22141_vm7 = vcmp.eq.f32.partialorder %v22140_v44, 1.0 }
 0x293   :  { %v16965_v51 = vsel %vm22132_vm14, %v22130_v28, 0.0  ;;  %vm22136_vm10 = vcmp.eq.f32.partialorder %v22135_v33, 1.0  ;;  %22139 = vst [vmem:[#allocation356_spill] sm:$0xff] %v16978_v49  ;;  %v16983_v42 = vsel %vm22141_vm7, %v22008_v39, 0.0  ;;  %vm22143_vm14 = vcmp.eq.f32.partialorder %v16566_v37, 1.0  ;;  %v22146_v19 = vld [vmem:[#allocation84_spill] sm:$0xff] }
 0x294   :  { %22133 = vst [vmem:[#allocation232_spill] sm:$0xff] %v16965_v51  ;;  %v16970_v38 = vsel %vm22136_vm10, %v22134_v4, 0.0  ;;  %22142 = vst [vmem:[#allocation63_spill] sm:$0xff] %v16983_v42  ;;  %v16988_v28 = vsel %vm22143_vm14, %v15949_v23, 0.0  ;;  %v22145_v4 = vld [vmem:[#allocation123_spill] sm:$0xff]  ;;  %6404 = vadd.xlane.f32.xlu1 %v22146_v19  ;;  %v22147_v33 = vld [vmem:[#allocation240_spill] sm:$0xff] }
 0x295   :  { %22137 = vst [vmem:[#allocation79_spill] sm:$0xff] %v16970_v38  ;;  %22144 = vst [vmem:[#allocation238_spill] sm:$0xff] %v16988_v28  ;;  %6402 = vadd.xlane.f32.xlu0 %v22145_v4  ;;  %v22148_v38 = vld [vmem:[#allocation239_spill] sm:$0xff]  ;;  %v17001_v40 = vsel %vm2821_vm3, 1.0, %v15820_v26  ;;  %vm2822_vm9 = vcmp.gt.f32.partialorder %v22109_v11, 0.0  ;;  %v17007_v23 = vsel %vm5441_vm6, %v16005_v45, 0.0 }
 0x296   :  { %v16996_v8 = vsel %vm20908_vm0, %v22148_v38, %v22147_v33  ;;  %22149 = vst [vmem:[#allocation17_spill] sm:$0xff] %v17007_v23  ;;  %v22150_v37 = vld [vmem:[#allocation247_spill] sm:$0xff]  ;;  %v22151_v39 = vld [vmem:[#allocation350_spill] sm:$0xff]  ;;  %v4613_v4 = vsel %vm4357_vm13, %v4101_v53, 0.0  ;;  %v17020_v19 = vsel %vm5442_vm4, %v16025_v57, 0.0  ;;  %v17025_v9 = vsel %vm5443_vm8, %v16057_v6, 0.0  ;;  %v1717_v23 = vpop.permute.xlu1 %1716 }
 0x297   :  { %v17013_v44 = vsel %vm5450_vm15, %v22151_v39, %v22150_v37  ;;  %22153 = vst [vmem:[#allocation316_spill] sm:$0xff] %v17020_v19  ;;  %22154 = vst [vmem:[#allocation349_spill] sm:$0xff] %v17025_v9  ;;  %v22155_v45 = vld [vmem:[#allocation204_spill] sm:$0xff]  ;;  %v22157_v37 = vld [vmem:[#allocation142_spill] sm:$0xff]  ;;  %v4103_v19 = vmul.f32 %v22161_v59, %v22161_v59  ;;  %vm5453_vm6 = vcmp.eq.f32.partialorder %v16828_v3, 1.0  ;;  %vm5452_vm4 = vcmp.eq.f32.partialorder %v16955_v20, 1.0 }
 0x298   :  { %22152 = vst [vmem:[#allocation201_spill] sm:$0xff] %v17013_v44  ;;  %v17029_v33 = vmul.f32 %v21660_v22, %v22155_v45  ;;  %v22158_v28 = vld [vmem:[#allocation246_spill] sm:$0xff]  ;;  %v22160_v42 = vld [vmem:[#allocation279_spill] sm:$0xff]  ;;  %v17044_v6 = vmul.f32 %v22014_v34, %v1697_v46  ;;  %v17047_v24 = vmul.f32 %v22014_v34, %v1717_v23  ;;  %v1713_v45 = vpop.permute.xlu0 %1712  ;;  %v17061_v46 = vsel %vm2821_vm3, %v16825_v36, %v4613_v4  ;;  %v22175_v31 = vld [vmem:[#allocation252_spill] sm:$0xff] }
 0x299   :  { %v17035_v53 = vsel %vm5451_vm12, %v22158_v28, %v22157_v37  ;;  %v4102_v57 = vmul.f32 %v22160_v42, %v22160_v42  ;;  %v22162_v9 = vld [vmem:[#allocation271_spill] sm:$0xff]  ;;  %v22163_v37 = vld [vmem:[#allocation89_spill] sm:$0xff]  ;;  %v22164_v49 = vld [vmem:[#allocation98_spill] sm:$0xff]  ;;  %v17067_v58 = vsel %vm2822_vm9, 1.0, %v15820_v26  ;;  %vm2823_vm10 = vcmp.gt.f32.partialorder %v22127_v18, 0.0 }
 0x29a   :  { %22156 = vst [vmem:[#allocation320_spill] sm:$0xff] %v17029_v33  ;;  %22159 = vst [vmem:[#allocation267_spill] sm:$0xff] %v17035_v53  ;;  %vm4360_vm8 = vcmp.ge.f32.partialorder %v22162_v9, -0.1  ;;  %6406 = vadd.xlane.f32.xlu0 %v22163_v37  ;;  %6408 = vadd.xlane.f32.xlu1 %v22164_v49  ;;  %v22165_v42 = vld [vmem:[#allocation234_spill] sm:$0xff]  ;;  %v22166_v51 = vld [vmem:[#allocation235_spill] sm:$0xff]  ;;  %v1728_v41 = vpop.permute.xlu1 %1727 }
 0x29b   :  { %v17056_v59 = vsel %vm20909_vm5, %v22166_v51, %v22165_v42  ;;  %v22167_v23 = vld [vmem:[#allocation278_spill] sm:$0xff]  ;;  %v17074_v49 = vsel %vm5444_vm11, %v16104_v7, 0.0  ;;  %v17079_v36 = vsel %vm5445_vm2, %v16160_v16, 0.0  ;;  %vm20907_vm3 = vcmp.eq.f32.partialorder %v17029_v33, 1.0  ;;  %v22172_v42 = vld [vmem:[#allocation139_spill] sm:$0xff]  ;;  %v22183_v51 = vld [vmem:[#allocation220_spill] sm:$0xff] }
 0x29c   :  { %v3590_v56 = vadd.f32 1.0, %v22167_v23  ;;  %v22168_v37 = vld [vmem:[#allocation206_spill] sm:$0xff]  ;;  %22169 = vst [vmem:[#allocation75_spill] sm:$0xff] %v17074_v49  ;;  %22170 = vst [vmem:[#allocation97_spill] sm:$0xff] %v17079_v36  ;;  %v17092_v7 = vsel %vm5453_vm6, %v22175_v31, %v22174_v47  ;;  %v3591_v49 = vadd.f32 1.0, %v22177_v62  ;;  %vm5454_vm2 = vcmp.eq.f32.partialorder %v17044_v6, 1.0  ;;  %v1724_v5 = vpop.permute.xlu0 %1723 }
 0x29d   :  { %vm20905_vm13 = vcmp.eq.f32.partialorder %v22168_v37, 1.0  ;;  %v22171_v4 = vld [vmem:[#allocation194_spill] sm:$0xff]  ;;  %22176 = vst [vmem:[#allocation321_spill] sm:$0xff] %v17092_v7  ;;  %vm4361_vm11 = vcmp.ge.f32.partialorder %v22178_v35, -0.1  ;;  %v22179_v16 = vld [vmem:[#allocation19_spill] sm:$0xff]  ;;  %v17110_v62 = vmul.f32 %v22014_v34, %v1705_v17 }
 0x29e   :  { %v17086_v23 = vsel %vm5452_vm4, %v22172_v42, %v22171_v4  ;;  %v17098_v36 = vmul.f32 %v22179_v16, %v1728_v41  ;;  %v4614_v4 = vsel %vm4358_vm1, %v4102_v57, 0.0  ;;  %vm22180_vm7 = vcmp.ge.f32.partialorder %v22127_v18, -0.1  ;;  %v22181_v52 = vld [vmem:[#allocation210_spill] sm:$0xff]  ;;  %6410 = vadd.xlane.f32.xlu0 %v22183_v51  ;;  %v22184_v41 = vld [vmem:[#allocation127_spill] sm:$0xff]  ;;  %v22188_v53 = vld [vmem:[#allocation245_spill] sm:$0xff] }
 0x29f   :  { %22173 = vst [vmem:[#allocation137_spill] sm:$0xff] %v17086_v23  ;;  %v4615_v38 = vsel %vm22180_vm7, %v4103_v19, 0.0  ;;  %v17106_v47 = vmul.f32 %v21660_v22, %v22181_v52  ;;  %vm5455_vm14 = vcmp.eq.f32.partialorder %v16899_v21, 1.0  ;;  %6412 = vadd.xlane.f32.xlu1 %v22184_v41  ;;  %v22185_v7 = vld [vmem:[#allocation251_spill] sm:$0xff]  ;;  %v22186_v23 = vld [vmem:[#allocation250_spill] sm:$0xff]  ;;  %v22187_v19 = vld [vmem:[#allocation141_spill] sm:$0xff]  ;;  %v1736_v41 = vpop.permute.xlu1 %1735 }
 0x2a0   :  { %v17118_v57 = vsel %vm20905_vm13, %v22186_v23, %v22185_v7  ;;  %v17124_v52 = vsel %vm20907_vm3, %v22188_v53, %v22187_v19  ;;  %v17129_v17 = vsel %vm2823_vm10, 1.0, %v15820_v26  ;;  %vm22189_vm1 = vcmp.eq.f32.partialorder %v16745_v63, 1.0  ;;  %v22193_v37 = vld [vmem:[#allocation12_spill] sm:$0xff]  ;;  %v17160_v63 = vpop.permute.xlu0 %1731  ;;  %v22205_v33 = vld [vmem:[#allocation283_spill] sm:$0xff] }
 0x2a1   :  { %22182 = vst [vmem:[#allocation86_spill] sm:$0xff] %v17106_v47  ;;  %v17134_v51 = vsel %vm22189_vm1, %v16211_v12, 0.0  ;;  %vm22191_vm7 = vcmp.eq.f32.partialorder %v16685_v61, 1.0  ;;  %v22194_v23 = vld [vmem:[#allocation144_spill] sm:$0xff]  ;;  %v17149_v26 = vsel %vm2822_vm9, %v3590_v56, %v4614_v4  ;;  %v17153_v12 = vsel %vm2823_vm10, %v3591_v49, %v4615_v38  ;;  %v22196_v61 = vld [vmem:[#allocation82_spill] sm:$0xff]  ;;  %v22200_v56 = vld [vmem:[#allocation285_spill] sm:$0xff] }
 0x2a2   :  { %22190 = vst [vmem:[#allocation138_spill] sm:$0xff] %v17134_v51  ;;  %v17139_v7 = vsel %vm22191_vm7, %v16262_v60, 0.0  ;;  %v17145_v19 = vsel %vm5454_vm2, %v22194_v23, %v22193_v37  ;;  %vm2824_vm1 = vcmp.gt.f32.partialorder %v22162_v9, 0.0  ;;  %vm20911_vm7 = vcmp.eq.f32.partialorder %v22196_v61, 1.0  ;;  %v22198_v37 = vld [vmem:[#allocation40_spill] sm:$0xff]  ;;  %v22201_v38 = vld [vmem:[#allocation277_spill] sm:$0xff] }
 0x2a3   :  { %22192 = vst [vmem:[#allocation158_spill] sm:$0xff] %v17139_v7  ;;  %22195 = vst [vmem:[#allocation266_spill] sm:$0xff] %v17145_v19  ;;  %v17158_v60 = vmul.f32 %v22179_v16, %v1736_v41  ;;  %v22197_v7 = vld [vmem:[#allocation197_spill] sm:$0xff]  ;;  %v4104_v18 = vmul.f32 %v22200_v56, %v22200_v56  ;;  %vm4362_vm9 = vcmp.ge.f32.partialorder %v22201_v38, -0.1  ;;  %vm20913_vm10 = vcmp.eq.f32.partialorder %v17106_v47, 1.0 }
 0x2a4   :  { %v17166_v11 = vsel %vm5455_vm14, %v22198_v37, %v22197_v7  ;;  %vm20912_vm13 = vcmp.eq.f32.partialorder %v17110_v62, 1.0  ;;  %v22202_v49 = vld [vmem:[#allocation109_spill] sm:$0xff]  ;;  %v22204_v41 = vld [vmem:[#allocation284_spill] sm:$0xff]  ;;  %v4105_v53 = vmul.f32 %v22205_v33, %v22205_v33  ;;  %vm5457_vm3 = vcmp.eq.f32.partialorder %v16973_v0, 1.0  ;;  %v17198_v19 = vld [vmem:[#allocation7 + $0x8] sm:$0xff] }
 0x2a5   :  { %22199 = vst [vmem:[#allocation23_spill] sm:$0xff] %v17166_v11  ;;  %6414 = vadd.xlane.f32.xlu0 %v22202_v49  ;;  %v22203_v4 = vld [vmem:[#allocation217_spill] sm:$0xff]  ;;  %v3592_v51 = vadd.f32 1.0, %v22204_v41  ;;  %v17180_v7 = vmul.f32 %v22014_v34, %v1713_v45  ;;  %vm22206_vm0 = vcmp.eq.f32.partialorder %v16788_v54, 1.0  ;;  %vm22208_vm5 = vcmp.eq.f32.partialorder %v16733_v43, 1.0  ;;  %v22211_v11 = vld [vmem:[#allocation259_spill] sm:$0xff] }
 0x2a6   :  { %6416 = vadd.xlane.f32.xlu1 %v22203_v4  ;;  %v17185_v56 = vsel %vm22206_vm0, %v22113_v50, 0.0  ;;  %v17190_v49 = vsel %vm22208_vm5, %v16388_v13, 0.0  ;;  %v1744_v4 = vpop.permute.xlu1 %1743  ;;  %v22210_v41 = vld [vmem:[#allocation261_spill] sm:$0xff]  ;;  %v17203_v34 = vsel %vm2824_vm1, 1.0, %v17198_v19  ;;  %vm2825_vm0 = vcmp.gt.f32.partialorder %v22178_v35, 0.0  ;;  %v22213_v13 = vld [vmem:[#allocation215_spill] sm:$0xff] }
 0x2a7   :  { %22207 = vst [vmem:[#allocation205_spill] sm:$0xff] %v17185_v56  ;;  %22209 = vst [vmem:[#allocation352_spill] sm:$0xff] %v17190_v49  ;;  %v17196_v33 = vsel %vm20911_vm7, %v22211_v11, %v22210_v41  ;;  %v22212_v54 = vld [vmem:[#allocation53_spill] sm:$0xff]  ;;  %v17209_v50 = vmul.f32 %v21660_v22, %v22213_v13  ;;  %v17212_v45 = vmul.f32 %v22179_v16, %v1744_v4  ;;  %v17214_v41 = vpop.permute.xlu0 %1739  ;;  %v22215_v49 = vld [vmem:[#allocation18_spill] sm:$0xff]  ;;  %v4616_v61 = vsel %vm4360_vm8, %v4104_v18, 0.0 }
 0x2a8   :  { %v3593_v43 = vadd.f32 1.0, %v22212_v54  ;;  %v17220_v56 = vsel %vm20912_vm13, %v22215_v49, %v16690_v14  ;;  %v22217_v11 = vld [vmem:[#allocation25_spill] sm:$0xff]  ;;  %v22218_v54 = vld [vmem:[#allocation230_spill] sm:$0xff]  ;;  %v22219_v22 = vld [vmem:[#allocation256_spill] sm:$0xff]  ;;  %v4617_v14 = vsel %vm4361_vm11, %v4105_v53, 0.0  ;;  %vm2826_vm5 = vcmp.gt.f32.partialorder %v22201_v38, 0.0 }
 0x2a9   :  { %22214 = vst [vmem:[#allocation169_spill] sm:$0xff] %v17209_v50  ;;  %22216 = vst [vmem:[#allocation74_spill] sm:$0xff] %v17220_v56  ;;  %6418 = vadd.xlane.f32.xlu0 %v22217_v11  ;;  %v22220_v13 = vld [vmem:[#allocation149_spill] sm:$0xff]  ;;  %v22221_v44 = vld [vmem:[#allocation344_spill] sm:$0xff]  ;;  %vm5458_vm13 = vcmp.eq.f32.partialorder %v17180_v7, 1.0  ;;  %v17257_v53 = vmul.f32 %v22179_v16, %v1724_v5  ;;  %v17266_v29 = vsel %vm2825_vm0, 1.0, %v17198_v19  ;;  %v17333_v3 = vmul.f32 %v22179_v16, %v17160_v63 }
 0x2aa   :  { %6420 = vadd.xlane.f32.xlu1 %v22218_v54  ;;  %v17230_v4 = vsel %vm20913_vm10, %v22220_v13, %v22219_v22  ;;  %v17236_v25 = vsel %vm5457_vm3, %v22221_v44, %v16750_v2  ;;  %v22223_v11 = vld [vmem:[#allocation155_spill] sm:$0xff]  ;;  %v22224_v18 = vld [vmem:[#allocation209_spill] sm:$0xff]  ;;  %v17247_v54 = vsel %vm5450_vm15, %v22151_v39, 0.0  ;;  %v17252_v2 = vsel %vm5451_vm12, %v22158_v28, 0.0  ;;  %v22227_v22 = vld [vmem:[#allocation160_spill] sm:$0xff]  ;;  %v1752_v47 = vpop.permute.xlu1 %1751 }
 0x2ab   :  { %22222 = vst [vmem:[#allocation123_spill] sm:$0xff] %v17236_v25  ;;  %vm4363_vm8 = vcmp.ge.f32.partialorder %v22223_v11, -0.1  ;;  %vm20917_vm7 = vcmp.eq.f32.partialorder %v22224_v18, 1.0  ;;  %22225 = vst [vmem:[#allocation84_spill] sm:$0xff] %v17247_v54  ;;  %vm5459_vm10 = vcmp.eq.f32.partialorder %v17047_v24, 1.0  ;;  %v17261_v13 = vsel %vm2824_vm1, %v3592_v51, %v4616_v61  ;;  %v17272_v28 = vpop.permute.xlu0 %1747 }
 0x2ac   :  { %22226 = vst [vmem:[#allocation240_spill] sm:$0xff] %v17252_v2  ;;  %vm4364_vm11 = vcmp.ge.f32.partialorder %v22227_v22, -0.1  ;;  %vm20918_vm12 = vcmp.eq.f32.partialorder %v17209_v50, 1.0  ;;  %v17270_v30 = vmul.f32 %v22179_v16, %v1752_v47  ;;  %v17276_v5 = vsel %vm2825_vm0, %v3593_v43, %v4617_v14  ;;  %v22228_v39 = vld [vmem:[#allocation290_spill] sm:$0xff]  ;;  %v22230_v61 = vld [vmem:[#allocation229_spill] sm:$0xff] }
 0x2ad   :  { %v4106_v9 = vmul.f32 %v22228_v39, %v22228_v39  ;;  %v22229_v51 = vld [vmem:[#allocation14_spill] sm:$0xff]  ;;  %v22231_v2 = vld [vmem:[#allocation272_spill] sm:$0xff]  ;;  %v22233_v47 = vld [vmem:[#allocation15_spill] sm:$0xff]  ;;  %v17298_v39 = vsel %vm2826_vm5, 1.0, %v17198_v19  ;;  %vm5460_vm15 = vcmp.eq.f32.partialorder %v17257_v53, 1.0  ;;  %vm2827_vm1 = vcmp.gt.f32.partialorder %v22223_v11, 0.0 }
 0x2ae   :  { %6422 = vadd.xlane.f32.xlu0 %v22229_v51  ;;  %6424 = vadd.xlane.f32.xlu1 %v22230_v61  ;;  %v22232_v54 = vld [vmem:[#allocation270_spill] sm:$0xff]  ;;  %v17292_v35 = vsel %vm5458_vm13, %v22233_v47, %v16757_v27  ;;  %v22235_v43 = vld [vmem:[#allocation289_spill] sm:$0xff]  ;;  %v22236_v51 = vld [vmem:[#allocation28_spill] sm:$0xff]  ;;  %v17313_v27 = vsel %vm5452_vm4, %v22172_v42, 0.0  ;;  %vm5461_vm4 = vcmp.eq.f32.partialorder %v17098_v36, 1.0  ;;  %vm2828_vm0 = vcmp.gt.f32.partialorder %v22227_v22, 0.0 }
 0x2af   :  { %v17286_v25 = vsel %vm20917_vm7, %v22232_v54, %v22231_v2  ;;  %22234 = vst [vmem:[#allocation247_spill] sm:$0xff] %v17292_v35  ;;  %v3594_v14 = vadd.f32 1.0, %v22235_v43  ;;  %v22237_v61 = vld [vmem:[#allocation51_spill] sm:$0xff]  ;;  %v22239_v2 = vld [vmem:[#allocation148_spill] sm:$0xff]  ;;  %22241 = vst [vmem:[#allocation142_spill] sm:$0xff] %v17313_v27  ;;  %v17318_v43 = vsel %vm5453_vm6, %v22175_v31, 0.0  ;;  %v17338_v42 = vpop.permute.xlu0 %1755  ;;  %v17372_v55 = vsel %vm5461_vm4, %v17001_v40, %v17061_v46 }
 0x2b0   :  { %v17302_v56 = vmul.f32 %v22237_v61, %v22236_v51  ;;  %v17308_v18 = vsel %vm5459_vm10, %v22239_v2, %v16811_v48  ;;  %22242 = vst [vmem:[#allocation246_spill] sm:$0xff] %v17318_v43  ;;  %v1760_v51 = vpop.permute.xlu1 %1759  ;;  %v22243_v54 = vld [vmem:[#allocation263_spill] sm:$0xff]  ;;  %v22244_v35 = vld [vmem:[#allocation264_spill] sm:$0xff]  ;;  %v22246_v43 = vld [vmem:[#allocation214_spill] sm:$0xff]  ;;  %v17383_v21 = vsel %vm2827_vm1, 1.0, %v17198_v19  ;;  %v17389_v46 = vmul.f32 %v22179_v16, %v17214_v41 }
 0x2b1   :  { %22240 = vst [vmem:[#allocation204_spill] sm:$0xff] %v17308_v18  ;;  %v17325_v15 = vsel %vm20918_vm12, %v22244_v35, %v22243_v54  ;;  %v22245_v48 = vld [vmem:[#allocation287_spill] sm:$0xff]  ;;  %v17336_v31 = vmul.f32 %v22179_v16, %v1760_v51  ;;  %v4618_v54 = vsel %vm4362_vm9, %v4106_v9, 0.0  ;;  %vm20923_vm6 = vcmp.eq.f32.partialorder %v22246_v43, 1.0  ;;  %v22247_v27 = vld [vmem:[#allocation113_spill] sm:$0xff]  ;;  %v22248_v50 = vld [vmem:[#allocation24_spill] sm:$0xff] }
 0x2b2   :  { %22238 = vst [vmem:[#allocation350_spill] sm:$0xff] %v17302_v56  ;;  %v4107_v20 = vmul.f32 %v22245_v48, %v22245_v48  ;;  %6426 = vadd.xlane.f32.xlu0 %v22247_v27  ;;  %6428 = vadd.xlane.f32.xlu1 %v22248_v50  ;;  %v22249_v48 = vld [vmem:[#allocation286_spill] sm:$0xff]  ;;  %v22250_v63 = vld [vmem:[#allocation295_spill] sm:$0xff]  ;;  %v22251_v51 = vld [vmem:[#allocation288_spill] sm:$0xff]  ;;  %vm20926_vm12 = vcmp.eq.f32.partialorder %v17302_v56, 1.0  ;;  %v17355_v9 = vsel %vm5460_vm15, %v16816_v10, %v16821_v32  ;;  %v17360_v50 = vsel %vm5454_vm2, %v22194_v23, 0.0 }
 0x2b3   :  { %v3595_v35 = vadd.f32 1.0, %v22249_v48  ;;  %v4108_v18 = vmul.f32 %v22250_v63, %v22250_v63  ;;  %vm4366_vm7 = vcmp.ge.f32.partialorder %v22251_v51, -0.1  ;;  %22252 = vst [vmem:[#allocation279_spill] sm:$0xff] %v17355_v9  ;;  %22253 = vst [vmem:[#allocation276_spill] sm:$0xff] %v17360_v50  ;;  %v17365_v27 = vsel %vm5455_vm14, %v22198_v37, 0.0  ;;  %v17394_v37 = vpop.permute.xlu0 %1763 }
 0x2b4   :  { %22254 = vst [vmem:[#allocation271_spill] sm:$0xff] %v17365_v27  ;;  %v22255_v48 = vld [vmem:[#allocation281_spill] sm:$0xff]  ;;  %v1768_v63 = vpop.permute.xlu1 %1767  ;;  %22256 = vst [vmem:[#allocation89_spill] sm:$0xff] %v17372_v55  ;;  %v17376_v32 = vsel %vm2826_vm5, %v3594_v14, %v4618_v54  ;;  %v4619_v6 = vsel %vm4363_vm8, %v4107_v20, 0.0  ;;  %vm5463_vm2 = vcmp.eq.f32.partialorder %v17158_v60, 1.0  ;;  %vm5462_vm14 = vcmp.eq.f32.partialorder %v17333_v3, 1.0 }
 0x2b5   :  { %vm4365_vm9 = vcmp.ge.f32.partialorder %v22255_v48, -0.1  ;;  %v17392_v23 = vmul.f32 %v22179_v16, %v1768_v63  ;;  %v22257_v38 = vld [vmem:[#allocation36_spill] sm:$0xff]  ;;  %v22260_v54 = vld [vmem:[#allocation275_spill] sm:$0xff]  ;;  %v22261_v50 = vld [vmem:[#allocation282_spill] sm:$0xff]  ;;  %vm22264_vm5 = vcmp.eq.f32.partialorder %v17110_v62, 1.0  ;;  %v17438_v11 = vsel %vm5462_vm14, %v17067_v58, %v17149_v26 }
 0x2b6   :  { %6430 = vadd.xlane.f32.xlu0 %v22257_v38  ;;  %v22258_v14 = vld [vmem:[#allocation236_spill] sm:$0xff]  ;;  %v22263_v63 = vld [vmem:[#allocation57_spill] sm:$0xff]  ;;  %v17414_v38 = vsel %vm2828_vm0, 1.0, %v17198_v19  ;;  %v17423_v56 = vsel %vm22264_vm5, %v22215_v49, 0.0  ;;  %v17444_v62 = vsel %vm5463_vm2, %v17129_v17, %v17153_v12  ;;  %vm5465_vm5 = vcmp.eq.f32.partialorder %v17212_v45, 1.0  ;;  %v22293_v36 = vld [vmem:[#allocation298_spill] sm:$0xff] }
 0x2b7   :  { %6432 = vadd.xlane.f32.xlu1 %v22258_v14  ;;  %v22259_v20 = vld [vmem:[#allocation48_spill] sm:$0xff]  ;;  %v3596_v9 = vadd.f32 1.0, %v22263_v63  ;;  %v4875_v14 = vsel %vm2827_vm1, %v3595_v35, %v4619_v6  ;;  %22265 = vst [vmem:[#allocation98_spill] sm:$0xff] %v17423_v56  ;;  %v22267_v63 = vld [vmem:[#allocation219_spill] sm:$0xff]  ;;  %22269 = vst [vmem:[#allocation194_spill] sm:$0xff] %v17444_v62  ;;  %v17458_v12 = vmul.f32 %v22179_v16, %v17272_v28  ;;  %v17460_v35 = vpop.permute.xlu0 %1771  ;;  %v17477_v28 = vsel %vm5458_vm13, %v22233_v47, 0.0 }
 0x2b8   :  { %v17402_v27 = vsel %vm20926_vm12, %v22260_v54, %v22259_v20  ;;  %v22262_v55 = vld [vmem:[#allocation280_spill] sm:$0xff]  ;;  %v4620_v20 = vsel %vm4364_vm11, %v4108_v18, 0.0  ;;  %v17432_v43 = vmul.f32 %v22237_v61, %v22267_v63  ;;  %v22270_v0 = vld [vmem:[#allocation213_spill] sm:$0xff]  ;;  %vm5464_vm11 = vcmp.eq.f32.partialorder %v17389_v46, 1.0  ;;  %22277 = vst [vmem:[#allocation139_spill] sm:$0xff] %v17477_v28  ;;  %v22286_v28 = vld [vmem:[#allocation323_spill] sm:$0xff] }
 0x2b9   :  { %v17408_v41 = vsel %vm20923_vm6, %v22262_v55, %v22261_v50  ;;  %v17428_v50 = vsel %vm5457_vm3, %v22221_v44, 0.0  ;;  %v1776_v55 = vpop.permute.xlu1 %1775  ;;  %vm2829_vm3 = vcmp.gt.f32.partialorder %v22255_v48, 0.0  ;;  %vm20921_vm8 = vcmp.eq.f32.partialorder %v22270_v0, 1.0  ;;  %v22271_v49 = vld [vmem:[#allocation165_spill] sm:$0xff]  ;;  %v22272_v26 = vld [vmem:[#allocation52_spill] sm:$0xff]  ;;  %v22287_v0 = vld [vmem:[#allocation299_spill] sm:$0xff] }
 0x2ba   :  { %22266 = vst [vmem:[#allocation234_spill] sm:$0xff] %v17428_v50  ;;  %22268 = vst [vmem:[#allocation278_spill] sm:$0xff] %v17432_v43  ;;  %v17450_v44 = vmul.f32 %v22179_v16, %v1776_v55  ;;  %v4109_v18 = vmul.f32 %v22271_v49, %v22271_v49  ;;  %vm4367_vm1 = vcmp.ge.f32.partialorder %v22272_v26, -0.1  ;;  %v22273_v6 = vld [vmem:[#allocation237_spill] sm:$0xff]  ;;  %v4876_v55 = vsel %vm2828_vm0, %v3596_v9, %v4620_v20  ;;  %v22279_v20 = vld [vmem:[#allocation292_spill] sm:$0xff] }
 0x2bb   :  { %6434 = vadd.xlane.f32.xlu0 %v22273_v6  ;;  %v22274_v63 = vld [vmem:[#allocation193_spill] sm:$0xff]  ;;  %v17472_v62 = vsel %vm2829_vm3, 1.0, %v17198_v19  ;;  %v17482_v22 = vsel %vm5459_vm10, %v22239_v2, 0.0  ;;  %vm20925_vm0 = vcmp.eq.f32.partialorder %v17432_v43, 1.0  ;;  %v17495_v7 = vsel %vm5464_vm11, %v17203_v34, %v17261_v13  ;;  %v22281_v6 = vld [vmem:[#allocation300_spill] sm:$0xff]  ;;  %v22283_v13 = vld [vmem:[#allocation103_spill] sm:$0xff] }
 0x2bc   :  { %6436 = vadd.xlane.f32.xlu1 %v22274_v63  ;;  %v22275_v50 = vld [vmem:[#allocation301_spill] sm:$0xff]  ;;  %22278 = vst [vmem:[#allocation187_spill] sm:$0xff] %v17482_v22  ;;  %vm2830_vm13 = vcmp.gt.f32.partialorder %v22251_v51, 0.0  ;;  %v17505_v47 = vsel %vm5465_vm5, %v17266_v29, %v17276_v5  ;;  %v4621_v2 = vsel %vm4365_vm9, %v4109_v18, 0.0  ;;  %v3598_v63 = vadd.f32 1.0, %v22281_v6  ;;  %v22294_v53 = vld [vmem:[#allocation108_spill] sm:$0xff] }
 0x2bd   :  { %v4110_v49 = vmul.f32 %v22275_v50, %v22275_v50  ;;  %v22276_v56 = vld [vmem:[#allocation293_spill] sm:$0xff]  ;;  %v1784_v9 = vpop.permute.xlu1 %1783  ;;  %v17513_v22 = vmul.f32 %v22237_v61, %v22283_v13  ;;  %v4111_v18 = vmul.f32 %v22287_v0, %v22287_v0  ;;  %vm5467_vm9 = vcmp.eq.f32.partialorder %v17270_v30, 1.0  ;;  %v22290_v0 = vld [vmem:[#allocation167_spill] sm:$0xff]  ;;  %v22300_v43 = vld [vmem:[#allocation164_spill] sm:$0xff] }
 0x2be   :  { %v3597_v54 = vadd.f32 1.0, %v22276_v56  ;;  %v22280_v56 = vld [vmem:[#allocation291_spill] sm:$0xff]  ;;  %v17499_v24 = vmul.f32 %v22179_v16, %v1784_v9  ;;  %v22285_v9 = vld [vmem:[#allocation128_spill] sm:$0xff]  ;;  %v17525_v6 = vmul.f32 %v22179_v16, %v17338_v42  ;;  %v17530_v61 = vsel %vm5460_vm15, %v16816_v10, 0.0  ;;  %v22307_v3 = vld [vmem:[#allocation297_spill] sm:$0xff] }
 0x2bf   :  { %v17489_v50 = vsel %vm20921_vm8, %v22280_v56, %v22279_v20  ;;  %v22282_v20 = vld [vmem:[#allocation294_spill] sm:$0xff]  ;;  %22284 = vst [vmem:[#allocation252_spill] sm:$0xff] %v17513_v22  ;;  %vm5466_vm8 = vcmp.eq.f32.partialorder %v17458_v12, 1.0  ;;  %6438 = vadd.xlane.f32.xlu0 %v22285_v9  ;;  %v4622_v5 = vsel %vm4366_vm7, %v4110_v49, 0.0  ;;  %22288 = vst [vmem:[#allocation161_spill] sm:$0xff] %v17530_v61  ;;  %v17537_v49 = vpop.permute.xlu0 %1779  ;;  %v17550_v10 = vsel %vm2830_vm13, 1.0, %v17198_v19 }
 0x2c0   :  { %vm4368_vm10 = vcmp.ge.f32.partialorder %v22282_v20, -0.1  ;;  %6440 = vadd.xlane.f32.xlu1 %v22286_v28  ;;  %v17535_v28 = vsel %vm5461_vm4, %v17001_v40, 0.0  ;;  %v22291_v9 = vld [vmem:[#allocation154_spill] sm:$0xff]  ;;  %v4877_v42 = vsel %vm2829_vm3, %v3597_v54, %v4621_v2  ;;  %vm2831_vm7 = vcmp.gt.f32.partialorder %v22272_v26, 0.0  ;;  %v22297_v2 = vld [vmem:[#allocation248_spill] sm:$0xff] }
 0x2c1   :  { %22289 = vst [vmem:[#allocation157_spill] sm:$0xff] %v17535_v28  ;;  %v1795_v13 = vpop.permute.xlu1 %1794  ;;  %v17543_v56 = vsel %vm20925_vm0, %v22291_v9, %v22290_v0  ;;  %v22292_v40 = vld [vmem:[#allocation166_spill] sm:$0xff]  ;;  %vm20929_vm6 = vcmp.eq.f32.partialorder %v22294_v53, 1.0  ;;  %v22295_v28 = vld [vmem:[#allocation20_spill] sm:$0xff]  ;;  %v17563_v48 = vsel %vm5466_vm8, %v17298_v39, %v17376_v32  ;;  %v4878_v54 = vsel %vm2830_vm13, %v3598_v63, %v4622_v5  ;;  %v22301_v32 = vld [vmem:[#allocation173_spill] sm:$0xff] }
 0x2c2   :  { %vm4369_vm15 = vcmp.ge.f32.partialorder %v22292_v40, -0.1  ;;  %v17557_v61 = vmul.f32 %v22295_v28, %v1795_v13  ;;  %22296 = vst [vmem:[#allocation19_spill] sm:$0xff] %v17563_v48  ;;  %vm5416_vm3 = vcmp.eq.f32.partialorder %v17513_v22, 1.0  ;;  %v22298_v0 = vld [vmem:[#allocation328_spill] sm:$0xff]  ;;  %v17573_v13 = vsel %vm5467_vm9, %v17383_v21, %v4875_v14  ;;  %v22311_v48 = vld [vmem:[#allocation254_spill] sm:$0xff] }
 0x2c3   :  { %6442 = vadd.xlane.f32.xlu0 %v22297_v2  ;;  %22299 = vst [vmem:[#allocation210_spill] sm:$0xff] %v17573_v13  ;;  %v3599_v9 = vadd.f32 1.0, %v22300_v43  ;;  %vm2832_vm0 = vcmp.gt.f32.partialorder %v22282_v20, 0.0  ;;  %vm4371_vm12 = vcmp.ge.f32.partialorder %v22301_v32, -0.1  ;;  %vm5468_vm4 = vcmp.eq.f32.partialorder %v17525_v6, 1.0  ;;  %v17619_v53 = vpop.permute.xlu0 %1790 }
 0x2c4   :  { %6444 = vadd.xlane.f32.xlu1 %v22298_v0  ;;  %v4623_v51 = vsel %vm4367_vm1, %v4111_v18, 0.0  ;;  %v17584_v63 = vsel %vm5462_vm14, %v17067_v58, 0.0  ;;  %v17589_v14 = vsel %vm5463_vm2, %v17129_v17, 0.0  ;;  %vm5469_vm13 = vcmp.eq.f32.partialorder %v17336_v31, 1.0  ;;  %v22304_v2 = vld [vmem:[#allocation304_spill] sm:$0xff]  ;;  %v22305_v0 = vld [vmem:[#allocation302_spill] sm:$0xff] }
 0x2c5   :  { %22302 = vst [vmem:[#allocation220_spill] sm:$0xff] %v17584_v63  ;;  %22303 = vst [vmem:[#allocation127_spill] sm:$0xff] %v17589_v14  ;;  %v17594_v43 = vmul.f32 %v22179_v16, %v17394_v37  ;;  %v1803_v5 = vpop.permute.xlu1 %1802  ;;  %v17600_v18 = vsel %vm20929_vm6, %v22305_v0, %v22304_v2  ;;  %v17605_v58 = vsel %vm2831_vm7, 1.0, %v17198_v19  ;;  %v22306_v60 = vld [vmem:[#allocation296_spill] sm:$0xff]  ;;  %v22308_v14 = vld [vmem:[#allocation305_spill] sm:$0xff]  ;;  %vm2833_vm2 = vcmp.gt.f32.partialorder %v22292_v40, 0.0 }
 0x2c6   :  { %v17608_v17 = vmul.f32 %v22295_v28, %v1803_v5  ;;  %v17614_v37 = vsel %vm5416_vm3, %v22307_v3, %v22306_v60  ;;  %v3600_v63 = vadd.f32 1.0, %v22308_v14  ;;  %v22309_v13 = vld [vmem:[#allocation306_spill] sm:$0xff]  ;;  %v22310_v0 = vld [vmem:[#allocation76_spill] sm:$0xff]  ;;  %v17626_v5 = vsel %vm5468_vm4, %v17414_v38, %v4876_v55  ;;  %v22330_v12 = vld [vmem:[#allocation307_spill] sm:$0xff] }
 0x2c7   :  { %v4112_v2 = vmul.f32 %v22309_v13, %v22309_v13  ;;  %6446 = vadd.xlane.f32.xlu0 %v22310_v0  ;;  %22312 = vst [vmem:[#allocation251_spill] sm:$0xff] %v17626_v5  ;;  %v4879_v60 = vsel %vm2831_vm7, %v3599_v9, %v4623_v51  ;;  %v17633_v14 = vsel %vm2832_vm0, 1.0, %v17198_v19  ;;  %v22313_v13 = vld [vmem:[#allocation56_spill] sm:$0xff]  ;;  %v17646_v26 = vsel %vm5464_vm11, %v17203_v34, 0.0  ;;  %v22318_v0 = vld [vmem:[#allocation303_spill] sm:$0xff] }
 0x2c8   :  { %6448 = vadd.xlane.f32.xlu1 %v22311_v48  ;;  %v4113_v22 = vmul.f32 %v22313_v13, %v22313_v13  ;;  %v17640_v48 = vsel %vm5469_vm13, %v17472_v62, %v4877_v42  ;;  %22315 = vst [vmem:[#allocation12_spill] sm:$0xff] %v17646_v26  ;;  %v17651_v55 = vsel %vm5465_vm5, %v17266_v29, 0.0  ;;  %v22317_v9 = vld [vmem:[#allocation16_spill] sm:$0xff]  ;;  %vm5470_vm1 = vcmp.eq.f32.partialorder %v17594_v43, 1.0  ;;  %v22319_v13 = vld [vmem:[#allocation178_spill] sm:$0xff]  ;;  %v22335_v31 = vld [vmem:[#allocation311_spill] sm:$0xff] }
 0x2c9   :  { %22314 = vst [vmem:[#allocation141_spill] sm:$0xff] %v17640_v48  ;;  %22316 = vst [vmem:[#allocation144_spill] sm:$0xff] %v17651_v55  ;;  %vm4372_vm14 = vcmp.ge.f32.partialorder %v22317_v9, -0.1  ;;  %v1811_v51 = vpop.permute.xlu1 %1810  ;;  %v3601_v42 = vadd.f32 1.0, %v22318_v0  ;;  %v4114_v3 = vmul.f32 %v22319_v13, %v22319_v13  ;;  %v22320_v48 = vld [vmem:[#allocation308_spill] sm:$0xff]  ;;  %v17663_v34 = vmul.f32 %v22179_v16, %v17460_v35 }
 0x2ca   :  { %v4115_v46 = vmul.f32 %v22320_v48, %v22320_v48  ;;  %vm5471_vm11 = vcmp.eq.f32.partialorder %v17392_v23, 1.0  ;;  %v17666_v45 = vmul.f32 %v22295_v28, %v1811_v51  ;;  %v4624_v29 = vsel %vm4368_vm10, %v4112_v2, 0.0  ;;  %v22321_v55 = vld [vmem:[#allocation171_spill] sm:$0xff]  ;;  %v22322_v0 = vld [vmem:[#allocation145_spill] sm:$0xff]  ;;  %v22323_v13 = vld [vmem:[#allocation338_spill] sm:$0xff] }
 0x2cb   :  { %vm4374_vm5 = vcmp.ge.f32.partialorder %v22321_v55, -0.1  ;;  %6450 = vadd.xlane.f32.xlu0 %v22322_v0  ;;  %v4625_v48 = vsel %vm4369_vm15, %v4113_v22, 0.0  ;;  %v17678_v35 = vsel %vm2833_vm2, 1.0, %v17198_v19  ;;  %vm2834_vm7 = vcmp.gt.f32.partialorder %v22293_v36, 0.0  ;;  %v22324_v51 = vld [vmem:[#allocation309_spill] sm:$0xff] }
 0x2cc   :  { %6452 = vadd.xlane.f32.xlu1 %v22323_v13  ;;  %v3602_v26 = vadd.f32 1.0, %v22324_v51  ;;  %v17685_v2 = vsel %vm5470_vm1, %v17550_v10, %v4878_v54  ;;  %vm2835_vm10 = vcmp.gt.f32.partialorder %v22301_v32, 0.0  ;;  %v17691_v22 = vsel %vm5466_vm8, %v17298_v39, 0.0  ;;  %v22328_v13 = vld [vmem:[#allocation172_spill] sm:$0xff]  ;;  %v1799_v51 = vpop.permute.xlu0 %1798  ;;  %v22345_v43 = vld [vmem:[#allocation310_spill] sm:$0xff] }
 0x2cd   :  { %22325 = vst [vmem:[#allocation197_spill] sm:$0xff] %v17685_v2  ;;  %22326 = vst [vmem:[#allocation40_spill] sm:$0xff] %v17691_v22  ;;  %v17696_v0 = vsel %vm5467_vm9, %v17383_v21, 0.0  ;;  %vm4373_vm15 = vcmp.ge.f32.partialorder %v22328_v13, -0.1  ;;  %v1819_v5 = vpop.permute.xlu1 %1818  ;;  %v17702_v54 = vsel %vm5471_vm11, %v17605_v58, %v4879_v60  ;;  %v3603_v39 = vadd.f32 1.0, %v22330_v12 }
 0x2ce   :  { %22327 = vst [vmem:[#allocation285_spill] sm:$0xff] %v17696_v0  ;;  %vm22329_vm6 = vcmp.ge.f32.partialorder %v22293_v36, -0.1  ;;  %v4627_v22 = vsel %vm4371_vm12, %v4115_v46, 0.0  ;;  %vm5473_vm8 = vcmp.eq.f32.partialorder %v17450_v44, 1.0  ;;  %vm5472_vm9 = vcmp.eq.f32.partialorder %v17663_v34, 1.0 }
 0x2cf   :  { %v4626_v2 = vsel %vm22329_vm6, %v4114_v3, 0.0  ;;  %v17713_v30 = vmul.f32 %v22179_v16, %v17537_v49  ;;  %v17716_v21 = vmul.f32 %v22295_v28, %v1819_v5  ;;  %v22331_v60 = vld [vmem:[#allocation257_spill] sm:$0xff]  ;;  %v22332_v0 = vld [vmem:[#allocation35_spill] sm:$0xff]  ;;  %v4880_v3 = vsel %vm2832_vm0, %v3600_v63, %v4624_v29  ;;  %v22351_v34 = vld [vmem:[#allocation64_spill] sm:$0xff] }
 0x2d0   :  { %6454 = vadd.xlane.f32.xlu0 %v22331_v60  ;;  %6456 = vadd.xlane.f32.xlu1 %v22332_v0  ;;  %v4881_v46 = vsel %vm2833_vm2, %v3601_v42, %v4625_v48  ;;  %v17727_v12 = vsel %vm2834_vm7, 1.0, %v17198_v19  ;;  %v17732_v16 = vsel %vm2835_vm10, 1.0, %v17198_v19  ;;  %vm2836_vm12 = vcmp.gt.f32.partialorder %v22317_v9, 0.0  ;;  %v22333_v49 = vld [vmem:[#allocation315_spill] sm:$0xff]  ;;  %v22336_v48 = vld [vmem:[#allocation60_spill] sm:$0xff]  ;;  %v22337_v60 = vld [vmem:[#allocation318_spill] sm:$0xff]  ;;  %v1807_v32 = vpop.permute.xlu0 %1806 }
 0x2d1   :  { %v4116_v5 = vmul.f32 %v22333_v49, %v22333_v49  ;;  %v17740_v20 = vsel %vm5468_vm4, %v17414_v38, 0.0  ;;  %v17745_v40 = vsel %vm5469_vm13, %v17472_v62, 0.0  ;;  %v1827_v63 = vpop.permute.xlu1 %1826  ;;  %v17750_v42 = vsel %vm5472_vm9, %v17633_v14, %v4880_v3 }
 0x2d2   :  { %22334 = vst [vmem:[#allocation277_spill] sm:$0xff] %v17745_v40  ;;  %v17755_v29 = vsel %vm5473_vm8, %v17678_v35, %v4881_v46  ;;  %v4882_v38 = vsel %vm2834_vm7, %v3602_v26, %v4626_v2  ;;  %v4883_v6 = vsel %vm2835_vm10, %v3603_v39, %v4627_v22  ;;  %vm4376_vm6 = vcmp.ge.f32.partialorder %v22335_v31, -0.1  ;;  %v22338_v46 = vld [vmem:[#allocation179_spill] sm:$0xff]  ;;  %v22339_v26 = vld [vmem:[#allocation133_spill] sm:$0xff]  ;;  %v22340_v2 = vld [vmem:[#allocation268_spill] sm:$0xff] }
 0x2d3   :  { %vm5474_vm0 = vcmp.eq.f32.partialorder %v17713_v30, 1.0  ;;  %v17764_v62 = vmul.f32 %v22295_v28, %v1827_v63  ;;  %v4117_v0 = vmul.f32 %v22336_v48, %v22336_v48  ;;  %v4118_v3 = vmul.f32 %v22337_v60, %v22337_v60  ;;  %v22341_v22 = vld [vmem:[#allocation313_spill] sm:$0xff] }
 0x2d4   :  { %vm4375_vm4 = vcmp.ge.f32.partialorder %v22338_v46, -0.1  ;;  %vm5475_vm13 = vcmp.eq.f32.partialorder %v17499_v24, 1.0  ;;  %v17774_v36 = vmul.f32 %v22295_v28, %v17619_v53  ;;  %6458 = vadd.xlane.f32.xlu0 %v22339_v26  ;;  %6460 = vadd.xlane.f32.xlu1 %v22340_v2  ;;  %v3604_v39 = vadd.f32 1.0, %v22341_v22  ;;  %v22343_v2 = vld [vmem:[#allocation177_spill] sm:$0xff] }
 0x2d5   :  { %v17782_v49 = vsel %vm2836_vm12, 1.0, %v17198_v19  ;;  %v4628_v63 = vsel %vm4372_vm14, %v4116_v5, 0.0  ;;  %vm2837_vm2 = vcmp.gt.f32.partialorder %v22328_v13, 0.0  ;;  %v17790_v53 = vsel %vm5470_vm1, %v17550_v10, 0.0  ;;  %v1835_v60 = vpop.permute.xlu1 %1834  ;;  %v22344_v22 = vld [vmem:[#allocation317_spill] sm:$0xff] }
 0x2d6   :  { %v17795_v48 = vsel %vm5471_vm11, %v17605_v58, 0.0  ;;  %v17800_v26 = vsel %vm5474_vm0, %v17727_v12, %v4882_v38  ;;  %v3605_v5 = vadd.f32 1.0, %v22343_v2  ;;  %vm2838_vm14 = vcmp.gt.f32.partialorder %v22321_v55, 0.0  ;;  %v22346_v2 = vld [vmem:[#allocation33_spill] sm:$0xff] }
 0x2d7   :  { %22342 = vst [vmem:[#allocation109_spill] sm:$0xff] %v17795_v48  ;;  %v3606_v40 = vadd.f32 1.0, %v22344_v22  ;;  %vm4377_vm1 = vcmp.ge.f32.partialorder %v22345_v43, -0.1  ;;  %v17807_v10 = vmul.f32 %v22295_v28, %v1835_v60  ;;  %v17812_v23 = vsel %vm5475_vm13, %v17732_v16, %v4883_v6  ;;  %v22347_v22 = vld [vmem:[#allocation184_spill] sm:$0xff] }
 0x2d8   :  { %v4629_v58 = vsel %vm4373_vm15, %v4117_v0, 0.0  ;;  %v4630_v38 = vsel %vm4374_vm5, %v4118_v3, 0.0  ;;  %vm5476_vm11 = vcmp.eq.f32.partialorder %v17774_v36, 1.0  ;;  %6462 = vadd.xlane.f32.xlu0 %v22346_v2  ;;  %6464 = vadd.xlane.f32.xlu1 %v16796_v1  ;;  %v4884_v60 = vsel %vm2836_vm12, %v3604_v39, %v4628_v63  ;;  %v22348_v0 = vld [vmem:[#allocation176_spill] sm:$0xff]  ;;  %v1815_v39 = vpop.permute.xlu0 %1814 }
 0x2d9   :  { %v5733_v6 = vsel %vm2837_vm2, 1.0, %v17198_v19  ;;  %v4119_v48 = vmul.f32 %v22347_v22, %v22347_v22  ;;  %vm4378_vm7 = vcmp.ge.f32.partialorder %v22348_v0, -0.1  ;;  %vm5477_vm5 = vcmp.eq.f32.partialorder %v17557_v61, 1.0  ;;  %v1843_v63 = vpop.permute.xlu1 %1842 }
 0x2da   :  { %v17831_v3 = vmul.f32 %v22295_v28, %v1799_v51  ;;  %v17836_v1 = vsel %vm5472_vm9, %v17633_v14, 0.0  ;;  %v17841_v9 = vsel %vm5473_vm8, %v17678_v35, 0.0  ;;  %v4885_v2 = vsel %vm2837_vm2, %v3605_v5, %v4629_v58  ;;  %v22352_v35 = vld [vmem:[#allocation106_spill] sm:$0xff] }
 0x2db   :  { %22349 = vst [vmem:[#allocation217_spill] sm:$0xff] %v17836_v1  ;;  %22350 = vst [vmem:[#allocation284_spill] sm:$0xff] %v17841_v9  ;;  %v4886_v22 = vsel %vm2838_vm14, %v3606_v40, %v4630_v38  ;;  %v5734_v51 = vsel %vm2838_vm14, 1.0, %v17198_v19  ;;  %v4120_v14 = vmul.f32 %v22351_v34, %v22351_v34  ;;  %v17853_v1 = vmul.f32 %v22295_v28, %v1843_v63  ;;  %v22353_v40 = vld [vmem:[#allocation218_spill] sm:$0xff]  ;;  %v22355_v38 = vld [vmem:[#allocation107_spill] sm:$0xff] }
 0x2dc   :  { %v17858_v44 = vsel %vm5476_vm11, %v17782_v49, %v4884_v60  ;;  %vm2839_vm10 = vcmp.gt.f32.partialorder %v22338_v46, 0.0  ;;  %v3607_v13 = vadd.f32 1.0, %v22352_v35  ;;  %6466 = vadd.xlane.f32.xlu0 %v22353_v40  ;;  %6468 = vadd.xlane.f32.xlu1 %v17056_v59  ;;  %v17866_v55 = vsel %vm5477_vm5, %v5733_v6, %v4885_v2  ;;  %v22354_v5 = vld [vmem:[#allocation322_spill] sm:$0xff] }
 0x2dd   :  { %vm2840_vm15 = vcmp.gt.f32.partialorder %v22335_v31, 0.0  ;;  %v3608_v58 = vadd.f32 1.0, %v22354_v5  ;;  %v4121_v60 = vmul.f32 %v22355_v38, %v22355_v38  ;;  %v22356_v63 = vld [vmem:[#allocation66_spill] sm:$0xff]  ;;  %vm5478_vm12 = vcmp.eq.f32.partialorder %v17831_v3, 1.0  ;;  %v1851_v5 = vpop.permute.xlu1 %1850 }
 0x2de   :  { %vm4379_vm8 = vcmp.ge.f32.partialorder %v22356_v63, -0.1  ;;  %v22357_v34 = vld [vmem:[#allocation222_spill] sm:$0xff]  ;;  %v4631_v59 = vsel %vm4375_vm4, %v4119_v48, 0.0  ;;  %v17880_v2 = vsel %vm5474_vm0, %v17727_v12, 0.0  ;;  %v17885_v35 = vsel %vm5475_vm13, %v17732_v16, 0.0 }
 0x2df   :  { %vm4380_vm9 = vcmp.ge.f32.partialorder %v22357_v34, -0.1  ;;  %22358 = vst [vmem:[#allocation283_spill] sm:$0xff] %v17880_v2  ;;  %22359 = vst [vmem:[#allocation261_spill] sm:$0xff] %v17885_v35  ;;  %vm5479_vm2 = vcmp.eq.f32.partialorder %v17608_v17, 1.0  ;;  %v5224_v40 = vmul.f32 %v22295_v28, %v1807_v32  ;;  %v5735_v38 = vsel %vm2839_vm10, 1.0, %v17198_v19  ;;  %v1823_v32 = vpop.permute.xlu0 %1822 }
 0x2e0   :  { %v4632_v48 = vsel %vm4376_vm6, %v4120_v14, 0.0  ;;  %v17895_v30 = vmul.f32 %v22295_v28, %v1851_v5  ;;  %v5736_v24 = vsel %vm2840_vm15, 1.0, %v17198_v19  ;;  %vm2841_vm0 = vcmp.gt.f32.partialorder %v22345_v43, 0.0  ;;  %v22360_v12 = vld [vmem:[#allocation183_spill] sm:$0xff]  ;;  %6470 = vadd.xlane.f32.xlu0 %v16996_v8  ;;  %6472 = vadd.xlane.f32.xlu1 %v17124_v52  ;;  %v22361_v2 = vld [vmem:[#allocation325_spill] sm:$0xff]  ;;  %v22364_v31 = vld [vmem:[#allocation186_spill] sm:$0xff] }
 0x2e1   :  { %v3609_v16 = vadd.f32 1.0, %v22360_v12  ;;  %v17906_v35 = vsel %vm5478_vm12, %v5734_v51, %v4886_v22  ;;  %v4887_v14 = vsel %vm2839_vm10, %v3607_v13, %v4631_v59  ;;  %v4633_v5 = vsel %vm4377_vm1, %v4121_v60, 0.0  ;;  %v22362_v22 = vld [vmem:[#allocation319_spill] sm:$0xff]  ;;  %v22363_v13 = vld [vmem:[#allocation228_spill] sm:$0xff] }
 0x2e2   :  { %v4122_v9 = vmul.f32 %v22361_v2, %v22361_v2  ;;  %v17916_v12 = vsel %vm5479_vm2, %v5735_v38, %v4887_v14  ;;  %v4888_v8 = vsel %vm2840_vm15, %v3608_v58, %v4632_v48  ;;  %v17923_v52 = vsel %vm5476_vm11, %v17782_v49, 0.0  ;;  %v22366_v2 = vld [vmem:[#allocation70_spill] sm:$0xff]  ;;  %v22367_v14 = vld [vmem:[#allocation331_spill] sm:$0xff] }
 0x2e3   :  { %v17927_v46 = vsel %vm5477_vm5, %v5733_v6, 0.0  ;;  %vm4381_vm6 = vcmp.ge.f32.partialorder %v22362_v22, -0.1  ;;  %vm4382_vm4 = vcmp.ge.f32.partialorder %v22363_v13, -0.1  ;;  %vm5480_vm13 = vcmp.eq.f32.partialorder %v5224_v40, 1.0 }
 0x2e4   :  { %v5737_v60 = vsel %vm2841_vm0, 1.0, %v17198_v19  ;;  %vm2842_vm14 = vcmp.gt.f32.partialorder %v22348_v0, 0.0  ;;  %v4123_v36 = vmul.f32 %v22364_v31, %v22364_v31  ;;  %vm5481_vm1 = vcmp.eq.f32.partialorder %v17666_v45, 1.0  ;;  %v22365_v6 = vld [vmem:[#allocation324_spill] sm:$0xff]  ;;  %6474 = vadd.xlane.f32.xlu0 %v17118_v57  ;;  %6476 = vadd.xlane.f32.xlu1 %v17230_v4  ;;  %v22368_v43 = vld [vmem:[#allocation227_spill] sm:$0xff] }
 0x2e5   :  { %v5226_v61 = vmul.f32 %v22295_v28, %v1815_v39  ;;  %v4889_v49 = vsel %vm2841_vm0, %v3609_v16, %v4633_v5  ;;  %v3610_v58 = vadd.f32 1.0, %v22365_v6  ;;  %v4634_v59 = vsel %vm4378_vm7, %v4122_v9, 0.0  ;;  %v1831_v9 = vpop.permute.xlu0 %1830 }
 0x2e6   :  { %vm2843_vm11 = vcmp.gt.f32.partialorder %v22356_v63, 0.0  ;;  %v3611_v48 = vadd.f32 1.0, %v22366_v2  ;;  %v4124_v31 = vmul.f32 %v22367_v14, %v22367_v14  ;;  %v17951_v39 = vsel %vm5480_vm13, %v5736_v24, %v4888_v8  ;;  %v22371_v2 = vld [vmem:[#allocation329_spill] sm:$0xff]  ;;  %v22373_v63 = vld [vmem:[#allocation327_spill] sm:$0xff] }
 0x2e7   :  { %vm2844_vm5 = vcmp.gt.f32.partialorder %v22357_v34, 0.0  ;;  %v17956_v57 = vsel %vm5478_vm12, %v5734_v51, 0.0  ;;  %v17960_v4 = vsel %vm5479_vm2, %v5735_v38, 0.0  ;;  %vm4383_vm7 = vcmp.ge.f32.partialorder %v22368_v43, -0.1  ;;  %v22369_v51 = vld [vmem:[#allocation330_spill] sm:$0xff] }
 0x2e8   :  { %v17965_v16 = vsel %vm5481_vm1, %v5737_v60, %v4889_v49  ;;  %v5738_v5 = vsel %vm2842_vm14, 1.0, %v17198_v19  ;;  %v4635_v3 = vsel %vm4379_vm8, %v4123_v36, 0.0  ;;  %v3612_v8 = vadd.f32 1.0, %v22369_v51  ;;  %v22370_v38 = vld [vmem:[#allocation114_spill] sm:$0xff]  ;;  %6478 = vadd.xlane.f32.xlu0 %v17196_v33  ;;  %6480 = vadd.xlane.f32.xlu1 %v17325_v15  ;;  %v22372_v33 = vld [vmem:[#allocation335_spill] sm:$0xff] }
 0x2e9   :  { %vm5483_vm10 = vcmp.eq.f32.partialorder %v17716_v21, 1.0  ;;  %vm5482_vm15 = vcmp.eq.f32.partialorder %v5226_v61, 1.0  ;;  %v5228_v17 = vmul.f32 %v22295_v28, %v1823_v32  ;;  %v4125_v6 = vmul.f32 %v22370_v38, %v22370_v38 }
 0x2ea   :  { %vm4384_vm12 = vcmp.ge.f32.partialorder %v22371_v2, -0.1  ;;  %v4890_v49 = vsel %vm2842_vm14, %v3610_v58, %v4634_v59  ;;  %v5739_v36 = vsel %vm2843_vm11, 1.0, %v17198_v19  ;;  %v4636_v14 = vsel %vm4380_vm9, %v4124_v31, 0.0 }
 0x2eb   :  { %v5740_v32 = vsel %vm2844_vm5, 1.0, %v17198_v19  ;;  %v4891_v51 = vsel %vm2843_vm11, %v3611_v48, %v4635_v3  ;;  %v4126_v15 = vmul.f32 %v22372_v33, %v22372_v33  ;;  %v17995_v0 = vsel %vm5480_vm13, %v5736_v24, 0.0  ;;  %v22374_v3 = vld [vmem:[#allocation105_spill] sm:$0xff] }
 0x2ec   :  { %v17999_v58 = vsel %vm5481_vm1, %v5737_v60, 0.0  ;;  %v18002_v59 = vsel %vm5482_vm15, %v5738_v5, %v4890_v49  ;;  %v18006_v31 = vsel %vm5483_vm10, %v5739_v36, %v4891_v51  ;;  %vm2845_vm8 = vcmp.gt.f32.partialorder %v22362_v22, 0.0  ;;  %v22375_v24 = vld [vmem:[#allocation333_spill] sm:$0xff]  ;;  %v1839_v49 = vpop.permute.xlu0 %1838  ;;  %6482 = vadd.xlane.f32.xlu0 %v17286_v25  ;;  %6484 = vadd.xlane.f32.xlu1 %v17402_v27  ;;  %v22376_v51 = vld [vmem:[#allocation334_spill] sm:$0xff]  ;;  %v22381_v22 = vld [vmem:[#allocation68_spill] sm:$0xff] }
 0x2ed   :  { %v3613_v48 = vadd.f32 1.0, %v22373_v63  ;;  %vm4385_vm9 = vcmp.ge.f32.partialorder %v22374_v3, -0.1  ;;  %vm5484_vm2 = vcmp.eq.f32.partialorder %v5228_v17, 1.0  ;;  %v4892_v40 = vsel %vm2844_vm5, %v3612_v8, %v4636_v14  ;;  %v22377_v8 = vld [vmem:[#allocation73_spill] sm:$0xff] }
 0x2ee   :  { %v4637_v45 = vsel %vm4381_vm6, %v4125_v6, 0.0  ;;  %v4127_v60 = vmul.f32 %v22375_v24, %v22375_v24  ;;  %vm5485_vm0 = vcmp.eq.f32.partialorder %v17764_v62, 1.0  ;;  %v5230_v38 = vmul.f32 %v22295_v28, %v1831_v9  ;;  %v22379_v24 = vld [vmem:[#allocation99_spill] sm:$0xff] }
 0x2ef   :  { %vm2846_vm13 = vcmp.gt.f32.partialorder %v22363_v13, 0.0  ;;  %v3614_v34 = vadd.f32 1.0, %v22376_v51  ;;  %vm4386_vm14 = vcmp.ge.f32.partialorder %v22377_v8, -0.1  ;;  %v4638_v6 = vsel %vm4382_vm4, %v4126_v15, 0.0  ;;  %v22378_v15 = vld [vmem:[#allocation50_spill] sm:$0xff] }
 0x2f0   :  { %vm2847_vm6 = vcmp.gt.f32.partialorder %v22368_v43, 0.0  ;;  %v18028_v14 = vsel %vm5482_vm15, %v5738_v5, 0.0  ;;  %v18032_v9 = vsel %vm5483_vm10, %v5739_v36, 0.0  ;;  %v18035_v25 = vsel %vm5484_vm2, %v5740_v32, %v4892_v40  ;;  %v22380_v36 = vld [vmem:[#allocation339_spill] sm:$0xff]  ;;  %6486 = vadd.xlane.f32.xlu0 %v17408_v41  ;;  %6488 = vadd.xlane.f32.xlu1 %v17543_v56  ;;  %v22382_v51 = vld [vmem:[#allocation112_spill] sm:$0xff]  ;;  %v1847_v56 = vpop.permute.xlu0 %1846 }
 0x2f1   :  { %v4893_v27 = vsel %vm2845_vm8, %v3613_v48, %v4637_v45  ;;  %v5741_v33 = vsel %vm2845_vm8, 1.0, %v17198_v19  ;;  %v3615_v63 = vadd.f32 1.0, %v22378_v15  ;;  %vm2779_vm4 = vcmp.gt.f32.partialorder %v22379_v24, 0.0 }
 0x2f2   :  { %v18046_v61 = vsel %vm5485_vm0, %v5741_v33, %v4893_v27  ;;  %v5742_v21 = vsel %vm2846_vm13, 1.0, %v17198_v19  ;;  %v4639_v5 = vsel %vm4383_vm7, %v4127_v60, 0.0  ;;  %v4128_v48 = vmul.f32 %v22380_v36, %v22380_v36 }
 0x2f3   :  { %vm4387_vm1 = vcmp.ge.f32.partialorder %v22381_v22, -0.1  ;;  %vm5486_vm11 = vcmp.eq.f32.partialorder %v5230_v38, 1.0  ;;  %v4894_v40 = vsel %vm2846_vm13, %v3614_v34, %v4638_v6  ;;  %v5743_v45 = vsel %vm2847_vm6, 1.0, %v17198_v19  ;;  %v22383_v34 = vld [vmem:[#allocation115_spill] sm:$0xff] }
 0x2f4   :  { %v4129_v60 = vmul.f32 %v22382_v51, %v22382_v51  ;;  %vm5487_vm5 = vcmp.eq.f32.partialorder %v17807_v10, 1.0  ;;  %v5232_v27 = vmul.f32 %v22295_v28, %v1839_v49  ;;  %v18068_v15 = vsel %vm5484_vm2, %v5740_v32, 0.0  ;;  %v22384_v32 = vld [vmem:[#allocation47_spill] sm:$0xff]  ;;  %v22385_v49 = vld [vmem:[#allocation345_spill] sm:$0xff]  ;;  %6490 = vadd.xlane.f32.xlu0 %v17489_v50  ;;  %6492 = vadd.xlane.f32.xlu1 %v17614_v37  ;;  %v22387_v37 = vld [vmem:[#allocation110_spill] sm:$0xff] }
 0x2f5   :  { %v18072_v41 = vsel %vm5485_vm0, %v5741_v33, 0.0  ;;  %v4895_v13 = vsel %vm2847_vm6, %v3615_v63, %v4639_v5  ;;  %vm2848_vm7 = vcmp.gt.f32.partialorder %v22371_v2, 0.0  ;;  %v3616_v6 = vadd.f32 1.0, %v22383_v34  ;;  %v22386_v5 = vld [vmem:[#allocation341_spill] sm:$0xff]  ;;  %v22388_v10 = vld [vmem:[#allocation196_spill] sm:$0xff] }
 0x2f6   :  { %vm2849_vm10 = vcmp.gt.f32.partialorder %v22374_v3, 0.0  ;;  %v18080_v36 = vsel %vm5486_vm11, %v5742_v21, %v4894_v40  ;;  %v4640_v17 = vsel %vm4384_vm12, %v4128_v48, 0.0  ;;  %v3617_v62 = vadd.f32 1.0, %v22384_v32  ;;  %v22390_v34 = vld [vmem:[#allocation189_spill] sm:$0xff] }
 0x2f7   :  { %v4130_v33 = vmul.f32 %v22385_v49, %v22385_v49  ;;  %vm5489_vm15 = vcmp.eq.f32.partialorder %v17853_v1, 1.0  ;;  %v18092_v43 = vsel %vm5487_vm5, %v5743_v45, %v4895_v13  ;;  %v4641_v63 = vsel %vm4385_vm9, %v4129_v60, 0.0  ;;  %v22392_v49 = vld [vmem:[#allocation170_spill] sm:$0xff] }
 0x2f8   :  { %v4131_v48 = vmul.f32 %v22386_v5, %v22386_v5  ;;  %vm5488_vm12 = vcmp.eq.f32.partialorder %v5232_v27, 1.0  ;;  %v5234_v40 = vmul.f32 %v22295_v28, %v1847_v56  ;;  %v18100_v51 = vsel %vm5486_vm11, %v5742_v21, 0.0  ;;  %6494 = vadd.xlane.f32.xlu0 %v17600_v18  ;;  %v22393_v5 = vld [vmem:[#allocation119_spill] sm:$0xff] }
 0x2f9   :  { %v18104_v50 = vsel %vm5487_vm5, %v5743_v45, 0.0  ;;  %vm5419_vm8 = vcmp.eq.f32.partialorder %v22387_v37, 1.0  ;;  %v4896_v13 = vsel %vm2848_vm7, %v3616_v6, %v4640_v17  ;;  %v5744_v60 = vsel %vm2848_vm7, 1.0, %v17198_v19  ;;  %v22389_v45 = vld [vmem:[#allocation22_spill] sm:$0xff]  ;;  %v22841_v37 = vld [vmem:[#allocation151_spill] sm:$0xff] }
 0x2fa   :  { %v5745_v28 = vsel %vm2849_vm10, 1.0, %v17198_v19  ;;  %v4897_v38 = vsel %vm2849_vm10, %v3617_v62, %v4641_v63  ;;  %vm2850_vm9 = vcmp.gt.f32.partialorder %v22377_v8, 0.0  ;;  %v3618_v21 = vadd.f32 1.0, %v22388_v10  ;;  %6496 = vadd.xlane.f32.xlu1 %v22389_v45  ;;  %v22391_v62 = vld [vmem:[#allocation312_spill] sm:$0xff]  ;;  %v22395_v10 = vld [vmem:[#allocation354_spill] sm:$0xff]  ;;  %v22397_v45 = vld [vmem:[#allocation355_spill] sm:$0xff] }
 0x2fb   :  { %vm2851_vm2 = vcmp.gt.f32.partialorder %v22381_v22, 0.0  ;;  %v18123_v2 = vsel %vm5488_vm12, %v5744_v60, %v4896_v13  ;;  %v18127_v56 = vsel %vm5489_vm15, %v5745_v28, %v4897_v38  ;;  %v4642_v3 = vsel %vm4386_vm14, %v4130_v33, 0.0  ;;  %v22394_v38 = vld [vmem:[#allocation131_spill] sm:$0xff] }
 0x2fc   :  { %v3619_v6 = vadd.f32 1.0, %v22390_v34  ;;  %vm5490_vm0 = vcmp.eq.f32.partialorder %v5234_v40, 1.0  ;;  %v4643_v17 = vsel %vm4387_vm1, %v4131_v48, 0.0  ;;  %v18135_v18 = vsel %vm5488_vm12, %v5744_v60, 0.0  ;;  %v22399_v34 = vld [vmem:[#allocation129_spill] sm:$0xff]  ;;  %v22401_v22 = vld [vmem:[#allocation163_spill] sm:$0xff] }
 0x2fd   :  { %v18139_v32 = vsel %vm5489_vm15, %v5745_v28, 0.0  ;;  %vm5491_vm13 = vcmp.eq.f32.partialorder %v17895_v30, 1.0  ;;  %v4827_v33 = vsel %vm2779_vm4, %v22392_v49, %v22391_v62  ;;  %v18149_v63 = vsel %vm2779_vm4, 1.0, %v17198_v19  ;;  %v22402_v40 = vld [vmem:[#allocation347_spill] sm:$0xff]  ;;  %v22405_v62 = vld [vmem:[#allocation181_spill] sm:$0xff] }
 0x2fe   :  { %v5931_v27 = vsel %vm5419_vm8, %v18149_v63, %v4827_v33  ;;  %v4898_v1 = vsel %vm2850_vm9, %v3618_v21, %v4642_v3  ;;  %v5746_v30 = vsel %vm2850_vm9, 1.0, %v17198_v19  ;;  %6500 = vadd.xlane.f32.xlu1 %v22393_v5  ;;  %v4899_v24 = vsel %vm2851_vm2, %v3619_v6, %v4643_v17  ;;  %v22396_v21 = vld [vmem:[#allocation29_spill] sm:$0xff]  ;;  %v22398_v3 = vld [vmem:[#allocation143_spill] sm:$0xff] }
 0x2ff   :  { %6498 = vadd.xlane.f32.xlu0 %v5931_v27  ;;  %v18161_v48 = vsel %vm5490_vm0, %v5746_v30, %v4898_v1  ;;  %v5747_v13 = vsel %vm2851_vm2, 1.0, %v17198_v19  ;;  %v18171_v28 = vsel %vm5490_vm0, %v5746_v30, 0.0  ;;  %v22400_v19 = vld [vmem:[#allocation146_spill] sm:$0xff]  ;;  %v22403_v6 = vld [vmem:[#allocation249_spill] sm:$0xff]  ;;  %v22406_v49 = vld [vmem:[#allocation175_spill] sm:$0xff] }
 0x300   :  { %v18168_v60 = vsel %vm5491_vm13, %v5747_v13, %v4899_v24  ;;  %v18173_v8 = vsel %vm5491_vm13, %v5747_v13, 0.0  ;;  %v22404_v17 = vld [vmem:[#allocation241_spill] sm:$0xff]  ;;  %v22407_v33 = vld [vmem:[#allocation255_spill] sm:$0xff]  ;;  %v22408_v1 = vld [vmem:[#allocation182_spill] sm:$0xff] }
 0x301   :  { %v22409_v30 = vld [vmem:[#allocation13_spill] sm:$0xff] }
 0x302   :  { %6504 = vadd.xlane.f32.xlu1 %v22395_v10  ;;  %v22410_v13 = vld [vmem:[#allocation253_spill] sm:$0xff] }
 0x303   :  { %6502 = vadd.xlane.f32.xlu0 %v22394_v38  ;;  %v22411_v38 = vld [vmem:[#allocation152_spill] sm:$0xff] }
 0x306   :  { %6508 = vadd.xlane.f32.xlu1 %v22397_v45  ;;  %v22412_v45 = vld [vmem:[#allocation203_spill] sm:$0xff] }
 0x307   :  { %6506 = vadd.xlane.f32.xlu0 %v22396_v21 }
 0x309   :  { %v18189_v27 = vpop.xlane.xlu0 %6388 }
 0x30a   :  { %6512 = vadd.xlane.f32.xlu1 %v22399_v34 }
 0x30b   :  { %6510 = vadd.xlane.f32.xlu0 %v22398_v3  ;;  %v22413_v3 = vld [vmem:[#allocation212_spill] sm:$0xff] }
 0x30c   :  { %v18195_v24 = vpop.xlane.xlu1 %6390 }
 0x30d   :  { %v18193_v5 = vpop.xlane.xlu0 %6392 }
 0x30e   :  { %6516 = vadd.xlane.f32.xlu1 %v22401_v22  ;;  %v22414_v22 = vld [vmem:[#allocation260_spill] sm:$0xff] }
 0x30f   :  { %6514 = vadd.xlane.f32.xlu0 %v22400_v19 }
 0x311   :  { %v18199_v10 = vpop.xlane.xlu0 %6394 }
 0x312   :  { %6520 = vadd.xlane.f32.xlu1 %v22403_v6  ;;  %v18201_v21 = vpop.xlane.xlu1 %6396 }
 0x313   :  { %6518 = vadd.xlane.f32.xlu0 %v22402_v40  ;;  %v22415_v40 = vld [vmem:[#allocation150_spill] sm:$0xff] }
 0x316   :  { %6524 = vadd.xlane.f32.xlu1 %v22405_v62  ;;  %v22418_v62 = vld [vmem:[#allocation269_spill] sm:$0xff] }
 0x317   :  { %6522 = vadd.xlane.f32.xlu0 %v22404_v17 }
 0x31a   :  { %6528 = vadd.xlane.f32.xlu1 %v22407_v33  ;;  %v18205_v34 = vpop.xlane.xlu0 %6398  ;;  %v18207_v19 = vpop.xlane.xlu1 %6400 }
 0x31b   :  { %6526 = vadd.xlane.f32.xlu0 %v22406_v49  ;;  %v22419_v49 = vld [vmem:[#allocation83_spill] sm:$0xff] }
 0x31e   :  { %6532 = vadd.xlane.f32.xlu1 %v22409_v30  ;;  %v22421_v30 = vld [vmem:[#allocation223_spill] sm:$0xff] }
 0x31f   :  { %6530 = vadd.xlane.f32.xlu0 %v22408_v1 }
 0x321   :  { %v18213_v17 = vpop.xlane.xlu1 %6404 }
 0x322   :  { %6536 = vadd.xlane.f32.xlu1 %v22411_v38  ;;  %v18211_v6 = vpop.xlane.xlu0 %6402  ;;  %22417 = vst [vmem:[#allocation215_spill] sm:$0xff] %v18213_v17 }
 0x323   :  { %6534 = vadd.xlane.f32.xlu0 %v22410_v13  ;;  %22416 = vst [vmem:[#allocation53_spill] sm:$0xff] %v18211_v6  ;;  %v22422_v13 = vld [vmem:[#allocation58_spill] sm:$0xff] }
 0x326   :  { %6540 = vadd.xlane.f32.xlu1 %v22413_v3  ;;  %v22424_v3 = vld [vmem:[#allocation273_spill] sm:$0xff] }
 0x327   :  { %6538 = vadd.xlane.f32.xlu0 %v22412_v45  ;;  %v18217_v33 = vpop.xlane.xlu0 %6406  ;;  %v18219_v1 = vpop.xlane.xlu1 %6408 }
 0x328   :  { %22420 = vst [vmem:[#allocation18_spill] sm:$0xff] %v18217_v33  ;;  %v22429_v33 = vld [vmem:[#allocation201_spill] sm:$0xff] }
 0x32a   :  { %6544 = vadd.xlane.f32.xlu1 %v22415_v40 }
 0x32b   :  { %6542 = vadd.xlane.f32.xlu0 %v22414_v22  ;;  %v18223_v38 = vpop.xlane.xlu0 %6410  ;;  %v22425_v22 = vld [vmem:[#allocation117_spill] sm:$0xff] }
 0x32c   :  { %22423 = vst [vmem:[#allocation25_spill] sm:$0xff] %v18223_v38  ;;  %v18225_v45 = vpop.xlane.xlu1 %6412  ;;  %v22433_v38 = vld [vmem:[#allocation137_spill] sm:$0xff] }
 0x32e   :  { %6548 = vadd.xlane.f32.xlu1 %v22419_v49  ;;  %v22428_v49 = vld [vmem:[#allocation136_spill] sm:$0xff] }
 0x32f   :  { %6546 = vadd.xlane.f32.xlu0 %v22418_v62 }
 0x332   :  { %6552 = vadd.xlane.f32.xlu1 %v22422_v13  ;;  %v18229_v40 = vpop.xlane.xlu0 %6414  ;;  %v22432_v13 = vld [vmem:[#allocation267_spill] sm:$0xff] }
 0x333   :  { %6550 = vadd.xlane.f32.xlu0 %v22421_v30  ;;  %22426 = vst [vmem:[#allocation230_spill] sm:$0xff] %v18229_v40  ;;  %v18231_v62 = vpop.xlane.xlu1 %6416  ;;  %v22437_v40 = vld [vmem:[#allocation266_spill] sm:$0xff] }
 0x334   :  { %22427 = vst [vmem:[#allocation256_spill] sm:$0xff] %v18231_v62 }
 0x336   :  { %6556 = vadd.xlane.f32.xlu1 %v22425_v22  ;;  %v18235_v17 = vpop.xlane.xlu0 %6418  ;;  %v22436_v22 = vld [vmem:[#allocation321_spill] sm:$0xff] }
 0x337   :  { %6554 = vadd.xlane.f32.xlu0 %v22424_v3  ;;  %22430 = vst [vmem:[#allocation344_spill] sm:$0xff] %v18235_v17  ;;  %v18237_v30 = vpop.xlane.xlu1 %6420  ;;  %v22441_v17 = vld [vmem:[#allocation74_spill] sm:$0xff] }
 0x338   :  { %22431 = vst [vmem:[#allocation155_spill] sm:$0xff] %v18237_v30 }
 0x33a   :  { %6560 = vadd.xlane.f32.xlu1 %v22429_v33  ;;  %v22440_v33 = vld [vmem:[#allocation23_spill] sm:$0xff] }
 0x33b   :  { %6558 = vadd.xlane.f32.xlu0 %v22428_v49  ;;  %v18241_v6 = vpop.xlane.xlu0 %6422  ;;  %v18243_v3 = vpop.xlane.xlu1 %6424 }
 0x33c   :  { %22434 = vst [vmem:[#allocation160_spill] sm:$0xff] %v18241_v6  ;;  %22435 = vst [vmem:[#allocation290_spill] sm:$0xff] %v18243_v3  ;;  %v22445_v6 = vld [vmem:[#allocation247_spill] sm:$0xff] }
 0x33e   :  { %6564 = vadd.xlane.f32.xlu1 %v22433_v38  ;;  %v22444_v38 = vld [vmem:[#allocation123_spill] sm:$0xff] }
 0x33f   :  { %6562 = vadd.xlane.f32.xlu0 %v22432_v13  ;;  %v18247_v62 = vpop.xlane.xlu0 %6426  ;;  %v18249_v49 = vpop.xlane.xlu1 %6428 }
 0x340   :  { %22438 = vst [vmem:[#allocation14_spill] sm:$0xff] %v18247_v62  ;;  %22439 = vst [vmem:[#allocation229_spill] sm:$0xff] %v18249_v49  ;;  %v22449_v62 = vld [vmem:[#allocation279_spill] sm:$0xff] }
 0x342   :  { %6568 = vadd.xlane.f32.xlu1 %v22437_v40  ;;  %v22448_v40 = vld [vmem:[#allocation204_spill] sm:$0xff] }
 0x343   :  { %6566 = vadd.xlane.f32.xlu0 %v22436_v22  ;;  %v18253_v30 = vpop.xlane.xlu0 %6430 }
 0x344   :  { %22442 = vst [vmem:[#allocation272_spill] sm:$0xff] %v18253_v30  ;;  %v18255_v13 = vpop.xlane.xlu1 %6432 }
 0x345   :  { %22443 = vst [vmem:[#allocation15_spill] sm:$0xff] %v18255_v13 }
 0x346   :  { %6572 = vadd.xlane.f32.xlu1 %v22441_v17  ;;  %v22452_v17 = vld [vmem:[#allocation89_spill] sm:$0xff] }
 0x347   :  { %6570 = vadd.xlane.f32.xlu0 %v22440_v33 }
 0x348   :  { %v18259_v3 = vpop.xlane.xlu0 %6434 }
 0x349   :  { %22446 = vst [vmem:[#allocation289_spill] sm:$0xff] %v18259_v3  ;;  %v18261_v22 = vpop.xlane.xlu1 %6436 }
 0x34a   :  { %6576 = vadd.xlane.f32.xlu1 %v22445_v6  ;;  %22447 = vst [vmem:[#allocation28_spill] sm:$0xff] %v18261_v22  ;;  %v22455_v6 = vld [vmem:[#allocation194_spill] sm:$0xff] }
 0x34b   :  { %6574 = vadd.xlane.f32.xlu0 %v22444_v38  ;;  %v22871_v22 = vld [vmem:[#allocation138_spill] sm:$0xff] }
 0x34c   :  { %v18265_v49 = vpop.xlane.xlu0 %6438 }
 0x34d   :  { %22450 = vst [vmem:[#allocation51_spill] sm:$0xff] %v18265_v49  ;;  %v18267_v33 = vpop.xlane.xlu1 %6440 }
 0x34e   :  { %6580 = vadd.xlane.f32.xlu1 %v22449_v62  ;;  %22451 = vst [vmem:[#allocation148_spill] sm:$0xff] %v18267_v33  ;;  %v22458_v62 = vld [vmem:[#allocation19_spill] sm:$0xff]  ;;  %v22637_v33 = vld [vmem:[#allocation346_spill] sm:$0xff] }
 0x34f   :  { %6578 = vadd.xlane.f32.xlu0 %v22448_v40  ;;  %vm22638_vm6 = vcmp.eq.f32.partialorder %v22637_v33, 1.0 }
 0x350   :  { %v18271_v30 = vpop.xlane.xlu0 %6442 }
 0x351   :  { %22453 = vst [vmem:[#allocation263_spill] sm:$0xff] %v18271_v30  ;;  %v18273_v38 = vpop.xlane.xlu1 %6444  ;;  %v22462_v30 = vld [vmem:[#allocation251_spill] sm:$0xff] }
 0x352   :  { %6584 = vadd.xlane.f32.xlu1 %v17438_v11  ;;  %22454 = vst [vmem:[#allocation287_spill] sm:$0xff] %v18273_v38  ;;  %v22461_v11 = vld [vmem:[#allocation210_spill] sm:$0xff] }
 0x353   :  { %6582 = vadd.xlane.f32.xlu0 %v22452_v17 }
 0x354   :  { %v18277_v3 = vpop.xlane.xlu0 %6446 }
 0x355   :  { %22456 = vst [vmem:[#allocation113_spill] sm:$0xff] %v18277_v3  ;;  %v18279_v40 = vpop.xlane.xlu1 %6448  ;;  %v22466_v3 = vld [vmem:[#allocation197_spill] sm:$0xff] }
 0x356   :  { %6588 = vadd.xlane.f32.xlu1 %v17495_v7  ;;  %22457 = vst [vmem:[#allocation24_spill] sm:$0xff] %v18279_v40  ;;  %v22465_v7 = vld [vmem:[#allocation141_spill] sm:$0xff] }
 0x357   :  { %6586 = vadd.xlane.f32.xlu0 %v22455_v6 }
 0x358   :  { %v18283_v49 = vpop.xlane.xlu0 %6450 }
 0x359   :  { %22459 = vst [vmem:[#allocation286_spill] sm:$0xff] %v18283_v49  ;;  %v18285_v17 = vpop.xlane.xlu1 %6452 }
 0x35a   :  { %6592 = vadd.xlane.f32.xlu1 %v22458_v62  ;;  %22460 = vst [vmem:[#allocation295_spill] sm:$0xff] %v18285_v17 }
 0x35b   :  { %6590 = vadd.xlane.f32.xlu0 %v17505_v47 }
 0x35d   :  { %v18289_v38 = vpop.xlane.xlu0 %6454  ;;  %v18291_v6 = vpop.xlane.xlu1 %6456 }
 0x35e   :  { %6596 = vadd.xlane.f32.xlu1 %v22462_v30  ;;  %22463 = vst [vmem:[#allocation288_spill] sm:$0xff] %v18289_v38  ;;  %22464 = vst [vmem:[#allocation281_spill] sm:$0xff] %v18291_v6 }
 0x35f   :  { %6594 = vadd.xlane.f32.xlu0 %v22461_v11 }
 0x361   :  { %v18295_v40 = vpop.xlane.xlu0 %6458  ;;  %v18297_v47 = vpop.xlane.xlu1 %6460 }
 0x362   :  { %6600 = vadd.xlane.f32.xlu1 %v22466_v3  ;;  %22467 = vst [vmem:[#allocation36_spill] sm:$0xff] %v18295_v40  ;;  %22468 = vst [vmem:[#allocation236_spill] sm:$0xff] %v18297_v47 }
 0x363   :  { %6598 = vadd.xlane.f32.xlu0 %v22465_v7 }
 0x365   :  { %v18301_v62 = vpop.xlane.xlu0 %6462  ;;  %v18303_v11 = vpop.xlane.xlu1 %6464 }
 0x366   :  { %6604 = vadd.xlane.f32.xlu1 %v17750_v42  ;;  %22469 = vst [vmem:[#allocation48_spill] sm:$0xff] %v18301_v62  ;;  %22470 = vst [vmem:[#allocation282_spill] sm:$0xff] %v18303_v11 }
 0x367   :  { %6602 = vadd.xlane.f32.xlu0 %v17702_v54 }
 0x369   :  { %v18307_v30 = vpop.xlane.xlu0 %6466  ;;  %v18309_v7 = vpop.xlane.xlu1 %6468 }
 0x36a   :  { %6608 = vadd.xlane.f32.xlu1 %v17800_v26  ;;  %22471 = vst [vmem:[#allocation57_spill] sm:$0xff] %v18307_v30  ;;  %22472 = vst [vmem:[#allocation219_spill] sm:$0xff] %v18309_v7 }
 0x36b   :  { %6606 = vadd.xlane.f32.xlu0 %v17755_v29 }
 0x36d   :  { %v18313_v3 = vpop.xlane.xlu0 %6470  ;;  %v18315_v54 = vpop.xlane.xlu1 %6472 }
 0x36e   :  { %6612 = vadd.xlane.f32.xlu1 %v17858_v44  ;;  %22473 = vst [vmem:[#allocation165_spill] sm:$0xff] %v18313_v3  ;;  %22474 = vst [vmem:[#allocation52_spill] sm:$0xff] %v18315_v54 }
 0x36f   :  { %6610 = vadd.xlane.f32.xlu0 %v17812_v23 }
 0x371   :  { %v18319_v42 = vpop.xlane.xlu0 %6474  ;;  %v18321_v29 = vpop.xlane.xlu1 %6476 }
 0x372   :  { %6616 = vadd.xlane.f32.xlu1 %v17906_v35  ;;  %22475 = vst [vmem:[#allocation237_spill] sm:$0xff] %v18319_v42  ;;  %22476 = vst [vmem:[#allocation193_spill] sm:$0xff] %v18321_v29 }
 0x373   :  { %6614 = vadd.xlane.f32.xlu0 %v17866_v55 }
 0x375   :  { %v18325_v26 = vpop.xlane.xlu0 %6478  ;;  %v18327_v23 = vpop.xlane.xlu1 %6480 }
 0x376   :  { %6620 = vadd.xlane.f32.xlu1 %v17951_v39  ;;  %22477 = vst [vmem:[#allocation301_spill] sm:$0xff] %v18325_v26  ;;  %22478 = vst [vmem:[#allocation293_spill] sm:$0xff] %v18327_v23 }
 0x377   :  { %6618 = vadd.xlane.f32.xlu0 %v17916_v12 }
 0x379   :  { %v18331_v44 = vpop.xlane.xlu0 %6482  ;;  %v18333_v55 = vpop.xlane.xlu1 %6484 }
 0x37a   :  { %6624 = vadd.xlane.f32.xlu1 %v18002_v59  ;;  %22479 = vst [vmem:[#allocation292_spill] sm:$0xff] %v18331_v44  ;;  %22480 = vst [vmem:[#allocation300_spill] sm:$0xff] %v18333_v55  ;;  %v22568_v55 = vld [vmem:[#allocation44_spill] sm:$0xff] }
 0x37b   :  { %6622 = vadd.xlane.f32.xlu0 %v17965_v16 }
 0x37d   :  { %v18337_v35 = vpop.xlane.xlu0 %6486  ;;  %v18339_v12 = vpop.xlane.xlu1 %6488 }
 0x37e   :  { %6628 = vadd.xlane.f32.xlu1 %v18035_v25  ;;  %22481 = vst [vmem:[#allocation294_spill] sm:$0xff] %v18337_v35  ;;  %22482 = vst [vmem:[#allocation103_spill] sm:$0xff] %v18339_v12 }
 0x37f   :  { %6626 = vadd.xlane.f32.xlu0 %v18006_v31 }
 0x381   :  { %v18343_v39 = vpop.xlane.xlu0 %6490  ;;  %v18345_v16 = vpop.xlane.xlu1 %6492 }
 0x382   :  { %6632 = vadd.xlane.f32.xlu1 %v18080_v36  ;;  %22483 = vst [vmem:[#allocation128_spill] sm:$0xff] %v18343_v39  ;;  %22484 = vst [vmem:[#allocation323_spill] sm:$0xff] %v18345_v16 }
 0x383   :  { %6630 = vadd.xlane.f32.xlu0 %v18046_v61 }
 0x385   :  { %v18349_v59 = vpop.xlane.xlu0 %6494 }
 0x386   :  { %6636 = vadd.xlane.f32.xlu1 %v18123_v2  ;;  %22485 = vst [vmem:[#allocation299_spill] sm:$0xff] %v18349_v59 }
 0x387   :  { %6634 = vadd.xlane.f32.xlu0 %v18092_v43  ;;  %v18351_v31 = vpop.xlane.xlu1 %6496 }
 0x388   :  { %22486 = vst [vmem:[#allocation167_spill] sm:$0xff] %v18351_v31 }
 0x38a   :  { %6640 = vadd.xlane.f32.xlu1 %v18161_v48 }
 0x38b   :  { %6638 = vadd.xlane.f32.xlu0 %v18127_v56  ;;  %v18357_v61 = vpop.xlane.xlu1 %6500 }
 0x38c   :  { %v18355_v25 = vpop.xlane.xlu0 %6498  ;;  %22488 = vst [vmem:[#allocation298_spill] sm:$0xff] %v18357_v61 }
 0x38d   :  { %22487 = vst [vmem:[#allocation166_spill] sm:$0xff] %v18355_v25  ;;  %v22497_v25 = vld [vmem:[#allocation38_spill] sm:$0xff] }
 0x38f   :  { %6642 = vadd.xlane.f32.xlu0 %v18168_v60  ;;  %v18362_v39 = vpop.xlane.xlu1 %6504 }
 0x390   :  { %v18360_v36 = vpop.xlane.xlu0 %6502  ;;  %22490 = vst [vmem:[#allocation248_spill] sm:$0xff] %v18362_v39 }
 0x391   :  { %22489 = vst [vmem:[#allocation20_spill] sm:$0xff] %v18360_v36 }
 0x393   :  { %v18366_v2 = vpop.xlane.xlu1 %6508 }
 0x394   :  { %v18364_v43 = vpop.xlane.xlu0 %6506  ;;  %22492 = vst [vmem:[#allocation164_spill] sm:$0xff] %v18366_v2 }
 0x395   :  { %22491 = vst [vmem:[#allocation328_spill] sm:$0xff] %v18364_v43 }
 0x397   :  { %v18370_v35 = vpop.xlane.xlu1 %6512 }
 0x398   :  { %v18368_v59 = vpop.xlane.xlu0 %6510  ;;  %22494 = vst [vmem:[#allocation304_spill] sm:$0xff] %v18370_v35 }
 0x399   :  { %22493 = vst [vmem:[#allocation173_spill] sm:$0xff] %v18368_v59 }
 0x39b   :  { %v18374_v48 = vpop.xlane.xlu1 %6516  ;;  %6905 = vbcast.lane.b32.xlu1 %v22497_v25, 256 }
 0x39c   :  { %v18372_v56 = vpop.xlane.xlu0 %6514  ;;  %22496 = vst [vmem:[#allocation305_spill] sm:$0xff] %v18374_v48  ;;  %v22516_v48 = vld [vmem:[#allocation39_spill] sm:$0xff] }
 0x39d   :  { %22495 = vst [vmem:[#allocation296_spill] sm:$0xff] %v18372_v56 }
 0x39f   :  { %v18379_v60 = vpop.xlane.xlu1 %6520  ;;  %6913 = vbcast.lane.b32.xlu1 %v22497_v25, 272 }
 0x3a0   :  { %v18377_v44 = vpop.xlane.xlu0 %6518  ;;  %22499 = vst [vmem:[#allocation76_spill] sm:$0xff] %v18379_v60 }
 0x3a1   :  { %22498 = vst [vmem:[#allocation306_spill] sm:$0xff] %v18377_v44 }
 0x3a3   :  { %v18384_v43 = vpop.xlane.xlu1 %6524  ;;  %6917 = vbcast.lane.b32.xlu1 %v22497_v25, 280 }
 0x3a4   :  { %v18382_v36 = vpop.xlane.xlu0 %6522  ;;  %22501 = vst [vmem:[#allocation56_spill] sm:$0xff] %v18384_v43 }
 0x3a5   :  { %22500 = vst [vmem:[#allocation254_spill] sm:$0xff] %v18382_v36  ;;  %6909 = vbcast.lane.b32.xlu0 %v22497_v25, 264 }
 0x3a7   :  { %v18390_v56 = vpop.xlane.xlu1 %6528  ;;  %6925 = vbcast.lane.b32.xlu1 %v22497_v25, 296 }
 0x3a8   :  { %v18388_v59 = vpop.xlane.xlu0 %6526  ;;  %22503 = vst [vmem:[#allocation303_spill] sm:$0xff] %v18390_v56 }
 0x3a9   :  { %22502 = vst [vmem:[#allocation16_spill] sm:$0xff] %v18388_v59  ;;  %6921 = vbcast.lane.b32.xlu0 %v22497_v25, 288 }
 0x3ab   :  { %v18396_v60 = vpop.xlane.xlu1 %6532  ;;  %6933 = vbcast.lane.b32.xlu1 %v22497_v25, 312 }
 0x3ac   :  { %v18394_v44 = vpop.xlane.xlu0 %6530  ;;  %22505 = vst [vmem:[#allocation308_spill] sm:$0xff] %v18396_v60 }
 0x3ad   :  { %22504 = vst [vmem:[#allocation178_spill] sm:$0xff] %v18394_v44  ;;  %6929 = vbcast.lane.b32.xlu0 %v22497_v25, 304 }
 0x3af   :  { %v18402_v43 = vpop.xlane.xlu1 %6536  ;;  %6941 = vbcast.lane.b32.xlu1 %v22497_v25, 328 }
 0x3b0   :  { %v18400_v36 = vpop.xlane.xlu0 %6534  ;;  %22507 = vst [vmem:[#allocation145_spill] sm:$0xff] %v18402_v43 }
 0x3b1   :  { %22506 = vst [vmem:[#allocation171_spill] sm:$0xff] %v18400_v36  ;;  %6937 = vbcast.lane.b32.xlu0 %v22497_v25, 320 }
 0x3b3   :  { %v18408_v56 = vpop.xlane.xlu1 %6540  ;;  %6949 = vbcast.lane.b32.xlu1 %v22497_v25, 344 }
 0x3b4   :  { %v18406_v59 = vpop.xlane.xlu0 %6538  ;;  %22509 = vst [vmem:[#allocation309_spill] sm:$0xff] %v18408_v56 }
 0x3b5   :  { %22508 = vst [vmem:[#allocation338_spill] sm:$0xff] %v18406_v59  ;;  %6945 = vbcast.lane.b32.xlu0 %v22497_v25, 336 }
 0x3b7   :  { %v18414_v60 = vpop.xlane.xlu1 %6544  ;;  %6957 = vbcast.lane.b32.xlu1 %v22497_v25, 360 }
 0x3b8   :  { %v18412_v44 = vpop.xlane.xlu0 %6542  ;;  %22511 = vst [vmem:[#allocation307_spill] sm:$0xff] %v18414_v60 }
 0x3b9   :  { %22510 = vst [vmem:[#allocation172_spill] sm:$0xff] %v18412_v44  ;;  %6953 = vbcast.lane.b32.xlu0 %v22497_v25, 352 }
 0x3bb   :  { %v18420_v43 = vpop.xlane.xlu1 %6548  ;;  %6965 = vbcast.lane.b32.xlu1 %v22497_v25, 376 }
 0x3bc   :  { %v18418_v36 = vpop.xlane.xlu0 %6546  ;;  %22513 = vst [vmem:[#allocation35_spill] sm:$0xff] %v18420_v43 }
 0x3bd   :  { %22512 = vst [vmem:[#allocation257_spill] sm:$0xff] %v18418_v36  ;;  %6961 = vbcast.lane.b32.xlu0 %v22497_v25, 368 }
 0x3bf   :  { %v18426_v56 = vpop.xlane.xlu1 %6552  ;;  %6976 = vbcast.lane.b32.xlu1 %v22516_v48, 264 }
 0x3c0   :  { %v18424_v59 = vpop.xlane.xlu0 %6550  ;;  %22515 = vst [vmem:[#allocation311_spill] sm:$0xff] %v18426_v56  ;;  %v22533_v56 = vld [vmem:[#allocation41_spill] sm:$0xff] }
 0x3c1   :  { %22514 = vst [vmem:[#allocation315_spill] sm:$0xff] %v18424_v59  ;;  %6972 = vbcast.lane.b32.xlu0 %v22516_v48, 256 }
 0x3c3   :  { %v18432_v60 = vpop.xlane.xlu1 %6556  ;;  %6984 = vbcast.lane.b32.xlu1 %v22516_v48, 280 }
 0x3c4   :  { %v18430_v44 = vpop.xlane.xlu0 %6554  ;;  %22518 = vst [vmem:[#allocation318_spill] sm:$0xff] %v18432_v60 }
 0x3c5   :  { %22517 = vst [vmem:[#allocation60_spill] sm:$0xff] %v18430_v44  ;;  %6980 = vbcast.lane.b32.xlu0 %v22516_v48, 272 }
 0x3c7   :  { %v18438_v43 = vpop.xlane.xlu1 %6560  ;;  %6992 = vbcast.lane.b32.xlu1 %v22516_v48, 296 }
 0x3c8   :  { %v18436_v36 = vpop.xlane.xlu0 %6558  ;;  %22520 = vst [vmem:[#allocation133_spill] sm:$0xff] %v18438_v43 }
 0x3c9   :  { %22519 = vst [vmem:[#allocation179_spill] sm:$0xff] %v18436_v36  ;;  %6988 = vbcast.lane.b32.xlu0 %v22516_v48, 288 }
 0x3cb   :  { %v18444_v59 = vpop.xlane.xlu1 %6564  ;;  %7000 = vbcast.lane.b32.xlu1 %v22516_v48, 312 }
 0x3cc   :  { %v18442_v25 = vpop.xlane.xlu0 %6562  ;;  %22522 = vst [vmem:[#allocation313_spill] sm:$0xff] %v18444_v59 }
 0x3cd   :  { %22521 = vst [vmem:[#allocation268_spill] sm:$0xff] %v18442_v25  ;;  %6996 = vbcast.lane.b32.xlu0 %v22516_v48, 304 }
 0x3cf   :  { %v18450_v60 = vpop.xlane.xlu1 %6568  ;;  %7008 = vbcast.lane.b32.xlu1 %v22516_v48, 328 }
 0x3d0   :  { %v18448_v44 = vpop.xlane.xlu0 %6566  ;;  %22524 = vst [vmem:[#allocation317_spill] sm:$0xff] %v18450_v60 }
 0x3d1   :  { %22523 = vst [vmem:[#allocation177_spill] sm:$0xff] %v18448_v44  ;;  %7004 = vbcast.lane.b32.xlu0 %v22516_v48, 320 }
 0x3d3   :  { %v18456_v43 = vpop.xlane.xlu1 %6572  ;;  %7016 = vbcast.lane.b32.xlu1 %v22516_v48, 344 }
 0x3d4   :  { %v18454_v36 = vpop.xlane.xlu0 %6570  ;;  %22526 = vst [vmem:[#allocation33_spill] sm:$0xff] %v18456_v43 }
 0x3d5   :  { %22525 = vst [vmem:[#allocation310_spill] sm:$0xff] %v18454_v36  ;;  %7012 = vbcast.lane.b32.xlu0 %v22516_v48, 336 }
 0x3d7   :  { %v18462_v59 = vpop.xlane.xlu1 %6576  ;;  %7024 = vbcast.lane.b32.xlu1 %v22516_v48, 360 }
 0x3d8   :  { %v18460_v25 = vpop.xlane.xlu0 %6574  ;;  %22528 = vst [vmem:[#allocation176_spill] sm:$0xff] %v18462_v59 }
 0x3d9   :  { %22527 = vst [vmem:[#allocation184_spill] sm:$0xff] %v18460_v25  ;;  %7020 = vbcast.lane.b32.xlu0 %v22516_v48, 352 }
 0x3db   :  { %v18468_v60 = vpop.xlane.xlu1 %6580  ;;  %7032 = vbcast.lane.b32.xlu1 %v22516_v48, 376 }
 0x3dc   :  { %v18466_v44 = vpop.xlane.xlu0 %6578  ;;  %22530 = vst [vmem:[#allocation106_spill] sm:$0xff] %v18468_v60 }
 0x3dd   :  { %22529 = vst [vmem:[#allocation64_spill] sm:$0xff] %v18466_v44  ;;  %7028 = vbcast.lane.b32.xlu0 %v22516_v48, 368 }
 0x3df   :  { %v18474_v43 = vpop.xlane.xlu1 %6584  ;;  %7043 = vbcast.lane.b32.xlu1 %v22533_v56, 264 }
 0x3e0   :  { %v18472_v36 = vpop.xlane.xlu0 %6582  ;;  %22532 = vst [vmem:[#allocation322_spill] sm:$0xff] %v18474_v43 }
 0x3e1   :  { %22531 = vst [vmem:[#allocation218_spill] sm:$0xff] %v18472_v36  ;;  %7039 = vbcast.lane.b32.xlu0 %v22533_v56, 256 }
 0x3e3   :  { %v18480_v59 = vpop.xlane.xlu1 %6588  ;;  %7051 = vbcast.lane.b32.xlu1 %v22533_v56, 280 }
 0x3e4   :  { %v18478_v25 = vpop.xlane.xlu0 %6586  ;;  %22535 = vst [vmem:[#allocation66_spill] sm:$0xff] %v18480_v59 }
 0x3e5   :  { %22534 = vst [vmem:[#allocation107_spill] sm:$0xff] %v18478_v25  ;;  %7047 = vbcast.lane.b32.xlu0 %v22533_v56, 272 }
 0x3e7   :  { %v18486_v60 = vpop.xlane.xlu1 %6592  ;;  %7059 = vbcast.lane.b32.xlu1 %v22533_v56, 296 }
 0x3e8   :  { %v18484_v44 = vpop.xlane.xlu0 %6590  ;;  %22537 = vst [vmem:[#allocation183_spill] sm:$0xff] %v18486_v60 }
 0x3e9   :  { %22536 = vst [vmem:[#allocation222_spill] sm:$0xff] %v18484_v44  ;;  %7055 = vbcast.lane.b32.xlu0 %v22533_v56, 288 }
 0x3eb   :  { %v18492_v43 = vpop.xlane.xlu1 %6596  ;;  %7067 = vbcast.lane.b32.xlu1 %v22533_v56, 312 }
 0x3ec   :  { %v18490_v48 = vpop.xlane.xlu0 %6594  ;;  %22539 = vst [vmem:[#allocation319_spill] sm:$0xff] %v18492_v43 }
 0x3ed   :  { %22538 = vst [vmem:[#allocation325_spill] sm:$0xff] %v18490_v48  ;;  %7063 = vbcast.lane.b32.xlu0 %v22533_v56, 304 }
 0x3ef   :  { %v18498_v25 = vpop.xlane.xlu1 %6600  ;;  %7075 = vbcast.lane.b32.xlu1 %v22533_v56, 328 }
 0x3f0   :  { %v18496_v59 = vpop.xlane.xlu0 %6598  ;;  %22541 = vst [vmem:[#allocation186_spill] sm:$0xff] %v18498_v25 }
 0x3f1   :  { %22540 = vst [vmem:[#allocation228_spill] sm:$0xff] %v18496_v59  ;;  %7071 = vbcast.lane.b32.xlu0 %v22533_v56, 320 }
 0x3f3   :  { %v18504_v60 = vpop.xlane.xlu1 %6604  ;;  %7083 = vbcast.lane.b32.xlu1 %v22533_v56, 344 }
 0x3f4   :  { %v18502_v44 = vpop.xlane.xlu0 %6602  ;;  %22543 = vst [vmem:[#allocation70_spill] sm:$0xff] %v18504_v60  ;;  %v22549_v60 = vld [vmem:[#allocation42_spill] sm:$0xff] }
 0x3f5   :  { %22542 = vst [vmem:[#allocation324_spill] sm:$0xff] %v18502_v44  ;;  %7079 = vbcast.lane.b32.xlu0 %v22533_v56, 336 }
 0x3f7   :  { %v18510_v43 = vpop.xlane.xlu1 %6608  ;;  %7091 = vbcast.lane.b32.xlu1 %v22533_v56, 360 }
 0x3f8   :  { %v18508_v48 = vpop.xlane.xlu0 %6606  ;;  %22545 = vst [vmem:[#allocation227_spill] sm:$0xff] %v18510_v43 }
 0x3f9   :  { %22544 = vst [vmem:[#allocation331_spill] sm:$0xff] %v18508_v48  ;;  %7087 = vbcast.lane.b32.xlu0 %v22533_v56, 352 }
 0x3fb   :  { %7099 = vbcast.lane.b32.xlu1 %v22533_v56, 376  ;;  %v18517_v25 = vpop.xlane.xlu1 %6612 }
 0x3fc   :  { %v18514_v59 = vpop.xlane.xlu0 %6610  ;;  %22547 = vst [vmem:[#allocation114_spill] sm:$0xff] %v18517_v25 }
 0x3fd   :  { %22546 = vst [vmem:[#allocation330_spill] sm:$0xff] %v18514_v59  ;;  %7095 = vbcast.lane.b32.xlu0 %v22533_v56, 368 }
 0x3ff   :  { %7110 = vbcast.lane.b32.xlu1 %v22549_v60, 264  ;;  %v18523_v36 = vpop.xlane.xlu1 %6616 }
 0x400   :  { %v18520_v44 = vpop.xlane.xlu0 %6614  ;;  %22550 = vst [vmem:[#allocation335_spill] sm:$0xff] %v18523_v36 }
 0x401   :  { %22548 = vst [vmem:[#allocation329_spill] sm:$0xff] %v18520_v44  ;;  %7106 = vbcast.lane.b32.xlu0 %v22549_v60, 256 }
 0x403   :  { %7118 = vbcast.lane.b32.xlu1 %v22549_v60, 280  ;;  %v18529_v43 = vpop.xlane.xlu1 %6620 }
 0x404   :  { %v18526_v48 = vpop.xlane.xlu0 %6618  ;;  %22552 = vst [vmem:[#allocation105_spill] sm:$0xff] %v18529_v43 }
 0x405   :  { %22551 = vst [vmem:[#allocation327_spill] sm:$0xff] %v18526_v48  ;;  %7114 = vbcast.lane.b32.xlu0 %v22549_v60, 272 }
 0x407   :  { %7126 = vbcast.lane.b32.xlu1 %v22549_v60, 296  ;;  %v18535_v56 = vpop.xlane.xlu1 %6624 }
 0x408   :  { %v18532_v59 = vpop.xlane.xlu0 %6622  ;;  %22554 = vst [vmem:[#allocation334_spill] sm:$0xff] %v18535_v56 }
 0x409   :  { %22553 = vst [vmem:[#allocation333_spill] sm:$0xff] %v18532_v59  ;;  %7122 = vbcast.lane.b32.xlu0 %v22549_v60, 288 }
 0x40b   :  { %7134 = vbcast.lane.b32.xlu1 %v22549_v60, 312  ;;  %v18541_v36 = vpop.xlane.xlu1 %6628 }
 0x40c   :  { %v18538_v44 = vpop.xlane.xlu0 %6626  ;;  %22556 = vst [vmem:[#allocation50_spill] sm:$0xff] %v18541_v36 }
 0x40d   :  { %22555 = vst [vmem:[#allocation73_spill] sm:$0xff] %v18538_v44  ;;  %7130 = vbcast.lane.b32.xlu0 %v22549_v60, 304 }
 0x40f   :  { %7142 = vbcast.lane.b32.xlu1 %v22549_v60, 328  ;;  %v18547_v43 = vpop.xlane.xlu1 %6632 }
 0x410   :  { %v18544_v48 = vpop.xlane.xlu0 %6630  ;;  %22558 = vst [vmem:[#allocation339_spill] sm:$0xff] %v18547_v43 }
 0x411   :  { %22557 = vst [vmem:[#allocation99_spill] sm:$0xff] %v18544_v48  ;;  %7138 = vbcast.lane.b32.xlu0 %v22549_v60, 320 }
 0x413   :  { %7150 = vbcast.lane.b32.xlu1 %v22549_v60, 344  ;;  %v18553_v56 = vpop.xlane.xlu1 %6636 }
 0x414   :  { %v18550_v59 = vpop.xlane.xlu0 %6634  ;;  %22560 = vst [vmem:[#allocation112_spill] sm:$0xff] %v18553_v56  ;;  %v22564_v56 = vld [vmem:[#allocation43_spill] sm:$0xff] }
 0x415   :  { %22559 = vst [vmem:[#allocation68_spill] sm:$0xff] %v18550_v59  ;;  %7146 = vbcast.lane.b32.xlu0 %v22549_v60, 336 }
 0x417   :  { %7158 = vbcast.lane.b32.xlu1 %v22549_v60, 360  ;;  %v18559_v36 = vpop.xlane.xlu1 %6640 }
 0x418   :  { %v18556_v44 = vpop.xlane.xlu0 %6638  ;;  %22562 = vst [vmem:[#allocation47_spill] sm:$0xff] %v18559_v36 }
 0x419   :  { %22561 = vst [vmem:[#allocation115_spill] sm:$0xff] %v18556_v44  ;;  %7154 = vbcast.lane.b32.xlu0 %v22549_v60, 352 }
 0x41b   :  { %7166 = vbcast.lane.b32.xlu1 %v22549_v60, 376  ;;  %v18565_v43 = vpop.permute.xlu1 %6905 }
 0x41c   :  { %v18562_v48 = vpop.xlane.xlu0 %6642 }
 0x41d   :  { %22563 = vst [vmem:[#allocation345_spill] sm:$0xff] %v18562_v48  ;;  %7162 = vbcast.lane.b32.xlu0 %v22549_v60, 368 }
 0x41f   :  { %7177 = vbcast.lane.b32.xlu1 %v22564_v56, 264  ;;  %v18571_v25 = vpop.permute.xlu1 %6913 }
 0x420   :  { %v18568_v59 = vpop.permute.xlu0 %6909 }
 0x421   :  { %7173 = vbcast.lane.b32.xlu0 %v22564_v56, 256 }
 0x423   :  { %7185 = vbcast.lane.b32.xlu1 %v22564_v56, 280  ;;  %v18577_v36 = vpop.permute.xlu1 %6917 }
 0x424   :  { %v18574_v44 = vpop.permute.xlu0 %6921 }
 0x425   :  { %7181 = vbcast.lane.b32.xlu0 %v22564_v56, 272 }
 0x427   :  { %7193 = vbcast.lane.b32.xlu1 %v22564_v56, 296  ;;  %v18583_v60 = vpop.permute.xlu1 %6925 }
 0x428   :  { %v18580_v48 = vpop.permute.xlu0 %6929 }
 0x429   :  { %7189 = vbcast.lane.b32.xlu0 %v22564_v56, 288 }
 0x42b   :  { %7201 = vbcast.lane.b32.xlu1 %v22564_v56, 312  ;;  %v18589_v2 = vpop.permute.xlu1 %6933 }
 0x42c   :  { %v18586_v35 = vpop.permute.xlu0 %6937 }
 0x42d   :  { %7197 = vbcast.lane.b32.xlu0 %v22564_v56, 304 }
 0x42f   :  { %7209 = vbcast.lane.b32.xlu1 %v22564_v56, 328  ;;  %v18595_v61 = vpop.permute.xlu1 %6941 }
 0x430   :  { %v18592_v39 = vpop.permute.xlu0 %6945 }
 0x431   :  { %7205 = vbcast.lane.b32.xlu0 %v22564_v56, 320 }
 0x433   :  { %7217 = vbcast.lane.b32.xlu1 %v22564_v56, 344  ;;  %v18601_v31 = vpop.permute.xlu1 %6949 }
 0x434   :  { %v18598_v26 = vpop.permute.xlu0 %6953  ;;  %22565 = vst [vmem:[#allocation341_spill] sm:$0xff] %v18601_v31 }
 0x435   :  { %7213 = vbcast.lane.b32.xlu0 %v22564_v56, 336 }
 0x437   :  { %7225 = vbcast.lane.b32.xlu1 %v22564_v56, 360  ;;  %v18607_v16 = vpop.permute.xlu1 %6957 }
 0x438   :  { %v18604_v42 = vpop.permute.xlu0 %6961  ;;  %22566 = vst [vmem:[#allocation110_spill] sm:$0xff] %v18607_v16 }
 0x439   :  { %7221 = vbcast.lane.b32.xlu0 %v22564_v56, 352 }
 0x43b   :  { %7233 = vbcast.lane.b32.xlu1 %v22564_v56, 376  ;;  %v18613_v12 = vpop.permute.xlu1 %6965 }
 0x43c   :  { %v18610_v3 = vpop.permute.xlu0 %6972  ;;  %22567 = vst [vmem:[#allocation196_spill] sm:$0xff] %v18613_v12  ;;  %v22640_v12 = vld [vmem:[#allocation190_spill] sm:$0xff] }
 0x43d   :  { %7229 = vbcast.lane.b32.xlu0 %v22564_v56, 368  ;;  %vm22641_vm4 = vcmp.eq.f32.partialorder %v22640_v12, 1.0 }
 0x43f   :  { %7244 = vbcast.lane.b32.xlu1 %v22568_v55, 264  ;;  %v18619_v62 = vpop.permute.xlu1 %6976 }
 0x440   :  { %v18616_v30 = vpop.permute.xlu0 %6980  ;;  %22569 = vst [vmem:[#allocation22_spill] sm:$0xff] %v18619_v62 }
 0x441   :  { %7240 = vbcast.lane.b32.xlu0 %v22568_v55, 256 }
 0x443   :  { %7252 = vbcast.lane.b32.xlu1 %v22568_v55, 280  ;;  %v18625_v40 = vpop.permute.xlu1 %6984 }
 0x444   :  { %v18622_v23 = vpop.permute.xlu0 %6988  ;;  %22570 = vst [vmem:[#allocation189_spill] sm:$0xff] %v18625_v40 }
 0x445   :  { %7248 = vbcast.lane.b32.xlu0 %v22568_v55, 272 }
 0x447   :  { %7260 = vbcast.lane.b32.xlu1 %v22568_v55, 296  ;;  %v18631_v56 = vpop.permute.xlu1 %6992 }
 0x448   :  { %v18628_v29 = vpop.permute.xlu0 %6996  ;;  %22572 = vst [vmem:[#allocation170_spill] sm:$0xff] %v18631_v56 }
 0x449   :  { %22571 = vst [vmem:[#allocation312_spill] sm:$0xff] %v18628_v29  ;;  %7256 = vbcast.lane.b32.xlu0 %v22568_v55, 288  ;;  %v22874_v29 = vld [vmem:[#allocation205_spill] sm:$0xff] }
 0x44b   :  { %7268 = vbcast.lane.b32.xlu1 %v22568_v55, 312  ;;  %v18637_v54 = vpop.permute.xlu1 %7000 }
 0x44c   :  { %v18634_v38 = vpop.permute.xlu0 %7004  ;;  %22574 = vst [vmem:[#allocation131_spill] sm:$0xff] %v18637_v54 }
 0x44d   :  { %22573 = vst [vmem:[#allocation119_spill] sm:$0xff] %v18634_v38  ;;  %7264 = vbcast.lane.b32.xlu0 %v22568_v55, 304 }
 0x44f   :  { %7276 = vbcast.lane.b32.xlu1 %v22568_v55, 328  ;;  %v18643_v7 = vpop.permute.xlu1 %7008 }
 0x450   :  { %v18640_v49 = vpop.permute.xlu0 %7012  ;;  %22576 = vst [vmem:[#allocation29_spill] sm:$0xff] %v18643_v7 }
 0x451   :  { %22575 = vst [vmem:[#allocation354_spill] sm:$0xff] %v18640_v49  ;;  %7272 = vbcast.lane.b32.xlu0 %v22568_v55, 320 }
 0x453   :  { %7284 = vbcast.lane.b32.xlu1 %v22568_v55, 344  ;;  %v18649_v47 = vpop.permute.xlu1 %7016 }
 0x454   :  { %v18646_v11 = vpop.permute.xlu0 %7020  ;;  %22578 = vst [vmem:[#allocation143_spill] sm:$0xff] %v18649_v47  ;;  %v22584_v47 = vld [vmem:[#allocation45_spill] sm:$0xff] }
 0x455   :  { %22577 = vst [vmem:[#allocation355_spill] sm:$0xff] %v18646_v11  ;;  %7280 = vbcast.lane.b32.xlu0 %v22568_v55, 336 }
 0x457   :  { %7292 = vbcast.lane.b32.xlu1 %v22568_v55, 360  ;;  %v18655_v54 = vpop.permute.xlu1 %7024 }
 0x458   :  { %v18652_v6 = vpop.permute.xlu0 %7028  ;;  %22580 = vst [vmem:[#allocation146_spill] sm:$0xff] %v18655_v54 }
 0x459   :  { %22579 = vst [vmem:[#allocation129_spill] sm:$0xff] %v18652_v6  ;;  %7288 = vbcast.lane.b32.xlu0 %v22568_v55, 352 }
 0x45b   :  { %7300 = vbcast.lane.b32.xlu1 %v22568_v55, 376  ;;  %v18661_v7 = vpop.permute.xlu1 %7032 }
 0x45c   :  { %v18658_v17 = vpop.permute.xlu0 %7039  ;;  %22582 = vst [vmem:[#allocation347_spill] sm:$0xff] %v18661_v7 }
 0x45d   :  { %22581 = vst [vmem:[#allocation163_spill] sm:$0xff] %v18658_v17  ;;  %7296 = vbcast.lane.b32.xlu0 %v22568_v55, 368 }
 0x45f   :  { %7311 = vbcast.lane.b32.xlu1 %v22584_v47, 264  ;;  %v18667_v40 = vpop.permute.xlu1 %7043 }
 0x460   :  { %v18664_v56 = vpop.permute.xlu0 %7047  ;;  %22585 = vst [vmem:[#allocation241_spill] sm:$0xff] %v18667_v40 }
 0x461   :  { %22583 = vst [vmem:[#allocation249_spill] sm:$0xff] %v18664_v56  ;;  %7307 = vbcast.lane.b32.xlu0 %v22584_v47, 256 }
 0x463   :  { %7319 = vbcast.lane.b32.xlu1 %v22584_v47, 280  ;;  %v18673_v54 = vpop.permute.xlu1 %7051 }
 0x464   :  { %v18670_v6 = vpop.permute.xlu0 %7055  ;;  %22587 = vst [vmem:[#allocation175_spill] sm:$0xff] %v18673_v54 }
 0x465   :  { %22586 = vst [vmem:[#allocation181_spill] sm:$0xff] %v18670_v6  ;;  %7315 = vbcast.lane.b32.xlu0 %v22584_v47, 272 }
 0x467   :  { %7327 = vbcast.lane.b32.xlu1 %v22584_v47, 296  ;;  %v18679_v55 = vpop.permute.xlu1 %7059 }
 0x468   :  { %v18676_v17 = vpop.permute.xlu0 %7063  ;;  %22589 = vst [vmem:[#allocation182_spill] sm:$0xff] %v18679_v55 }
 0x469   :  { %22588 = vst [vmem:[#allocation255_spill] sm:$0xff] %v18676_v17  ;;  %7323 = vbcast.lane.b32.xlu0 %v22584_v47, 288 }
 0x46b   :  { %7335 = vbcast.lane.b32.xlu1 %v22584_v47, 312  ;;  %v18685_v40 = vpop.permute.xlu1 %7067 }
 0x46c   :  { %v18682_v7 = vpop.permute.xlu0 %7071  ;;  %22591 = vst [vmem:[#allocation253_spill] sm:$0xff] %v18685_v40 }
 0x46d   :  { %22590 = vst [vmem:[#allocation13_spill] sm:$0xff] %v18682_v7  ;;  %7331 = vbcast.lane.b32.xlu0 %v22584_v47, 304 }
 0x46f   :  { %7343 = vbcast.lane.b32.xlu1 %v22584_v47, 328  ;;  %v18691_v54 = vpop.permute.xlu1 %7075 }
 0x470   :  { %v18688_v6 = vpop.permute.xlu0 %7079  ;;  %22593 = vst [vmem:[#allocation203_spill] sm:$0xff] %v18691_v54 }
 0x471   :  { %22592 = vst [vmem:[#allocation152_spill] sm:$0xff] %v18688_v6  ;;  %7339 = vbcast.lane.b32.xlu0 %v22584_v47, 320 }
 0x473   :  { %7351 = vbcast.lane.b32.xlu1 %v22584_v47, 344  ;;  %v18697_v55 = vpop.permute.xlu1 %7083 }
 0x474   :  { %v18694_v17 = vpop.permute.xlu0 %7087  ;;  %22595 = vst [vmem:[#allocation260_spill] sm:$0xff] %v18697_v55  ;;  %v22601_v55 = vld [vmem:[#allocation46_spill] sm:$0xff] }
 0x475   :  { %22594 = vst [vmem:[#allocation212_spill] sm:$0xff] %v18694_v17  ;;  %7347 = vbcast.lane.b32.xlu0 %v22584_v47, 336 }
 0x477   :  { %7359 = vbcast.lane.b32.xlu1 %v22584_v47, 360  ;;  %v18703_v40 = vpop.permute.xlu1 %7091 }
 0x478   :  { %v18700_v7 = vpop.permute.xlu0 %7095  ;;  %22597 = vst [vmem:[#allocation269_spill] sm:$0xff] %v18703_v40 }
 0x479   :  { %22596 = vst [vmem:[#allocation150_spill] sm:$0xff] %v18700_v7  ;;  %7355 = vbcast.lane.b32.xlu0 %v22584_v47, 352 }
 0x47b   :  { %7367 = vbcast.lane.b32.xlu1 %v22584_v47, 376  ;;  %v18709_v54 = vpop.permute.xlu1 %7099 }
 0x47c   :  { %v18706_v6 = vpop.permute.xlu0 %7106  ;;  %22599 = vst [vmem:[#allocation223_spill] sm:$0xff] %v18709_v54 }
 0x47d   :  { %22598 = vst [vmem:[#allocation83_spill] sm:$0xff] %v18706_v6  ;;  %7363 = vbcast.lane.b32.xlu0 %v22584_v47, 368 }
 0x47f   :  { %7378 = vbcast.lane.b32.xlu1 %v22601_v55, 264  ;;  %v18715_v56 = vpop.permute.xlu1 %7110 }
 0x480   :  { %v18712_v17 = vpop.permute.xlu0 %7114  ;;  %22602 = vst [vmem:[#allocation273_spill] sm:$0xff] %v18715_v56 }
 0x481   :  { %22600 = vst [vmem:[#allocation58_spill] sm:$0xff] %v18712_v17  ;;  %7374 = vbcast.lane.b32.xlu0 %v22601_v55, 256 }
 0x483   :  { %7386 = vbcast.lane.b32.xlu1 %v22601_v55, 280  ;;  %v18721_v40 = vpop.permute.xlu1 %7118 }
 0x484   :  { %v18718_v7 = vpop.permute.xlu0 %7122  ;;  %22604 = vst [vmem:[#allocation136_spill] sm:$0xff] %v18721_v40 }
 0x485   :  { %22603 = vst [vmem:[#allocation117_spill] sm:$0xff] %v18718_v7  ;;  %7382 = vbcast.lane.b32.xlu0 %v22601_v55, 272 }
 0x487   :  { %7394 = vbcast.lane.b32.xlu1 %v22601_v55, 296  ;;  %v18727_v47 = vpop.permute.xlu1 %7126 }
 0x488   :  { %v18724_v6 = vpop.permute.xlu0 %7130  ;;  %22606 = vst [vmem:[#allocation267_spill] sm:$0xff] %v18727_v47 }
 0x489   :  { %22605 = vst [vmem:[#allocation201_spill] sm:$0xff] %v18724_v6  ;;  %7390 = vbcast.lane.b32.xlu0 %v22601_v55, 288 }
 0x48b   :  { %7402 = vbcast.lane.b32.xlu1 %v22601_v55, 312  ;;  %v18733_v56 = vpop.permute.xlu1 %7134 }
 0x48c   :  { %v18730_v54 = vpop.permute.xlu0 %7138  ;;  %22608 = vst [vmem:[#allocation321_spill] sm:$0xff] %v18733_v56 }
 0x48d   :  { %22607 = vst [vmem:[#allocation137_spill] sm:$0xff] %v18730_v54  ;;  %7398 = vbcast.lane.b32.xlu0 %v22601_v55, 304 }
 0x48f   :  { %7410 = vbcast.lane.b32.xlu1 %v22601_v55, 328  ;;  %v18739_v40 = vpop.permute.xlu1 %7142 }
 0x490   :  { %v18736_v7 = vpop.permute.xlu0 %7146  ;;  %22610 = vst [vmem:[#allocation23_spill] sm:$0xff] %v18739_v40 }
 0x491   :  { %22609 = vst [vmem:[#allocation266_spill] sm:$0xff] %v18736_v7  ;;  %7406 = vbcast.lane.b32.xlu0 %v22601_v55, 320 }
 0x493   :  { %7418 = vbcast.lane.b32.xlu1 %v22601_v55, 344  ;;  %v18745_v47 = vpop.permute.xlu1 %7150 }
 0x494   :  { %v18742_v6 = vpop.permute.xlu0 %7154  ;;  %22612 = vst [vmem:[#allocation123_spill] sm:$0xff] %v18745_v47 }
 0x495   :  { %22611 = vst [vmem:[#allocation74_spill] sm:$0xff] %v18742_v6  ;;  %7414 = vbcast.lane.b32.xlu0 %v22601_v55, 336 }
 0x497   :  { %7426 = vbcast.lane.b32.xlu1 %v22601_v55, 360  ;;  %v18751_v56 = vpop.permute.xlu1 %7158 }
 0x498   :  { %v18748_v54 = vpop.permute.xlu0 %7162  ;;  %22614 = vst [vmem:[#allocation204_spill] sm:$0xff] %v18751_v56 }
 0x499   :  { %22613 = vst [vmem:[#allocation247_spill] sm:$0xff] %v18748_v54  ;;  %7422 = vbcast.lane.b32.xlu0 %v22601_v55, 352 }
 0x49b   :  { %7434 = vbcast.lane.b32.xlu1 %v22601_v55, 376  ;;  %v18757_v40 = vpop.permute.xlu1 %7166 }
 0x49c   :  { %v18754_v7 = vpop.permute.xlu0 %7173  ;;  %22616 = vst [vmem:[#allocation89_spill] sm:$0xff] %v18757_v40 }
 0x49d   :  { %22615 = vst [vmem:[#allocation279_spill] sm:$0xff] %v18754_v7  ;;  %7430 = vbcast.lane.b32.xlu0 %v22601_v55, 368 }
 0x49f   :  { %v18762_v47 = vpop.permute.xlu1 %7177 }
 0x4a0   :  { %v18760_v6 = vpop.permute.xlu0 %7181  ;;  %22618 = vst [vmem:[#allocation19_spill] sm:$0xff] %v18762_v47 }
 0x4a1   :  { %22617 = vst [vmem:[#allocation194_spill] sm:$0xff] %v18760_v6 }
 0x4a3   :  { %v18766_v54 = vpop.permute.xlu1 %7185 }
 0x4a4   :  { %v18764_v17 = vpop.permute.xlu0 %7189  ;;  %22620 = vst [vmem:[#allocation251_spill] sm:$0xff] %v18766_v54  ;;  %v22631_v54 = vld [vmem:[#allocation55_spill] sm:$0xff] }
 0x4a5   :  { %22619 = vst [vmem:[#allocation210_spill] sm:$0xff] %v18764_v17 }
 0x4a7   :  { %v18770_v56 = vpop.permute.xlu1 %7193 }
 0x4a8   :  { %v18768_v11 = vpop.permute.xlu0 %7197  ;;  %22622 = vst [vmem:[#allocation197_spill] sm:$0xff] %v18770_v56 }
 0x4a9   :  { %22621 = vst [vmem:[#allocation141_spill] sm:$0xff] %v18768_v11  ;;  %v22632_v11 = vld [vmem:[#allocation340_spill] sm:$0xff] }
 0x4aa   :  { %vm22633_vm14 = vcmp.eq.f32.partialorder %v22632_v11, 1.0  ;;  %v22644_v11 = vld [vmem:[#allocation65_spill] sm:$0xff] }
 0x4ab   :  { %v18774_v7 = vpop.permute.xlu1 %7201  ;;  %v6132_v56 = vsel %vm22633_vm14, %v22631_v54, 0.0  ;;  %v22645_v54 = vld [vmem:[#allocation342_spill] sm:$0xff] }
 0x4ac   :  { %v18772_v62 = vpop.permute.xlu0 %7205  ;;  %22624 = vst [vmem:[#allocation39_spill] sm:$0xff] %v18774_v7  ;;  %vm22646_vm1 = vcmp.eq.f32.partialorder %v22645_v54, 1.0  ;;  %v22662_v54 = vld [vmem:[#allocation85_spill] sm:$0xff] }
 0x4ad   :  { %22623 = vst [vmem:[#allocation38_spill] sm:$0xff] %v18772_v62 }
 0x4af   :  { %v18778_v40 = vpop.permute.xlu1 %7209 }
 0x4b0   :  { %v18776_v49 = vpop.permute.xlu0 %7213  ;;  %22626 = vst [vmem:[#allocation42_spill] sm:$0xff] %v18778_v40 }
 0x4b1   :  { %22625 = vst [vmem:[#allocation41_spill] sm:$0xff] %v18776_v49  ;;  %v22636_v49 = vld [vmem:[#allocation54_spill] sm:$0xff] }
 0x4b2   :  { %v6134_v40 = vsel %vm22638_vm6, %v22636_v49, 0.0 }
 0x4b3   :  { %v18782_v6 = vpop.permute.xlu1 %7217 }
 0x4b4   :  { %v18780_v55 = vpop.permute.xlu0 %7221  ;;  %22628 = vst [vmem:[#allocation44_spill] sm:$0xff] %v18782_v6 }
 0x4b5   :  { %22627 = vst [vmem:[#allocation43_spill] sm:$0xff] %v18780_v55  ;;  %v22639_v55 = vld [vmem:[#allocation61_spill] sm:$0xff] }
 0x4b6   :  { %v6133_v6 = vsel %vm22641_vm4, %v22639_v55, 0.0  ;;  %v22655_v55 = vld [vmem:[#allocation77_spill] sm:$0xff] }
 0x4b7   :  { %v18786_v17 = vpop.permute.xlu1 %7225 }
 0x4b8   :  { %v18784_v47 = vpop.permute.xlu0 %7229  ;;  %22630 = vst [vmem:[#allocation46_spill] sm:$0xff] %v18786_v17 }
 0x4b9   :  { %22629 = vst [vmem:[#allocation45_spill] sm:$0xff] %v18784_v47 }
 0x4bb   :  { %v18793_v7 = vpop.permute.xlu1 %7233 }
 0x4bc   :  { %8484 = vadd.xlane.f32.xlu0 %v6132_v56  ;;  %v18791_v62 = vpop.permute.xlu0 %7240  ;;  %22635 = vst [vmem:[#allocation340_spill] sm:$0xff] %v18793_v7  ;;  %v6135_v56 = vsel %vm22646_vm1, %v22644_v11, 0.0  ;;  %v22648_v7 = vld [vmem:[#allocation348_spill] sm:$0xff] }
 0x4bd   :  { %22634 = vst [vmem:[#allocation55_spill] sm:$0xff] %v18791_v62  ;;  %v22647_v62 = vld [vmem:[#allocation69_spill] sm:$0xff]  ;;  %vm22649_vm11 = vcmp.eq.f32.partialorder %v22648_v7, 1.0  ;;  %v22659_v7 = vld [vmem:[#allocation80_spill] sm:$0xff] }
 0x4be   :  { %v6136_v38 = vsel %vm22649_vm11, %v22647_v62, 0.0  ;;  %v22660_v62 = vld [vmem:[#allocation67_spill] sm:$0xff] }
 0x4bf   :  { %8486 = vadd.xlane.f32.xlu1 %v6133_v6  ;;  %v18801_v17 = vpop.permute.xlu1 %7244  ;;  %v22653_v6 = vld [vmem:[#allocation195_spill] sm:$0xff]  ;;  %vm22661_vm10 = vcmp.eq.f32.partialorder %v22660_v62, 1.0 }
 0x4c0   :  { %8488 = vadd.xlane.f32.xlu0 %v6134_v40  ;;  %22642 = vst [vmem:[#allocation54_spill] sm:$0xff] %v18801_v17  ;;  %v18803_v47 = vpop.permute.xlu0 %7248  ;;  %v22652_v40 = vld [vmem:[#allocation72_spill] sm:$0xff]  ;;  %vm22654_vm5 = vcmp.eq.f32.partialorder %v22653_v6, 1.0 }
 0x4c1   :  { %22643 = vst [vmem:[#allocation346_spill] sm:$0xff] %v18803_v47  ;;  %v6137_v12 = vsel %vm22654_vm5, %v22652_v40, 0.0  ;;  %v22656_v17 = vld [vmem:[#allocation200_spill] sm:$0xff] }
 0x4c2   :  { %vm22657_vm7 = vcmp.eq.f32.partialorder %v22656_v17, 1.0  ;;  %v22666_v40 = vld [vmem:[#allocation88_spill] sm:$0xff] }
 0x4c3   :  { %8492 = vadd.xlane.f32.xlu1 %v6136_v38  ;;  %v18811_v49 = vpop.permute.xlu1 %7252  ;;  %v6138_v47 = vsel %vm22657_vm7, %v22655_v55, 0.0  ;;  %v6139_v38 = vsel %vm22661_vm10, %v22659_v7, 0.0 }
 0x4c4   :  { %8490 = vadd.xlane.f32.xlu0 %v6135_v56  ;;  %22650 = vst [vmem:[#allocation61_spill] sm:$0xff] %v18811_v49  ;;  %v18813_v33 = vpop.permute.xlu0 %7256  ;;  %v22663_v56 = vld [vmem:[#allocation71_spill] sm:$0xff] }
 0x4c5   :  { %22651 = vst [vmem:[#allocation190_spill] sm:$0xff] %v18813_v33  ;;  %vm22664_vm15 = vcmp.eq.f32.partialorder %v22663_v56, 1.0  ;;  %v22667_v33 = vld [vmem:[#allocation92_spill] sm:$0xff] }
 0x4c6   :  { %v6140_v49 = vsel %vm22664_vm15, %v22662_v54, 0.0  ;;  %vm22668_vm12 = vcmp.eq.f32.partialorder %v22667_v33, 1.0  ;;  %v22674_v56 = vld [vmem:[#allocation96_spill] sm:$0xff]  ;;  %v22675_v54 = vld [vmem:[#allocation351_spill] sm:$0xff] }
 0x4c7   :  { %8496 = vadd.xlane.f32.xlu1 %v6138_v47  ;;  %v18821_v11 = vpop.permute.xlu1 %7260  ;;  %v6141_v17 = vsel %vm22668_vm12, %v22666_v40, 0.0  ;;  %v22670_v47 = vld [vmem:[#allocation208_spill] sm:$0xff]  ;;  %vm22676_vm2 = vcmp.eq.f32.partialorder %v22675_v54, 1.0 }
 0x4c8   :  { %8494 = vadd.xlane.f32.xlu0 %v6137_v12  ;;  %22658 = vst [vmem:[#allocation65_spill] sm:$0xff] %v18821_v11  ;;  %v18829_v6 = vpop.permute.xlu0 %7264  ;;  %v22669_v12 = vld [vmem:[#allocation93_spill] sm:$0xff]  ;;  %vm22671_vm9 = vcmp.eq.f32.partialorder %v22670_v47, 1.0  ;;  %v22678_v11 = vld [vmem:[#allocation102_spill] sm:$0xff]  ;;  %v22681_v40 = vld [vmem:[#allocation104_spill] sm:$0xff] }
 0x4c9   :  { %22665 = vst [vmem:[#allocation342_spill] sm:$0xff] %v18829_v6  ;;  %v6142_v55 = vsel %vm22671_vm9, %v22669_v12, 0.0  ;;  %vm22679_vm0 = vcmp.eq.f32.partialorder %v22678_v11, 1.0  ;;  %v22682_v12 = vld [vmem:[#allocation207_spill] sm:$0xff] }
 0x4ca   :  { %vm22683_vm13 = vcmp.eq.f32.partialorder %v22682_v12, 1.0  ;;  %v22684_v47 = vld [vmem:[#allocation111_spill] sm:$0xff] }
 0x4cb   :  { %8500 = vadd.xlane.f32.xlu1 %v6140_v49  ;;  %v18837_v62 = vpop.permute.xlu1 %7268  ;;  %v6143_v49 = vsel %vm22676_vm2, %v22674_v56, 0.0  ;;  %v22688_v56 = vld [vmem:[#allocation116_spill] sm:$0xff] }
 0x4cc   :  { %8498 = vadd.xlane.f32.xlu0 %v6139_v38  ;;  %22672 = vst [vmem:[#allocation69_spill] sm:$0xff] %v18837_v62  ;;  %v18839_v7 = vpop.permute.xlu0 %7272  ;;  %v22677_v38 = vld [vmem:[#allocation101_spill] sm:$0xff] }
 0x4cd   :  { %22673 = vst [vmem:[#allocation348_spill] sm:$0xff] %v18839_v7  ;;  %v6144_v6 = vsel %vm22679_vm0, %v22677_v38, 0.0  ;;  %v22689_v7 = vld [vmem:[#allocation94_spill] sm:$0xff] }
 0x4ce   :  { %vm22690_vm6 = vcmp.eq.f32.partialorder %v22689_v7, 1.0 }
 0x4cf   :  { %8504 = vadd.xlane.f32.xlu1 %v6142_v55  ;;  %v18847_v33 = vpop.permute.xlu1 %7276  ;;  %v22685_v55 = vld [vmem:[#allocation100_spill] sm:$0xff]  ;;  %v6147_v11 = vsel %vm22690_vm6, %v22688_v56, 0.0  ;;  %v22703_v56 = vld [vmem:[#allocation135_spill] sm:$0xff] }
 0x4d0   :  { %8502 = vadd.xlane.f32.xlu0 %v6141_v17  ;;  %22680 = vst [vmem:[#allocation72_spill] sm:$0xff] %v18847_v33  ;;  %v6145_v17 = vsel %vm22683_vm13, %v22681_v40, 0.0  ;;  %vm22686_vm14 = vcmp.eq.f32.partialorder %v22685_v55, 1.0  ;;  %v18855_v54 = vpop.permute.xlu0 %7280  ;;  %v22696_v55 = vld [vmem:[#allocation125_spill] sm:$0xff]  ;;  %v22700_v33 = vld [vmem:[#allocation118_spill] sm:$0xff] }
 0x4d1   :  { %v6146_v62 = vsel %vm22686_vm14, %v22684_v47, 0.0  ;;  %22687 = vst [vmem:[#allocation195_spill] sm:$0xff] %v18855_v54  ;;  %v22697_v47 = vld [vmem:[#allocation353_spill] sm:$0xff]  ;;  %vm22701_vm11 = vcmp.eq.f32.partialorder %v22700_v33, 1.0 }
 0x4d2   :  { %vm22698_vm1 = vcmp.eq.f32.partialorder %v22697_v47, 1.0 }
 0x4d3   :  { %8508 = vadd.xlane.f32.xlu1 %v6144_v6  ;;  %v22692_v6 = vld [vmem:[#allocation224_spill] sm:$0xff]  ;;  %v18863_v12 = vpop.permute.xlu1 %7284 }
 0x4d4   :  { %8506 = vadd.xlane.f32.xlu0 %v6143_v49  ;;  %v22691_v49 = vld [vmem:[#allocation121_spill] sm:$0xff]  ;;  %vm22693_vm4 = vcmp.eq.f32.partialorder %v22692_v6, 1.0  ;;  %22694 = vst [vmem:[#allocation77_spill] sm:$0xff] %v18863_v12  ;;  %v18865_v40 = vpop.permute.xlu0 %7288  ;;  %v22706_v6 = vld [vmem:[#allocation140_spill] sm:$0xff] }
 0x4d5   :  { %v6148_v38 = vsel %vm22693_vm4, %v22691_v49, 0.0  ;;  %22695 = vst [vmem:[#allocation200_spill] sm:$0xff] %v18865_v40  ;;  %v22704_v49 = vld [vmem:[#allocation27_spill] sm:$0xff]  ;;  %v22711_v40 = vld [vmem:[#allocation120_spill] sm:$0xff] }
 0x4d6   :  { %vm22705_vm5 = vcmp.eq.f32.partialorder %v22704_v49, 1.0  ;;  %vm22712_vm10 = vcmp.eq.f32.partialorder %v22711_v40, 1.0 }
 0x4d7   :  { %8512 = vadd.xlane.f32.xlu1 %v6146_v62  ;;  %v6149_v62 = vsel %vm22698_vm1, %v22696_v55, 0.0  ;;  %v18873_v7 = vpop.permute.xlu1 %7292  ;;  %v22710_v55 = vld [vmem:[#allocation34_spill] sm:$0xff] }
 0x4d8   :  { %8510 = vadd.xlane.f32.xlu0 %v6145_v17  ;;  %v22699_v17 = vld [vmem:[#allocation130_spill] sm:$0xff]  ;;  %22702 = vst [vmem:[#allocation80_spill] sm:$0xff] %v18873_v7  ;;  %v18881_v47 = vpop.permute.xlu0 %7296  ;;  %v6153_v33 = vsel %vm22712_vm10, %v22710_v55, 0.0  ;;  %v22722_v7 = vld [vmem:[#allocation156_spill] sm:$0xff] }
 0x4d9   :  { %v6150_v54 = vsel %vm22701_vm11, %v22699_v17, 0.0  ;;  %22709 = vst [vmem:[#allocation67_spill] sm:$0xff] %v18881_v47  ;;  %vm22723_vm9 = vcmp.eq.f32.partialorder %v22722_v7, 1.0  ;;  %v22725_v55 = vld [vmem:[#allocation162_spill] sm:$0xff] }
 0x4db   :  { %8516 = vadd.xlane.f32.xlu1 %v6148_v38  ;;  %v22707_v38 = vld [vmem:[#allocation30_spill] sm:$0xff]  ;;  %v18889_v49 = vpop.permute.xlu1 %7300 }
 0x4dc   :  { %8514 = vadd.xlane.f32.xlu0 %v6147_v11  ;;  %v6151_v11 = vsel %vm22705_vm5, %v22703_v56, 0.0  ;;  %vm22708_vm7 = vcmp.eq.f32.partialorder %v22707_v38, 1.0  ;;  %22716 = vst [vmem:[#allocation85_spill] sm:$0xff] %v18889_v49  ;;  %v18891_v56 = vpop.permute.xlu0 %7307  ;;  %v22718_v38 = vld [vmem:[#allocation153_spill] sm:$0xff] }
 0x4dd   :  { %v6152_v12 = vsel %vm22708_vm7, %v22706_v6, 0.0  ;;  %22717 = vst [vmem:[#allocation71_spill] sm:$0xff] %v18891_v56  ;;  %v22719_v6 = vld [vmem:[#allocation233_spill] sm:$0xff]  ;;  %v22733_v56 = vld [vmem:[#allocation244_spill] sm:$0xff] }
 0x4de   :  { %vm22720_vm12 = vcmp.eq.f32.partialorder %v22719_v6, 1.0  ;;  %vm22734_vm13 = vcmp.eq.f32.partialorder %v22733_v56, 1.0 }
 0x4df   :  { %8520 = vadd.xlane.f32.xlu1 %v6150_v54  ;;  %v22714_v54 = vld [vmem:[#allocation26_spill] sm:$0xff]  ;;  %v18899_v40 = vpop.permute.xlu1 %7311 }
 0x4e0   :  { %8518 = vadd.xlane.f32.xlu0 %v6149_v62  ;;  %v22713_v62 = vld [vmem:[#allocation147_spill] sm:$0xff]  ;;  %vm22715_vm15 = vcmp.eq.f32.partialorder %v22714_v54, 1.0  ;;  %22724 = vst [vmem:[#allocation88_spill] sm:$0xff] %v18899_v40  ;;  %v22728_v54 = vld [vmem:[#allocation168_spill] sm:$0xff]  ;;  %v18907_v6 = vpop.permute.xlu0 %7315 }
 0x4e1   :  { %v6154_v17 = vsel %vm22715_vm15, %v22713_v62, 0.0  ;;  %v22726_v62 = vld [vmem:[#allocation314_spill] sm:$0xff]  ;;  %22731 = vst [vmem:[#allocation92_spill] sm:$0xff] %v18907_v6 }
 0x4e2   :  { %vm22727_vm2 = vcmp.eq.f32.partialorder %v22726_v62, 1.0  ;;  %v22744_v6 = vld [vmem:[#allocation134_spill] sm:$0xff] }
 0x4e3   :  { %8524 = vadd.xlane.f32.xlu1 %v6152_v12  ;;  %v6155_v12 = vsel %vm22720_vm12, %v22718_v38, 0.0  ;;  %v22732_v38 = vld [vmem:[#allocation174_spill] sm:$0xff]  ;;  %v18915_v62 = vpop.permute.xlu1 %7319  ;;  %vm22745_vm4 = vcmp.eq.f32.partialorder %v22744_v6, 1.0 }
 0x4e4   :  { %8522 = vadd.xlane.f32.xlu0 %v6151_v11  ;;  %v22721_v11 = vld [vmem:[#allocation159_spill] sm:$0xff]  ;;  %v6159_v7 = vsel %vm22734_vm13, %v22732_v38, 0.0  ;;  %22738 = vst [vmem:[#allocation93_spill] sm:$0xff] %v18915_v62  ;;  %v22747_v38 = vld [vmem:[#allocation192_spill] sm:$0xff] }
 0x4e5   :  { %v6156_v47 = vsel %vm22723_vm9, %v22721_v11, 0.0  ;;  %v22755_v62 = vld [vmem:[#allocation191_spill] sm:$0xff] }
 0x4e6   :  { %vm22756_vm5 = vcmp.eq.f32.partialorder %v22755_v62, 1.0 }
 0x4e7   :  { %8528 = vadd.xlane.f32.xlu1 %v6154_v17  ;;  %v22729_v17 = vld [vmem:[#allocation243_spill] sm:$0xff]  ;;  %v18925_v56 = vpop.permute.xlu1 %7327 }
 0x4e8   :  { %8526 = vadd.xlane.f32.xlu0 %v6153_v33  ;;  %v6157_v33 = vsel %vm22727_vm2, %v22725_v55, 0.0  ;;  %vm22730_vm0 = vcmp.eq.f32.partialorder %v22729_v17, 1.0  ;;  %v18917_v55 = vpop.permute.xlu0 %7323  ;;  %v22740_v17 = vld [vmem:[#allocation185_spill] sm:$0xff]  ;;  %22746 = vst [vmem:[#allocation96_spill] sm:$0xff] %v18925_v56  ;;  %v22766_v56 = vld [vmem:[#allocation262_spill] sm:$0xff] }
 0x4e9   :  { %v6158_v49 = vsel %vm22730_vm0, %v22728_v54, 0.0  ;;  %22739 = vst [vmem:[#allocation208_spill] sm:$0xff] %v18917_v55  ;;  %v22741_v54 = vld [vmem:[#allocation242_spill] sm:$0xff]  ;;  %vm22767_vm15 = vcmp.eq.f32.partialorder %v22766_v56, 1.0 }
 0x4ea   :  { %vm22742_vm6 = vcmp.eq.f32.partialorder %v22741_v54, 1.0 }
 0x4eb   :  { %8532 = vadd.xlane.f32.xlu1 %v6156_v47  ;;  %v22736_v47 = vld [vmem:[#allocation31_spill] sm:$0xff] }
 0x4ec   :  { %8530 = vadd.xlane.f32.xlu0 %v6155_v12  ;;  %v22735_v12 = vld [vmem:[#allocation180_spill] sm:$0xff]  ;;  %vm22737_vm14 = vcmp.eq.f32.partialorder %v22736_v47, 1.0  ;;  %v22750_v47 = vld [vmem:[#allocation198_spill] sm:$0xff]  ;;  %v18933_v54 = vpop.permute.xlu0 %7331 }
 0x4ed   :  { %v6160_v11 = vsel %vm22737_vm14, %v22735_v12, 0.0  ;;  %v22748_v12 = vld [vmem:[#allocation49_spill] sm:$0xff]  ;;  %22753 = vst [vmem:[#allocation351_spill] sm:$0xff] %v18933_v54 }
 0x4ee   :  { %vm22749_vm1 = vcmp.eq.f32.partialorder %v22748_v12, 1.0  ;;  %v18941_v12 = vpop.permute.xlu1 %7335 }
 0x4ef   :  { %8536 = vadd.xlane.f32.xlu1 %v6158_v49  ;;  %v6161_v49 = vsel %vm22742_vm6, %v22740_v17, 0.0  ;;  %v22754_v17 = vld [vmem:[#allocation202_spill] sm:$0xff]  ;;  %22760 = vst [vmem:[#allocation101_spill] sm:$0xff] %v18941_v12 }
 0x4f0   :  { %8534 = vadd.xlane.f32.xlu0 %v6157_v33  ;;  %v22743_v33 = vld [vmem:[#allocation188_spill] sm:$0xff]  ;;  %v6165_v6 = vsel %vm22756_vm5, %v22754_v17, 0.0  ;;  %v22769_v17 = vld [vmem:[#allocation221_spill] sm:$0xff] }
 0x4f1   :  { %v6162_v40 = vsel %vm22745_vm4, %v22743_v33, 0.0 }
 0x4f2   :  { %v18951_v62 = vpop.permute.xlu1 %7343 }
 0x4f3   :  { %8540 = vadd.xlane.f32.xlu1 %v6160_v11  ;;  %v22751_v11 = vld [vmem:[#allocation90_spill] sm:$0xff]  ;;  %22768 = vst [vmem:[#allocation104_spill] sm:$0xff] %v18951_v62  ;;  %v22788_v62 = vld [vmem:[#allocation320_spill] sm:$0xff] }
 0x4f4   :  { %8538 = vadd.xlane.f32.xlu0 %v6159_v7  ;;  %v6163_v7 = vsel %vm22749_vm1, %v22747_v38, 0.0  ;;  %vm22752_vm11 = vcmp.eq.f32.partialorder %v22751_v11, 1.0  ;;  %v18943_v38 = vpop.permute.xlu0 %7339  ;;  %v22762_v11 = vld [vmem:[#allocation211_spill] sm:$0xff]  ;;  %vm22789_vm14 = vcmp.eq.f32.partialorder %v22788_v62, 1.0 }
 0x4f5   :  { %v6164_v55 = vsel %vm22752_vm11, %v22750_v47, 0.0  ;;  %22761 = vst [vmem:[#allocation102_spill] sm:$0xff] %v18943_v38  ;;  %v22763_v47 = vld [vmem:[#allocation337_spill] sm:$0xff] }
 0x4f6   :  { %vm22764_vm10 = vcmp.eq.f32.partialorder %v22763_v47, 1.0  ;;  %v22777_v38 = vld [vmem:[#allocation21_spill] sm:$0xff] }
 0x4f7   :  { %8544 = vadd.xlane.f32.xlu1 %v6162_v40  ;;  %v22758_v40 = vld [vmem:[#allocation258_spill] sm:$0xff]  ;;  %vm22778_vm2 = vcmp.eq.f32.partialorder %v22777_v38, 1.0 }
 0x4f8   :  { %8542 = vadd.xlane.f32.xlu0 %v6161_v49  ;;  %v22757_v49 = vld [vmem:[#allocation95_spill] sm:$0xff]  ;;  %vm22759_vm7 = vcmp.eq.f32.partialorder %v22758_v40, 1.0  ;;  %v22772_v40 = vld [vmem:[#allocation226_spill] sm:$0xff]  ;;  %v18959_v47 = vpop.permute.xlu0 %7347 }
 0x4f9   :  { %v6166_v33 = vsel %vm22759_vm7, %v22757_v49, 0.0  ;;  %v22770_v49 = vld [vmem:[#allocation343_spill] sm:$0xff]  ;;  %22775 = vst [vmem:[#allocation207_spill] sm:$0xff] %v18959_v47 }
 0x4fa   :  { %vm22771_vm12 = vcmp.eq.f32.partialorder %v22770_v49, 1.0  ;;  %v18967_v49 = vpop.permute.xlu1 %7351 }
 0x4fb   :  { %8548 = vadd.xlane.f32.xlu1 %v6164_v55  ;;  %v6167_v55 = vsel %vm22764_vm10, %v22762_v11, 0.0  ;;  %v22776_v11 = vld [vmem:[#allocation231_spill] sm:$0xff]  ;;  %22782 = vst [vmem:[#allocation111_spill] sm:$0xff] %v18967_v49 }
 0x4fc   :  { %8546 = vadd.xlane.f32.xlu0 %v6163_v7  ;;  %v22765_v7 = vld [vmem:[#allocation216_spill] sm:$0xff]  ;;  %v6171_v56 = vsel %vm22778_vm2, %v22776_v11, 0.0  ;;  %v22791_v11 = vld [vmem:[#allocation250_spill] sm:$0xff]  ;;  %vm11069_vm2 = vcmask 261312  }
 0x4fd   :  { %v6168_v54 = vsel %vm22767_vm15, %v22765_v7, 0.0 }
 0x4fe   :  { %v18977_v38 = vpop.permute.xlu1 %7359 }
 0x4ff   :  { %8552 = vadd.xlane.f32.xlu1 %v6166_v33  ;;  %v22773_v33 = vld [vmem:[#allocation122_spill] sm:$0xff]  ;;  %22790 = vst [vmem:[#allocation116_spill] sm:$0xff] %v18977_v38 }
 0x500   :  { %8550 = vadd.xlane.f32.xlu0 %v6165_v6  ;;  %v6169_v6 = vsel %vm22771_vm12, %v22769_v17, 0.0  ;;  %vm22774_vm9 = vcmp.eq.f32.partialorder %v22773_v33, 1.0  ;;  %v18969_v17 = vpop.permute.xlu0 %7355  ;;  %v22784_v33 = vld [vmem:[#allocation239_spill] sm:$0xff]  ;;  %v22810_v38 = vld [vmem:[#allocation350_spill] sm:$0xff] }
 0x501   :  { %v6170_v12 = vsel %vm22774_vm9, %v22772_v40, 0.0  ;;  %22783 = vst [vmem:[#allocation100_spill] sm:$0xff] %v18969_v17  ;;  %v22785_v40 = vld [vmem:[#allocation199_spill] sm:$0xff]  ;;  %v22799_v17 = vld [vmem:[#allocation82_spill] sm:$0xff]  ;;  %vm22811_vm7 = vcmp.eq.f32.partialorder %v22810_v38, 1.0 }
 0x502   :  { %vm22786_vm13 = vcmp.eq.f32.partialorder %v22785_v40, 1.0  ;;  %vm22800_vm1 = vcmp.eq.f32.partialorder %v22799_v17, 1.0 }
 0x503   :  { %8556 = vadd.xlane.f32.xlu1 %v6168_v54  ;;  %v22780_v54 = vld [vmem:[#allocation274_spill] sm:$0xff] }
 0x504   :  { %8554 = vadd.xlane.f32.xlu0 %v6167_v55  ;;  %v22779_v55 = vld [vmem:[#allocation235_spill] sm:$0xff]  ;;  %vm22781_vm0 = vcmp.eq.f32.partialorder %v22780_v54, 1.0  ;;  %v22794_v54 = vld [vmem:[#allocation149_spill] sm:$0xff]  ;;  %v18985_v40 = vpop.permute.xlu0 %7363 }
 0x505   :  { %v6172_v7 = vsel %vm22781_vm0, %v22779_v55, 0.0  ;;  %v22792_v55 = vld [vmem:[#allocation206_spill] sm:$0xff]  ;;  %22797 = vst [vmem:[#allocation94_spill] sm:$0xff] %v18985_v40  ;;  %vm11076_vm0 = vcmask 326912  }
 0x506   :  { %vm22793_vm6 = vcmp.eq.f32.partialorder %v22792_v55, 1.0  ;;  %v18993_v55 = vpop.permute.xlu1 %7367 }
 0x507   :  { %8560 = vadd.xlane.f32.xlu1 %v6170_v12  ;;  %v6173_v12 = vsel %vm22786_vm13, %v22784_v33, 0.0  ;;  %v22798_v33 = vld [vmem:[#allocation259_spill] sm:$0xff]  ;;  %22804 = vst [vmem:[#allocation121_spill] sm:$0xff] %v18993_v55  ;;  %vm11083_vm13 = vcmask 392512  }
 0x508   :  { %8558 = vadd.xlane.f32.xlu0 %v6169_v6  ;;  %v22787_v6 = vld [vmem:[#allocation245_spill] sm:$0xff]  ;;  %v6177_v62 = vsel %vm22800_vm1, %v22798_v33, 0.0  ;;  %v22813_v33 = vld [vmem:[#allocation280_spill] sm:$0xff]  ;;  %vm11111_vm1 = vcmask 654912  }
 0x509   :  { %v6174_v47 = vsel %vm22789_vm14, %v22787_v6, 0.0  ;;  %vm11090_vm14 = vcmask 458112  }
 0x50a   :  { %v19003_v17 = vpop.permute.xlu1 %7378 }
 0x50b   :  { %8564 = vadd.xlane.f32.xlu1 %v6172_v7  ;;  %v22795_v7 = vld [vmem:[#allocation86_spill] sm:$0xff]  ;;  %22812 = vst [vmem:[#allocation125_spill] sm:$0xff] %v19003_v17 }
 0x50c   :  { %8562 = vadd.xlane.f32.xlu0 %v6171_v56  ;;  %v6175_v56 = vsel %vm22793_vm6, %v22791_v11, 0.0  ;;  %vm22796_vm4 = vcmp.eq.f32.partialorder %v22795_v7, 1.0  ;;  %v18995_v11 = vpop.permute.xlu0 %7374  ;;  %v22806_v7 = vld [vmem:[#allocation270_spill] sm:$0xff]  ;;  %vm11097_vm6 = vcmask 523712  }
 0x50d   :  { %v6176_v49 = vsel %vm22796_vm4, %v22794_v54, 0.0  ;;  %22805 = vst [vmem:[#allocation224_spill] sm:$0xff] %v18995_v11  ;;  %v22807_v54 = vld [vmem:[#allocation209_spill] sm:$0xff]  ;;  %vm11104_vm4 = vcmask 589312  }
 0x50e   :  { %vm22808_vm5 = vcmp.eq.f32.partialorder %v22807_v54, 1.0  ;;  %v22821_v11 = vld [vmem:[#allocation213_spill] sm:$0xff] }
 0x50f   :  { %8568 = vadd.xlane.f32.xlu1 %v6174_v47  ;;  %v22802_v47 = vld [vmem:[#allocation169_spill] sm:$0xff]  ;;  %vm22822_vm12 = vcmp.eq.f32.partialorder %v22821_v11, 1.0  ;;  %v6187_v11 = vsel %vm5419_vm8, %v18149_v63, 0.0  ;;  %v22842_v63 = vld [vmem:[#allocation91_spill] sm:$0xff]  ;;  %vm11062_vm8 = vcmask 195712  }
 0x510   :  { %8566 = vadd.xlane.f32.xlu0 %v6173_v12  ;;  %v22801_v12 = vld [vmem:[#allocation264_spill] sm:$0xff]  ;;  %vm22803_vm11 = vcmp.eq.f32.partialorder %v22802_v47, 1.0  ;;  %v22816_v47 = vld [vmem:[#allocation154_spill] sm:$0xff]  ;;  %v19011_v54 = vpop.permute.xlu0 %7382 }
 0x511   :  { %v6178_v6 = vsel %vm22803_vm11, %v22801_v12, 0.0  ;;  %v22814_v12 = vld [vmem:[#allocation214_spill] sm:$0xff]  ;;  %22819 = vst [vmem:[#allocation353_spill] sm:$0xff] %v19011_v54  ;;  %vm11118_vm11 = vcmask 720512  }
 0x512   :  { %vm22815_vm10 = vcmp.eq.f32.partialorder %v22814_v12, 1.0  ;;  %v19019_v12 = vpop.permute.xlu1 %7386 }
 0x513   :  { %8572 = vadd.xlane.f32.xlu1 %v6176_v49  ;;  %v6179_v49 = vsel %vm22808_vm5, %v22806_v7, 0.0  ;;  %v22820_v7 = vld [vmem:[#allocation291_spill] sm:$0xff]  ;;  %22825 = vst [vmem:[#allocation130_spill] sm:$0xff] %v19019_v12  ;;  %vm21043_vm5 = vcmask 786112  }
 0x514   :  { %8570 = vadd.xlane.f32.xlu0 %v6175_v56  ;;  %v22809_v56 = vld [vmem:[#allocation275_spill] sm:$0xff]  ;;  %v6183_v38 = vsel %vm22822_vm12, %v22820_v7, 0.0  ;;  %vm11153_vm12 = vcmask 1048512  }
 0x515   :  { %v6180_v40 = vsel %vm22811_vm7, %v22809_v56, 0.0  ;;  %v22832_v7 = vld [vmem:[#allocation59_spill] sm:$0xff]  ;;  %vm21042_vm7 = vcmask 851712  }
 0x516   :  { %v19027_v17 = vpop.permute.xlu1 %7394 }
 0x517   :  { %8576 = vadd.xlane.f32.xlu1 %v6178_v6  ;;  %v22817_v6 = vld [vmem:[#allocation278_spill] sm:$0xff]  ;;  %22831 = vst [vmem:[#allocation135_spill] sm:$0xff] %v19027_v17 }
 0x518   :  { %8574 = vadd.xlane.f32.xlu0 %v6177_v62  ;;  %v6181_v62 = vsel %vm22815_vm10, %v22813_v33, 0.0  ;;  %vm22818_vm15 = vcmp.eq.f32.partialorder %v22817_v6, 1.0  ;;  %v19021_v33 = vpop.permute.xlu0 %7390  ;;  %v22827_v6 = vld [vmem:[#allocation302_spill] sm:$0xff]  ;;  %vm11139_vm10 = vcmask 917312  }
 0x519   :  { %v6182_v55 = vsel %vm22818_vm15, %v22816_v47, 0.0  ;;  %22826 = vst [vmem:[#allocation118_spill] sm:$0xff] %v19021_v33  ;;  %v22828_v47 = vld [vmem:[#allocation108_spill] sm:$0xff]  ;;  %v22862_v17 = vld [vmem:[#allocation238_spill] sm:$0xff]  ;;  %v22868_v33 = vld [vmem:[#allocation75_spill] sm:$0xff]  ;;  %vm11146_vm15 = vcmask 982912  }
 0x51a   :  { %vm22829_vm9 = vcmp.eq.f32.partialorder %v22828_v47, 1.0  ;;  %v22838_v47 = vld [vmem:[#allocation124_spill] sm:$0xff] }
 0x51b   :  { %8580 = vadd.xlane.f32.xlu1 %v6180_v40  ;;  %v22835_v40 = vld [vmem:[#allocation225_spill] sm:$0xff] }
 0x51c   :  { %8578 = vadd.xlane.f32.xlu0 %v6179_v49  ;;  %v22823_v49 = vld [vmem:[#allocation297_spill] sm:$0xff] }
 0x51d   :  { %v6184_v56 = vsel %vm5416_vm3, %v22823_v49, 0.0  ;;  %v22834_v49 = vld [vmem:[#allocation78_spill] sm:$0xff]  ;;  %vm11055_vm3 = vcmask 130112  }
 0x51f   :  { %8584 = vadd.xlane.f32.xlu1 %v6182_v55  ;;  %v6185_v55 = vsel %vm22829_vm9, %v22827_v6, 0.0  ;;  %vm12340_vm9 = vcmask 1041409  }
 0x520   :  { %8582 = vadd.xlane.f32.xlu0 %v6181_v62  ;;  %v22830_v62 = vld [vmem:[#allocation265_spill] sm:$0xff] }
 0x523   :  { %8588 = vadd.xlane.f32.xlu1 %v6184_v56  ;;  %v19037_v56 = vpop.permute.xlu1 %7402 }
 0x524   :  { %8586 = vadd.xlane.f32.xlu0 %v6183_v38  ;;  %v19033_v38 = vpop.permute.xlu0 %7398  ;;  %22836 = vst [vmem:[#allocation140_spill] sm:$0xff] %v19037_v56 }
 0x525   :  { %22833 = vst [vmem:[#allocation27_spill] sm:$0xff] %v19033_v38  ;;  %v22864_v38 = vld [vmem:[#allocation316_spill] sm:$0xff] }
 0x527   :  { %8592 = vadd.xlane.f32.xlu1 %v22830_v62  ;;  %v19043_v62 = vpop.permute.xlu1 %7410 }
 0x528   :  { %8590 = vadd.xlane.f32.xlu0 %v6185_v55  ;;  %v19039_v6 = vpop.permute.xlu0 %7406  ;;  %v22839_v55 = vld [vmem:[#allocation87_spill] sm:$0xff]  ;;  %22840 = vst [vmem:[#allocation34_spill] sm:$0xff] %v19043_v62  ;;  %v22851_v62 = vld [vmem:[#allocation132_spill] sm:$0xff] }
 0x529   :  { %22837 = vst [vmem:[#allocation30_spill] sm:$0xff] %v19039_v6  ;;  %v22848_v6 = vld [vmem:[#allocation126_spill] sm:$0xff] }
 0x52b   :  { %8596 = vadd.xlane.f32.xlu1 %v22832_v7  ;;  %v22844_v7 = vld [vmem:[#allocation37_spill] sm:$0xff] }
 0x52c   :  { %8594 = vadd.xlane.f32.xlu0 %v6187_v11  ;;  %v19047_v11 = vpop.permute.xlu0 %7414 }
 0x52d   :  { %22843 = vst [vmem:[#allocation120_spill] sm:$0xff] %v19047_v11  ;;  %v22854_v11 = vld [vmem:[#allocation332_spill] sm:$0xff] }
 0x52f   :  { %8600 = vadd.xlane.f32.xlu1 %v22835_v40  ;;  %v19051_v40 = vpop.permute.xlu1 %7418 }
 0x530   :  { %8598 = vadd.xlane.f32.xlu0 %v22834_v49  ;;  %v22845_v49 = vld [vmem:[#allocation62_spill] sm:$0xff]  ;;  %22846 = vst [vmem:[#allocation147_spill] sm:$0xff] %v19051_v40  ;;  %v19053_v56 = vpop.permute.xlu0 %7422 }
 0x531   :  { %22847 = vst [vmem:[#allocation26_spill] sm:$0xff] %v19053_v56  ;;  %v12759_v56 = vmov 0  }
 0x532   :  { %12414 = vset.pattern.permute.xlu1 %v12759_v56  ;;  %12415 = vset.pattern.permute.xlu0 %v12759_v56 }
 0x533   :  { %8604 = vadd.xlane.f32.xlu1 %v22839_v55  ;;  %v19057_v55 = vpop.permute.xlu1 %7426 }
 0x534   :  { %8602 = vadd.xlane.f32.xlu0 %v22838_v47  ;;  %v22849_v47 = vld [vmem:[#allocation81_spill] sm:$0xff]  ;;  %22850 = vst [vmem:[#allocation153_spill] sm:$0xff] %v19057_v55  ;;  %v22859_v55 = vld [vmem:[#allocation79_spill] sm:$0xff] }
 0x537   :  { %8608 = vadd.xlane.f32.xlu1 %v22842_v63  ;;  %v19061_v63 = vpop.permute.xlu0 %7430 }
 0x538   :  { %8606 = vadd.xlane.f32.xlu0 %v22841_v37  ;;  %v22852_v37 = vld [vmem:[#allocation326_spill] sm:$0xff]  ;;  %22853 = vst [vmem:[#allocation233_spill] sm:$0xff] %v19061_v63  ;;  %v22861_v63 = vld [vmem:[#allocation63_spill] sm:$0xff] }
 0x53b   :  { %8612 = vadd.xlane.f32.xlu1 %v22845_v49  ;;  %v19065_v49 = vpop.permute.xlu1 %7434 }
 0x53c   :  { %8610 = vadd.xlane.f32.xlu0 %v22844_v7  ;;  %v22855_v7 = vld [vmem:[#allocation32_spill] sm:$0xff]  ;;  %22856 = vst [vmem:[#allocation159_spill] sm:$0xff] %v19065_v49 }
 0x53f   :  { %8616 = vadd.xlane.f32.xlu1 %v22849_v47  ;;  %v22858_v47 = vld [vmem:[#allocation232_spill] sm:$0xff] }
 0x540   :  { %8614 = vadd.xlane.f32.xlu0 %v22848_v6  ;;  %v22857_v6 = vld [vmem:[#allocation336_spill] sm:$0xff] }
 0x543   :  { %8620 = vadd.xlane.f32.xlu1 %v22852_v37 }
 0x544   :  { %8618 = vadd.xlane.f32.xlu0 %v22851_v62 }
 0x547   :  { %8624 = vadd.xlane.f32.xlu1 %v22855_v7 }
 0x548   :  { %8622 = vadd.xlane.f32.xlu0 %v22854_v11  ;;  %v22860_v11 = vld [vmem:[#allocation356_spill] sm:$0xff] }
 0x549   :  { %v19067_v40 = vpop.xlane.xlu0 %8484 }
 0x54b   :  { %8628 = vadd.xlane.f32.xlu1 %v22858_v47  ;;  %v22863_v47 = vld [vmem:[#allocation17_spill] sm:$0xff] }
 0x54c   :  { %8626 = vadd.xlane.f32.xlu0 %v22857_v6  ;;  %v19073_v37 = vpop.xlane.xlu1 %8486 }
 0x54d   :  { %v19071_v62 = vpop.xlane.xlu0 %8488 }
 0x54f   :  { %8632 = vadd.xlane.f32.xlu1 %v22860_v11  ;;  %v22867_v11 = vld [vmem:[#allocation349_spill] sm:$0xff] }
 0x550   :  { %8630 = vadd.xlane.f32.xlu0 %v22859_v55  ;;  %v19079_v49 = vpop.xlane.xlu1 %8492 }
 0x551   :  { %v19077_v7 = vpop.xlane.xlu0 %8490 }
 0x553   :  { %8636 = vadd.xlane.f32.xlu1 %v22862_v17  ;;  %v22870_v17 = vld [vmem:[#allocation97_spill] sm:$0xff] }
 0x554   :  { %8634 = vadd.xlane.f32.xlu0 %v22861_v63  ;;  %v19085_v6 = vpop.xlane.xlu1 %8496 }
 0x555   :  { %v19083_v56 = vpop.xlane.xlu0 %8494 }
 0x557   :  { %8640 = vadd.xlane.f32.xlu1 %v22864_v38  ;;  %v22873_v38 = vld [vmem:[#allocation158_spill] sm:$0xff] }
 0x558   :  { %8638 = vadd.xlane.f32.xlu0 %v22863_v47  ;;  %v19091_v55 = vpop.xlane.xlu1 %8500 }
 0x559   :  { %v19089_v12 = vpop.xlane.xlu0 %8498  ;;  %22866 = vst [vmem:[#allocation162_spill] sm:$0xff] %v19091_v55 }
 0x55a   :  { %22865 = vst [vmem:[#allocation156_spill] sm:$0xff] %v19089_v12 }
 0x55b   :  { %8644 = vadd.xlane.f32.xlu1 %v22868_v33  ;;  %v22876_v33 = vld [vmem:[#allocation352_spill] sm:$0xff] }
 0x55c   :  { %8642 = vadd.xlane.f32.xlu0 %v22867_v11  ;;  %v19097_v63 = vpop.xlane.xlu1 %8504 }
 0x55d   :  { %v19095_v54 = vpop.xlane.xlu0 %8502 }
 0x55e   :  { %22869 = vst [vmem:[#allocation314_spill] sm:$0xff] %v19095_v54  ;;  %v22877_v54 = vld [vmem:[#allocation84_spill] sm:$0xff] }
 0x55f   :  { %8648 = vadd.xlane.f32.xlu1 %v22871_v22  ;;  %v22880_v22 = vld [vmem:[#allocation240_spill] sm:$0xff] }
 0x560   :  { %8646 = vadd.xlane.f32.xlu0 %v22870_v17  ;;  %v19103_v47 = vpop.xlane.xlu1 %8508 }
 0x561   :  { %v19101_v16 = vpop.xlane.xlu0 %8506 }
 0x562   :  { %22872 = vst [vmem:[#allocation168_spill] sm:$0xff] %v19101_v16  ;;  %v22881_v16 = vld [vmem:[#allocation142_spill] sm:$0xff] }
 0x563   :  { %8652 = vadd.xlane.f32.xlu1 %v22874_v29  ;;  %v22884_v29 = vld [vmem:[#allocation246_spill] sm:$0xff] }
 0x564   :  { %8650 = vadd.xlane.f32.xlu0 %v22873_v38  ;;  %v19109_v11 = vpop.xlane.xlu1 %8512 }
 0x565   :  { %v19107_v55 = vpop.xlane.xlu0 %8510 }
 0x566   :  { %22875 = vst [vmem:[#allocation243_spill] sm:$0xff] %v19107_v55  ;;  %v22885_v55 = vld [vmem:[#allocation276_spill] sm:$0xff] }
 0x567   :  { %8656 = vadd.xlane.f32.xlu1 %v22877_v54  ;;  %v22888_v54 = vld [vmem:[#allocation271_spill] sm:$0xff] }
 0x568   :  { %8654 = vadd.xlane.f32.xlu0 %v22876_v33  ;;  %v19115_v17 = vpop.xlane.xlu1 %8516 }
 0x569   :  { %v19113_v13 = vpop.xlane.xlu0 %8514  ;;  %22879 = vst [vmem:[#allocation244_spill] sm:$0xff] %v19115_v17 }
 0x56a   :  { %22878 = vst [vmem:[#allocation174_spill] sm:$0xff] %v19113_v13  ;;  %v22889_v13 = vld [vmem:[#allocation98_spill] sm:$0xff] }
 0x56b   :  { %8660 = vadd.xlane.f32.xlu1 %v22881_v16  ;;  %v22892_v16 = vld [vmem:[#allocation234_spill] sm:$0xff] }
 0x56c   :  { %8658 = vadd.xlane.f32.xlu0 %v22880_v22  ;;  %v19121_v38 = vpop.xlane.xlu1 %8520 }
 0x56d   :  { %v19119_v12 = vpop.xlane.xlu0 %8518  ;;  %22883 = vst [vmem:[#allocation31_spill] sm:$0xff] %v19121_v38 }
 0x56e   :  { %22882 = vst [vmem:[#allocation180_spill] sm:$0xff] %v19119_v12  ;;  %v22893_v12 = vld [vmem:[#allocation139_spill] sm:$0xff] }
 0x56f   :  { %8664 = vadd.xlane.f32.xlu1 %v22885_v55  ;;  %v22896_v55 = vld [vmem:[#allocation187_spill] sm:$0xff] }
 0x570   :  { %8662 = vadd.xlane.f32.xlu0 %v22884_v29  ;;  %v19127_v33 = vpop.xlane.xlu1 %8524 }
 0x571   :  { %v19125_v31 = vpop.xlane.xlu0 %8522  ;;  %22887 = vst [vmem:[#allocation242_spill] sm:$0xff] %v19127_v33 }
 0x572   :  { %22886 = vst [vmem:[#allocation185_spill] sm:$0xff] %v19125_v31  ;;  %v22897_v31 = vld [vmem:[#allocation161_spill] sm:$0xff] }
 0x573   :  { %8668 = vadd.xlane.f32.xlu1 %v22889_v13  ;;  %v22900_v13 = vld [vmem:[#allocation157_spill] sm:$0xff] }
 0x574   :  { %8666 = vadd.xlane.f32.xlu0 %v22888_v54  ;;  %v19133_v22 = vpop.xlane.xlu1 %8528 }
 0x575   :  { %v19131_v17 = vpop.xlane.xlu0 %8526  ;;  %22891 = vst [vmem:[#allocation134_spill] sm:$0xff] %v19133_v22 }
 0x576   :  { %22890 = vst [vmem:[#allocation188_spill] sm:$0xff] %v19131_v17  ;;  %v22901_v17 = vld [vmem:[#allocation220_spill] sm:$0xff] }
 0x577   :  { %8672 = vadd.xlane.f32.xlu1 %v22893_v12  ;;  %v22903_v12 = vld [vmem:[#allocation127_spill] sm:$0xff] }
 0x578   :  { %8670 = vadd.xlane.f32.xlu0 %v22892_v16  ;;  %v19139_v29 = vpop.xlane.xlu1 %8532 }
 0x579   :  { %v19137_v38 = vpop.xlane.xlu0 %8530  ;;  %22895 = vst [vmem:[#allocation49_spill] sm:$0xff] %v19139_v29 }
 0x57a   :  { %22894 = vst [vmem:[#allocation192_spill] sm:$0xff] %v19137_v38  ;;  %v22904_v38 = vld [vmem:[#allocation12_spill] sm:$0xff] }
 0x57b   :  { %8676 = vadd.xlane.f32.xlu1 %v22897_v31  ;;  %v22906_v31 = vld [vmem:[#allocation144_spill] sm:$0xff] }
 0x57c   :  { %8674 = vadd.xlane.f32.xlu0 %v22896_v55  ;;  %v19145_v54 = vpop.xlane.xlu1 %8536 }
 0x57d   :  { %v19143_v33 = vpop.xlane.xlu0 %8534  ;;  %22899 = vst [vmem:[#allocation90_spill] sm:$0xff] %v19145_v54 }
 0x57e   :  { %22898 = vst [vmem:[#allocation198_spill] sm:$0xff] %v19143_v33  ;;  %v22907_v33 = vld [vmem:[#allocation40_spill] sm:$0xff] }
 0x57f   :  { %8680 = vadd.xlane.f32.xlu1 %v22901_v17  ;;  %v22910_v17 = vld [vmem:[#allocation285_spill] sm:$0xff] }
 0x580   :  { %8678 = vadd.xlane.f32.xlu0 %v22900_v13  ;;  %v19151_v16 = vpop.xlane.xlu1 %8540 }
 0x581   :  { %v19149_v22 = vpop.xlane.xlu0 %8538 }
 0x582   :  { %22902 = vst [vmem:[#allocation202_spill] sm:$0xff] %v19149_v22 }
 0x583   :  { %8684 = vadd.xlane.f32.xlu1 %v22904_v38  ;;  %v22913_v38 = vld [vmem:[#allocation277_spill] sm:$0xff] }
 0x584   :  { %8682 = vadd.xlane.f32.xlu0 %v22903_v12  ;;  %v19157_v55 = vpop.xlane.xlu1 %8544 }
 0x585   :  { %v19155_v29 = vpop.xlane.xlu0 %8542 }
 0x586   :  { %22905 = vst [vmem:[#allocation191_spill] sm:$0xff] %v19155_v29 }
 0x587   :  { %8688 = vadd.xlane.f32.xlu1 %v22907_v33  ;;  %v22915_v33 = vld [vmem:[#allocation109_spill] sm:$0xff] }
 0x588   :  { %8686 = vadd.xlane.f32.xlu0 %v22906_v31  ;;  %v19163_v13 = vpop.xlane.xlu1 %8548 }
 0x589   :  { %v19161_v54 = vpop.xlane.xlu0 %8546  ;;  %22909 = vst [vmem:[#allocation258_spill] sm:$0xff] %v19163_v13 }
 0x58a   :  { %22908 = vst [vmem:[#allocation95_spill] sm:$0xff] %v19161_v54  ;;  %v22916_v54 = vld [vmem:[#allocation217_spill] sm:$0xff] }
 0x58b   :  { %8692 = vadd.xlane.f32.xlu1 %v17740_v20  ;;  %v22917_v20 = vld [vmem:[#allocation284_spill] sm:$0xff] }
 0x58c   :  { %8690 = vadd.xlane.f32.xlu0 %v22910_v17  ;;  %v19169_v12 = vpop.xlane.xlu1 %8552 }
 0x58d   :  { %v19167_v22 = vpop.xlane.xlu0 %8550  ;;  %22912 = vst [vmem:[#allocation337_spill] sm:$0xff] %v19169_v12 }
 0x58e   :  { %22911 = vst [vmem:[#allocation211_spill] sm:$0xff] %v19167_v22  ;;  %v22918_v22 = vld [vmem:[#allocation283_spill] sm:$0xff] }
 0x58f   :  { %8696 = vadd.xlane.f32.xlu1 %v17790_v53  ;;  %v22919_v53 = vld [vmem:[#allocation261_spill] sm:$0xff] }
 0x590   :  { %8694 = vadd.xlane.f32.xlu0 %v22913_v38  ;;  %v19175_v31 = vpop.xlane.xlu1 %8556 }
 0x591   :  { %v19173_v29 = vpop.xlane.xlu0 %8554 }
 0x592   :  { %22914 = vst [vmem:[#allocation216_spill] sm:$0xff] %v19173_v29 }
 0x593   :  { %8700 = vadd.xlane.f32.xlu1 %v22916_v54 }
 0x594   :  { %8698 = vadd.xlane.f32.xlu0 %v22915_v33  ;;  %v19181_v17 = vpop.xlane.xlu1 %8560 }
 0x595   :  { %v19179_v13 = vpop.xlane.xlu0 %8558 }
 0x597   :  { %8704 = vadd.xlane.f32.xlu1 %v22918_v22 }
 0x598   :  { %8702 = vadd.xlane.f32.xlu0 %v22917_v20  ;;  %v19187_v38 = vpop.xlane.xlu1 %8564 }
 0x599   :  { %v19185_v12 = vpop.xlane.xlu0 %8562 }
 0x59b   :  { %8708 = vadd.xlane.f32.xlu1 %v17923_v52 }
 0x59c   :  { %8706 = vadd.xlane.f32.xlu0 %v22919_v53  ;;  %v19193_v33 = vpop.xlane.xlu1 %8568 }
 0x59d   :  { %v19191_v29 = vpop.xlane.xlu0 %8566 }
 0x59f   :  { %8712 = vadd.xlane.f32.xlu1 %v17956_v57 }
 0x5a0   :  { %8710 = vadd.xlane.f32.xlu0 %v17927_v46  ;;  %v19199_v20 = vpop.xlane.xlu1 %8572 }
 0x5a1   :  { %v19197_v54 = vpop.xlane.xlu0 %8570 }
 0x5a3   :  { %8716 = vadd.xlane.f32.xlu1 %v17995_v0 }
 0x5a4   :  { %8714 = vadd.xlane.f32.xlu0 %v17960_v4  ;;  %v19205_v53 = vpop.xlane.xlu1 %8576 }
 0x5a5   :  { %v19203_v22 = vpop.xlane.xlu0 %8574 }
 0x5a7   :  { %8720 = vadd.xlane.f32.xlu1 %v18028_v14  ;;  %v8228_v14 = vadd.f32 %v18565_v43, %v18189_v27 }
 0x5a8   :  { %8718 = vadd.xlane.f32.xlu0 %v17999_v58  ;;  %v19211_v46 = vpop.xlane.xlu1 %8580 }
 0x5a9   :  { %v19209_v52 = vpop.xlane.xlu0 %8578  ;;  %12418 = vrcp.f32 %v8228_v14  ;;  %v8238_v14 = vadd.f32 %v18592_v39, %v18219_v1 }
 0x5ab   :  { %8724 = vadd.xlane.f32.xlu1 %v18068_v15 }
 0x5ac   :  { %8722 = vadd.xlane.f32.xlu0 %v18032_v9  ;;  %v19217_v4 = vpop.xlane.xlu1 %8584 }
 0x5ad   :  { %v19215_v57 = vpop.xlane.xlu0 %8582 }
 0x5af   :  { %8728 = vadd.xlane.f32.xlu1 %v18100_v51 }
 0x5b0   :  { %8726 = vadd.xlane.f32.xlu0 %v18072_v41  ;;  %v19223_v58 = vpop.xlane.xlu1 %8588  ;;  %v8230_v41 = vadd.f32 %v18571_v25, %v18193_v5 }
 0x5b1   :  { %v19221_v0 = vpop.xlane.xlu0 %8586 }
 0x5b2   :  { %22920 = vst [vmem:[#allocation262_spill] sm:$0xff] %v19221_v0  ;;  %12420 = vrcp.f32 %v8230_v41 }
 0x5b3   :  { %8732 = vadd.xlane.f32.xlu1 %v18135_v18  ;;  %v8229_v18 = vadd.f32 %v18568_v59, %v18195_v24  ;;  %v12419_v41 = vpop.eup %12418 }
 0x5b4   :  { %8730 = vadd.xlane.f32.xlu0 %v18104_v50  ;;  %v19231_v15 = vpop.xlane.xlu1 %8592  ;;  %v8231_v50 = vadd.f32 %v18577_v36, %v18199_v10 }
 0x5b5   :  { %v19229_v9 = vpop.xlane.xlu0 %8590 }
 0x5b6   :  { %12422 = vrcp.f32 %v8231_v50 }
 0x5b7   :  { %8736 = vadd.xlane.f32.xlu1 %v18171_v28  ;;  %v8232_v28 = vadd.f32 %v18574_v44, %v18201_v21  ;;  %12424 = vrcp.f32 %v8229_v18  ;;  %v8240_v21 = vadd.f32 %v18598_v26, %v18225_v45 }
 0x5b8   :  { %8734 = vadd.xlane.f32.xlu0 %v18139_v32  ;;  %v19239_v0 = vpop.xlane.xlu1 %8596  ;;  %v8996_v32 = vadd.f32 1.0, %v19067_v40  ;;  %v8233_v40 = vadd.f32 %v18583_v60, %v18205_v34  ;;  %v8997_v34 = vadd.f32 1.0, %v19073_v37 }
 0x5b9   :  { %v19237_v51 = vpop.xlane.xlu0 %8594  ;;  %12426 = vrcp.f32 %v8232_v28  ;;  %v22925_v28 = vld [vmem:[#allocation256_spill] sm:$0xff] }
 0x5ba   :  { %22921 = vst [vmem:[#allocation221_spill] sm:$0xff] %v19237_v51  ;;  %v9253_v24 = vmul.f32 %v12419_v41, %v8996_v32  ;;  %12428 = vrcp.f32 %v8238_v14  ;;  %v8999_v32 = vadd.f32 1.0, %v19077_v7  ;;  %v8242_v45 = vadd.f32 %v18604_v42, %v22925_v28 }
 0x5bb   :  { %12430 = vrcp.f32 %v8233_v40 }
 0x5bc   :  { %8738 = vadd.xlane.f32.xlu0 %v18173_v8  ;;  %v19248_v5 = vpop.xlane.xlu1 %8600  ;;  %v12421_v1 = vpop.eup %12420  ;;  %12432 = vrcp.f32 %v8240_v21  ;;  %v9006_v21 = vadd.f32 1.0, %v19097_v63 }
 0x5bd   :  { %v19246_v27 = vpop.xlane.xlu0 %8598 }
 0x5be   :  { %22922 = vst [vmem:[#allocation343_spill] sm:$0xff] %v19246_v27  ;;  %v8998_v27 = vadd.f32 1.0, %v19071_v62  ;;  %v8234_v62 = vadd.f32 %v18580_v48, %v18207_v19  ;;  %v22927_v19 = vld [vmem:[#allocation53_spill] sm:$0xff] }
 0x5bf   :  { %v8235_v37 = vadd.f32 %v18589_v2, %v22927_v19 }
 0x5c0   :  { %v19257_v8 = vpop.xlane.xlu1 %8604  ;;  %v9257_v51 = vmul.f32 %v12421_v1, %v8998_v27  ;;  %12434 = vrcp.f32 %v8234_v62  ;;  %v22928_v1 = vld [vmem:[#allocation155_spill] sm:$0xff] }
 0x5c1   :  { %v19255_v10 = vpop.xlane.xlu0 %8602  ;;  %12436 = vrcp.f32 %v8242_v45 }
 0x5c2   :  { %22923 = vst [vmem:[#allocation226_spill] sm:$0xff] %v19255_v10  ;;  %v9764_v10 = vmul.f32 %v9253_v24, %v18565_v43  ;;  %v9766_v27 = vmul.f32 %v9257_v51, %v18571_v25  ;;  %v9000_v24 = vadd.f32 1.0, %v19079_v49  ;;  %12438 = vrcp.f32 %v8235_v37 }
 0x5c4   :  { %v19266_v18 = vpop.xlane.xlu1 %8608 }
 0x5c5   :  { %v19264_v50 = vpop.xlane.xlu0 %8606 }
 0x5c6   :  { %22924 = vst [vmem:[#allocation122_spill] sm:$0xff] %v19264_v50  ;;  %v12423_v50 = vpop.eup %12422 }
 0x5c7   :  { %v12425_v43 = vpop.eup %12424  ;;  %v9259_v7 = vmul.f32 %v12423_v50, %v8999_v32  ;;  %v22930_v50 = vld [vmem:[#allocation215_spill] sm:$0xff] }
 0x5c8   :  { %10277 = vperm.xlu1 %12414, %v9764_v10   ;;  %v19277_v41 = vpop.xlane.xlu1 %8612  ;;  %v9255_v40 = vmul.f32 %v12425_v43, %v8997_v34  ;;  %v8244_v10 = vadd.f32 %v18610_v3, %v22928_v1  ;;  %v12427_v25 = vpop.eup %12426  ;;  %v8236_v49 = vadd.f32 %v18586_v35, %v22930_v50  ;;  %v9001_v34 = vadd.f32 1.0, %v19083_v56 }
 0x5c9   :  { %v19275_v14 = vpop.xlane.xlu0 %8610  ;;  %v12429_v51 = vpop.eup %12428  ;;  %v9767_v32 = vmul.f32 %v9259_v7, %v18577_v36  ;;  %v9261_v62 = vmul.f32 %v12427_v25, %v9000_v24  ;;  %v9008_v43 = vadd.f32 1.0, %v19103_v47  ;;  %v22933_v24 = vld [vmem:[#allocation18_spill] sm:$0xff] }
 0x5ca   :  { %22926 = vst [vmem:[#allocation231_spill] sm:$0xff] %v19275_v14  ;;  %v9765_v63 = vmul.f32 %v9255_v40, %v18568_v59  ;;  %v9273_v45 = vmul.f32 %v12429_v51, %v9006_v21  ;;  %12440 = vrcp.f32 %v8244_v10  ;;  %v12431_v50 = vpop.eup %12430  ;;  %v9002_v59 = vadd.f32 1.0, %v19085_v6  ;;  %v22934_v10 = vld [vmem:[#allocation229_spill] sm:$0xff] }
 0x5cb   :  { %v12433_v36 = vpop.eup %12432  ;;  %12442 = vrcp.f32 %v8236_v49  ;;  %v9768_v56 = vmul.f32 %v9261_v62, %v18574_v44  ;;  %v9263_v7 = vmul.f32 %v12431_v50, %v9001_v34  ;;  %v8237_v47 = vadd.f32 %v18595_v61, %v22933_v24  ;;  %v22937_v62 = vld [vmem:[#allocation341_spill] sm:$0xff] }
 0x5cc   :  { %10283 = vperm.xlu1 %12414, %v9766_v27   ;;  %v19288_v14 = vpop.xlane.xlu1 %8616  ;;  %v22931_v27 = vld [vmem:[#allocation290_spill] sm:$0xff]  ;;  %v9774_v37 = vmul.f32 %v9273_v45, %v18592_v39  ;;  %v9277_v40 = vmul.f32 %v12433_v36, %v9008_v43  ;;  %v9010_v21 = vadd.f32 1.0, %v19109_v11  ;;  %v8248_v25 = vadd.f32 %v18622_v23, %v22934_v10  ;;  %v12435_v44 = vpop.eup %12434  ;;  %v22938_v45 = vld [vmem:[#allocation156_spill] sm:$0xff]  ;;  %v22940_v36 = vld [vmem:[#allocation15_spill] sm:$0xff] }
 0x5cd   :  { %v19286_v28 = vpop.xlane.xlu0 %8614  ;;  %v8246_v19 = vadd.f32 %v18616_v30, %v22931_v27  ;;  %v12437_v6 = vpop.eup %12436  ;;  %v9769_v39 = vmul.f32 %v9263_v7, %v18583_v60  ;;  %v9003_v11 = vadd.f32 1.0, %v22938_v45  ;;  %v22946_v45 = vld [vmem:[#allocation31_spill] sm:$0xff] }
 0x5ce   :  { %22929 = vst [vmem:[#allocation21_spill] sm:$0xff] %v19286_v28  ;;  %v9776_v43 = vmul.f32 %v9277_v40, %v18598_v26  ;;  %v9281_v27 = vmul.f32 %v12437_v6, %v9010_v21  ;;  %v22943_v26 = vld [vmem:[#allocation162_spill] sm:$0xff] }
 0x5cf   :  { %12444 = vrcp.f32 %v8246_v19  ;;  %v22939_v19 = vld [vmem:[#allocation244_spill] sm:$0xff]  ;;  %v22944_v40 = vld [vmem:[#allocation230_spill] sm:$0xff] }
 0x5d0   :  { %10286 = vperm.xlu1 %12414, %v9767_v32   ;;  %v19300_v28 = vpop.xlane.xlu1 %8620  ;;  %v22936_v32 = vld [vmem:[#allocation25_spill] sm:$0xff]  ;;  %12446 = vrcp.f32 %v8237_v47  ;;  %v9012_v50 = vadd.f32 1.0, %v22939_v19  ;;  %v9004_v47 = vadd.f32 1.0, %v22943_v26  ;;  %v22945_v21 = vld [vmem:[#allocation110_spill] sm:$0xff]  ;;  %v9014_v19 = vadd.f32 1.0, %v22946_v45 }
 0x5d1   :  { %v19298_v1 = vpop.xlane.xlu0 %8618  ;;  %v8239_v34 = vadd.f32 %v22937_v62, %v22936_v32  ;;  %12448 = vrcp.f32 %v8248_v25  ;;  %v12439_v32 = vpop.eup %12438  ;;  %v8241_v25 = vadd.f32 %v22945_v21, %v22944_v40  ;;  %v22953_v40 = vld [vmem:[#allocation242_spill] sm:$0xff] }
 0x5d2   :  { %22932 = vst [vmem:[#allocation235_spill] sm:$0xff] %v19298_v1  ;;  %10280 = vperm.xlu0 %12415, %v9765_v63   ;;  %v9265_v63 = vmul.f32 %v12435_v44, %v9002_v59  ;;  %v9267_v59 = vmul.f32 %v12439_v32, %v9003_v11  ;;  %v9778_v44 = vmul.f32 %v9281_v27, %v18604_v42  ;;  %v22951_v11 = vld [vmem:[#allocation196_spill] sm:$0xff]  ;;  %v9016_v45 = vadd.f32 1.0, %v22953_v40 }
 0x5d3   :  { %12450 = vrcp.f32 %v8239_v34 }
 0x5d4   :  { %10289 = vperm.xlu1 %12414, %v9768_v56   ;;  %v19312_v49 = vpop.xlane.xlu1 %8624  ;;  %v22941_v56 = vld [vmem:[#allocation312_spill] sm:$0xff]  ;;  %v12441_v60 = vpop.eup %12440  ;;  %v9770_v7 = vmul.f32 %v9265_v63, %v18580_v48  ;;  %v9771_v42 = vmul.f32 %v9267_v59, %v18589_v2 }
 0x5d5   :  { %v19310_v51 = vpop.xlane.xlu0 %8622  ;;  %v8250_v24 = vadd.f32 %v22941_v56, %v22940_v36  ;;  %v9285_v6 = vmul.f32 %v12441_v60, %v9012_v50  ;;  %v22947_v36 = vld [vmem:[#allocation28_spill] sm:$0xff]  ;;  %v22952_v50 = vld [vmem:[#allocation314_spill] sm:$0xff] }
 0x5d6   :  { %22935 = vst [vmem:[#allocation274_spill] sm:$0xff] %v19310_v51  ;;  %10307 = vperm.xlu0 %12415, %v9774_v37   ;;  %v22950_v63 = vld [vmem:[#allocation344_spill] sm:$0xff]  ;;  %v9005_v60 = vadd.f32 1.0, %v22952_v50  ;;  %v22961_v50 = vld [vmem:[#allocation134_spill] sm:$0xff] }
 0x5d7   :  { %12452 = vrcp.f32 %v8250_v24  ;;  %v8243_v32 = vadd.f32 %v22951_v11, %v22950_v63  ;;  %v9780_v24 = vmul.f32 %v9285_v6, %v18610_v3  ;;  %v22958_v3 = vld [vmem:[#allocation168_spill] sm:$0xff]  ;;  %v9018_v40 = vadd.f32 1.0, %v22961_v50 }
 0x5d8   :  { %10292 = vperm.xlu1 %12414, %v9769_v39   ;;  %v19324_v10 = vpop.xlane.xlu1 %8628  ;;  %v12443_v39 = vpop.eup %12442  ;;  %12454 = vrcp.f32 %v8241_v25  ;;  %v9007_v25 = vadd.f32 1.0, %v22958_v3  ;;  %v22959_v6 = vld [vmem:[#allocation160_spill] sm:$0xff] }
 0x5d9   :  { %v19322_v37 = vpop.xlane.xlu0 %8626  ;;  %v12445_v34 = vpop.eup %12444  ;;  %v9269_v27 = vmul.f32 %v12443_v39, %v9004_v47 }
 0x5da   :  { %22942 = vst [vmem:[#allocation239_spill] sm:$0xff] %v19322_v37  ;;  %10313 = vperm.xlu0 %12415, %v9776_v43   ;;  %v22948_v37 = vld [vmem:[#allocation119_spill] sm:$0xff]  ;;  %v9289_v26 = vmul.f32 %v12445_v34, %v9014_v19  ;;  %v12447_v63 = vpop.eup %12446  ;;  %v22960_v19 = vld [vmem:[#allocation22_spill] sm:$0xff] }
 0x5db   :  { %v8252_v43 = vadd.f32 %v22948_v37, %v22947_v36  ;;  %v22955_v36 = vld [vmem:[#allocation354_spill] sm:$0xff]  ;;  %v12449_v2 = vpop.eup %12448  ;;  %v9772_v59 = vmul.f32 %v9269_v27, %v18586_v35  ;;  %v9271_v47 = vmul.f32 %v12447_v63, %v9005_v60  ;;  %v8245_v39 = vadd.f32 %v22960_v19, %v22959_v6  ;;  %v22967_v60 = vld [vmem:[#allocation189_spill] sm:$0xff] }
 0x5dc   :  { %10295 = vperm.xlu1 %12414, %v9770_v7   ;;  %v19336_v48 = vpop.xlane.xlu1 %8632  ;;  %v22954_v7 = vld [vmem:[#allocation148_spill] sm:$0xff]  ;;  %v9293_v34 = vmul.f32 %v12449_v2, %v9016_v45  ;;  %v22966_v27 = vld [vmem:[#allocation14_spill] sm:$0xff]  ;;  %v22968_v45 = vld [vmem:[#allocation243_spill] sm:$0xff] }
 0x5dd   :  { %v19334_v51 = vpop.xlane.xlu0 %8630  ;;  %12456 = vrcp.f32 %v8252_v43  ;;  %v9782_v43 = vmul.f32 %v9289_v26, %v18616_v30  ;;  %v8247_v63 = vadd.f32 %v22967_v60, %v22966_v27  ;;  %v9773_v30 = vmul.f32 %v9271_v47, %v18595_v61  ;;  %v22969_v6 = vld [vmem:[#allocation49_spill] sm:$0xff] }
 0x5de   :  { %22949 = vst [vmem:[#allocation199_spill] sm:$0xff] %v19334_v51  ;;  %10319 = vperm.xlu0 %12415, %v9778_v44   ;;  %v8254_v51 = vadd.f32 %v22955_v36, %v22954_v7  ;;  %12458 = vrcp.f32 %v8243_v32  ;;  %v22962_v7 = vld [vmem:[#allocation287_spill] sm:$0xff]  ;;  %v9009_v2 = vadd.f32 1.0, %v22968_v45  ;;  %v9020_v50 = vadd.f32 1.0, %v22969_v6  ;;  %v22977_v45 = vld [vmem:[#allocation90_spill] sm:$0xff] }
 0x5df   :  { %v9022_v6 = vadd.f32 1.0, %v22977_v45  ;;  %v22985_v45 = vld [vmem:[#allocation249_spill] sm:$0xff] }
 0x5e0   :  { %10298 = vperm.xlu1 %12414, %v9771_v42   ;;  %v19348_v1 = vpop.xlane.xlu1 %8636  ;;  %v12451_v42 = vpop.eup %12450  ;;  %12460 = vrcp.f32 %v8254_v51  ;;  %v9784_v51 = vmul.f32 %v9293_v34, %v18622_v23  ;;  %v22974_v23 = vld [vmem:[#allocation174_spill] sm:$0xff]  ;;  %v22975_v34 = vld [vmem:[#allocation272_spill] sm:$0xff] }
 0x5e1   :  { %v19346_v44 = vpop.xlane.xlu0 %8634  ;;  %22957 = vst [vmem:[#allocation320_spill] sm:$0xff] %v19348_v1  ;;  %v12453_v32 = vpop.eup %12452  ;;  %v9275_v26 = vmul.f32 %v12451_v42, %v9007_v25  ;;  %12462 = vrcp.f32 %v8245_v39  ;;  %v9011_v39 = vadd.f32 1.0, %v22974_v23 }
 0x5e2   :  { %22956 = vst [vmem:[#allocation245_spill] sm:$0xff] %v19346_v44  ;;  %10325 = vperm.xlu0 %12415, %v9780_v24   ;;  %v22963_v44 = vld [vmem:[#allocation355_spill] sm:$0xff]  ;;  %v9297_v3 = vmul.f32 %v12453_v32, %v9018_v40  ;;  %v12455_v27 = vpop.eup %12454  ;;  %v22976_v40 = vld [vmem:[#allocation170_spill] sm:$0xff] }
 0x5e3   :  { %v8256_v24 = vadd.f32 %v22963_v44, %v22962_v7  ;;  %v22971_v7 = vld [vmem:[#allocation129_spill] sm:$0xff]  ;;  %v9775_v47 = vmul.f32 %v9275_v26, %v22937_v62  ;;  %v9279_v25 = vmul.f32 %v12455_v27, %v9009_v2  ;;  %v8249_v42 = vadd.f32 %v22976_v40, %v22975_v34  ;;  %v22982_v2 = vld [vmem:[#allocation131_spill] sm:$0xff] }
 0x5e4   :  { %10301 = vperm.xlu1 %12414, %v9772_v59   ;;  %v19360_v35 = vpop.xlane.xlu1 %8640  ;;  %v22970_v59 = vld [vmem:[#allocation24_spill] sm:$0xff]  ;;  %v22981_v26 = vld [vmem:[#allocation289_spill] sm:$0xff]  ;;  %v9024_v34 = vadd.f32 1.0, %v19151_v16 }
 0x5e5   :  { %v19358_v1 = vpop.xlane.xlu0 %8638  ;;  %22965 = vst [vmem:[#allocation206_spill] sm:$0xff] %v19360_v35  ;;  %12464 = vrcp.f32 %v8256_v24  ;;  %v9786_v24 = vmul.f32 %v9297_v3, %v22941_v56  ;;  %v8251_v27 = vadd.f32 %v22982_v2, %v22981_v26  ;;  %v9777_v56 = vmul.f32 %v9279_v25, %v22945_v21  ;;  %v22989_v16 = vld [vmem:[#allocation29_spill] sm:$0xff] }
 0x5e6   :  { %22964 = vst [vmem:[#allocation250_spill] sm:$0xff] %v19358_v1  ;;  %10331 = vperm.xlu0 %12415, %v9782_v43   ;;  %v8258_v1 = vadd.f32 %v22971_v7, %v22970_v59  ;;  %12466 = vrcp.f32 %v8247_v63  ;;  %v22978_v59 = vld [vmem:[#allocation295_spill] sm:$0xff] }
 0x5e7   :  { %v12457_v61 = vpop.eup %12456 }
 0x5e8   :  { %10304 = vperm.xlu1 %12414, %v9773_v30   ;;  %v19372_v35 = vpop.xlane.xlu1 %8644  ;;  %v9301_v32 = vmul.f32 %v12457_v61, %v9020_v50  ;;  %v12459_v30 = vpop.eup %12458  ;;  %12468 = vrcp.f32 %v8258_v1  ;;  %v22983_v50 = vld [vmem:[#allocation180_spill] sm:$0xff] }
 0x5e9   :  { %v19370_v43 = vpop.xlane.xlu0 %8642  ;;  %22973 = vst [vmem:[#allocation86_spill] sm:$0xff] %v19372_v35  ;;  %v9283_v3 = vmul.f32 %v12459_v30, %v9011_v39  ;;  %v9013_v61 = vadd.f32 1.0, %v22983_v50  ;;  %12470 = vrcp.f32 %v8249_v42  ;;  %v22990_v50 = vld [vmem:[#allocation236_spill] sm:$0xff] }
 0x5ea   :  { %22972 = vst [vmem:[#allocation149_spill] sm:$0xff] %v19370_v43  ;;  %10337 = vperm.xlu0 %12415, %v9784_v51   ;;  %v22979_v43 = vld [vmem:[#allocation163_spill] sm:$0xff]  ;;  %v12461_v63 = vpop.eup %12460  ;;  %v9788_v1 = vmul.f32 %v9301_v32, %v22948_v37  ;;  %v22987_v37 = vld [vmem:[#allocation185_spill] sm:$0xff] }
 0x5eb   :  { %v8260_v51 = vadd.f32 %v22979_v43, %v22978_v59  ;;  %v9305_v23 = vmul.f32 %v12461_v63, %v9022_v6  ;;  %v12463_v26 = vpop.eup %12462  ;;  %v9779_v25 = vmul.f32 %v9283_v3, %v22951_v11  ;;  %v9015_v42 = vadd.f32 1.0, %v22987_v37  ;;  %v22988_v32 = vld [vmem:[#allocation51_spill] sm:$0xff]  ;;  %v22997_v37 = vld [vmem:[#allocation258_spill] sm:$0xff] }
 0x5ec   :  { %10310 = vperm.xlu1 %12414, %v9775_v47   ;;  %v19384_v62 = vpop.xlane.xlu1 %8648  ;;  %v22984_v47 = vld [vmem:[#allocation281_spill] sm:$0xff]  ;;  %v9287_v39 = vmul.f32 %v12463_v26, %v9013_v61  ;;  %v8253_v6 = vadd.f32 %v22989_v16, %v22988_v32  ;;  %v9026_v63 = vadd.f32 1.0, %v19157_v55  ;;  %v22994_v3 = vld [vmem:[#allocation263_spill] sm:$0xff]  ;;  %v9028_v32 = vadd.f32 1.0, %v22997_v37 }
 0x5ed   :  { %v19382_v35 = vpop.xlane.xlu0 %8646  ;;  %12472 = vrcp.f32 %v8260_v51  ;;  %v8262_v59 = vadd.f32 %v22985_v45, %v22984_v47  ;;  %v9790_v30 = vmul.f32 %v9305_v23, %v22955_v36  ;;  %v22991_v47 = vld [vmem:[#allocation181_spill] sm:$0xff]  ;;  %v22995_v61 = vld [vmem:[#allocation143_spill] sm:$0xff] }
 0x5ee   :  { %22980 = vst [vmem:[#allocation259_spill] sm:$0xff] %v19382_v35  ;;  %10343 = vperm.xlu0 %12415, %v9786_v24   ;;  %12474 = vrcp.f32 %v8251_v27  ;;  %v8255_v26 = vadd.f32 %v22995_v61, %v22994_v3  ;;  %v9781_v36 = vmul.f32 %v9287_v39, %v22960_v19 }
 0x5ef   :  { %v12465_v21 = vpop.eup %12464  ;;  %12476 = vrcp.f32 %v8262_v59 }
 0x5f0   :  { %10316 = vperm.xlu1 %12414, %v9777_v56   ;;  %v19396_v35 = vpop.xlane.xlu1 %8652  ;;  %v9309_v51 = vmul.f32 %v12465_v21, %v9024_v34  ;;  %v12467_v56 = vpop.eup %12466  ;;  %v22996_v34 = vld [vmem:[#allocation188_spill] sm:$0xff]  ;;  %12478 = vrcp.f32 %v8253_v6 }
 0x5f1   :  { %v19394_v24 = vpop.xlane.xlu0 %8650  ;;  %v9291_v23 = vmul.f32 %v12467_v56, %v9015_v42  ;;  %v9017_v55 = vadd.f32 1.0, %v22996_v34  ;;  %v23005_v34 = vld [vmem:[#allocation337_spill] sm:$0xff] }
 0x5f2   :  { %22986 = vst [vmem:[#allocation82_spill] sm:$0xff] %v19394_v24  ;;  %10349 = vperm.xlu0 %12415, %v9788_v1   ;;  %v8264_v1 = vadd.f32 %v22991_v47, %v22990_v50  ;;  %v12469_v27 = vpop.eup %12468  ;;  %v9792_v59 = vmul.f32 %v9309_v51, %v22963_v44  ;;  %v22999_v50 = vld [vmem:[#allocation255_spill] sm:$0xff]  ;;  %v23002_v44 = vld [vmem:[#allocation192_spill] sm:$0xff]  ;;  %v23003_v51 = vld [vmem:[#allocation113_spill] sm:$0xff]  ;;  %v9030_v37 = vadd.f32 1.0, %v23005_v34 }
 0x5f3   :  { %v9313_v21 = vmul.f32 %v12469_v27, %v9026_v63  ;;  %v12471_v3 = vpop.eup %12470  ;;  %v9783_v39 = vmul.f32 %v9291_v23, %v22967_v60  ;;  %v9019_v6 = vadd.f32 1.0, %v23002_v44  ;;  %v23004_v63 = vld [vmem:[#allocation146_spill] sm:$0xff]  ;;  %v23013_v34 = vld [vmem:[#allocation152_spill] sm:$0xff] }
 0x5f4   :  { %10322 = vperm.xlu1 %12414, %v9779_v25   ;;  %v19408_v11 = vpop.xlane.xlu1 %8656  ;;  %12480 = vrcp.f32 %v8264_v1  ;;  %v22998_v25 = vld [vmem:[#allocation282_spill] sm:$0xff]  ;;  %v9295_v42 = vmul.f32 %v12471_v3, %v9017_v55  ;;  %v8257_v56 = vadd.f32 %v23004_v63, %v23003_v51  ;;  %v23010_v55 = vld [vmem:[#allocation347_spill] sm:$0xff]  ;;  %v9032_v51 = vadd.f32 1.0, %v19175_v31  ;;  %v23017_v31 = vld [vmem:[#allocation241_spill] sm:$0xff] }
 0x5f5   :  { %v19406_v24 = vpop.xlane.xlu0 %8654  ;;  %22993 = vst [vmem:[#allocation169_spill] sm:$0xff] %v19408_v11  ;;  %12482 = vrcp.f32 %v8255_v26  ;;  %v9794_v1 = vmul.f32 %v9313_v21, %v22971_v7  ;;  %v23009_v23 = vld [vmem:[#allocation286_spill] sm:$0xff] }
 0x5f6   :  { %22992 = vst [vmem:[#allocation264_spill] sm:$0xff] %v19406_v24  ;;  %10355 = vperm.xlu0 %12415, %v9790_v30   ;;  %v8266_v24 = vadd.f32 %v22999_v50, %v22998_v25  ;;  %v23006_v25 = vld [vmem:[#allocation219_spill] sm:$0xff]  ;;  %v8259_v3 = vadd.f32 %v23010_v55, %v23009_v23  ;;  %v9785_v7 = vmul.f32 %v9295_v42, %v22976_v40 }
 0x5f7   :  { %v12473_v19 = vpop.eup %12472 }
 0x5f8   :  { %10328 = vperm.xlu1 %12414, %v9781_v36   ;;  %v19420_v11 = vpop.xlane.xlu1 %8660  ;;  %v9317_v27 = vmul.f32 %v12473_v19, %v9028_v32  ;;  %v12475_v36 = vpop.eup %12474  ;;  %12484 = vrcp.f32 %v8266_v24  ;;  %v23011_v32 = vld [vmem:[#allocation198_spill] sm:$0xff] }
 0x5f9   :  { %v19418_v30 = vpop.xlane.xlu0 %8658  ;;  %23001 = vst [vmem:[#allocation209_spill] sm:$0xff] %v19420_v11  ;;  %v12477_v26 = vpop.eup %12476  ;;  %v9299_v21 = vmul.f32 %v12475_v36, %v9019_v6  ;;  %v9021_v19 = vadd.f32 1.0, %v23011_v32  ;;  %12486 = vrcp.f32 %v8257_v56  ;;  %v23018_v32 = vld [vmem:[#allocation193_spill] sm:$0xff] }
 0x5fa   :  { %23000 = vst [vmem:[#allocation270_spill] sm:$0xff] %v19418_v30  ;;  %10361 = vperm.xlu0 %12415, %v9792_v59   ;;  %v23007_v30 = vld [vmem:[#allocation13_spill] sm:$0xff]  ;;  %v9796_v24 = vmul.f32 %v9317_v27, %v22979_v43  ;;  %v9321_v44 = vmul.f32 %v12477_v26, %v9030_v37  ;;  %v12479_v23 = vpop.eup %12478  ;;  %v23015_v43 = vld [vmem:[#allocation202_spill] sm:$0xff]  ;;  %v23016_v27 = vld [vmem:[#allocation288_spill] sm:$0xff]  ;;  %v9034_v26 = vadd.f32 1.0, %v19181_v17 }
 0x5fb   :  { %v8268_v59 = vadd.f32 %v23007_v30, %v23006_v25  ;;  %v9787_v42 = vmul.f32 %v9299_v21, %v22982_v2  ;;  %v9303_v6 = vmul.f32 %v12479_v23, %v9021_v19  ;;  %v9023_v56 = vadd.f32 1.0, %v23015_v43  ;;  %v23022_v21 = vld [vmem:[#allocation36_spill] sm:$0xff]  ;;  %v23023_v19 = vld [vmem:[#allocation175_spill] sm:$0xff] }
 0x5fc   :  { %10334 = vperm.xlu1 %12414, %v9783_v39   ;;  %v19432_v60 = vpop.xlane.xlu1 %8664  ;;  %v23012_v39 = vld [vmem:[#allocation52_spill] sm:$0xff]  ;;  %v8261_v37 = vadd.f32 %v23017_v31, %v23016_v27  ;;  %v9798_v36 = vmul.f32 %v9321_v44, %v22985_v45  ;;  %v8263_v23 = vadd.f32 %v23023_v19, %v23022_v21  ;;  %v9036_v43 = vadd.f32 1.0, %v19187_v38  ;;  %v23026_v27 = vld [vmem:[#allocation150_spill] sm:$0xff] }
 0x5fd   :  { %v19430_v11 = vpop.xlane.xlu0 %8662  ;;  %12488 = vrcp.f32 %v8268_v59  ;;  %v8270_v25 = vadd.f32 %v23013_v34, %v23012_v39  ;;  %v23019_v39 = vld [vmem:[#allocation212_spill] sm:$0xff]  ;;  %v9789_v45 = vmul.f32 %v9303_v6, %v22989_v16  ;;  %v23030_v38 = vld [vmem:[#allocation182_spill] sm:$0xff] }
 0x5fe   :  { %23008 = vst [vmem:[#allocation275_spill] sm:$0xff] %v19430_v11  ;;  %10367 = vperm.xlu0 %12415, %v9794_v1   ;;  %v12481_v40 = vpop.eup %12480  ;;  %12490 = vrcp.f32 %v8259_v3 }
 0x5ff   :  { %v9325_v59 = vmul.f32 %v12481_v40, %v9032_v51  ;;  %12492 = vrcp.f32 %v8270_v25  ;;  %v23024_v51 = vld [vmem:[#allocation191_spill] sm:$0xff] }
 0x600   :  { %10340 = vperm.xlu1 %12414, %v9785_v7   ;;  %v19444_v11 = vpop.xlane.xlu1 %8668  ;;  %v12483_v7 = vpop.eup %12482  ;;  %v9025_v17 = vadd.f32 1.0, %v23024_v51  ;;  %12494 = vrcp.f32 %v8261_v37  ;;  %v23031_v51 = vld [vmem:[#allocation300_spill] sm:$0xff] }
 0x601   :  { %v19442_v1 = vpop.xlane.xlu0 %8666  ;;  %v9307_v44 = vmul.f32 %v12483_v7, %v9023_v56  ;;  %v9800_v25 = vmul.f32 %v9325_v59, %v22991_v47  ;;  %v23028_v47 = vld [vmem:[#allocation95_spill] sm:$0xff]  ;;  %v23029_v59 = vld [vmem:[#allocation48_spill] sm:$0xff] }
 0x602   :  { %23014 = vst [vmem:[#allocation350_spill] sm:$0xff] %v19442_v1  ;;  %10373 = vperm.xlu0 %12415, %v9796_v24   ;;  %v8272_v24 = vadd.f32 %v23019_v39, %v23018_v32  ;;  %v12485_v3 = vpop.eup %12484  ;;  %v9027_v37 = vadd.f32 1.0, %v23028_v47  ;;  %v9040_v47 = vadd.f32 1.0, %v19199_v20  ;;  %v23041_v20 = vld [vmem:[#allocation203_spill] sm:$0xff] }
 0x603   :  { %v9329_v40 = vmul.f32 %v12485_v3, %v9034_v26  ;;  %v12487_v21 = vpop.eup %12486  ;;  %v9791_v6 = vmul.f32 %v9307_v44, %v22995_v61  ;;  %v8265_v26 = vadd.f32 %v23030_v38, %v23029_v59  ;;  %v9038_v3 = vadd.f32 1.0, %v19193_v33  ;;  %v23034_v44 = vld [vmem:[#allocation57_spill] sm:$0xff]  ;;  %v23038_v59 = vld [vmem:[#allocation58_spill] sm:$0xff] }
 0x604   :  { %10346 = vperm.xlu1 %12414, %v9787_v42   ;;  %v19456_v2 = vpop.xlane.xlu1 %8672  ;;  %12496 = vrcp.f32 %v8272_v24  ;;  %v23025_v42 = vld [vmem:[#allocation293_spill] sm:$0xff]  ;;  %v9311_v56 = vmul.f32 %v12487_v21, %v9025_v17 }
 0x605   :  { %v19454_v1 = vpop.xlane.xlu0 %8670  ;;  %23021 = vst [vmem:[#allocation214_spill] sm:$0xff] %v19456_v2  ;;  %v8274_v32 = vadd.f32 %v23026_v27, %v23025_v42  ;;  %12498 = vrcp.f32 %v8263_v23  ;;  %v9802_v7 = vmul.f32 %v9329_v40, %v22999_v50  ;;  %v23032_v42 = vld [vmem:[#allocation83_spill] sm:$0xff]  ;;  %v23035_v17 = vld [vmem:[#allocation253_spill] sm:$0xff] }
 0x606   :  { %23020 = vst [vmem:[#allocation280_spill] sm:$0xff] %v19454_v1  ;;  %10379 = vperm.xlu0 %12415, %v9798_v36   ;;  %v8267_v21 = vadd.f32 %v23035_v17, %v23034_v44  ;;  %v9793_v50 = vmul.f32 %v9311_v56, %v23004_v63 }
 0x607   :  { %v12489_v16 = vpop.eup %12488  ;;  %12500 = vrcp.f32 %v8274_v32 }
 0x608   :  { %10352 = vperm.xlu1 %12414, %v9789_v45   ;;  %v19468_v2 = vpop.xlane.xlu1 %8676  ;;  %v9333_v24 = vmul.f32 %v12489_v16, %v9036_v43  ;;  %v12491_v45 = vpop.eup %12490  ;;  %v23036_v43 = vld [vmem:[#allocation211_spill] sm:$0xff]  ;;  %12502 = vrcp.f32 %v8265_v26 }
 0x609   :  { %v19466_v36 = vpop.xlane.xlu0 %8674  ;;  %v12493_v23 = vpop.eup %12492  ;;  %v9315_v40 = vmul.f32 %v12491_v45, %v9027_v37  ;;  %v9029_v33 = vadd.f32 1.0, %v23036_v43  ;;  %v23042_v43 = vld [vmem:[#allocation323_spill] sm:$0xff] }
 0x60a   :  { %23027 = vst [vmem:[#allocation154_spill] sm:$0xff] %v19466_v36  ;;  %10385 = vperm.xlu0 %12415, %v9800_v25   ;;  %v8276_v25 = vadd.f32 %v23032_v42, %v23031_v51  ;;  %v9804_v32 = vmul.f32 %v9333_v24, %v23007_v30  ;;  %v9337_v16 = vmul.f32 %v12493_v23, %v9038_v3  ;;  %v12495_v44 = vpop.eup %12494  ;;  %v23039_v30 = vld [vmem:[#allocation216_spill] sm:$0xff]  ;;  %v23040_v24 = vld [vmem:[#allocation165_spill] sm:$0xff]  ;;  %v9042_v23 = vadd.f32 1.0, %v19205_v53 }
 0x60b   :  { %v9795_v56 = vmul.f32 %v9315_v40, %v23010_v55  ;;  %v9319_v37 = vmul.f32 %v12495_v44, %v9029_v33  ;;  %v9031_v26 = vadd.f32 1.0, %v23039_v30  ;;  %v8269_v3 = vadd.f32 %v23041_v20, %v23040_v24  ;;  %v23044_v40 = vld [vmem:[#allocation237_spill] sm:$0xff]  ;;  %v23045_v33 = vld [vmem:[#allocation260_spill] sm:$0xff] }
 0x60c   :  { %10358 = vperm.xlu1 %12414, %v9791_v6   ;;  %v19480_v61 = vpop.xlane.xlu1 %8680  ;;  %12504 = vrcp.f32 %v8276_v25  ;;  %v23037_v6 = vld [vmem:[#allocation103_spill] sm:$0xff]  ;;  %v9806_v45 = vmul.f32 %v9337_v16, %v23013_v34  ;;  %v8271_v44 = vadd.f32 %v23045_v33, %v23044_v40  ;;  %v9033_v53 = vadd.f32 1.0, %v19179_v13  ;;  %v23047_v30 = vld [vmem:[#allocation201_spill] sm:$0xff] }
 0x60d   :  { %v19478_v36 = vpop.xlane.xlu0 %8678  ;;  %23033 = vst [vmem:[#allocation278_spill] sm:$0xff] %v19480_v61  ;;  %v8278_v51 = vadd.f32 %v23038_v59, %v23037_v6  ;;  %12506 = vrcp.f32 %v8267_v21  ;;  %v23043_v6 = vld [vmem:[#allocation117_spill] sm:$0xff]  ;;  %v9797_v34 = vmul.f32 %v9319_v37, %v23017_v31 }
 0x60e   :  { %10391 = vperm.xlu0 %12415, %v9802_v7   ;;  %v12497_v63 = vpop.eup %12496 }
 0x60f   :  { %v9341_v25 = vmul.f32 %v12497_v63, %v9040_v47  ;;  %12508 = vrcp.f32 %v8278_v51  ;;  %v9044_v63 = vadd.f32 1.0, %v19211_v46  ;;  %v23049_v46 = vld [vmem:[#allocation269_spill] sm:$0xff] }
 0x610   :  { %10364 = vperm.xlu1 %12414, %v9793_v50   ;;  %v19492_v1 = vpop.xlane.xlu1 %8684  ;;  %v12499_v50 = vpop.eup %12498  ;;  %12510 = vrcp.f32 %v8269_v3 }
 0x611   :  { %v19490_v7 = vpop.xlane.xlu0 %8682  ;;  %v12501_v21 = vpop.eup %12500  ;;  %v9323_v16 = vmul.f32 %v12499_v50, %v9031_v26  ;;  %v9808_v47 = vmul.f32 %v9341_v25, %v23019_v39  ;;  %v9035_v39 = vadd.f32 1.0, %v19185_v12  ;;  %v23048_v26 = vld [vmem:[#allocation301_spill] sm:$0xff]  ;;  %v9046_v50 = vadd.f32 1.0, %v19217_v4 }
 0x612   :  { %10397 = vperm.xlu0 %12415, %v9804_v32   ;;  %v8280_v32 = vadd.f32 %v23043_v6, %v23042_v43  ;;  %v9345_v51 = vmul.f32 %v12501_v21, %v9042_v23  ;;  %v12503_v40 = vpop.eup %12502  ;;  %v8273_v3 = vadd.f32 %v23049_v46, %v23048_v26  ;;  %v23050_v21 = vld [vmem:[#allocation298_spill] sm:$0xff]  ;;  %v9037_v4 = vadd.f32 1.0, %v19191_v29 }
 0x613   :  { %v9799_v13 = vmul.f32 %v9323_v16, %v23023_v19  ;;  %v9327_v37 = vmul.f32 %v12503_v40, %v9033_v53  ;;  %v23053_v16 = vld [vmem:[#allocation223_spill] sm:$0xff]  ;;  %v9048_v40 = vadd.f32 1.0, %v19223_v58  ;;  %v23058_v58 = vld [vmem:[#allocation273_spill] sm:$0xff] }
 0x614   :  { %10370 = vperm.xlu1 %12414, %v9795_v56   ;;  %v19504_v55 = vpop.xlane.xlu1 %8688  ;;  %12512 = vrcp.f32 %v8280_v32  ;;  %v23046_v56 = vld [vmem:[#allocation167_spill] sm:$0xff]  ;;  %v9810_v25 = vmul.f32 %v9345_v51, %v23026_v27 }
 0x615   :  { %v19502_v61 = vpop.xlane.xlu0 %8686  ;;  %v8282_v24 = vadd.f32 %v23047_v30, %v23046_v56  ;;  %12514 = vrcp.f32 %v8271_v44  ;;  %v23052_v44 = vld [vmem:[#allocation292_spill] sm:$0xff]  ;;  %v9801_v27 = vmul.f32 %v9327_v37, %v23030_v38 }
 0x616   :  { %10403 = vperm.xlu0 %12415, %v9806_v45   ;;  %v12505_v31 = vpop.eup %12504  ;;  %v8275_v53 = vadd.f32 %v23053_v16, %v23052_v44 }
 0x617   :  { %v9349_v23 = vmul.f32 %v12505_v31, %v9044_v63  ;;  %v12507_v32 = vpop.eup %12506  ;;  %12516 = vrcp.f32 %v8282_v24  ;;  %v23054_v31 = vld [vmem:[#allocation248_spill] sm:$0xff] }
 0x618   :  { %10376 = vperm.xlu1 %12414, %v9797_v34   ;;  %v19516_v43 = vpop.xlane.xlu1 %8692  ;;  %v23051_v34 = vld [vmem:[#allocation137_spill] sm:$0xff]  ;;  %v9331_v51 = vmul.f32 %v12507_v32, %v9035_v39  ;;  %12518 = vrcp.f32 %v8273_v3  ;;  %v23057_v39 = vld [vmem:[#allocation294_spill] sm:$0xff]  ;;  %v9050_v32 = vadd.f32 1.0, %v19231_v15  ;;  %v9041_v15 = vadd.f32 1.0, %v19203_v22 }
 0x619   :  { %v19514_v45 = vpop.xlane.xlu0 %8690  ;;  %v12509_v12 = vpop.eup %12508  ;;  %v9812_v63 = vmul.f32 %v9349_v23, %v23032_v42  ;;  %v9039_v42 = vadd.f32 1.0, %v19197_v54  ;;  %v8277_v3 = vadd.f32 %v23058_v58, %v23057_v39 }
 0x61a   :  { %10409 = vperm.xlu0 %12415, %v9808_v47   ;;  %v8284_v47 = vadd.f32 %v23051_v34, %v23050_v21  ;;  %v9353_v24 = vmul.f32 %v12509_v12, %v9046_v50  ;;  %v12511_v44 = vpop.eup %12510  ;;  %v9803_v29 = vmul.f32 %v9331_v51, %v23035_v17  ;;  %v23059_v12 = vld [vmem:[#allocation164_spill] sm:$0xff] }
 0x61b   :  { %v9335_v37 = vmul.f32 %v12511_v44, %v9037_v4  ;;  %v23063_v51 = vld [vmem:[#allocation136_spill] sm:$0xff]  ;;  %v9052_v44 = vadd.f32 1.0, %v19239_v0  ;;  %v23068_v0 = vld [vmem:[#allocation267_spill] sm:$0xff] }
 0x61c   :  { %10382 = vperm.xlu1 %12414, %v9799_v13   ;;  %v19528_v19 = vpop.xlane.xlu1 %8696  ;;  %12520 = vrcp.f32 %v8284_v47  ;;  %v23055_v13 = vld [vmem:[#allocation266_spill] sm:$0xff]  ;;  %v9814_v23 = vmul.f32 %v9353_v24, %v23038_v59 }
 0x61d   :  { %v19526_v56 = vpop.xlane.xlu0 %8694  ;;  %v8286_v26 = vadd.f32 %v23055_v13, %v23054_v31  ;;  %12522 = vrcp.f32 %v8275_v53  ;;  %v23062_v53 = vld [vmem:[#allocation128_spill] sm:$0xff]  ;;  %v9805_v59 = vmul.f32 %v9335_v37, %v23041_v20 }
 0x61e   :  { %10415 = vperm.xlu0 %12415, %v9810_v25   ;;  %v12513_v38 = vpop.eup %12512  ;;  %v8279_v4 = vadd.f32 %v23063_v51, %v23062_v53 }
 0x61f   :  { %v9357_v50 = vmul.f32 %v12513_v38, %v9048_v40  ;;  %v12515_v47 = vpop.eup %12514  ;;  %12524 = vrcp.f32 %v8286_v26  ;;  %v23064_v38 = vld [vmem:[#allocation304_spill] sm:$0xff] }
 0x620   :  { %10388 = vperm.xlu1 %12414, %v9801_v27   ;;  %v19540_v21 = vpop.xlane.xlu1 %8700  ;;  %v23060_v27 = vld [vmem:[#allocation74_spill] sm:$0xff]  ;;  %v9339_v24 = vmul.f32 %v12515_v47, %v9039_v42  ;;  %12526 = vrcp.f32 %v8277_v3  ;;  %v23067_v42 = vld [vmem:[#allocation299_spill] sm:$0xff]  ;;  %v9054_v47 = vadd.f32 1.0, %v19248_v5  ;;  %v9045_v5 = vadd.f32 1.0, %v19215_v57 }
 0x621   :  { %v19538_v25 = vpop.xlane.xlu0 %8698  ;;  %23056 = vst [vmem:[#allocation291_spill] sm:$0xff] %v19540_v21  ;;  %v12517_v54 = vpop.eup %12516  ;;  %v9816_v40 = vmul.f32 %v9357_v50, %v23043_v6  ;;  %v9043_v6 = vadd.f32 1.0, %v19209_v52  ;;  %v8281_v3 = vadd.f32 %v23068_v0, %v23067_v42 }
 0x622   :  { %10421 = vperm.xlu0 %12415, %v9812_v63   ;;  %v8288_v63 = vadd.f32 %v23060_v27, %v23059_v12  ;;  %v9361_v26 = vmul.f32 %v12517_v54, %v9050_v32  ;;  %v12519_v53 = vpop.eup %12518  ;;  %v9807_v22 = vmul.f32 %v9339_v24, %v23045_v33  ;;  %v23069_v54 = vld [vmem:[#allocation305_spill] sm:$0xff] }
 0x623   :  { %v9343_v37 = vmul.f32 %v12519_v53, %v9041_v15  ;;  %v23072_v24 = vld [vmem:[#allocation321_spill] sm:$0xff]  ;;  %v9056_v53 = vadd.f32 1.0, %v19257_v8  ;;  %v23077_v8 = vld [vmem:[#allocation23_spill] sm:$0xff] }
 0x624   :  { %10394 = vperm.xlu1 %12414, %v9803_v29   ;;  %v19552_v17 = vpop.xlane.xlu1 %8704  ;;  %12528 = vrcp.f32 %v8288_v63  ;;  %v23065_v29 = vld [vmem:[#allocation247_spill] sm:$0xff]  ;;  %v9818_v50 = vmul.f32 %v9361_v26, %v23047_v30 }
 0x625   :  { %v19550_v31 = vpop.xlane.xlu0 %8702  ;;  %23061 = vst [vmem:[#allocation213_spill] sm:$0xff] %v19552_v17  ;;  %v8290_v39 = vadd.f32 %v23065_v29, %v23064_v38  ;;  %12530 = vrcp.f32 %v8279_v4  ;;  %v23071_v4 = vld [vmem:[#allocation166_spill] sm:$0xff]  ;;  %v9809_v30 = vmul.f32 %v9343_v37, %v23049_v46 }
 0x626   :  { %10427 = vperm.xlu0 %12415, %v9814_v23   ;;  %v12521_v20 = vpop.eup %12520  ;;  %v8283_v15 = vadd.f32 %v23072_v24, %v23071_v4 }
 0x627   :  { %v9365_v32 = vmul.f32 %v12521_v20, %v9052_v44  ;;  %v12523_v63 = vpop.eup %12522  ;;  %12532 = vrcp.f32 %v8290_v39  ;;  %v23073_v20 = vld [vmem:[#allocation76_spill] sm:$0xff] }
 0x628   :  { %10400 = vperm.xlu1 %12414, %v9805_v59   ;;  %v19564_v12 = vpop.xlane.xlu1 %8708  ;;  %v23070_v59 = vld [vmem:[#allocation279_spill] sm:$0xff]  ;;  %v9347_v26 = vmul.f32 %v12523_v63, %v9043_v6  ;;  %12534 = vrcp.f32 %v8281_v3  ;;  %v23076_v3 = vld [vmem:[#allocation20_spill] sm:$0xff] }
 0x629   :  { %v19562_v23 = vpop.xlane.xlu0 %8706  ;;  %v12525_v52 = vpop.eup %12524  ;;  %v9820_v44 = vmul.f32 %v9365_v32, %v23051_v34  ;;  %v23075_v34 = vld [vmem:[#allocation262_spill] sm:$0xff]  ;;  %v8285_v32 = vadd.f32 %v23077_v8, %v23076_v3 }
 0x62a   :  { %23066 = vst [vmem:[#allocation297_spill] sm:$0xff] %v19562_v23  ;;  %10433 = vperm.xlu0 %12415, %v9816_v40   ;;  %v8292_v40 = vadd.f32 %v23070_v59, %v23069_v54  ;;  %v9369_v39 = vmul.f32 %v12525_v52, %v9054_v47  ;;  %v12527_v4 = vpop.eup %12526  ;;  %v9811_v57 = vmul.f32 %v9347_v26, %v23053_v16  ;;  %v9047_v6 = vadd.f32 1.0, %v23075_v34  ;;  %v23080_v26 = vld [vmem:[#allocation328_spill] sm:$0xff]  ;;  %v23083_v34 = vld [vmem:[#allocation141_spill] sm:$0xff] }
 0x62b   :  { %v9351_v37 = vmul.f32 %v12527_v4, %v9045_v5  ;;  %v23081_v5 = vld [vmem:[#allocation123_spill] sm:$0xff] }
 0x62c   :  { %10406 = vperm.xlu1 %12414, %v9807_v22   ;;  %v19576_v33 = vpop.xlane.xlu1 %8712  ;;  %12536 = vrcp.f32 %v8292_v40  ;;  %v23074_v22 = vld [vmem:[#allocation194_spill] sm:$0xff]  ;;  %v9822_v47 = vmul.f32 %v9369_v39, %v23055_v13  ;;  %v9058_v40 = vadd.f32 1.0, %v19266_v18  ;;  %v8287_v4 = vadd.f32 %v23081_v5, %v23080_v26 }
 0x62d   :  { %v19574_v38 = vpop.xlane.xlu0 %8710  ;;  %v8294_v42 = vadd.f32 %v23074_v22, %v23073_v20  ;;  %12538 = vrcp.f32 %v8283_v15  ;;  %v23079_v20 = vld [vmem:[#allocation210_spill] sm:$0xff]  ;;  %v9813_v13 = vmul.f32 %v9351_v37, %v23058_v58  ;;  %v9049_v18 = vadd.f32 1.0, %v19229_v9 }
 0x62e   :  { %10439 = vperm.xlu0 %12415, %v9818_v50   ;;  %v12529_v46 = vpop.eup %12528 }
 0x62f   :  { %v9373_v63 = vmul.f32 %v12529_v46, %v9056_v53  ;;  %v12531_v52 = vpop.eup %12530  ;;  %12540 = vrcp.f32 %v8294_v42  ;;  %v9060_v46 = vadd.f32 1.0, %v19277_v41  ;;  %v23087_v41 = vld [vmem:[#allocation204_spill] sm:$0xff] }
 0x630   :  { %10412 = vperm.xlu1 %12414, %v9809_v30   ;;  %v19588_v54 = vpop.xlane.xlu1 %8716  ;;  %v23078_v30 = vld [vmem:[#allocation56_spill] sm:$0xff]  ;;  %v9355_v39 = vmul.f32 %v12531_v52, %v9047_v6  ;;  %12542 = vrcp.f32 %v8285_v32  ;;  %v23086_v32 = vld [vmem:[#allocation173_spill] sm:$0xff] }
 0x631   :  { %v19586_v50 = vpop.xlane.xlu0 %8714  ;;  %v12533_v15 = vpop.eup %12532  ;;  %v9824_v53 = vmul.f32 %v9373_v63, %v23060_v27  ;;  %v23085_v27 = vld [vmem:[#allocation221_spill] sm:$0xff]  ;;  %v8289_v63 = vadd.f32 %v23087_v41, %v23086_v32 }
 0x632   :  { %10445 = vperm.xlu0 %12415, %v9820_v44   ;;  %v8296_v44 = vadd.f32 %v23079_v20, %v23078_v30  ;;  %v9377_v42 = vmul.f32 %v12533_v15, %v9058_v40  ;;  %v12535_v26 = vpop.eup %12534  ;;  %v9815_v9 = vmul.f32 %v9355_v39, %v23063_v51  ;;  %v9051_v6 = vadd.f32 1.0, %v23085_v27  ;;  %v23092_v39 = vld [vmem:[#allocation296_spill] sm:$0xff]  ;;  %v23096_v32 = vld [vmem:[#allocation41_spill] sm:$0xff] }
 0x633   :  { %v9359_v37 = vmul.f32 %v12535_v26, %v9049_v18  ;;  %v23093_v18 = vld [vmem:[#allocation89_spill] sm:$0xff]  ;;  %v9064_v27 = vadd.f32 1.0, %v19300_v28  ;;  %v23100_v28 = vld [vmem:[#allocation19_spill] sm:$0xff] }
 0x634   :  { %10418 = vperm.xlu1 %12414, %v9811_v57   ;;  %v19600_v16 = vpop.xlane.xlu1 %8720  ;;  %12544 = vrcp.f32 %v8296_v44  ;;  %v23082_v57 = vld [vmem:[#allocation303_spill] sm:$0xff]  ;;  %v9826_v40 = vmul.f32 %v9377_v42, %v23065_v29  ;;  %v9062_v44 = vadd.f32 1.0, %v19288_v14  ;;  %v8291_v26 = vadd.f32 %v23093_v18, %v23092_v39 }
 0x635   :  { %v19598_v23 = vpop.xlane.xlu0 %8718  ;;  %v8298_v3 = vadd.f32 %v23083_v34, %v23082_v57  ;;  %12546 = vrcp.f32 %v8287_v4  ;;  %v23089_v57 = vld [vmem:[#allocation38_spill] sm:$0xff]  ;;  %v9817_v29 = vmul.f32 %v9359_v37, %v23068_v0 }
 0x636   :  { %10451 = vperm.xlu0 %12415, %v9822_v47   ;;  %v12537_v58 = vpop.eup %12536 }
 0x637   :  { %v9381_v52 = vmul.f32 %v12537_v58, %v9060_v46  ;;  %v12539_v15 = vpop.eup %12538  ;;  %12548 = vrcp.f32 %v8298_v3  ;;  %v23094_v46 = vld [vmem:[#allocation343_spill] sm:$0xff] }
 0x638   :  { %10424 = vperm.xlu1 %12414, %v9813_v13   ;;  %v19612_v30 = vpop.xlane.xlu1 %8724  ;;  %v23088_v13 = vld [vmem:[#allocation308_spill] sm:$0xff]  ;;  %v9363_v42 = vmul.f32 %v12539_v15, %v9051_v6  ;;  %v9053_v14 = vadd.f32 1.0, %v23094_v46  ;;  %12550 = vrcp.f32 %v8289_v63  ;;  %v23101_v46 = vld [vmem:[#allocation309_spill] sm:$0xff] }
 0x639   :  { %v19610_v47 = vpop.xlane.xlu0 %8722  ;;  %23084 = vst [vmem:[#allocation252_spill] sm:$0xff] %v19612_v30  ;;  %v12541_v4 = vpop.eup %12540  ;;  %v9828_v3 = vmul.f32 %v9381_v52, %v23070_v59  ;;  %v23098_v59 = vld [vmem:[#allocation226_spill] sm:$0xff] }
 0x63a   :  { %10457 = vperm.xlu0 %12415, %v9824_v53   ;;  %v8300_v53 = vadd.f32 %v23089_v57, %v23088_v13  ;;  %v9385_v58 = vmul.f32 %v12541_v4, %v9062_v44  ;;  %v12543_v39 = vpop.eup %12542  ;;  %v9819_v37 = vmul.f32 %v9363_v42, %v23072_v24  ;;  %v9055_v63 = vadd.f32 1.0, %v23098_v59  ;;  %v23099_v52 = vld [vmem:[#allocation306_spill] sm:$0xff] }
 0x63b   :  { %v9367_v6 = vmul.f32 %v12543_v39, %v9053_v14  ;;  %v8293_v44 = vadd.f32 %v23100_v28, %v23099_v52  ;;  %v9066_v4 = vadd.f32 1.0, %v19312_v49  ;;  %v23104_v42 = vld [vmem:[#allocation254_spill] sm:$0xff]  ;;  %v23105_v14 = vld [vmem:[#allocation251_spill] sm:$0xff] }
 0x63c   :  { %10430 = vperm.xlu1 %12414, %v9815_v9   ;;  %v19624_v51 = vpop.xlane.xlu1 %8728  ;;  %12552 = vrcp.f32 %v8300_v53  ;;  %v23095_v9 = vld [vmem:[#allocation145_spill] sm:$0xff]  ;;  %v9830_v15 = vmul.f32 %v9385_v58, %v23074_v22  ;;  %v8295_v39 = vadd.f32 %v23105_v14, %v23104_v42  ;;  %v23106_v22 = vld [vmem:[#allocation122_spill] sm:$0xff] }
 0x63d   :  { %v19622_v17 = vpop.xlane.xlu0 %8726  ;;  %23091 = vst [vmem:[#allocation108_spill] sm:$0xff] %v19624_v51  ;;  %v8302_v13 = vadd.f32 %v23096_v32, %v23095_v9  ;;  %12554 = vrcp.f32 %v8291_v26  ;;  %v23102_v9 = vld [vmem:[#allocation43_spill] sm:$0xff]  ;;  %v9821_v59 = vmul.f32 %v9367_v6, %v23077_v8  ;;  %v9057_v58 = vadd.f32 1.0, %v23106_v22 }
 0x63e   :  { %23090 = vst [vmem:[#allocation302_spill] sm:$0xff] %v19622_v17  ;;  %10463 = vperm.xlu0 %12415, %v9826_v40   ;;  %v12545_v0 = vpop.eup %12544  ;;  %v23114_v22 = vld [vmem:[#allocation35_spill] sm:$0xff]  ;;  %v23195_v17 = vld [vmem:[#allocation93_spill] sm:$0xff] }
 0x63f   :  { %v9389_v53 = vmul.f32 %v12545_v0, %v9064_v27  ;;  %12556 = vrcp.f32 %v8302_v13  ;;  %v9068_v0 = vadd.f32 1.0, %v19324_v10 }
 0x640   :  { %10436 = vperm.xlu1 %12414, %v9817_v29   ;;  %v19636_v21 = vpop.xlane.xlu1 %8732  ;;  %v12547_v29 = vpop.eup %12546  ;;  %12558 = vrcp.f32 %v8293_v44  ;;  %v23111_v44 = vld [vmem:[#allocation231_spill] sm:$0xff] }
 0x641   :  { %v19634_v40 = vpop.xlane.xlu0 %8730  ;;  %23097 = vst [vmem:[#allocation265_spill] sm:$0xff] %v19636_v21  ;;  %v12549_v24 = vpop.eup %12548  ;;  %v9371_v52 = vmul.f32 %v12547_v29, %v9055_v63  ;;  %v9832_v49 = vmul.f32 %v9389_v53, %v23079_v20  ;;  %v9059_v29 = vadd.f32 1.0, %v23111_v44  ;;  %v23112_v20 = vld [vmem:[#allocation16_spill] sm:$0xff]  ;;  %v23113_v53 = vld [vmem:[#allocation197_spill] sm:$0xff] }
 0x642   :  { %10469 = vperm.xlu0 %12415, %v9828_v3   ;;  %v8304_v3 = vadd.f32 %v23102_v9, %v23101_v46  ;;  %v9393_v13 = vmul.f32 %v12549_v24, %v9066_v4  ;;  %v12551_v42 = vpop.eup %12550  ;;  %v8297_v4 = vadd.f32 %v23113_v53, %v23112_v20  ;;  %v9070_v24 = vadd.f32 1.0, %v19336_v48  ;;  %v23121_v44 = vld [vmem:[#allocation320_spill] sm:$0xff] }
 0x643   :  { %v9823_v6 = vmul.f32 %v9371_v52, %v23081_v5  ;;  %v9375_v63 = vmul.f32 %v12551_v42, %v9057_v58  ;;  %v23118_v52 = vld [vmem:[#allocation178_spill] sm:$0xff]  ;;  %v23119_v58 = vld [vmem:[#allocation39_spill] sm:$0xff]  ;;  %v9072_v20 = vadd.f32 1.0, %v23121_v44 }
 0x644   :  { %10442 = vperm.xlu1 %12414, %v9819_v37   ;;  %v19646_v26 = vpop.xlane.xlu1 %8736  ;;  %12560 = vrcp.f32 %v8304_v3  ;;  %v23108_v37 = vld [vmem:[#allocation307_spill] sm:$0xff]  ;;  %v9834_v10 = vmul.f32 %v9393_v13, %v23083_v34  ;;  %v8299_v42 = vadd.f32 %v23119_v58, %v23118_v52 }
 0x645   :  { %23103 = vst [vmem:[#allocation59_spill] sm:$0xff] %v19646_v26  ;;  %v19652_v27 = vpop.xlane.xlu0 %8734  ;;  %12562 = vrcp.f32 %v8295_v39  ;;  %v9825_v34 = vmul.f32 %v9375_v63, %v23087_v41 }
 0x646   :  { %10475 = vperm.xlu0 %12415, %v9830_v15   ;;  %23107 = vst [vmem:[#allocation78_spill] sm:$0xff] %v19652_v27  ;;  %v23109_v15 = vld [vmem:[#allocation45_spill] sm:$0xff]  ;;  %v12553_v8 = vpop.eup %12552 }
 0x647   :  { %v8306_v46 = vadd.f32 %v23109_v15, %v23108_v37  ;;  %v9397_v3 = vmul.f32 %v12553_v8, %v9068_v0  ;;  %v23115_v37 = vld [vmem:[#allocation55_spill] sm:$0xff]  ;;  %v23120_v0 = vld [vmem:[#allocation21_spill] sm:$0xff] }
 0x648   :  { %10448 = vperm.xlu1 %12414, %v9821_v59   ;;  %v19658_v21 = vpop.permute.xlu1 %10277  ;;  %v12555_v59 = vpop.eup %12554  ;;  %v9061_v48 = vadd.f32 1.0, %v23120_v0  ;;  %v23129_v0 = vld [vmem:[#allocation206_spill] sm:$0xff] }
 0x649   :  { %23110 = vst [vmem:[#allocation225_spill] sm:$0xff] %v19658_v21  ;;  %12564 = vrcp.f32 %v8306_v46  ;;  %v19668_v21 = vpop.xlane.xlu0 %8738  ;;  %v12557_v39 = vpop.eup %12556  ;;  %v9379_v13 = vmul.f32 %v12555_v59, %v9059_v29  ;;  %v9836_v46 = vmul.f32 %v9397_v3, %v23089_v57  ;;  %v23126_v57 = vld [vmem:[#allocation235_spill] sm:$0xff]  ;;  %v9074_v44 = vadd.f32 1.0, %v23129_v0 }
 0x64a   :  { %10481 = vperm.xlu0 %12415, %v9832_v49   ;;  %v8308_v49 = vadd.f32 %v23115_v37, %v23114_v22  ;;  %23116 = vst [vmem:[#allocation124_spill] sm:$0xff] %v19668_v21  ;;  %12566 = vrcp.f32 %v8297_v4  ;;  %v9401_v8 = vmul.f32 %v12557_v39, %v9070_v24  ;;  %v23123_v22 = vld [vmem:[#allocation346_spill] sm:$0xff]  ;;  %v12559_v52 = vpop.eup %12558  ;;  %v9063_v4 = vadd.f32 1.0, %v23126_v57  ;;  %v23127_v3 = vld [vmem:[#allocation171_spill] sm:$0xff] }
 0x64b   :  { %v9827_v63 = vmul.f32 %v9379_v13, %v23093_v18  ;;  %v9383_v29 = vmul.f32 %v12559_v52, %v9061_v48  ;;  %v23128_v24 = vld [vmem:[#allocation42_spill] sm:$0xff]  ;;  %v23135_v48 = vld [vmem:[#allocation44_spill] sm:$0xff] }
 0x64c   :  { %10454 = vperm.xlu1 %12414, %v9823_v6   ;;  %v19670_v5 = vpop.permute.xlu1 %10283  ;;  %12568 = vrcp.f32 %v8308_v49  ;;  %v23122_v6 = vld [vmem:[#allocation311_spill] sm:$0xff]  ;;  %v8301_v59 = vadd.f32 %v23128_v24, %v23127_v3  ;;  %v9838_v49 = vmul.f32 %v9401_v8, %v23096_v32  ;;  %v23134_v13 = vld [vmem:[#allocation338_spill] sm:$0xff] }
 0x64d   :  { %23117 = vst [vmem:[#allocation87_spill] sm:$0xff] %v19670_v5  ;;  %v8310_v21 = vadd.f32 %v23123_v22, %v23122_v6  ;;  %12570 = vrcp.f32 %v8299_v42  ;;  %v23130_v6 = vld [vmem:[#allocation318_spill] sm:$0xff]  ;;  %v8303_v52 = vadd.f32 %v23135_v48, %v23134_v13  ;;  %v9829_v32 = vmul.f32 %v9383_v29, %v23100_v28  ;;  %v23142_v28 = vld [vmem:[#allocation172_spill] sm:$0xff] }
 0x64e   :  { %10487 = vperm.xlu0 %12415, %v9834_v10   ;;  %v12561_v41 = vpop.eup %12560  ;;  %v23137_v3 = vld [vmem:[#allocation86_spill] sm:$0xff] }
 0x64f   :  { %v9405_v39 = vmul.f32 %v12561_v41, %v9072_v20  ;;  %12572 = vrcp.f32 %v8310_v21  ;;  %v23136_v20 = vld [vmem:[#allocation274_spill] sm:$0xff]  ;;  %v9076_v0 = vadd.f32 1.0, %v23137_v3 }
 0x650   :  { %10460 = vperm.xlu1 %12414, %v9825_v34   ;;  %v19682_v5 = vpop.permute.xlu1 %10286  ;;  %v12563_v34 = vpop.eup %12562  ;;  %v9065_v41 = vadd.f32 1.0, %v23136_v20  ;;  %12574 = vrcp.f32 %v8301_v59  ;;  %v23143_v29 = vld [vmem:[#allocation46_spill] sm:$0xff] }
 0x651   :  { %v19680_v10 = vpop.permute.xlu0 %10280  ;;  %23125 = vst [vmem:[#allocation91_spill] sm:$0xff] %v19682_v5  ;;  %v23131_v5 = vld [vmem:[#allocation190_spill] sm:$0xff]  ;;  %v9387_v8 = vmul.f32 %v12563_v34, %v9063_v4  ;;  %v9840_v21 = vmul.f32 %v9405_v39, %v23102_v9  ;;  %v8305_v4 = vadd.f32 %v23143_v29, %v23142_v28  ;;  %v23148_v28 = vld [vmem:[#allocation348_spill] sm:$0xff] }
 0x652   :  { %23124 = vst [vmem:[#allocation151_spill] sm:$0xff] %v19680_v10  ;;  %10493 = vperm.xlu0 %12415, %v9836_v46   ;;  %v8312_v46 = vadd.f32 %v23131_v5, %v23130_v6  ;;  %v23139_v6 = vld [vmem:[#allocation342_spill] sm:$0xff] }
 0x653   :  { %v12565_v42 = vpop.eup %12564  ;;  %v9831_v9 = vmul.f32 %v9387_v8, %v23105_v14  ;;  %v23152_v8 = vld [vmem:[#allocation54_spill] sm:$0xff] }
 0x654   :  { %10466 = vperm.xlu1 %12414, %v9827_v63   ;;  %v19694_v18 = vpop.permute.xlu1 %10289  ;;  %v9409_v57 = vmul.f32 %v12565_v42, %v9074_v44  ;;  %12576 = vrcp.f32 %v8312_v46  ;;  %v23138_v63 = vld [vmem:[#allocation133_spill] sm:$0xff]  ;;  %v12567_v13 = vpop.eup %12566  ;;  %v23144_v44 = vld [vmem:[#allocation239_spill] sm:$0xff]  ;;  %v23146_v42 = vld [vmem:[#allocation340_spill] sm:$0xff] }
 0x655   :  { %v19692_v10 = vpop.permute.xlu0 %10307  ;;  %23133 = vst [vmem:[#allocation62_spill] sm:$0xff] %v19694_v18  ;;  %12578 = vrcp.f32 %v8303_v52  ;;  %v9391_v39 = vmul.f32 %v12567_v13, %v9065_v41  ;;  %v9067_v34 = vadd.f32 1.0, %v23144_v44  ;;  %v23145_v46 = vld [vmem:[#allocation257_spill] sm:$0xff]  ;;  %v23151_v52 = vld [vmem:[#allocation315_spill] sm:$0xff] }
 0x656   :  { %23132 = vst [vmem:[#allocation37_spill] sm:$0xff] %v19692_v10  ;;  %10499 = vperm.xlu0 %12415, %v9838_v49   ;;  %v8314_v10 = vadd.f32 %v23139_v6, %v23138_v63  ;;  %v12569_v59 = vpop.eup %12568  ;;  %v8307_v20 = vadd.f32 %v23146_v42, %v23145_v46  ;;  %v9842_v3 = vmul.f32 %v9409_v57, %v23109_v15  ;;  %v9078_v63 = vadd.f32 1.0, %v19384_v62  ;;  %v23153_v15 = vld [vmem:[#allocation60_spill] sm:$0xff]  ;;  %v23154_v57 = vld [vmem:[#allocation61_spill] sm:$0xff] }
 0x657   :  { %v8309_v41 = vadd.f32 %v23152_v8, %v23151_v52  ;;  %v9833_v62 = vmul.f32 %v9391_v39, %v23113_v53  ;;  %v9080_v46 = vadd.f32 1.0, %v19396_v35  ;;  %v23160_v53 = vld [vmem:[#allocation179_spill] sm:$0xff] }
 0x658   :  { %10472 = vperm.xlu1 %12414, %v9829_v32   ;;  %v19706_v18 = vpop.permute.xlu1 %10292  ;;  %v9413_v32 = vmul.f32 %v12569_v59, %v9076_v0  ;;  %12580 = vrcp.f32 %v8314_v10  ;;  %v8311_v0 = vadd.f32 %v23154_v57, %v23153_v15  ;;  %v23155_v59 = vld [vmem:[#allocation199_spill] sm:$0xff] }
 0x659   :  { %v19704_v49 = vpop.permute.xlu0 %10313  ;;  %23141 = vst [vmem:[#allocation81_spill] sm:$0xff] %v19706_v18  ;;  %v23147_v18 = vld [vmem:[#allocation313_spill] sm:$0xff]  ;;  %12582 = vrcp.f32 %v8305_v4  ;;  %v9069_v44 = vadd.f32 1.0, %v23155_v59 }
 0x65a   :  { %23140 = vst [vmem:[#allocation126_spill] sm:$0xff] %v19704_v49  ;;  %10505 = vperm.xlu0 %12415, %v9840_v21   ;;  %v12571_v49 = vpop.eup %12570  ;;  %v8316_v21 = vadd.f32 %v23148_v28, %v23147_v18  ;;  %12584 = vrcp.f32 %v8307_v20  ;;  %v9844_v18 = vmul.f32 %v9413_v32, %v23115_v37  ;;  %v23156_v4 = vld [vmem:[#allocation317_spill] sm:$0xff] }
 0x65b   :  { %v12573_v13 = vpop.eup %12572  ;;  %v9395_v10 = vmul.f32 %v12571_v49, %v9067_v34  ;;  %v23161_v49 = vld [vmem:[#allocation65_spill] sm:$0xff] }
 0x65c   :  { %10478 = vperm.xlu1 %12414, %v9831_v9   ;;  %v19720_v14 = vpop.permute.xlu1 %10295  ;;  %v9417_v9 = vmul.f32 %v12573_v13, %v9078_v63  ;;  %12586 = vrcp.f32 %v8316_v21  ;;  %v12575_v15 = vpop.eup %12574  ;;  %v8313_v39 = vadd.f32 %v23161_v49, %v23160_v53  ;;  %v23162_v20 = vld [vmem:[#allocation245_spill] sm:$0xff]  ;;  %v23163_v63 = vld [vmem:[#allocation268_spill] sm:$0xff] }
 0x65d   :  { %v19718_v26 = vpop.permute.xlu0 %10319  ;;  %23150 = vst [vmem:[#allocation326_spill] sm:$0xff] %v19720_v14  ;;  %12588 = vrcp.f32 %v8309_v41  ;;  %v9835_v37 = vmul.f32 %v9395_v10, %v23119_v58  ;;  %v9399_v35 = vmul.f32 %v12575_v15, %v9069_v44  ;;  %v9071_v32 = vadd.f32 1.0, %v23162_v20  ;;  %v23164_v21 = vld [vmem:[#allocation69_spill] sm:$0xff]  ;;  %v23167_v53 = vld [vmem:[#allocation200_spill] sm:$0xff]  ;;  %v23174_v20 = vld [vmem:[#allocation250_spill] sm:$0xff] }
 0x65e   :  { %23149 = vst [vmem:[#allocation132_spill] sm:$0xff] %v19718_v26  ;;  %10511 = vperm.xlu0 %12415, %v9842_v3   ;;  %v23157_v26 = vld [vmem:[#allocation195_spill] sm:$0xff]  ;;  %v12577_v34 = vpop.eup %12576  ;;  %12590 = vrcp.f32 %v8311_v0  ;;  %v8315_v13 = vadd.f32 %v23164_v21, %v23163_v63  ;;  %v23170_v0 = vld [vmem:[#allocation177_spill] sm:$0xff]  ;;  %v23171_v10 = vld [vmem:[#allocation72_spill] sm:$0xff]  ;;  %v9073_v63 = vadd.f32 1.0, %v23174_v20 }
 0x65f   :  { %v8318_v52 = vadd.f32 %v23157_v26, %v23156_v4  ;;  %v9421_v59 = vmul.f32 %v12577_v34, %v9080_v46  ;;  %v23165_v4 = vld [vmem:[#allocation169_spill] sm:$0xff]  ;;  %v12579_v41 = vpop.eup %12578  ;;  %v8317_v44 = vadd.f32 %v23171_v10, %v23170_v0  ;;  %v9837_v34 = vmul.f32 %v9399_v35, %v23128_v24  ;;  %v23177_v0 = vld [vmem:[#allocation88_spill] sm:$0xff] }
 0x660   :  { %10484 = vperm.xlu1 %12414, %v9833_v62   ;;  %v19734_v14 = vpop.permute.xlu1 %10298  ;;  %v9846_v62 = vmul.f32 %v9417_v9, %v23123_v22  ;;  %v23172_v22 = vld [vmem:[#allocation310_spill] sm:$0xff]  ;;  %v23173_v9 = vld [vmem:[#allocation77_spill] sm:$0xff]  ;;  %v23180_v35 = vld [vmem:[#allocation176_spill] sm:$0xff] }
 0x661   :  { %v19732_v3 = vpop.permute.xlu0 %10325  ;;  %23159 = vst [vmem:[#allocation32_spill] sm:$0xff] %v19734_v14  ;;  %v9082_v14 = vadd.f32 1.0, %v23165_v4  ;;  %12592 = vrcp.f32 %v8318_v52  ;;  %v8319_v46 = vadd.f32 %v23173_v9, %v23172_v22  ;;  %v9403_v52 = vmul.f32 %v12579_v41, %v9071_v32  ;;  %v23181_v32 = vld [vmem:[#allocation67_spill] sm:$0xff] }
 0x662   :  { %23158 = vst [vmem:[#allocation332_spill] sm:$0xff] %v19732_v3  ;;  %10517 = vperm.xlu0 %12415, %v9844_v18   ;;  %v23166_v3 = vld [vmem:[#allocation33_spill] sm:$0xff]  ;;  %12594 = vrcp.f32 %v8313_v39  ;;  %v12581_v15 = vpop.eup %12580  ;;  %v8322_v41 = vadd.f32 %v23181_v32, %v23180_v35  ;;  %v23185_v35 = vld [vmem:[#allocation114_spill] sm:$0xff] }
 0x663   :  { %v8320_v18 = vadd.f32 %v23167_v53, %v23166_v3  ;;  %v12583_v3 = vpop.eup %12582  ;;  %12596 = vrcp.f32 %v8315_v13  ;;  %v9425_v4 = vmul.f32 %v12581_v15, %v9082_v14  ;;  %v23184_v15 = vld [vmem:[#allocation80_spill] sm:$0xff] }
 0x664   :  { %10490 = vperm.xlu1 %12414, %v9835_v37   ;;  %v19748_v58 = vpop.permute.xlu1 %10301  ;;  %v9848_v37 = vmul.f32 %v9421_v59, %v23131_v5  ;;  %v12585_v24 = vpop.eup %12584  ;;  %v9839_v5 = vmul.f32 %v9403_v52, %v23135_v48  ;;  %v9407_v14 = vmul.f32 %v12583_v3, %v9073_v63  ;;  %v23182_v59 = vld [vmem:[#allocation149_spill] sm:$0xff]  ;;  %v23189_v52 = vld [vmem:[#allocation106_spill] sm:$0xff]  ;;  %v23190_v63 = vld [vmem:[#allocation71_spill] sm:$0xff] }
 0x665   :  { %v19746_v51 = vpop.permute.xlu0 %10331  ;;  %23169 = vst [vmem:[#allocation232_spill] sm:$0xff] %v19748_v58  ;;  %v23175_v58 = vld [vmem:[#allocation209_spill] sm:$0xff]  ;;  %12598 = vrcp.f32 %v8320_v18  ;;  %v9075_v18 = vadd.f32 1.0, %v23182_v59  ;;  %v8324_v3 = vadd.f32 %v23190_v63, %v23189_v52 }
 0x666   :  { %23168 = vst [vmem:[#allocation336_spill] sm:$0xff] %v19746_v51  ;;  %10523 = vperm.xlu0 %12415, %v9846_v62   ;;  %v9084_v39 = vadd.f32 1.0, %v23175_v58  ;;  %v23176_v51 = vld [vmem:[#allocation218_spill] sm:$0xff]  ;;  %12600 = vrcp.f32 %v8317_v44  ;;  %v12587_v13 = vpop.eup %12586  ;;  %v9086_v44 = vadd.f32 1.0, %v19432_v60  ;;  %v9841_v60 = vmul.f32 %v9407_v14, %v23143_v29  ;;  %v23199_v14 = vld [vmem:[#allocation92_spill] sm:$0xff] }
 0x667   :  { %v8325_v62 = vadd.f32 %v23177_v0, %v23176_v51  ;;  %12602 = vrcp.f32 %v8319_v46  ;;  %v12589_v58 = vpop.eup %12588  ;;  %v23183_v51 = vld [vmem:[#allocation184_spill] sm:$0xff] }
 0x668   :  { %10496 = vperm.xlu1 %12414, %v9837_v34   ;;  %v19762_v22 = vpop.permute.xlu1 %10304  ;;  %v8321_v20 = vadd.f32 %v23184_v15, %v23183_v51  ;;  %v9850_v34 = vmul.f32 %v9425_v4, %v23139_v6  ;;  %v23191_v6 = vld [vmem:[#allocation64_spill] sm:$0xff]  ;;  %v23192_v4 = vld [vmem:[#allocation85_spill] sm:$0xff] }
 0x669   :  { %v19760_v27 = vpop.permute.xlu0 %10337  ;;  %23179 = vst [vmem:[#allocation356_spill] sm:$0xff] %v19762_v22  ;;  %v9429_v22 = vmul.f32 %v12587_v13, %v9084_v39  ;;  %12604 = vrcp.f32 %v8325_v62  ;;  %v8323_v39 = vadd.f32 %v23192_v4, %v23191_v6  ;;  %v9411_v62 = vmul.f32 %v12585_v24, %v9075_v18  ;;  %v23193_v13 = vld [vmem:[#allocation259_spill] sm:$0xff]  ;;  %v23198_v24 = vld [vmem:[#allocation322_spill] sm:$0xff] }
 0x66a   :  { %23178 = vst [vmem:[#allocation79_spill] sm:$0xff] %v19760_v27  ;;  %10529 = vperm.xlu0 %12415, %v9848_v37   ;;  %v12591_v27 = vpop.eup %12590  ;;  %v23186_v37 = vld [vmem:[#allocation224_spill] sm:$0xff]  ;;  %12606 = vrcp.f32 %v8322_v41  ;;  %v9077_v51 = vadd.f32 1.0, %v23193_v13  ;;  %v9088_v41 = vadd.f32 1.0, %v19444_v11  ;;  %v8326_v18 = vadd.f32 %v23199_v14, %v23198_v24 }
 0x66b   :  { %v8340_v32 = vadd.f32 %v23186_v37, %v23185_v35  ;;  %v12593_v59 = vpop.eup %12592  ;;  %12608 = vrcp.f32 %v8321_v20  ;;  %v9843_v11 = vmul.f32 %v9411_v62, %v23146_v42  ;;  %v23200_v20 = vld [vmem:[#allocation82_spill] sm:$0xff] }
 0x66c   :  { %10502 = vperm.xlu1 %12414, %v9839_v5   ;;  %v19776_v48 = vpop.permute.xlu1 %10310  ;;  %v12595_v35 = vpop.eup %12594  ;;  %v9852_v5 = vmul.f32 %v9429_v22, %v23148_v28  ;;  %v9415_v22 = vmul.f32 %v12589_v58, %v9077_v51  ;;  %v23207_v62 = vld [vmem:[#allocation222_spill] sm:$0xff]  ;;  %v23208_v51 = vld [vmem:[#allocation96_spill] sm:$0xff] }
 0x66d   :  { %v19774_v46 = vpop.permute.xlu0 %10343  ;;  %23188 = vst [vmem:[#allocation238_spill] sm:$0xff] %v19776_v48  ;;  %v23194_v48 = vld [vmem:[#allocation107_spill] sm:$0xff]  ;;  %12610 = vrcp.f32 %v8340_v32  ;;  %v19792_v29 = vpop.eup %12596 }
 0x66e   :  { %23187 = vst [vmem:[#allocation63_spill] sm:$0xff] %v19774_v46  ;;  %10535 = vperm.xlu0 %12415, %v9850_v34   ;;  %v9433_v46 = vmul.f32 %v12593_v59, %v9086_v44  ;;  %v8327_v52 = vadd.f32 %v23195_v17, %v23194_v48  ;;  %12612 = vrcp.f32 %v8324_v3  ;;  %v9079_v44 = vadd.f32 1.0, %v23200_v20  ;;  %v23201_v48 = vld [vmem:[#allocation66_spill] sm:$0xff]  ;;  %v23202_v59 = vld [vmem:[#allocation208_spill] sm:$0xff] }
 0x66f   :  { %v12599_v28 = vpop.eup %12598  ;;  %12614 = vrcp.f32 %v8323_v39  ;;  %v9093_v3 = vadd.f32 1.0, %v19478_v36  ;;  %v23204_v39 = vld [vmem:[#allocation351_spill] sm:$0xff]  ;;  %v8329_v20 = vadd.f32 %v23208_v51, %v23207_v62  ;;  %v23213_v62 = vld [vmem:[#allocation325_spill] sm:$0xff] }
 0x670   :  { %10508 = vperm.xlu1 %12414, %v9841_v60   ;;  %v19790_v6 = vpop.permute.xlu1 %10316  ;;  %v19798_v32 = vpop.eup %12600  ;;  %v8328_v60 = vadd.f32 %v23202_v59, %v23201_v48  ;;  %v9854_v13 = vmul.f32 %v9433_v46, %v23157_v26  ;;  %12616 = vrcp.f32 %v8327_v52  ;;  %v23209_v46 = vld [vmem:[#allocation319_spill] sm:$0xff]  ;;  %v9419_v52 = vmul.f32 %v12591_v27, %v9079_v44  ;;  %v23211_v48 = vld [vmem:[#allocation264_spill] sm:$0xff] }
 0x671   :  { %v19788_v34 = vpop.permute.xlu0 %10349  ;;  %23197 = vst [vmem:[#allocation316_spill] sm:$0xff] %v19790_v6  ;;  %v9437_v6 = vmul.f32 %v12599_v28, %v9088_v41  ;;  %12618 = vrcp.f32 %v8326_v18  ;;  %v23210_v41 = vld [vmem:[#allocation102_spill] sm:$0xff]  ;;  %v9845_v28 = vmul.f32 %v9415_v22, %v23152_v8  ;;  %v9081_v4 = vadd.f32 1.0, %v23211_v48  ;;  %v23218_v22 = vld [vmem:[#allocation207_spill] sm:$0xff] }
 0x672   :  { %23196 = vst [vmem:[#allocation17_spill] sm:$0xff] %v19788_v34  ;;  %10541 = vperm.xlu0 %12415, %v9852_v5   ;;  %v19804_v34 = vpop.eup %12602  ;;  %v23203_v5 = vld [vmem:[#allocation183_spill] sm:$0xff]  ;;  %v8332_v36 = vadd.f32 %v23210_v41, %v23209_v46  ;;  %12620 = vrcp.f32 %v8328_v60  ;;  %v9108_v18 = vadd.f32 1.0, %v19564_v12  ;;  %v23217_v8 = vld [vmem:[#allocation186_spill] sm:$0xff]  ;;  %v9847_v12 = vmul.f32 %v9419_v52, %v23154_v57 }
 0x673   :  { %v8330_v24 = vadd.f32 %v23204_v39, %v23203_v5  ;;  %v12605_v26 = vpop.eup %12604  ;;  %v8334_v44 = vadd.f32 %v23218_v22, %v23217_v8  ;;  %v23219_v60 = vld [vmem:[#allocation270_spill] sm:$0xff]  ;;  %v23228_v52 = vld [vmem:[#allocation111_spill] sm:$0xff] }
 0x674   :  { %10514 = vperm.xlu1 %12414, %v9843_v11   ;;  %v19810_v58 = vpop.permute.xlu1 %10322  ;;  %v19818_v5 = vpop.eup %12606  ;;  %v9856_v11 = vmul.f32 %v9437_v6, %v23167_v53  ;;  %v9423_v6 = vmul.f32 %v12595_v35, %v9081_v4  ;;  %v23227_v35 = vld [vmem:[#allocation324_spill] sm:$0xff] }
 0x675   :  { %v19808_v42 = vpop.permute.xlu0 %10355  ;;  %23206 = vst [vmem:[#allocation75_spill] sm:$0xff] %v19810_v58  ;;  %23212 = vst [vmem:[#allocation97_spill] sm:$0xff] %v19818_v5  ;;  %v9447_v58 = vmul.f32 %v12605_v26, %v9093_v3  ;;  %12622 = vrcp.f32 %v8330_v24  ;;  %v19828_v27 = vpop.eup %12608  ;;  %v9083_v3 = vadd.f32 1.0, %v23219_v60  ;;  %v23220_v26 = vld [vmem:[#allocation228_spill] sm:$0xff]  ;;  %v8335_v60 = vadd.f32 %v23228_v52, %v23227_v35 }
 0x676   :  { %23205 = vst [vmem:[#allocation349_spill] sm:$0xff] %v19808_v42  ;;  %10547 = vperm.xlu0 %12415, %v9854_v13   ;;  %v23214_v13 = vld [vmem:[#allocation101_spill] sm:$0xff]  ;;  %12624 = vrcp.f32 %v8329_v20  ;;  %v9095_v20 = vadd.f32 1.0, %v19490_v7  ;;  %v23230_v7 = vld [vmem:[#allocation94_spill] sm:$0xff]  ;;  %v23233_v35 = vld [vmem:[#allocation116_spill] sm:$0xff] }
 0x677   :  { %v8331_v42 = vadd.f32 %v23214_v13, %v23213_v62  ;;  %v12611_v53 = vpop.eup %12610  ;;  %12626 = vrcp.f32 %v8332_v36  ;;  %v9861_v62 = vmul.f32 %v9447_v58, %v23177_v0  ;;  %v23224_v36 = vld [vmem:[#allocation100_spill] sm:$0xff]  ;;  %v23229_v58 = vld [vmem:[#allocation227_spill] sm:$0xff] }
 0x678   :  { %10520 = vperm.xlu1 %12414, %v9845_v28   ;;  %v19826_v46 = vpop.permute.xlu1 %10328  ;;  %v19834_v24 = vpop.eup %12612  ;;  %v23221_v28 = vld [vmem:[#allocation104_spill] sm:$0xff] }
 0x679   :  { %v19824_v30 = vpop.permute.xlu0 %10361  ;;  %23216 = vst [vmem:[#allocation158_spill] sm:$0xff] %v19826_v46  ;;  %v8333_v48 = vadd.f32 %v23221_v28, %v23220_v26  ;;  %v19840_v5 = vpop.eup %12614  ;;  %12628 = vrcp.f32 %v8331_v42  ;;  %v9427_v42 = vmul.f32 %v19792_v29, %v9083_v3  ;;  %v23231_v26 = vld [vmem:[#allocation275_spill] sm:$0xff]  ;;  %v23236_v3 = vld [vmem:[#allocation353_spill] sm:$0xff] }
 0x67a   :  { %23215 = vst [vmem:[#allocation138_spill] sm:$0xff] %v19824_v30  ;;  %10553 = vperm.xlu0 %12415, %v9856_v11   ;;  %v9477_v30 = vmul.f32 %v12611_v53, %v9108_v18  ;;  %23222 = vst [vmem:[#allocation205_spill] sm:$0xff] %v19840_v5  ;;  %v23223_v11 = vld [vmem:[#allocation70_spill] sm:$0xff]  ;;  %12630 = vrcp.f32 %v8334_v44  ;;  %v12617_v0 = vpop.eup %12616  ;;  %v8338_v18 = vadd.f32 %v23230_v7, %v23229_v58  ;;  %v9096_v44 = vadd.f32 1.0, %v19492_v1 }
 0x67b   :  { %v8336_v8 = vadd.f32 %v23224_v36, %v23223_v11  ;;  %v9849_v53 = vmul.f32 %v9423_v6, %v23161_v49  ;;  %v9085_v11 = vadd.f32 1.0, %v23231_v26  ;;  %v19855_v36 = vpop.eup %12618  ;;  %12632 = vrcp.f32 %v8333_v48  ;;  %v23235_v6 = vld [vmem:[#allocation335_spill] sm:$0xff]  ;;  %v23239_v26 = vld [vmem:[#allocation125_spill] sm:$0xff] }
 0x67c   :  { %10526 = vperm.xlu1 %12414, %v9847_v12   ;;  %v19846_v4 = vpop.permute.xlu1 %10334  ;;  %v9451_v12 = vmul.f32 %v12617_v0, %v9095_v20  ;;  %v12621_v29 = vpop.eup %12620  ;;  %v8342_v58 = vadd.f32 %v23236_v3, %v23235_v6  ;;  %v9851_v1 = vmul.f32 %v9427_v42, %v23164_v21  ;;  %v23238_v0 = vld [vmem:[#allocation329_spill] sm:$0xff]  ;;  %v23243_v42 = vld [vmem:[#allocation327_spill] sm:$0xff] }
 0x67d   :  { %v19844_v57 = vpop.permute.xlu0 %10367  ;;  %23226 = vst [vmem:[#allocation84_spill] sm:$0xff] %v19846_v4  ;;  %12634 = vrcp.f32 %v8336_v8  ;;  %v9453_v7 = vmul.f32 %v12621_v29, %v9096_v44  ;;  %v23246_v44 = vld [vmem:[#allocation27_spill] sm:$0xff] }
 0x67e   :  { %23225 = vst [vmem:[#allocation352_spill] sm:$0xff] %v19844_v57  ;;  %10568 = vperm.xlu0 %12415, %v9861_v62   ;;  %v9876_v57 = vmul.f32 %v9477_v30, %v23186_v37  ;;  %v23232_v62 = vld [vmem:[#allocation331_spill] sm:$0xff]  ;;  %12636 = vrcp.f32 %v8335_v60  ;;  %v9431_v30 = vmul.f32 %v19798_v32, %v9085_v11  ;;  %v23237_v37 = vld [vmem:[#allocation350_spill] sm:$0xff]  ;;  %v9097_v60 = vadd.f32 1.0, %v19502_v61 }
 0x67f   :  { %v8337_v4 = vadd.f32 %v23233_v35, %v23232_v62  ;;  %v12623_v48 = vpop.eup %12622  ;;  %12638 = vrcp.f32 %v8338_v18  ;;  %v9087_v20 = vadd.f32 1.0, %v23237_v37  ;;  %v9863_v62 = vmul.f32 %v9451_v12, %v23195_v17  ;;  %v23241_v18 = vld [vmem:[#allocation118_spill] sm:$0xff] }
 0x680   :  { %10532 = vperm.xlu1 %12414, %v9849_v53   ;;  %v19863_v49 = vpop.permute.xlu1 %10340  ;;  %v12625_v8 = vpop.eup %12624  ;;  %v8341_v53 = vadd.f32 %v23239_v26, %v23238_v0  ;;  %v23244_v11 = vld [vmem:[#allocation130_spill] sm:$0xff]  ;;  %v9853_v29 = vmul.f32 %v9431_v30, %v23171_v10  ;;  %v9092_v0 = vadd.f32 1.0, %v19468_v2 }
 0x681   :  { %v19861_v46 = vpop.permute.xlu0 %10373  ;;  %23234 = vst [vmem:[#allocation240_spill] sm:$0xff] %v19863_v49  ;;  %v19874_v49 = vpop.eup %12626  ;;  %12640 = vrcp.f32 %v8337_v4  ;;  %v8343_v37 = vadd.f32 %v23244_v11, %v23243_v42  ;;  %v23245_v12 = vld [vmem:[#allocation334_spill] sm:$0xff]  ;;  %v9435_v4 = vmul.f32 %v19804_v34, %v9087_v20  ;;  %v23248_v42 = vld [vmem:[#allocation135_spill] sm:$0xff] }
 0x682   :  { %10613 = vperm.xlu0 %12415, %v9876_v57   ;;  %v23240_v57 = vld [vmem:[#allocation105_spill] sm:$0xff]  ;;  %12642 = vrcp.f32 %v8342_v58  ;;  %v8346_v61 = vadd.f32 %v23246_v44, %v23245_v12  ;;  %v9455_v58 = vmul.f32 %v12625_v8, %v9097_v60  ;;  %v23250_v2 = vld [vmem:[#allocation50_spill] sm:$0xff]  ;;  %v23255_v12 = vld [vmem:[#allocation140_spill] sm:$0xff] }
 0x683   :  { %v8344_v6 = vadd.f32 %v23241_v18, %v23240_v57  ;;  %v12629_v17 = vpop.eup %12628  ;;  %12644 = vrcp.f32 %v8341_v53  ;;  %v23251_v30 = vld [vmem:[#allocation30_spill] sm:$0xff] }
 0x684   :  { %10538 = vperm.xlu1 %12414, %v9851_v1   ;;  %v19880_v32 = vpop.permute.xlu1 %10346  ;;  %v19889_v57 = vpop.eup %12630  ;;  %v9864_v1 = vmul.f32 %v9453_v7, %v23202_v59  ;;  %v8348_v20 = vadd.f32 %v23251_v30, %v23250_v2  ;;  %v9445_v7 = vmul.f32 %v19834_v24, %v9092_v0  ;;  %v23253_v8 = vld [vmem:[#allocation278_spill] sm:$0xff]  ;;  %v9099_v2 = vadd.f32 1.0, %v19514_v45  ;;  %v23260_v0 = vld [vmem:[#allocation99_spill] sm:$0xff] }
 0x685   :  { %v19878_v21 = vpop.permute.xlu0 %10379  ;;  %23242 = vst [vmem:[#allocation142_spill] sm:$0xff] %v19880_v32  ;;  %v9098_v32 = vadd.f32 1.0, %v19504_v55  ;;  %12646 = vrcp.f32 %v8344_v6  ;;  %v19899_v34 = vpop.eup %12632  ;;  %v9855_v55 = vmul.f32 %v9435_v4, %v23173_v9  ;;  %v9094_v53 = vadd.f32 1.0, %v23253_v8  ;;  %v23254_v6 = vld [vmem:[#allocation73_spill] sm:$0xff]  ;;  %v23261_v8 = vld [vmem:[#allocation34_spill] sm:$0xff]  ;;  %v23263_v45 = vld [vmem:[#allocation147_spill] sm:$0xff] }
 0x686   :  { %10574 = vperm.xlu0 %12415, %v9863_v62   ;;  %v23247_v62 = vld [vmem:[#allocation333_spill] sm:$0xff]  ;;  %12648 = vrcp.f32 %v8343_v37  ;;  %v9865_v37 = vmul.f32 %v9455_v58, %v23208_v51 }
 0x687   :  { %v8345_v35 = vadd.f32 %v23248_v42, %v23247_v62  ;;  %v19903_v59 = vpop.eup %12634  ;;  %12650 = vrcp.f32 %v8346_v61  ;;  %v9457_v62 = vmul.f32 %v12623_v48, %v9098_v32  ;;  %v23257_v61 = vld [vmem:[#allocation339_spill] sm:$0xff]  ;;  %v23262_v48 = vld [vmem:[#allocation68_spill] sm:$0xff]  ;;  %v9449_v58 = vmul.f32 %v19855_v36, %v9094_v53 }
 0x688   :  { %10544 = vperm.xlu1 %12414, %v9853_v29   ;;  %v19897_v10 = vpop.permute.xlu1 %10352  ;;  %23252 = vst [vmem:[#allocation276_spill] sm:$0xff] %v19903_v59  ;;  %v19908_v60 = vpop.eup %12636  ;;  %v8347_v29 = vadd.f32 %v23255_v12, %v23254_v6  ;;  %v8349_v6 = vadd.f32 %v23261_v8, %v23260_v0  ;;  %v8351_v32 = vadd.f32 %v23263_v45, %v23262_v48  ;;  %v23265_v0 = vld [vmem:[#allocation233_spill] sm:$0xff]  ;;  %v23266_v36 = vld [vmem:[#allocation115_spill] sm:$0xff]  ;;  %v23268_v53 = vlaneseq }
 0x689   :  { %v19895_v5 = vpop.permute.xlu0 %10385  ;;  %23249 = vst [vmem:[#allocation246_spill] sm:$0xff] %v19897_v10  ;;  %12652 = vrcp.f32 %v8345_v35  ;;  %v23258_v10 = vld [vmem:[#allocation120_spill] sm:$0xff]  ;;  %v9860_v35 = vmul.f32 %v9445_v7, %v23190_v63 }
 0x68a   :  { %10577 = vperm.xlu0 %12415, %v9864_v1   ;;  %v19914_v1 = vpop.eup %12638  ;;  %v8350_v9 = vadd.f32 %v23258_v10, %v23257_v61  ;;  %12654 = vrcp.f32 %v8348_v20  ;;  %v9109_v61 = vadd.f32 1.0, %v19574_v38  ;;  %v9459_v20 = vmul.f32 %v12629_v17, %v9099_v2  ;;  %v23267_v38 = vld [vmem:[#allocation153_spill] sm:$0xff] }
 0x68b   :  { %23256 = vst [vmem:[#allocation271_spill] sm:$0xff] %v19914_v1  ;;  %v19924_v51 = vpop.eup %12640  ;;  %12656 = vrcp.f32 %v8347_v29  ;;  %v8353_v7 = vadd.f32 %v23267_v38, %v23266_v36  ;;  %v19942_v29 = vand.u32 127, %v23268_v53 }
 0x68c   :  { %10550 = vperm.xlu1 %12414, %v9855_v55   ;;  %v19920_v24 = vpop.permute.xlu1 %10358  ;;  %v12643_v1 = vpop.eup %12642  ;;  %v9866_v55 = vmul.f32 %v9457_v62, %v23204_v39  ;;  %12658 = vrcp.f32 %v8350_v9  ;;  %v9110_v62 = vadd.f32 1.0, %v19576_v33  ;;  %v9867_v9 = vmul.f32 %v9459_v20, %v23214_v13 }
 0x68d   :  { %v19918_v4 = vpop.permute.xlu0 %10391  ;;  %23259 = vst [vmem:[#allocation98_spill] sm:$0xff] %v19920_v24  ;;  %v9100_v24 = vadd.f32 1.0, %v19516_v43  ;;  %v12645_v63 = vpop.eup %12644  ;;  %12660 = vrcp.f32 %v8349_v6  ;;  %v9862_v43 = vmul.f32 %v9449_v58, %v23199_v14  ;;  %v11064_v33 = vadd.s32 4294967272, %v19942_v29  ;;  %v23270_v58 = vld [vmem:[#allocation11_spill] sm:$0xff] }
 0x68e   :  { %10580 = vperm.xlu0 %12415, %v9865_v37   ;;  %v23264_v37 = vld [vmem:[#allocation47_spill] sm:$0xff]  ;;  %12662 = vrcp.f32 %v8351_v32  ;;  %v9479_v17 = vmul.f32 %v12645_v63, %v9109_v61 }
 0x68f   :  { %v8354_v10 = vadd.f32 %v23265_v0, %v23264_v37  ;;  %v19944_v39 = vpop.eup %12646  ;;  %v9461_v6 = vmul.f32 %v19874_v49, %v9100_v24  ;;  %v11050_v37 = vadd.s32 4294967288, %v19942_v29  ;;  %v9481_v49 = vmul.f32 %v12643_v1, %v9110_v62 }
 0x690   :  { %10565 = vperm.xlu1 %12414, %v9860_v35   ;;  %v19937_v48 = vpop.permute.xlu1 %10364  ;;  %v12649_v2 = vpop.eup %12648  ;;  %v9101_v35 = vadd.f32 1.0, %v19526_v56  ;;  %v9877_v56 = vmul.f32 %v9479_v17, %v23239_v26  ;;  %v9111_v24 = vadd.f32 1.0, %v19586_v50  ;;  %v11071_v50 = vadd.s32 4294967264, %v19942_v29 }
 0x691   :  { %v19935_v59 = vpop.permute.xlu0 %10397  ;;  %v19952_v36 = vpop.eup %12650  ;;  %12664 = vrcp.f32 %v8354_v10  ;;  %v19966_v10 = vsub.s32 %v19942_v29, %v23270_v58  ;;  %v9868_v20 = vmul.f32 %v9461_v6, %v23210_v41  ;;  %v19974_v53 = vsub.s32 %v11050_v37, %v23270_v58 }
 0x692   :  { %10583 = vperm.xlu0 %12415, %v9866_v55   ;;  %v11057_v55 = vadd.s32 4294967280, %v19942_v29  ;;  %12666 = vrcp.f32 %v8353_v7  ;;  %v9463_v63 = vmul.f32 %v19899_v34, %v9101_v35  ;;  %v9102_v7 = vadd.f32 1.0, %v19528_v19 }
 0x693   :  { %v19960_v13 = vpop.eup %12652  ;;  %v19985_v41 = vsub.s32 %v11064_v33, %v23270_v58  ;;  %v11078_v19 = vadd.s32 4294967256, %v19942_v29  ;;  %v11237_v34 = vrot.slane %v19861_v46, %v19966_v10  ;;  %v9878_v6 = vmul.f32 %v9481_v49, %v23236_v3 }
 0x694   :  { %10571 = vperm.xlu1 %12414, %v9862_v43   ;;  %v19957_v14 = vpop.permute.xlu1 %10370  ;;  %v19968_v61 = vpop.eup %12654  ;;  %v19977_v26 = vsub.s32 %v11057_v55, %v23270_v58  ;;  %v9483_v35 = vmul.f32 %v12649_v2, %v9111_v24  ;;  %v9112_v37 = vadd.f32 1.0, %v19588_v54  ;;  %v9103_v46 = vadd.f32 1.0, %v19538_v25 }
 0x695   :  { %v19955_v32 = vpop.permute.xlu0 %10403  ;;  %23269 = vst [vmem:[#allocation234_spill] sm:$0xff] %v19957_v14  ;;  %v19982_v17 = vpop.eup %12656  ;;  %v9465_v14 = vmul.f32 %v19889_v57, %v9102_v7  ;;  %v20004_v3 = vsub.s32 %v11071_v50, %v23270_v58  ;;  %v11085_v54 = vadd.s32 4294967248, %v19942_v29  ;;  %v11092_v25 = vadd.s32 4294967240, %v19942_v29 }
 0x696   :  { %10586 = vperm.xlu0 %12415, %v9867_v9   ;;  %v19991_v9 = vpop.eup %12658  ;;  %v11246_v55 = vrot.slane %v19878_v21, %v19977_v26  ;;  %v9485_v7 = vmul.f32 %v19944_v39, %v9112_v37  ;;  %v9113_v50 = vadd.f32 1.0, %v19598_v23  ;;  %v11099_v39 = vadd.s32 4294967232, %v19942_v29 }
 0x697   :  { %v19997_v33 = vpop.eup %12660  ;;  %v20036_v37 = vsub.s32 %v11092_v25, %v23270_v58  ;;  %v9119_v25 = vadd.f32 1.0, %v19634_v40  ;;  %v11120_v40 = vadd.s32 4294967208, %v19942_v29 }
 0x698   :  { %10616 = vperm.xlu1 %12414, %v9877_v56   ;;  %v10377_v43 = vpop.permute.xlu1 %10376  ;;  %v9869_v56 = vmul.f32 %v9463_v63, %v23221_v28  ;;  %v20011_v28 = vsub.s32 %v11078_v19, %v23270_v58  ;;  %v9879_v63 = vmul.f32 %v9483_v35, %v23244_v11  ;;  %v23271_v19 = vld [vmem:[#allocation280_spill] sm:$0xff]  ;;  %v20029_v11 = vsub.s32 %v11085_v54, %v23270_v58 }
 0x699   :  { %v19980_v1 = vpop.permute.xlu0 %10409  ;;  %v11241_v62 = vrot.slane %v10377_v43, %v19974_v53  ;;  %v12663_v43 = vpop.eup %12662  ;;  %v9114_v54 = vadd.f32 1.0, %v19600_v16 }
 0x69a   :  { %10589 = vperm.xlu0 %12415, %v9868_v20  }
 0x69b   :  { %v11242_v20 = vsel %vm11055_vm3, %v11241_v62, %v11237_v34  ;;  %v20015_v24 = vpop.eup %12664  ;;  %v11256_v34 = vrot.slane %v19895_v5, %v20004_v3 }
 0x69c   :  { %10619 = vperm.xlu1 %12414, %v9878_v6   ;;  %v11247_v21 = vsel %vm11062_vm8, %v11246_v55, %v11242_v20  ;;  %v10383_v49 = vpop.permute.xlu1 %10382  ;;  %v20022_v62 = vpop.eup %12666  ;;  %v9089_v6 = vadd.f32 1.0, %v23271_v19  ;;  %v9870_v55 = vmul.f32 %v9465_v14, %v23218_v22  ;;  %v11106_v22 = vadd.s32 4294967224, %v19942_v29 }
 0x69d   :  { %v20007_v2 = vpop.permute.xlu0 %10415  ;;  %v11251_v57 = vrot.slane %v10383_v49, %v19985_v41  ;;  %v9880_v14 = vmul.f32 %v9485_v7, %v23241_v18  ;;  %v20051_v18 = vsub.s32 %v11099_v39, %v23270_v58  ;;  %v9115_v19 = vadd.f32 1.0, %v19610_v47 }
 0x69e   :  { %10592 = vperm.xlu0 %12415, %v9869_v56   ;;  %v9467_v56 = vmul.f32 %v19908_v60, %v9103_v46  ;;  %v9487_v46 = vmul.f32 %v19960_v13, %v9113_v50  ;;  %v9439_v49 = vmul.f32 %v19828_v27, %v9089_v6  ;;  %v20057_v27 = vsub.s32 %v11106_v22, %v23270_v58 }
 0x69f   :  { %v11252_v20 = vsel %vm11069_vm2, %v11251_v57, %v11247_v21  ;;  %v11266_v21 = vrot.slane %v19918_v4, %v20029_v11  ;;  %v9489_v50 = vmul.f32 %v19952_v36, %v9114_v54  ;;  %v11276_v6 = vrot.slane %v19935_v59, %v20051_v18  ;;  %v23272_v59 = vld [vmem:[#allocation252_spill] sm:$0xff]  ;;  %v23273_v54 = vld [vmem:[#allocation154_spill] sm:$0xff] }
 0x6a0   :  { %10622 = vperm.xlu1 %12414, %v9879_v63   ;;  %v11257_v5 = vsel %vm11076_vm0, %v11256_v34, %v11252_v20  ;;  %v10389_v35 = vpop.permute.xlu1 %10388  ;;  %v9871_v57 = vmul.f32 %v9467_v56, %v23228_v52  ;;  %v11113_v34 = vadd.s32 4294967216, %v19942_v29  ;;  %v9881_v7 = vmul.f32 %v9487_v46, %v23248_v42 }
 0x6a1   :  { %v20032_v23 = vpop.permute.xlu0 %10421  ;;  %v11261_v60 = vrot.slane %v10389_v35, %v20011_v28  ;;  %v9105_v56 = vadd.f32 1.0, %v19550_v31  ;;  %v9499_v20 = vmul.f32 %v12663_v43, %v9119_v25  ;;  %v11127_v35 = vadd.s32 4294967200, %v19942_v29 }
 0x6a2   :  { %10595 = vperm.xlu0 %12415, %v9870_v55   ;;  %v9857_v55 = vmul.f32 %v9439_v49, %v23184_v15  ;;  %v9116_v22 = vadd.f32 1.0, %v23272_v59  ;;  %v20078_v31 = vsub.s32 %v11120_v40, %v23270_v58  ;;  %v9882_v43 = vmul.f32 %v9489_v50, %v23246_v44  ;;  %v23274_v40 = vld [vmem:[#allocation302_spill] sm:$0xff] }
 0x6a3   :  { %v11262_v63 = vsel %vm11083_vm13, %v11261_v60, %v11257_v5  ;;  %v20070_v5 = vsub.s32 %v11113_v34, %v23270_v58  ;;  %v9491_v60 = vmul.f32 %v19982_v17, %v9115_v19  ;;  %v9471_v49 = vmul.f32 %v19924_v51, %v9105_v56  ;;  %v23275_v19 = vld [vmem:[#allocation205_spill] sm:$0xff]  ;;  %v23277_v56 = vld [vmem:[#allocation78_spill] sm:$0xff] }
 0x6a4   :  { %10625 = vperm.xlu1 %12414, %v9880_v14   ;;  %v11267_v16 = vsel %vm11090_vm14, %v11266_v21, %v11262_v63  ;;  %v10395_v4 = vpop.permute.xlu1 %10394  ;;  %v11134_v14 = vadd.s32 4294967192, %v19942_v29  ;;  %v9091_v21 = vadd.f32 1.0, %v23273_v54  ;;  %v20091_v63 = vsub.s32 %v11127_v35, %v23270_v58  ;;  %v23279_v35 = vld [vmem:[#allocation26_spill] sm:$0xff]  ;;  %v23281_v54 = vld [vmem:[#allocation59_spill] sm:$0xff] }
 0x6a5   :  { %v20053_v13 = vpop.permute.xlu0 %10427  ;;  %v11271_v52 = vrot.slane %v10395_v4, %v20036_v37  ;;  %v11286_v46 = vrot.slane %v19955_v32, %v20070_v5  ;;  %v11141_v44 = vadd.s32 4294967184, %v19942_v29  ;;  %v11148_v51 = vadd.s32 4294967176, %v19942_v29 }
 0x6a6   :  { %10598 = vperm.xlu0 %12415, %v9871_v57   ;;  %v9887_v57 = vmul.f32 %v9499_v20, %v23263_v45  ;;  %v9883_v4 = vmul.f32 %v9491_v60, %v23255_v12  ;;  %v11296_v50 = vrot.slane %v19980_v1, %v20091_v63  ;;  %v9121_v20 = vadd.f32 1.0, %v23277_v56 }
 0x6a7   :  { %v11272_v39 = vsel %vm11097_vm6, %v11271_v52, %v11267_v16  ;;  %v9493_v16 = vmul.f32 %v19968_v61, %v9116_v22  ;;  %v9117_v52 = vadd.f32 1.0, %v23274_v40  ;;  %v20114_v12 = vsub.s32 %v11141_v44, %v23270_v58  ;;  %v23283_v44 = vld [vmem:[#allocation158_spill] sm:$0xff]  ;;  %v23287_v40 = vld [vmem:[#allocation159_spill] sm:$0xff] }
 0x6a8   :  { %10628 = vperm.xlu1 %12414, %v9881_v7   ;;  %v11277_v47 = vsel %vm11104_vm4, %v11276_v6, %v11272_v39  ;;  %v10401_v36 = vpop.permute.xlu1 %10400  ;;  %v20103_v7 = vsub.s32 %v11134_v14, %v23270_v58  ;;  %v9443_v6 = vmul.f32 %v23275_v19, %v9091_v21  ;;  %v23278_v39 = vld [vmem:[#allocation112_spill] sm:$0xff]  ;;  %v9122_v21 = vadd.f32 1.0, %v23281_v54 }
 0x6a9   :  { %v20073_v42 = vpop.permute.xlu0 %10433  ;;  %v11281_v15 = vrot.slane %v10401_v36, %v20057_v27  ;;  %v9884_v22 = vmul.f32 %v9493_v16, %v23251_v30  ;;  %v9495_v60 = vmul.f32 %v19997_v33, %v9117_v52  ;;  %v23280_v14 = vld [vmem:[#allocation108_spill] sm:$0xff]  ;;  %v9503_v30 = vmul.f32 %v20022_v62, %v9121_v20  ;;  %v23285_v16 = vld [vmem:[#allocation121_spill] sm:$0xff] }
 0x6aa   :  { %10556 = vperm.xlu0 %12415, %v9857_v55   ;;  %v23276_v55 = vld [vmem:[#allocation116_spill] sm:$0xff]  ;;  %v9505_v20 = vmul.f32 %v20015_v24, %v9122_v21  ;;  %v11316_v21 = vrot.slane %v20032_v23, %v19966_v10 }
 0x6ab   :  { %v11282_v25 = vsel %vm11111_vm1, %v11281_v15, %v11277_v47  ;;  %v9873_v61 = vmul.f32 %v9471_v49, %v23276_v55  ;;  %v8352_v47 = vadd.f32 %v23279_v35, %v23278_v39  ;;  %v20121_v15 = vsub.s32 %v11148_v51, %v23270_v58  ;;  %v23289_v19 = vld [vmem:[#allocation332_spill] sm:$0xff] }
 0x6ac   :  { %10631 = vperm.xlu1 %12414, %v9882_v43   ;;  %v11287_v34 = vsel %vm11118_vm11, %v11286_v46, %v11282_v25  ;;  %v10407_v32 = vpop.permute.xlu1 %10406  ;;  %v9118_v46 = vadd.f32 1.0, %v23280_v14  ;;  %v11306_v49 = vrot.slane %v20007_v2, %v20114_v12  ;;  %v11162_v58 = vrot.slane %v23283_v44, %v19974_v53  ;;  %v23286_v2 = vld [vmem:[#allocation345_spill] sm:$0xff] }
 0x6ad   :  { %v20094_v17 = vpop.permute.xlu0 %10439  ;;  %v11291_v45 = vrot.slane %v10407_v32, %v20078_v31  ;;  %v23284_v32 = vld [vmem:[#allocation330_spill] sm:$0xff]  ;;  %12668 = vrcp.f32 %v8352_v47  ;;  %v8355_v52 = vadd.f32 %v23287_v40, %v23286_v2  ;;  %v23290_v47 = vld [vmem:[#allocation84_spill] sm:$0xff]  ;;  %v23298_v2 = vld [vmem:[#allocation97_spill] sm:$0xff] }
 0x6ae   :  { %10646 = vperm.xlu0 %12415, %v9887_v57   ;;  %v23282_v57 = vld [vmem:[#allocation85_spill] sm:$0xff]  ;;  %v8339_v51 = vadd.f32 %v23285_v16, %v23284_v32  ;;  %v9497_v56 = vmul.f32 %v19991_v9, %v9118_v46  ;;  %v23293_v9 = vld [vmem:[#allocation336_spill] sm:$0xff]  ;;  %v9890_v32 = vmul.f32 %v9505_v20, %v23265_v0 }
 0x6af   :  { %v11292_v29 = vsel %vm21043_vm5, %v11291_v45, %v11287_v34  ;;  %v9859_v25 = vmul.f32 %v9443_v6, %v23282_v57  ;;  %v11158_v6 = vrot.slane %v23289_v19, %v19966_v10  ;;  %v11167_v24 = vrot.slane %v23293_v9, %v19977_v26  ;;  %v23294_v46 = vld [vmem:[#allocation276_spill] sm:$0xff] }
 0x6b0   :  { %10634 = vperm.xlu1 %12414, %v9883_v4   ;;  %v11297_v1 = vsel %vm21042_vm7, %v11296_v50, %v11292_v29  ;;  %v10413_v59 = vpop.permute.xlu1 %10412  ;;  %v23288_v50 = vld [vmem:[#allocation291_spill] sm:$0xff]  ;;  %v9889_v29 = vmul.f32 %v9503_v30, %v23267_v38  ;;  %12670 = vrcp.f32 %v8339_v51  ;;  %v23295_v57 = vld [vmem:[#allocation120_spill] sm:$0xff]  ;;  %v23296_v30 = vld [vmem:[#allocation225_spill] sm:$0xff] }
 0x6b1   :  { %v20116_v36 = vpop.permute.xlu0 %10445  ;;  %v11301_v43 = vrot.slane %v10413_v59, %v20103_v7  ;;  %v9104_v62 = vadd.f32 1.0, %v23288_v50  ;;  %v11163_v39 = vsel %vm11055_vm3, %v11162_v58, %v11158_v6  ;;  %12672 = vrcp.f32 %v8355_v52 }
 0x6b2   :  { %10604 = vperm.xlu0 %12415, %v9873_v61   ;;  %v9885_v61 = vmul.f32 %v9495_v60, %v23261_v8  ;;  %v23292_v8 = vld [vmem:[#allocation151_spill] sm:$0xff]  ;;  %v11049_v44 = vrot.slane %v23296_v30, %v19966_v10  ;;  %v11168_v58 = vsel %vm11062_vm8, %v11167_v24, %v11163_v39  ;;  %v11335_v24 = vrot.slane %v20073_v42, %v20004_v3 }
 0x6b3   :  { %v11302_v34 = vsel %vm11139_vm10, %v11301_v43, %v11297_v1  ;;  %v11172_v1 = vrot.slane %v23290_v47, %v19985_v41  ;;  %v11054_v60 = vrot.slane %v23292_v8, %v19974_v53  ;;  %v9469_v54 = vmul.f32 %v23294_v46, %v9104_v62  ;;  %v23299_v62 = vld [vmem:[#allocation79_spill] sm:$0xff] }
 0x6b4   :  { %10637 = vperm.xlu1 %12414, %v9884_v22   ;;  %v11307_v45 = vsel %vm11146_vm15, %v11306_v49, %v11302_v34  ;;  %v10419_v4 = vpop.permute.xlu1 %10418  ;;  %v23291_v22 = vld [vmem:[#allocation214_spill] sm:$0xff]  ;;  %v11325_v34 = vrot.slane %v20053_v13, %v19977_v26  ;;  %v11177_v19 = vrot.slane %v23299_v62, %v20004_v3  ;;  %v23304_v8 = vld [vmem:[#allocation91_spill] sm:$0xff] }
 0x6b5   :  { %v20136_v33 = vpop.permute.xlu0 %10451  ;;  %v11311_v55 = vrot.slane %v10419_v4, %v20121_v15  ;;  %v9090_v43 = vadd.f32 1.0, %v23291_v22  ;;  %v11173_v51 = vsel %vm11069_vm2, %v11172_v1, %v11168_v58  ;;  %v11056_v50 = vsel %vm11055_vm3, %v11054_v60, %v11049_v44  ;;  %v23303_v22 = vld [vmem:[#allocation100_spill] sm:$0xff]  ;;  %v23308_v58 = vld [vmem:[#allocation63_spill] sm:$0xff] }
 0x6b6   :  { %10562 = vperm.xlu0 %12415, %v9859_v25   ;;  %v9886_v25 = vmul.f32 %v9497_v56, %v23295_v57  ;;  %v23301_v56 = vld [vmem:[#allocation265_spill] sm:$0xff]  ;;  %v11068_v60 = vrot.slane %v23304_v8, %v19985_v41  ;;  %v11178_v9 = vsel %vm11076_vm0, %v11177_v19, %v11173_v51  ;;  %v23314_v8 = vld [vmem:[#allocation232_spill] sm:$0xff] }
 0x6b7   :  { %v20153_v59 = vsel %vm11153_vm12, %v11311_v55, %v11307_v45  ;;  %v23297_v45 = vld [vmem:[#allocation240_spill] sm:$0xff]  ;;  %v9441_v52 = vmul.f32 %v23298_v2, %v9090_v43  ;;  %v23300_v55 = vld [vmem:[#allocation213_spill] sm:$0xff]  ;;  %v9120_v20 = vadd.f32 1.0, %v23301_v56  ;;  %v12669_v1 = vpop.eup %12668  ;;  %v9872_v43 = vmul.f32 %v9469_v54, %v23303_v22  ;;  %v23307_v54 = vld [vmem:[#allocation62_spill] sm:$0xff] }
 0x6b8   :  { %10640 = vperm.xlu1 %12414, %v9885_v61   ;;  %v10425_v38 = vpop.permute.xlu1 %10424  ;;  %v11182_v23 = vrot.slane %v23297_v45, %v20011_v28  ;;  %v9106_v61 = vadd.f32 1.0, %v23300_v55  ;;  %v11075_v44 = vrot.slane %v23307_v54, %v20004_v3  ;;  %v23309_v45 = vld [vmem:[#allocation271_spill] sm:$0xff]  ;;  %v23310_v2 = vld [vmem:[#allocation81_spill] sm:$0xff]  ;;  %v11345_v56 = vrot.slane %v20094_v17, %v20029_v11 }
 0x6b9   :  { %v20160_v14 = vpop.permute.xlu0 %10457  ;;  %v11320_v49 = vrot.slane %v10425_v38, %v19974_v53 }
 0x6ba   :  { %10652 = vperm.xlu0 %12415, %v9889_v29   ;;  %v23302_v29 = vld [vmem:[#allocation87_spill] sm:$0xff]  ;;  %v11183_v46 = vsel %vm11083_vm13, %v11182_v23, %v11178_v9  ;;  %v9473_v23 = vmul.f32 %v23309_v45, %v9106_v61  ;;  %v12671_v62 = vpop.eup %12670  ;;  %v23312_v61 = vld [vmem:[#allocation32_spill] sm:$0xff]  ;;  %v23315_v9 = vld [vmem:[#allocation17_spill] sm:$0xff] }
 0x6bb   :  { %v11321_v4 = vsel %vm11055_vm3, %v11320_v49, %v11316_v21  ;;  %v11061_v39 = vrot.slane %v23302_v29, %v19977_v26  ;;  %v23305_v21 = vld [vmem:[#allocation142_spill] sm:$0xff]  ;;  %v12673_v29 = vpop.eup %12672 }
 0x6bc   :  { %10643 = vperm.xlu1 %12414, %v9886_v25   ;;  %v11326_v13 = vsel %vm11062_vm8, %v11325_v34, %v11321_v4  ;;  %v10431_v0 = vpop.permute.xlu1 %10430  ;;  %v11192_v49 = vrot.slane %v23305_v21, %v20036_v37  ;;  %v23306_v25 = vld [vmem:[#allocation67_spill] sm:$0xff]  ;;  %v11187_v34 = vrot.slane %v23308_v58, %v20029_v11  ;;  %v9501_v4 = vmul.f32 %v12669_v1, %v9120_v20  ;;  %v23316_v21 = vld [vmem:[#allocation297_spill] sm:$0xff] }
 0x6bd   :  { %v20181_v6 = vpop.permute.xlu0 %10463  ;;  %v11330_v47 = vrot.slane %v10431_v0, %v19985_v41  ;;  %v11063_v38 = vsel %vm11062_vm8, %v11061_v39, %v11056_v50  ;;  %v9858_v30 = vmul.f32 %v9441_v52, %v23306_v25  ;;  %v11082_v50 = vrot.slane %v23310_v2, %v20011_v28  ;;  %v23317_v25 = vld [vmem:[#allocation356_spill] sm:$0xff]  ;;  %v23318_v2 = vld [vmem:[#allocation98_spill] sm:$0xff] }
 0x6be   :  { %10655 = vperm.xlu0 %12415, %v9890_v32   ;;  %v11070_v19 = vsel %vm11069_vm2, %v11068_v60, %v11063_v38  ;;  %v11188_v55 = vsel %vm11090_vm14, %v11187_v34, %v11183_v46  ;;  %v11096_v20 = vrot.slane %v23312_v61, %v20036_v37  ;;  %v11103_v60 = vrot.slane %v23314_v8, %v20051_v18 }
 0x6bf   :  { %v11331_v57 = vsel %vm11069_vm2, %v11330_v47, %v11326_v13  ;;  %v23311_v13 = vld [vmem:[#allocation326_spill] sm:$0xff]  ;;  %v11193_v39 = vsel %vm11097_vm6, %v11192_v49, %v11188_v55  ;;  %v9107_v49 = vadd.f32 1.0, %v23316_v21  ;;  %v11110_v54 = vrot.slane %v23317_v25, %v20057_v27 }
 0x6c0   :  { %10601 = vperm.xlu1 %12414, %v9872_v43   ;;  %v11336_v42 = vsel %vm11076_vm0, %v11335_v24, %v11331_v57  ;;  %v10437_v51 = vpop.permute.xlu1 %10436  ;;  %v11089_v0 = vrot.slane %v23311_v13, %v20029_v11  ;;  %v23313_v47 = vld [vmem:[#allocation246_spill] sm:$0xff]  ;;  %v11077_v43 = vsel %vm11076_vm0, %v11075_v44, %v11070_v19  ;;  %v11197_v24 = vrot.slane %v23315_v9, %v20051_v18 }
 0x6c1   :  { %v20205_v32 = vpop.permute.xlu0 %10469  ;;  %v11340_v52 = vrot.slane %v10437_v51, %v20011_v28  ;;  %v11202_v1 = vrot.slane %v23313_v47, %v20057_v27  ;;  %v11084_v57 = vsel %vm11083_vm13, %v11082_v50, %v11077_v43  ;;  %v9888_v58 = vmul.f32 %v9501_v4, %v23279_v35  ;;  %v23319_v19 = vld [vmem:[#allocation94_spill] sm:$0xff]  ;;  %v23320_v4 = vld [vmem:[#allocation349_spill] sm:$0xff] }
 0x6c2   :  { %v11091_v34 = vsel %vm11090_vm14, %v11089_v0, %v11084_v57  ;;  %v11212_v50 = vrot.slane %v23318_v2, %v20078_v31  ;;  %v9874_v13 = vmul.f32 %v9473_v23, %v23319_v19  ;;  %v11207_v0 = vrot.slane %v23320_v4, %v20070_v5  ;;  %v23322_v23 = vld [vmem:[#allocation124_spill] sm:$0xff]  ;;  %v23323_v43 = vld [vmem:[#allocation37_spill] sm:$0xff]  ;;  %v23324_v21 = vld [vmem:[#allocation138_spill] sm:$0xff] }
 0x6c3   :  { %v11341_v22 = vsel %vm11083_vm13, %v11340_v52, %v11336_v42  ;;  %v11198_v42 = vsel %vm11104_vm4, %v11197_v24, %v11193_v39  ;;  %v11098_v51 = vsel %vm11097_vm6, %v11096_v20, %v11091_v34  ;;  %v9475_v61 = vmul.f32 %v12671_v62, %v9107_v49  ;;  %v23321_v39 = vld [vmem:[#allocation238_spill] sm:$0xff] }
 0x6c4   :  { %10559 = vperm.xlu1 %12414, %v9858_v30   ;;  %v11346_v38 = vsel %vm11090_vm14, %v11345_v56, %v11341_v22  ;;  %v10443_v46 = vpop.permute.xlu1 %10442  ;;  %v11355_v30 = vrot.slane %v20116_v36, %v20051_v18  ;;  %v11203_v45 = vsel %vm11111_vm1, %v11202_v1, %v11198_v42  ;;  %v11105_v35 = vsel %vm11104_vm4, %v11103_v60, %v11098_v51 }
 0x6c5   :  { %v20229_v17 = vpop.permute.xlu0 %10475  ;;  %v11350_v44 = vrot.slane %v10443_v46, %v20036_v37  ;;  %v11112_v20 = vsel %vm11111_vm1, %v11110_v54, %v11105_v35  ;;  %v11124_v47 = vrot.slane %v23321_v39, %v20078_v31  ;;  %v9123_v22 = vadd.f32 1.0, %v23322_v23  ;;  %v23328_v35 = vld [vmem:[#allocation352_spill] sm:$0xff] }
 0x6c6   :  { %v11117_v8 = vrot.slane %v23323_v43, %v20070_v5  ;;  %v11208_v60 = vsel %vm11118_vm11, %v11207_v0, %v11203_v45  ;;  %v11365_v9 = vrot.slane %v20136_v33, %v20070_v5  ;;  %v11222_v62 = vrot.slane %v19937_v48, %v20103_v7 }
 0x6c7   :  { %v11351_v52 = vsel %vm11097_vm6, %v11350_v44, %v11346_v38  ;;  %v11213_v24 = vsel %vm21043_vm5, %v11212_v50, %v11208_v60  ;;  %v11217_v49 = vrot.slane %v23324_v21, %v20091_v63  ;;  %v9875_v33 = vmul.f32 %v9475_v61, %v23285_v16  ;;  %v23327_v16 = vld [vmem:[#allocation234_spill] sm:$0xff] }
 0x6c8   :  { %10649 = vperm.xlu1 %12414, %v9888_v58   ;;  %v11356_v36 = vsel %vm11104_vm4, %v11355_v30, %v11351_v52  ;;  %v10449_v56 = vpop.permute.xlu1 %10448  ;;  %v11119_v46 = vsel %vm11118_vm11, %v11117_v8, %v11112_v20  ;;  %v23325_v58 = vld [vmem:[#allocation316_spill] sm:$0xff]  ;;  %v9507_v42 = vmul.f32 %v12673_v29, %v9123_v22  ;;  %v23326_v30 = vld [vmem:[#allocation126_spill] sm:$0xff]  ;;  %v11375_v2 = vrot.slane %v20160_v14, %v20091_v63  ;;  %v23329_v14 = vld [vmem:[#allocation75_spill] sm:$0xff] }
 0x6c9   :  { %v20251_v55 = vpop.permute.xlu0 %10481  ;;  %v11360_v1 = vrot.slane %v10449_v56, %v20057_v27  ;;  %v11126_v44 = vsel %vm21043_vm5, %v11124_v47, %v11119_v46  ;;  %v11138_v48 = vrot.slane %v23325_v58, %v20103_v7  ;;  %v11131_v51 = vrot.slane %v23326_v30, %v20091_v63  ;;  %v23330_v47 = vld [vmem:[#allocation132_spill] sm:$0xff] }
 0x6ca   :  { %v11218_v45 = vsel %vm21042_vm7, %v11217_v49, %v11213_v24  ;;  %v11232_v52 = vrot.slane %v23327_v16, %v20121_v15  ;;  %v11227_v29 = vrot.slane %v23328_v35, %v20114_v12  ;;  %v11152_v61 = vrot.slane %v23329_v14, %v20121_v15 }
 0x6cb   :  { %v11361_v38 = vsel %vm11111_vm1, %v11360_v1, %v11356_v36  ;;  %v11223_v50 = vsel %vm11139_vm10, %v11222_v62, %v11218_v45  ;;  %v9891_v39 = vmul.f32 %v9507_v42, %v23287_v40  ;;  %v11145_v1 = vrot.slane %v23330_v47, %v20114_v12 }
 0x6cc   :  { %10607 = vperm.xlu1 %12414, %v9874_v13   ;;  %v11366_v25 = vsel %vm11118_vm11, %v11365_v9, %v11361_v38  ;;  %v10455_v54 = vpop.permute.xlu1 %10454  ;;  %v11133_v13 = vsel %vm21042_vm7, %v11131_v51, %v11126_v44  ;;  %v11228_v23 = vsel %vm11146_vm15, %v11227_v29, %v11223_v50  ;;  %v11385_v22 = vrot.slane %v20181_v6, %v20114_v12 }
 0x6cd   :  { %v20271_v57 = vpop.permute.xlu0 %10487  ;;  %v11370_v34 = vrot.slane %v10455_v54, %v20078_v31  ;;  %v11140_v56 = vsel %vm11139_vm10, %v11138_v48, %v11133_v13  ;;  %v11233_v43 = vsel %vm11153_vm12, %v11232_v52, %v11228_v23  ;;  %v11404_v58 = vrot.slane %v20229_v17, %v19977_v26 }
 0x6ce   :  { %v11147_v60 = vsel %vm11146_vm15, %v11145_v1, %v11140_v56  ;;  %v11414_v45 = vrot.slane %v20251_v55, %v20004_v3  ;;  %v11424_v52 = vrot.slane %v20271_v57, %v20029_v11 }
 0x6cf   :  { %v11371_v19 = vsel %vm21043_vm5, %v11370_v34, %v11366_v25  ;;  %v11154_v62 = vsel %vm11153_vm12, %v11152_v61, %v11147_v60  ;;  %vm12344_vm5 = vcmask 1043459  }
 0x6d0   :  { %10610 = vperm.xlu1 %12414, %v9875_v33   ;;  %v11376_v0 = vsel %vm21042_vm7, %v11375_v2, %v11371_v19  ;;  %v10461_v36 = vpop.permute.xlu1 %10460  ;;  %vm12342_vm7 = vcmask 1042434   ;;  %v12341_v46 = vsel %vm12340_vm9, %v11233_v43, %v11154_v62  ;;  %v11395_v33 = vrot.slane %v20205_v32, %v19966_v10 }
 0x6d1   :  { %v10494_v4 = vpop.permute.xlu0 %10493  ;;  %v11380_v20 = vrot.slane %v10461_v36, %v20103_v7  ;;  %v12343_v6 = vsel %vm12342_vm7, %v20153_v59, %v12341_v46  ;;  %v12680_v59 = vld [vmem:[#allocation5] sm:$0xff]  ;;  %vm23332_vm7 = vcmask 851712   ;;  %vm12346_vm9 = vcmask 1044484  }
 0x6d2   :  { %v11434_v55 = vrot.slane %v10494_v4, %v20051_v18 }
 0x6d3   :  { %v11381_v8 = vsel %vm11139_vm10, %v11380_v20, %v11376_v0 }
 0x6d4   :  { %10658 = vperm.xlu1 %12414, %v9891_v39   ;;  %v11386_v40 = vsel %vm11146_vm15, %v11385_v22, %v11381_v8  ;;  %v10467_v24 = vpop.permute.xlu1 %10466 }
 0x6d5   :  { %v10500_v9 = vpop.permute.xlu0 %10499  ;;  %v11390_v38 = vrot.slane %v10467_v24, %v20121_v15 }
 0x6d6   :  { %v11444_v57 = vrot.slane %v10500_v9, %v20070_v5 }
 0x6d7   :  { %v11391_v21 = vsel %vm11153_vm12, %v11390_v38, %v11386_v40 }
 0x6d8   :  { %v12345_v49 = vsel %vm12344_vm5, %v11391_v21, %v12343_v6  ;;  %v10473_v54 = vpop.permute.xlu1 %10472  ;;  %vm23331_vm5 = vcmask 786112  }
 0x6d9   :  { %v10506_v25 = vpop.permute.xlu0 %10505  ;;  %v11399_v44 = vrot.slane %v10473_v54, %v19974_v53 }
 0x6da   :  { %v11454_v4 = vrot.slane %v10506_v25, %v20091_v63 }
 0x6db   :  { %v11400_v48 = vsel %vm11055_vm3, %v11399_v44, %v11395_v33 }
 0x6dc   :  { %v11405_v42 = vsel %vm11062_vm8, %v11404_v58, %v11400_v48  ;;  %v10479_v30 = vpop.permute.xlu1 %10478 }
 0x6dd   :  { %v10512_v34 = vpop.permute.xlu0 %10511  ;;  %12367 = vadd.xlane.f32.xlu0 %v12680_v59  ;;  %v11409_v51 = vrot.slane %v10479_v30, %v19985_v41 }
 0x6de   :  { %v11464_v9 = vrot.slane %v10512_v34, %v20114_v12 }
 0x6df   :  { %v11410_v32 = vsel %vm11069_vm2, %v11409_v51, %v11405_v42 }
 0x6e0   :  { %v11415_v50 = vsel %vm11076_vm0, %v11414_v45, %v11410_v32  ;;  %v10485_v16 = vpop.permute.xlu1 %10484 }
 0x6e1   :  { %v10518_v2 = vpop.permute.xlu0 %10517  ;;  %v11419_v17 = vrot.slane %v10485_v16, %v20011_v28 }
 0x6e2   :  { %v11474_v58 = vrot.slane %v10518_v2, %v19966_v10 }
 0x6e3   :  { %v11420_v19 = vsel %vm11083_vm13, %v11419_v17, %v11415_v50 }
 0x6e4   :  { %v11425_v35 = vsel %vm11090_vm14, %v11424_v52, %v11420_v19  ;;  %v10491_v29 = vpop.permute.xlu1 %10490 }
 0x6e5   :  { %v10524_v13 = vpop.permute.xlu0 %10523  ;;  %v11429_v0 = vrot.slane %v10491_v29, %v20036_v37 }
 0x6e6   :  { %v11483_v34 = vrot.slane %v10524_v13, %v19977_v26 }
 0x6e7   :  { %v11430_v36 = vsel %vm11097_vm6, %v11429_v0, %v11425_v35 }
 0x6e8   :  { %v11435_v14 = vsel %vm11104_vm4, %v11434_v55, %v11430_v36  ;;  %v10497_v61 = vpop.permute.xlu1 %10496 }
 0x6e9   :  { %v10530_v56 = vpop.permute.xlu0 %10529  ;;  %v11439_v20 = vrot.slane %v10497_v61, %v20057_v27 }
 0x6ea   :  { %v11493_v32 = vrot.slane %v10530_v56, %v20004_v3 }
 0x6eb   :  { %v11440_v39 = vsel %vm11111_vm1, %v11439_v20, %v11435_v14 }
 0x6ec   :  { %v11445_v1 = vsel %vm11118_vm11, %v11444_v57, %v11440_v39  ;;  %v10503_v23 = vpop.permute.xlu1 %10502 }
 0x6ed   :  { %v10536_v47 = vpop.permute.xlu0 %10535  ;;  %v11449_v22 = vrot.slane %v10503_v23, %v20078_v31 }
 0x6ee   :  { %v11503_v52 = vrot.slane %v10536_v47, %v20029_v11 }
 0x6ef   :  { %v11450_v43 = vsel %vm23331_vm5, %v11449_v22, %v11445_v1 }
 0x6f0   :  { %v11455_v60 = vsel %vm23332_vm7, %v11454_v4, %v11450_v43  ;;  %v10509_v40 = vpop.permute.xlu1 %10508 }
 0x6f1   :  { %v10542_v8 = vpop.permute.xlu0 %10541  ;;  %v11459_v24 = vrot.slane %v10509_v40, %v20103_v7 }
 0x6f2   :  { %v11513_v55 = vrot.slane %v10542_v8, %v20051_v18 }
 0x6f3   :  { %v11460_v62 = vsel %vm11139_vm10, %v11459_v24, %v11455_v60 }
 0x6f4   :  { %v11465_v46 = vsel %vm11146_vm15, %v11464_v9, %v11460_v62  ;;  %v10515_v6 = vpop.permute.xlu1 %10514 }
 0x6f5   :  { %v10548_v38 = vpop.permute.xlu0 %10547  ;;  %v11469_v21 = vrot.slane %v10515_v6, %v20121_v15 }
 0x6f6   :  { %v11523_v57 = vrot.slane %v10548_v38, %v20070_v5 }
 0x6f7   :  { %v11470_v25 = vsel %vm11153_vm12, %v11469_v21, %v11465_v46 }
 0x6f8   :  { %v20345_v54 = vsel %vm12346_vm9, %v11470_v25, %v12345_v49  ;;  %v10521_v44 = vpop.permute.xlu1 %10520  ;;  %vm12348_vm9 = vcmask 1045509  }
 0x6f9   :  { %v10554_v33 = vpop.permute.xlu0 %10553  ;;  %v11478_v48 = vrot.slane %v10521_v44, %v19974_v53 }
 0x6fa   :  { %v11533_v4 = vrot.slane %v10554_v33, %v20091_v63 }
 0x6fb   :  { %v11479_v42 = vsel %vm11055_vm3, %v11478_v48, %v11474_v58 }
 0x6fc   :  { %v11484_v59 = vsel %vm11062_vm8, %v11483_v34, %v11479_v42  ;;  %v10527_v51 = vpop.permute.xlu1 %10526 }
 0x6fd   :  { %v10569_v30 = vpop.permute.xlu0 %10568  ;;  %v11488_v45 = vrot.slane %v10527_v51, %v19985_v41 }
 0x6ff   :  { %v11489_v49 = vsel %vm11069_vm2, %v11488_v45, %v11484_v59  ;;  %v11557_v45 = vrot.slane %v10569_v30, %v19974_v53 }
 0x700   :  { %v11494_v2 = vsel %vm11076_vm0, %v11493_v32, %v11489_v49  ;;  %v10533_v16 = vpop.permute.xlu1 %10532 }
 0x701   :  { %v20355_v50 = vpop.permute.xlu0 %10613  ;;  %v11498_v17 = vrot.slane %v10533_v16, %v20011_v28 }
 0x703   :  { %v11499_v19 = vsel %vm11083_vm13, %v11498_v17, %v11494_v2 }
 0x704   :  { %v11504_v35 = vsel %vm11090_vm14, %v11503_v52, %v11499_v19  ;;  %v10539_v29 = vpop.permute.xlu1 %10538 }
 0x705   :  { %v10575_v13 = vpop.permute.xlu0 %10574  ;;  %v11508_v0 = vrot.slane %v10539_v29, %v20036_v37 }
 0x706   :  { %v11567_v16 = vrot.slane %v10575_v13, %v19985_v41 }
 0x707   :  { %v11509_v36 = vsel %vm11097_vm6, %v11508_v0, %v11504_v35 }
 0x708   :  { %v11514_v14 = vsel %vm11104_vm4, %v11513_v55, %v11509_v36  ;;  %v10545_v61 = vpop.permute.xlu1 %10544 }
 0x709   :  { %v10578_v56 = vpop.permute.xlu0 %10577  ;;  %v11518_v20 = vrot.slane %v10545_v61, %v20057_v27 }
 0x70a   :  { %v11572_v35 = vrot.slane %v10578_v56, %v20004_v3 }
 0x70b   :  { %v11519_v39 = vsel %vm11111_vm1, %v11518_v20, %v11514_v14 }
 0x70c   :  { %v11524_v1 = vsel %vm11118_vm11, %v11523_v57, %v11519_v39  ;;  %v10551_v23 = vpop.permute.xlu1 %10550  ;;  %v11632_v57 = vrot.slane %v20355_v50, %v19966_v10 }
 0x70d   :  { %v10581_v47 = vpop.permute.xlu0 %10580  ;;  %v11528_v22 = vrot.slane %v10551_v23, %v20078_v31 }
 0x70e   :  { %v11577_v55 = vrot.slane %v10581_v47, %v20011_v28 }
 0x70f   :  { %v11529_v43 = vsel %vm23331_vm5, %v11528_v22, %v11524_v1 }
 0x710   :  { %v10566_v60 = vpop.permute.xlu1 %10565  ;;  %v11534_v40 = vsel %vm23332_vm7, %v11533_v4, %v11529_v43 }
 0x711   :  { %v10584_v8 = vpop.permute.xlu0 %10583  ;;  %v11553_v42 = vrot.slane %v10566_v60, %v19966_v10 }
 0x712   :  { %v11582_v61 = vrot.slane %v10584_v8, %v20029_v11 }
 0x713   :  { %v11558_v49 = vsel %vm11055_vm3, %v11557_v45, %v11553_v42 }
 0x714   :  { %v10572_v9 = vpop.permute.xlu1 %10571 }
 0x715   :  { %v10587_v24 = vpop.permute.xlu0 %10586  ;;  %v11562_v51 = vrot.slane %v10572_v9, %v19977_v26 }
 0x716   :  { %v11587_v23 = vrot.slane %v10587_v24, %v20036_v37 }
 0x717   :  { %v11563_v2 = vsel %vm11062_vm8, %v11562_v51, %v11558_v49 }
 0x718   :  { %v10617_v62 = vpop.permute.xlu1 %10616  ;;  %v11568_v19 = vsel %vm11069_vm2, %v11567_v16, %v11563_v2 }
 0x719   :  { %v20374_v38 = vpop.permute.xlu0 %10589  ;;  %v11573_v29 = vsel %vm11076_vm0, %v11572_v35, %v11568_v19  ;;  %v11636_v14 = vrot.slane %v10617_v62, %v19974_v53 }
 0x71a   :  { %v11578_v30 = vsel %vm11083_vm13, %v11577_v55, %v11573_v29 }
 0x71b   :  { %v11583_v39 = vsel %vm11090_vm14, %v11582_v61, %v11578_v30  ;;  %v11637_v53 = vsel %vm11055_vm3, %v11636_v14, %v11632_v57  ;;  %vm23333_vm3 = vmmov %vm23331_vm5 }
 0x71c   :  { %v10620_v46 = vpop.permute.xlu1 %10619 }
 0x71d   :  { %v20376_v6 = vpop.permute.xlu0 %10592  ;;  %v11641_v13 = vrot.slane %v10620_v46, %v19977_v26 }
 0x71f   :  { %v11642_v26 = vsel %vm11062_vm8, %v11641_v13, %v11637_v53  ;;  %vm23334_vm8 = vmmov %vm23332_vm7 }
 0x720   :  { %v10623_v21 = vpop.permute.xlu1 %10622 }
 0x721   :  { %v20378_v44 = vpop.permute.xlu0 %10595  ;;  %v11646_v56 = vrot.slane %v10623_v21, %v19985_v41  ;;  %v11588_v41 = vsel %vm11097_vm6, %v11587_v23, %v11583_v39 }
 0x723   :  { %v11647_v50 = vsel %vm11069_vm2, %v11646_v56, %v11642_v26  ;;  %vm23335_vm2 = vmmov %vm23333_vm3 }
 0x724   :  { %v10626_v25 = vpop.permute.xlu1 %10625 }
 0x725   :  { %v20380_v33 = vpop.permute.xlu0 %10598  ;;  %v11651_v47 = vrot.slane %v10626_v25, %v20004_v3 }
 0x727   :  { %v11652_v60 = vsel %vm11076_vm0, %v11651_v47, %v11647_v50  ;;  %vm23336_vm0 = vmmov %vm23332_vm7 }
 0x728   :  { %v10629_v58 = vpop.permute.xlu1 %10628 }
 0x729   :  { %v10557_v59 = vpop.permute.xlu0 %10556  ;;  %v11656_v22 = vrot.slane %v10629_v58, %v20011_v28 }
 0x72a   :  { %v11538_v1 = vrot.slane %v10557_v59, %v20103_v7 }
 0x72b   :  { %v11657_v62 = vsel %vm11083_vm13, %v11656_v22, %v11652_v60  ;;  %vm12350_vm13 = vcmask 1046534  }
 0x72c   :  { %v10632_v48 = vpop.permute.xlu1 %10631  ;;  %v11539_v24 = vsel %vm11139_vm10, %v11538_v1, %v11534_v40 }
 0x72d   :  { %v10647_v17 = vpop.permute.xlu0 %10646  ;;  %v11661_v43 = vrot.slane %v10632_v48, %v20029_v11  ;;  %v11592_v11 = vrot.slane %v20374_v38, %v20051_v18 }
 0x72f   :  { %v11662_v25 = vsel %vm11090_vm14, %v11661_v43, %v11657_v62  ;;  %vm12352_vm14 = vcmask 1047559  }
 0x730   :  { %v10635_v34 = vpop.permute.xlu1 %10634 }
 0x731   :  { %v20392_v36 = vpop.permute.xlu0 %10604  ;;  %v11666_v3 = vrot.slane %v10635_v34, %v20036_v37  ;;  %v11597_v37 = vrot.slane %v20376_v6, %v20057_v27  ;;  %v11593_v34 = vsel %vm11104_vm4, %v11592_v11, %v11588_v41 }
 0x732   :  { %v11617_v35 = vrot.slane %v20392_v36, %v20103_v7 }
 0x733   :  { %v11667_v38 = vsel %vm11097_vm6, %v11666_v3, %v11662_v25 }
 0x734   :  { %v10638_v32 = vpop.permute.xlu1 %10637 }
 0x735   :  { %v10563_v4 = vpop.permute.xlu0 %10562  ;;  %v11671_v9 = vrot.slane %v10638_v32, %v20051_v18  ;;  %v11602_v18 = vrot.slane %v20378_v44, %v20070_v5  ;;  %v11598_v32 = vsel %vm11111_vm1, %v11597_v37, %v11593_v34 }
 0x736   :  { %v11548_v28 = vrot.slane %v10563_v4, %v20121_v15 }
 0x737   :  { %v11672_v6 = vsel %vm11104_vm4, %v11671_v9, %v11667_v38  ;;  %v11603_v2 = vsel %vm11118_vm11, %v11602_v18, %v11598_v32 }
 0x738   :  { %v10641_v52 = vpop.permute.xlu1 %10640 }
 0x739   :  { %v11676_v46 = vrot.slane %v10641_v52, %v20057_v27  ;;  %v11607_v27 = vrot.slane %v20380_v33, %v20078_v31  ;;  %v10653_v59 = vpop.permute.xlu0 %10652 }
 0x73b   :  { %v11677_v51 = vsel %vm11111_vm1, %v11676_v46, %v11672_v6  ;;  %v11608_v33 = vsel %vm23333_vm3, %v11607_v27, %v11603_v2 }
 0x73c   :  { %v10644_v0 = vpop.permute.xlu1 %10643 }
 0x73d   :  { %v11681_v40 = vrot.slane %v10644_v0, %v20070_v5  ;;  %v10656_v55 = vpop.permute.xlu0 %10655 }
 0x73e   :  { %v11701_v61 = vrot.slane %v10656_v55, %v20114_v12 }
 0x73f   :  { %v11682_v49 = vsel %vm11118_vm11, %v11681_v40, %v11677_v51 }
 0x740   :  { %v10602_v20 = vpop.permute.xlu1 %10601 }
 0x741   :  { %v11612_v45 = vrot.slane %v10602_v20, %v20091_v63 }
 0x743   :  { %v11613_v16 = vsel %vm23334_vm8, %v11612_v45, %v11608_v33 }
 0x744   :  { %v10560_v10 = vpop.permute.xlu1 %10559 }
 0x745   :  { %v11543_v8 = vrot.slane %v10560_v10, %v20114_v12 }
 0x747   :  { %v11544_v21 = vsel %vm11146_vm15, %v11543_v8, %v11539_v24 }
 0x748   :  { %v11549_v58 = vsel %vm11153_vm12, %v11548_v28, %v11544_v21  ;;  %v10650_v48 = vpop.permute.xlu1 %10649 }
 0x749   :  { %v12349_v42 = vsel %vm12348_vm9, %v11549_v58, %v20345_v54  ;;  %v11691_v5 = vrot.slane %v10650_v48, %v20091_v63  ;;  %v11686_v54 = vrot.slane %v10647_v17, %v20078_v31  ;;  %v11696_v63 = vrot.slane %v10653_v59, %v20103_v7 }
 0x74a   :  { %v11618_v31 = vsel %vm11139_vm10, %v11617_v35, %v11613_v16 }
 0x74b   :  { %v11687_v52 = vsel %vm23335_vm2, %v11686_v54, %v11682_v49 }
 0x74c   :  { %v10608_v44 = vpop.permute.xlu1 %10607  ;;  %v11692_v29 = vsel %vm23336_vm0, %v11691_v5, %v11687_v52 }
 0x74d   :  { %v11622_v19 = vrot.slane %v10608_v44, %v20114_v12  ;;  %v11697_v17 = vsel %vm11139_vm10, %v11696_v63, %v11692_v29 }
 0x74e   :  { %v11702_v7 = vsel %vm11146_vm15, %v11701_v61, %v11697_v17 }
 0x74f   :  { %v11623_v14 = vsel %vm11146_vm15, %v11622_v19, %v11618_v31 }
 0x750   :  { %v10611_v0 = vpop.permute.xlu1 %10610 }
 0x751   :  { %v11627_v30 = vrot.slane %v10611_v0, %v20121_v15 }
 0x753   :  { %v11628_v13 = vsel %vm11153_vm12, %v11627_v30, %v11623_v14 }
 0x754   :  { %v10659_v20 = vpop.permute.xlu1 %10658  ;;  %v12351_v56 = vsel %vm12350_vm13, %v11628_v13, %v12349_v42 }
 0x755   :  { %v11706_v36 = vrot.slane %v10659_v20, %v20121_v15 }
 0x757   :  { %v11707_v57 = vsel %vm11153_vm12, %v11706_v36, %v11702_v7 }
 0x758   :  { %v12353_v39 = vsel %vm12352_vm14, %v11707_v57, %v12351_v56 }
 0x759   :  { %12363 = vadd.xlane.f32.xlu1 %v12353_v39 }
 0x76a   :  { %v12368_v47 = vpop.xlane.xlu0 %12367 }
 0x76b   :  { %12674 = vrcp.f32 %v12368_v47 }
 0x775   :  { %v12675_v1 = vpop.eup %12674 }
 0x7e6   :  { %v12364_v12 = vpop.xlane.xlu1 %12363 }
 0x7e7   :  { %v12381_v23 = vmul.f32 %v12675_v1, %v12364_v12 }
 0x7e9   :  { %12386 = vst [vmem:[#allocation7] sm:$0xff] %v12381_v23 }
 0x7ea   :  { %12736 = shalt.err (!%p12733_p6)
}
 0x7eb   :  { %s12737_s10 = scalar_lea.hbm %s20477_s2, 256 }
 0x7ec   :  { %p12738_p7 = scmp.ne.s32.totalorder %s20477_s2, %s12737_s10  ;;  %p12741_p8 = scmp.lt.u32.totalorder %s12737_s10, %s20477_s2 }
 0x7ee   :  { %p12743_p9 = pnand %p12741_p8, %p12738_p7 }
 0x7f0   :  { %12746 = shalt.err (!%p12743_p9)
}
 0x7f1   :  { %12399 = dma.vmem_to_hbm [thread:$0]  %s12394_s6, 256, %s20477_s2, [#allocation4], %s12754_s19, %s12754_s19, %s12755_s20  }
 0x7f2   :  { %12751 = dma.done.wait [#allocation4], 256  }
 0x7f3   :  { %12752 = vsyncadd [#allocation4], 4294967040 }
 0x7f4   :  { %12403 = vsyncpa [#allocation3], 1 }
 0x7f5   :  { %12404 = vsyncpa [#allocation6], 1 }
 0x7f6   :  { %12405 = vsyncpa [#allocation4], 1 }

</bundles_post_ra>
